<compile_context>
chip_gen: v5e
topology: v5e:2x2
jax: 0.10.0
libtpu: 0.0.40
codegen_flags: <defaults>
</compile_context>

<pallas_src>
import functools
import math

import jax
import jax.numpy as jnp
from jax.experimental import pallas as pl
from jax.experimental.pallas import tpu as pltpu

NEG_SLOPE = 0.3                      # LeakyReLU negative slope used everywhere
_VMEM_BUDGET = 12 * 1024 * 1024      # per-layer tile budget, safe for v5e's 16MiB scoped default
_VMEM_LIMIT = 32 * 1024 * 1024       # explicit scoped-VMEM limit (<= physical on all gens)


# ---------------------------------------------------------------------------
# Pallas kernels
# ---------------------------------------------------------------------------
def _conv_act_pool_kernel(p_ref, w_ref, b_ref, o_ref):
    """Fused Conv3d(k=3,pad=1) as matmul + MaxPool3d(2) + bias + LeakyReLU.

    p_ref: (8, tm, K) bf16  im2col patches, leading dim = 2x2x2 pooling offsets
    w_ref: (K, Cout)  bf16  conv weight reshaped to (kd*kh*kw*Cin, Cout)
    b_ref: (1, Cout)  f32   conv bias
    o_ref: (tm, Cout) f32   pooled output rows

    Bias + LeakyReLU are applied ONCE after the pooling max; this is exactly
    equivalent to maxpool(leaky(conv+bias)) because LeakyReLU(0.3) is strictly
    monotonic and the bias is constant across the pooling window.
    """
    w = w_ref[...]
    acc = jnp.dot(p_ref[0], w, preferred_element_type=jnp.float32)
    for p in range(1, 8):            # static unroll over the 2x2x2 pooling window
        acc = jnp.maximum(acc, jnp.dot(p_ref[p], w,
                                       preferred_element_type=jnp.float32))
    y = acc + b_ref[...]
    o_ref[...] = jnp.where(y > 0, y, NEG_SLOPE * y)


def _dense_head_kernel(x_ref, w1_ref, b1_ref, m1_ref, w2_ref, b2_ref, m2_ref,
                       w3_ref, b3_ref, o_ref, h1_ref):
    """dense1 -> LReLU -> dropout -> dense2 -> LReLU -> dropout -> out -> tanh*1.2

    Grid axis = tiles of the dense1 reduction dim F ("arbitrary").
    h1_ref: (B, 128) f32 output used as the dense1 pre-activation accumulator
            (output-resident across the grid; discarded by the wrapper).
    m1_ref/m2_ref: pre-scaled dropout keep masks (0 or 1/(1-p)), f32.
    """
    k = pl.program_id(0)

    @pl.when(k == 0)
    def _init():
        h1_ref[...] = jnp.zeros_like(h1_ref)

    h1_ref[...] += jnp.dot(x_ref[...], w1_ref[...],
                           preferred_element_type=jnp.float32)

    @pl.when(k == pl.num_programs(0) - 1)
    def _finalize():
        def leaky(v):
            return jnp.where(v > 0, v, NEG_SLOPE * v)

        h = leaky(h1_ref[...] + b1_ref[...]) * m1_ref[...]
        h = leaky(jnp.dot(h, w2_ref[...], preferred_element_type=jnp.float32)
                  + b2_ref[...]) * m2_ref[...]
        h = jnp.dot(h, w3_ref[...], preferred_element_type=jnp.float32) + b3_ref[...]
        o_ref[...] = jnp.tanh(h) * 1.2


# ---------------------------------------------------------------------------
# Tile pickers (VMEM-budget aware, keep grid >= 2 for megacore / pipelining)
# ---------------------------------------------------------------------------
def _pick_conv_tile(m, k, cout, budget=_VMEM_BUDGET):
    per_row = 2 * (8 * k * 2) + 2 * cout * 4     # double-buffered bf16 patches + f32 out
    fixed = k * cout * 2 + cout * 4              # weights + bias (single-buffered approx)
    t_cap = max(8, (budget - fixed) // max(per_row, 1))
    t = min(m, (t_cap // 8) * 8, 4096)
    t = max(t, 8)
    while t >= 8:
        if m % t == 0 and (m // t >= 2 or m <= 8):
            return t
        t -= 8
    return m  # fallback: full-extent block (always a legal block shape)


def _pick_dense_tile(f, target=2048):
    if f % 128 != 0:
        return f
    best = None
    t = 128
    while t <= min(target, f):
        if f % t == 0:
            if f // t >= 2:
                best = t            # largest lane-dense tile that keeps >= 2 grid steps
            elif best is None:
                best = t
        t += 128
    return best if best is not None else f


# ---------------------------------------------------------------------------
# Conv3DActMP block wrapper
# ---------------------------------------------------------------------------
def conv3x3x3_act_maxpool(x, w, b):
    """x: (B, D, H, W, Cin) f32 channels-last.
       w: (Cout, Cin, 3, 3, 3) (PyTorch Conv3d layout), b: (Cout,)."""
    B, D, H, W, Cin = x.shape
    assert w.shape[2:] == (3, 3, 3), "kernel_size=3 only"
    assert D % 2 == 0 and H % 2 == 0 and W % 2 == 0, "MaxPool3d(2) needs even spatial dims"
    Cout = w.shape[0]
    K = 27 * Cin
    Do, Ho, Wo = D // 2, H // 2, W // 2
    M = B * Do * Ho * Wo

    # padding=1, bf16 for the (dominant) patch traffic; accumulation stays f32.
    xp = jnp.pad(x, ((0, 0), (1, 1), (1, 1), (1, 1), (0, 0))).astype(jnp.bfloat16)

    def tap_slice(sd, sh, sw):
        # stride-2 window over the padded volume -> (B, Do, Ho, Wo, Cin)
        return jax.lax.slice(
            xp,
            (0, sd, sh, sw, 0),
            (B, sd + 2 * Do - 1, sh + 2 * Ho - 1, sw + 2 * Wo - 1, Cin),
            (1, 2, 2, 2, 1))

    # Build patches directly per pooling offset (no 8*M*K transpose copy).
    taps = [(kd, kh, kw) for kd in range(3) for kh in range(3) for kw in range(3)]
    slabs = []
    for pd in range(2):
        for ph in range(2):
            for pw in range(2):
                pieces = [tap_slice(pd + kd, ph + kh, pw + kw) for (kd, kh, kw) in taps]
                slab = jnp.stack(pieces, axis=4)            # (B,Do,Ho,Wo,27,Cin)
                slabs.append(slab.reshape(M, K))            # row-major, free reshape
    P8 = jnp.stack(slabs, axis=0)                           # (8, M, K) bf16

    W2 = jnp.transpose(w, (2, 3, 4, 1, 0)).reshape(K, Cout).astype(jnp.bfloat16)
    b2 = b.reshape(1, Cout).astype(jnp.float32)

    tm = _pick_conv_tile(M, K, Cout)
    grid = (M // tm,)

    flops = 2 * 8 * M * K * Cout
    bytes_accessed = P8.size * 2 + W2.size * 2 + b2.size * 4 + M * Cout * 4

    out = pl.pallas_call(
        _conv_act_pool_kernel,
        out_shape=jax.ShapeDtypeStruct((M, Cout), jnp.float32),
        grid_spec=pltpu.PrefetchScalarGridSpec(
            num_scalar_prefetch=0,
            grid=grid,
            in_specs=[
                pl.BlockSpec((8, tm, K), lambda i: (0, i, 0)),
                pl.BlockSpec((K, Cout), lambda i: (0, 0)),
                pl.BlockSpec((1, Cout), lambda i: (0, 0)),
            ],
            out_specs=pl.BlockSpec((tm, Cout), lambda i: (i, 0)),
        ),
        compiler_params=pltpu.CompilerParams(
            dimension_semantics=("parallel",),
            vmem_limit_bytes=_VMEM_LIMIT),
        cost_estimate=pl.CostEstimate(flops=flops, transcendentals=0,
                                      bytes_accessed=bytes_accessed),
    )(P8, W2, b2)
    return out.reshape(B, Do, Ho, Wo, Cout)


# ---------------------------------------------------------------------------
# Dense head wrapper
# ---------------------------------------------------------------------------
def dense_head(x, dense_params, *, dropout_rate, training, rng):
    """x: (B, F) flattened channels-last features."""
    B, F = x.shape
    (w1, b1), (w2, b2), (w3, b3) = dense_params
    h1n, h2n, h3n = w1.shape[0], w2.shape[0], w3.shape[0]   # 128, 64, 4

    w1t = w1.T.astype(jnp.bfloat16)     # (F, 128) -- the only large operand
    w2t = w2.T.astype(jnp.float32)      # (128, 64)
    w3t = w3.T.astype(jnp.float32)      # (64, 4)
    xb = x.astype(jnp.bfloat16)

    if dropout_rate is not None and training:
        # TODO(synk): RNG stream differs from torch.nn.Dropout; the Bernoulli
        # keep + 1/(1-p) scaling semantics are identical. (On-chip pltpu PRNG
        # was dropped: prng_seed has no CPU/interpret lowering.)
        keep = 1.0 - float(dropout_rate)
        k1, k2 = jax.random.split(rng)
        m1 = jnp.where(jax.random.bernoulli(k1, keep, (B, h1n)),
                       1.0 / keep, 0.0).astype(jnp.float32)
        m2 = jnp.where(jax.random.bernoulli(k2, keep, (B, h2n)),
                       1.0 / keep, 0.0).astype(jnp.float32)
    else:
        m1 = jnp.ones((B, h1n), jnp.float32)
        m2 = jnp.ones((B, h2n), jnp.float32)

    tf = _pick_dense_tile(F)
    grid = (F // tf,)

    out, _ = pl.pallas_call(
        _dense_head_kernel,
        out_shape=(jax.ShapeDtypeStruct((B, h3n), jnp.float32),
                   jax.ShapeDtypeStruct((B, h1n), jnp.float32)),  # accumulator (discarded)
        grid_spec=pltpu.PrefetchScalarGridSpec(
            num_scalar_prefetch=0,
            grid=grid,
            in_specs=[
                pl.BlockSpec((B, tf), lambda k: (0, k)),
                pl.BlockSpec((tf, h1n), lambda k: (k, 0)),
                pl.BlockSpec((1, h1n), lambda k: (0, 0)),
                pl.BlockSpec((B, h1n), lambda k: (0, 0)),
                pl.BlockSpec((h1n, h2n), lambda k: (0, 0)),
                pl.BlockSpec((1, h2n), lambda k: (0, 0)),
                pl.BlockSpec((B, h2n), lambda k: (0, 0)),
                pl.BlockSpec((h2n, h3n), lambda k: (0, 0)),
                pl.BlockSpec((1, h3n), lambda k: (0, 0)),
            ],
            out_specs=(pl.BlockSpec((B, h3n), lambda k: (0, 0)),
                       pl.BlockSpec((B, h1n), lambda k: (0, 0))),
        ),
        compiler_params=pltpu.CompilerParams(
            dimension_semantics=("arbitrary",),
            vmem_limit_bytes=_VMEM_LIMIT),
    )(xb, w1t, b1.reshape(1, h1n).astype(jnp.float32), m1,
      w2t, b2.reshape(1, h2n).astype(jnp.float32), m2,
      w3t, b3.reshape(1, h3n).astype(jnp.float32))
    return out


# ---------------------------------------------------------------------------
# Parameter init (deterministic, mirrors xavier_uniform_ + zero bias)
# ---------------------------------------------------------------------------
def _xavier_uniform(key, shape, fan_in, fan_out):
    limit = math.sqrt(6.0 / (fan_in + fan_out))
    return jax.random.uniform(key, shape, jnp.float32, -limit, limit)


def init_cosmoflow_params(key, *, n_conv_layers, n_conv_filters, conv_kernel,
                          in_channels, spatial):
    params = {"conv": [], "dense": []}
    cin = in_channels
    rf = conv_kernel ** 3
    for i in range(n_conv_layers):
        cout = n_conv_filters * (1 << i)
        key, wk = jax.random.split(key)
        w = _xavier_uniform(wk, (cout, cin, conv_kernel, conv_kernel, conv_kernel),
                            fan_in=cin * rf, fan_out=cout * rf)
        params["conv"].append((w, jnp.zeros((cout,), jnp.float32)))
        cin = cout
    flat = (spatial // (2 ** n_conv_layers)) ** 3 * cin
    for (fi, fo) in [(flat, 128), (128, 64), (64, 4)]:
        key, wk = jax.random.split(key)
        w = _xavier_uniform(wk, (fo, fi), fan_in=fi, fan_out=fo)
        params["dense"].append((w, jnp.zeros((fo,), jnp.float32)))
    return params


# ---------------------------------------------------------------------------
# Forward pass (== fc1.forward / CosmoFlow.forward)
# ---------------------------------------------------------------------------
def cosmoflow_forward(x_ncdhw, params, *, dropout_rate=0.5, training=True, rng=None):
    # layout: accept PyTorch NCDHW, convert once to NDHWC for the kernels.
    x = jnp.transpose(x_ncdhw, (0, 2, 3, 4, 1)).astype(jnp.float32)
    for (w, b) in params["conv"]:
        x = conv3x3x3_act_maxpool(x, w, b)
    B = x.shape[0]
    # == x.permute(0,2,3,4,1).flatten(1) in torch (we are already channels-last)
    x = x.reshape(B, -1)
    if rng is None:
        rng = jax.random.PRNGKey(0)
    return dense_head(x, params["dense"],
                      dropout_rate=dropout_rate, training=training, rng=rng)


if __name__ == "__main__":
    key = jax.random.PRNGKey(0)
    # Small-shape configuration consistent with the CosmoFlow architecture:
    # batch=2, in_channels=4, spatial=16, 3 conv blocks starting at 8 filters.
    B, Cin, S = 2, 4, 16
    n_layers, n_filters, ksz = 3, 8, 3

    pkey, xkey, dkey = jax.random.split(key, 3)
    params = init_cosmoflow_params(pkey, n_conv_layers=n_layers,
                                   n_conv_filters=n_filters, conv_kernel=ksz,
                                   in_channels=Cin, spatial=S)
    x = jax.random.normal(xkey, (B, Cin, S, S, S), jnp.float32)

    fwd = jax.jit(cosmoflow_forward, static_argnames=("dropout_rate", "training"))
    out = fwd(x, params, dropout_rate=0.5, training=True, rng=dkey)
    out = jax.block_until_ready(out)
    assert out.shape == (B, 4), out.shape
    assert bool(jnp.all(jnp.isfinite(out)))
    print("KERNEL_OK")
</pallas_src>

<mosaic_0001>
module attributes {stable_mosaic.version = 11 : i64} {
  func.func @_conv_act_pool_kernel(%arg0: i32, %arg1: memref<8x512x108xbf16, #tpu.memory_space<vmem>>, %arg2: memref<108x8xbf16, #tpu.memory_space<vmem>>, %arg3: memref<1x8xf32, #tpu.memory_space<vmem>>, %arg4: memref<512x8xf32, #tpu.memory_space<vmem>>) attributes {dimension_semantics = [#tpu.dimension_semantics<parallel>], iteration_bounds = array<i64: 2>, scalar_prefetch = 0 : i64, scratch_operands = 0 : i64, tpu.core_type = #tpu.core_type<tc>, window_params = [{transform_indices = @transform_0, window_bounds = array<i64: 8, 512, 108>}, {pipeline_mode = #tpu.pipeline_mode<synchronous>, transform_indices = @transform_1, window_bounds = array<i64: 108, 8>}, {pipeline_mode = #tpu.pipeline_mode<synchronous>, transform_indices = @transform_2, window_bounds = array<i64: 1, 8>}, {transform_indices = @transform_3, window_bounds = array<i64: 512, 8>}]} {
    %c0 = arith.constant 0 : index
    %c0_0 = arith.constant 0 : index
    %0 = vector.load %arg2[%c0, %c0_0] : memref<108x8xbf16, #tpu.memory_space<vmem>>, vector<108x8xbf16>
    %c0_1 = arith.constant 0 : index
    %c0_2 = arith.constant 0 : index
    %c0_3 = arith.constant 0 : index
    %1 = vector.load %arg1[%c0_1, %c0_2, %c0_3] : memref<8x512x108xbf16, #tpu.memory_space<vmem>>, vector<1x512x108xbf16>
    %2 = vector.shape_cast %1 : vector<1x512x108xbf16> to vector<512x108xbf16>
    %cst = arith.constant dense<0.000000e+00> : vector<512x8xf32>
    %3 = tpu.matmul %2, %0, %cst {dimension_numbers = #tpu.dot_dimension_numbers<[1], [0], [0], [1], [0, 0, 1, 1], [], []>} : vector<512x108xbf16>, vector<108x8xbf16>, vector<512x8xf32> -> vector<512x8xf32>
    %c1 = arith.constant 1 : index
    %c0_4 = arith.constant 0 : index
    %c0_5 = arith.constant 0 : index
    %4 = vector.load %arg1[%c1, %c0_4, %c0_5] : memref<8x512x108xbf16, #tpu.memory_space<vmem>>, vector<1x512x108xbf16>
    %5 = vector.shape_cast %4 : vector<1x512x108xbf16> to vector<512x108xbf16>
    %cst_6 = arith.constant dense<0.000000e+00> : vector<512x8xf32>
    %6 = tpu.matmul %5, %0, %cst_6 {dimension_numbers = #tpu.dot_dimension_numbers<[1], [0], [0], [1], [0, 0, 1, 1], [], []>} : vector<512x108xbf16>, vector<108x8xbf16>, vector<512x8xf32> -> vector<512x8xf32>
    %7 = arith.maximumf %3, %6 : vector<512x8xf32>
    %c2 = arith.constant 2 : index
    %c0_7 = arith.constant 0 : index
    %c0_8 = arith.constant 0 : index
    %8 = vector.load %arg1[%c2, %c0_7, %c0_8] : memref<8x512x108xbf16, #tpu.memory_space<vmem>>, vector<1x512x108xbf16>
    %9 = vector.shape_cast %8 : vector<1x512x108xbf16> to vector<512x108xbf16>
    %cst_9 = arith.constant dense<0.000000e+00> : vector<512x8xf32>
    %10 = tpu.matmul %9, %0, %cst_9 {dimension_numbers = #tpu.dot_dimension_numbers<[1], [0], [0], [1], [0, 0, 1, 1], [], []>} : vector<512x108xbf16>, vector<108x8xbf16>, vector<512x8xf32> -> vector<512x8xf32>
    %11 = arith.maximumf %7, %10 : vector<512x8xf32>
    %c3 = arith.constant 3 : index
    %c0_10 = arith.constant 0 : index
    %c0_11 = arith.constant 0 : index
    %12 = vector.load %arg1[%c3, %c0_10, %c0_11] : memref<8x512x108xbf16, #tpu.memory_space<vmem>>, vector<1x512x108xbf16>
    %13 = vector.shape_cast %12 : vector<1x512x108xbf16> to vector<512x108xbf16>
    %cst_12 = arith.constant dense<0.000000e+00> : vector<512x8xf32>
    %14 = tpu.matmul %13, %0, %cst_12 {dimension_numbers = #tpu.dot_dimension_numbers<[1], [0], [0], [1], [0, 0, 1, 1], [], []>} : vector<512x108xbf16>, vector<108x8xbf16>, vector<512x8xf32> -> vector<512x8xf32>
    %15 = arith.maximumf %11, %14 : vector<512x8xf32>
    %c4 = arith.constant 4 : index
    %c0_13 = arith.constant 0 : index
    %c0_14 = arith.constant 0 : index
    %16 = vector.load %arg1[%c4, %c0_13, %c0_14] : memref<8x512x108xbf16, #tpu.memory_space<vmem>>, vector<1x512x108xbf16>
    %17 = vector.shape_cast %16 : vector<1x512x108xbf16> to vector<512x108xbf16>
    %cst_15 = arith.constant dense<0.000000e+00> : vector<512x8xf32>
    %18 = tpu.matmul %17, %0, %cst_15 {dimension_numbers = #tpu.dot_dimension_numbers<[1], [0], [0], [1], [0, 0, 1, 1], [], []>} : vector<512x108xbf16>, vector<108x8xbf16>, vector<512x8xf32> -> vector<512x8xf32>
    %19 = arith.maximumf %15, %18 : vector<512x8xf32>
    %c5 = arith.constant 5 : index
    %c0_16 = arith.constant 0 : index
    %c0_17 = arith.constant 0 : index
    %20 = vector.load %arg1[%c5, %c0_16, %c0_17] : memref<8x512x108xbf16, #tpu.memory_space<vmem>>, vector<1x512x108xbf16>
    %21 = vector.shape_cast %20 : vector<1x512x108xbf16> to vector<512x108xbf16>
    %cst_18 = arith.constant dense<0.000000e+00> : vector<512x8xf32>
    %22 = tpu.matmul %21, %0, %cst_18 {dimension_numbers = #tpu.dot_dimension_numbers<[1], [0], [0], [1], [0, 0, 1, 1], [], []>} : vector<512x108xbf16>, vector<108x8xbf16>, vector<512x8xf32> -> vector<512x8xf32>
    %23 = arith.maximumf %19, %22 : vector<512x8xf32>
    %c6 = arith.constant 6 : index
    %c0_19 = arith.constant 0 : index
    %c0_20 = arith.constant 0 : index
    %24 = vector.load %arg1[%c6, %c0_19, %c0_20] : memref<8x512x108xbf16, #tpu.memory_space<vmem>>, vector<1x512x108xbf16>
    %25 = vector.shape_cast %24 : vector<1x512x108xbf16> to vector<512x108xbf16>
    %cst_21 = arith.constant dense<0.000000e+00> : vector<512x8xf32>
    %26 = tpu.matmul %25, %0, %cst_21 {dimension_numbers = #tpu.dot_dimension_numbers<[1], [0], [0], [1], [0, 0, 1, 1], [], []>} : vector<512x108xbf16>, vector<108x8xbf16>, vector<512x8xf32> -> vector<512x8xf32>
    %27 = arith.maximumf %23, %26 : vector<512x8xf32>
    %c7 = arith.constant 7 : index
    %c0_22 = arith.constant 0 : index
    %c0_23 = arith.constant 0 : index
    %28 = vector.load %arg1[%c7, %c0_22, %c0_23] : memref<8x512x108xbf16, #tpu.memory_space<vmem>>, vector<1x512x108xbf16>
    %29 = vector.shape_cast %28 : vector<1x512x108xbf16> to vector<512x108xbf16>
    %cst_24 = arith.constant dense<0.000000e+00> : vector<512x8xf32>
    %30 = tpu.matmul %29, %0, %cst_24 {dimension_numbers = #tpu.dot_dimension_numbers<[1], [0], [0], [1], [0, 0, 1, 1], [], []>} : vector<512x108xbf16>, vector<108x8xbf16>, vector<512x8xf32> -> vector<512x8xf32>
    %31 = arith.maximumf %27, %30 : vector<512x8xf32>
    %c0_25 = arith.constant 0 : index
    %c0_26 = arith.constant 0 : index
    %32 = vector.load %arg3[%c0_25, %c0_26] : memref<1x8xf32, #tpu.memory_space<vmem>>, vector<1x8xf32>
    %33 = vector.broadcast %32 : vector<1x8xf32> to vector<512x8xf32>
    %34 = arith.addf %31, %33 : vector<512x8xf32>
    %cst_27 = arith.constant 0.000000e+00 : f32
    %35 = vector.broadcast %cst_27 : f32 to vector<512x8xf32>
    %36 = arith.cmpf ogt, %34, %35 : vector<512x8xf32>
    %cst_28 = arith.constant 3.000000e-01 : f32
    %37 = vector.broadcast %cst_28 : f32 to vector<512x8xf32>
    %38 = arith.mulf %37, %34 : vector<512x8xf32>
    %39 = arith.select %36, %34, %38 : vector<512x8xi1>, vector<512x8xf32>
    %c0_29 = arith.constant 0 : index
    %c0_30 = arith.constant 0 : index
    %40 = vector.load %arg4[%c0_29, %c0_30] : memref<512x8xf32, #tpu.memory_space<vmem>>, vector<512x8xf32>
    tpu.vector_store %arg4[%c0_29, %c0_30], %39 {strides = array<i32>} : memref<512x8xf32, #tpu.memory_space<vmem>>, vector<512x8xf32>,
    return
  }
  func.func @transform_0(%arg0: i32) -> (i32, i32, i32) {
    %c0_i32 = arith.constant 0 : i32
    %c0_i32_0 = arith.constant 0 : i32
    %c0_i32_1 = arith.constant 0 : i32
    return %c0_i32, %arg0, %c0_i32_0 : i32, i32, i32
  }
  func.func @transform_1(%arg0: i32) -> (i32, i32) {
    %c0_i32 = arith.constant 0 : i32
    %c0_i32_0 = arith.constant 0 : i32
    %c0_i32_1 = arith.constant 0 : i32
    return %c0_i32, %c0_i32_0 : i32, i32
  }
  func.func @transform_2(%arg0: i32) -> (i32, i32) {
    %c0_i32 = arith.constant 0 : i32
    %c0_i32_0 = arith.constant 0 : i32
    %c0_i32_1 = arith.constant 0 : i32
    return %c0_i32, %c0_i32_0 : i32, i32
  }
  func.func @transform_3(%arg0: i32) -> (i32, i32) {
    %c0_i32 = arith.constant 0 : i32
    %c0_i32_0 = arith.constant 0 : i32
    return %arg0, %c0_i32 : i32, i32
  }
}

module attributes {stable_mosaic.version = 11 : i64} {
  func.func @_conv_act_pool_kernel(%arg0: i32, %arg1: memref<8x64x216xbf16, #tpu.memory_space<vmem>>, %arg2: memref<216x16xbf16, #tpu.memory_space<vmem>>, %arg3: memref<1x16xf32, #tpu.memory_space<vmem>>, %arg4: memref<64x16xf32, #tpu.memory_space<vmem>>) attributes {dimension_semantics = [#tpu.dimension_semantics<parallel>], iteration_bounds = array<i64: 2>, scalar_prefetch = 0 : i64, scratch_operands = 0 : i64, tpu.core_type = #tpu.core_type<tc>, window_params = [{transform_indices = @transform_0, window_bounds = array<i64: 8, 64, 216>}, {pipeline_mode = #tpu.pipeline_mode<synchronous>, transform_indices = @transform_1, window_bounds = array<i64: 216, 16>}, {pipeline_mode = #tpu.pipeline_mode<synchronous>, transform_indices = @transform_2, window_bounds = array<i64: 1, 16>}, {transform_indices = @transform_3, window_bounds = array<i64: 64, 16>}]} {
    %c0 = arith.constant 0 : index
    %c0_0 = arith.constant 0 : index
    %0 = vector.load %arg2[%c0, %c0_0] : memref<216x16xbf16, #tpu.memory_space<vmem>>, vector<216x16xbf16>
    %c0_1 = arith.constant 0 : index
    %c0_2 = arith.constant 0 : index
    %c0_3 = arith.constant 0 : index
    %1 = vector.load %arg1[%c0_1, %c0_2, %c0_3] : memref<8x64x216xbf16, #tpu.memory_space<vmem>>, vector<1x64x216xbf16>
    %2 = vector.shape_cast %1 : vector<1x64x216xbf16> to vector<64x216xbf16>
    %cst = arith.constant dense<0.000000e+00> : vector<64x16xf32>
    %3 = tpu.matmul %2, %0, %cst {dimension_numbers = #tpu.dot_dimension_numbers<[1], [0], [0], [1], [0, 0, 1, 1], [], []>} : vector<64x216xbf16>, vector<216x16xbf16>, vector<64x16xf32> -> vector<64x16xf32>
    %c1 = arith.constant 1 : index
    %c0_4 = arith.constant 0 : index
    %c0_5 = arith.constant 0 : index
    %4 = vector.load %arg1[%c1, %c0_4, %c0_5] : memref<8x64x216xbf16, #tpu.memory_space<vmem>>, vector<1x64x216xbf16>
    %5 = vector.shape_cast %4 : vector<1x64x216xbf16> to vector<64x216xbf16>
    %cst_6 = arith.constant dense<0.000000e+00> : vector<64x16xf32>
    %6 = tpu.matmul %5, %0, %cst_6 {dimension_numbers = #tpu.dot_dimension_numbers<[1], [0], [0], [1], [0, 0, 1, 1], [], []>} : vector<64x216xbf16>, vector<216x16xbf16>, vector<64x16xf32> -> vector<64x16xf32>
    %7 = arith.maximumf %3, %6 : vector<64x16xf32>
    %c2 = arith.constant 2 : index
    %c0_7 = arith.constant 0 : index
    %c0_8 = arith.constant 0 : index
    %8 = vector.load %arg1[%c2, %c0_7, %c0_8] : memref<8x64x216xbf16, #tpu.memory_space<vmem>>, vector<1x64x216xbf16>
    %9 = vector.shape_cast %8 : vector<1x64x216xbf16> to vector<64x216xbf16>
    %cst_9 = arith.constant dense<0.000000e+00> : vector<64x16xf32>
    %10 = tpu.matmul %9, %0, %cst_9 {dimension_numbers = #tpu.dot_dimension_numbers<[1], [0], [0], [1], [0, 0, 1, 1], [], []>} : vector<64x216xbf16>, vector<216x16xbf16>, vector<64x16xf32> -> vector<64x16xf32>
    %11 = arith.maximumf %7, %10 : vector<64x16xf32>
    %c3 = arith.constant 3 : index
    %c0_10 = arith.constant 0 : index
    %c0_11 = arith.constant 0 : index
    %12 = vector.load %arg1[%c3, %c0_10, %c0_11] : memref<8x64x216xbf16, #tpu.memory_space<vmem>>, vector<1x64x216xbf16>
    %13 = vector.shape_cast %12 : vector<1x64x216xbf16> to vector<64x216xbf16>
    %cst_12 = arith.constant dense<0.000000e+00> : vector<64x16xf32>
    %14 = tpu.matmul %13, %0, %cst_12 {dimension_numbers = #tpu.dot_dimension_numbers<[1], [0], [0], [1], [0, 0, 1, 1], [], []>} : vector<64x216xbf16>, vector<216x16xbf16>, vector<64x16xf32> -> vector<64x16xf32>
    %15 = arith.maximumf %11, %14 : vector<64x16xf32>
    %c4 = arith.constant 4 : index
    %c0_13 = arith.constant 0 : index
    %c0_14 = arith.constant 0 : index
    %16 = vector.load %arg1[%c4, %c0_13, %c0_14] : memref<8x64x216xbf16, #tpu.memory_space<vmem>>, vector<1x64x216xbf16>
    %17 = vector.shape_cast %16 : vector<1x64x216xbf16> to vector<64x216xbf16>
    %cst_15 = arith.constant dense<0.000000e+00> : vector<64x16xf32>
    %18 = tpu.matmul %17, %0, %cst_15 {dimension_numbers = #tpu.dot_dimension_numbers<[1], [0], [0], [1], [0, 0, 1, 1], [], []>} : vector<64x216xbf16>, vector<216x16xbf16>, vector<64x16xf32> -> vector<64x16xf32>
    %19 = arith.maximumf %15, %18 : vector<64x16xf32>
    %c5 = arith.constant 5 : index
    %c0_16 = arith.constant 0 : index
    %c0_17 = arith.constant 0 : index
    %20 = vector.load %arg1[%c5, %c0_16, %c0_17] : memref<8x64x216xbf16, #tpu.memory_space<vmem>>, vector<1x64x216xbf16>
    %21 = vector.shape_cast %20 : vector<1x64x216xbf16> to vector<64x216xbf16>
    %cst_18 = arith.constant dense<0.000000e+00> : vector<64x16xf32>
    %22 = tpu.matmul %21, %0, %cst_18 {dimension_numbers = #tpu.dot_dimension_numbers<[1], [0], [0], [1], [0, 0, 1, 1], [], []>} : vector<64x216xbf16>, vector<216x16xbf16>, vector<64x16xf32> -> vector<64x16xf32>
    %23 = arith.maximumf %19, %22 : vector<64x16xf32>
    %c6 = arith.constant 6 : index
    %c0_19 = arith.constant 0 : index
    %c0_20 = arith.constant 0 : index
    %24 = vector.load %arg1[%c6, %c0_19, %c0_20] : memref<8x64x216xbf16, #tpu.memory_space<vmem>>, vector<1x64x216xbf16>
    %25 = vector.shape_cast %24 : vector<1x64x216xbf16> to vector<64x216xbf16>
    %cst_21 = arith.constant dense<0.000000e+00> : vector<64x16xf32>
    %26 = tpu.matmul %25, %0, %cst_21 {dimension_numbers = #tpu.dot_dimension_numbers<[1], [0], [0], [1], [0, 0, 1, 1], [], []>} : vector<64x216xbf16>, vector<216x16xbf16>, vector<64x16xf32> -> vector<64x16xf32>
    %27 = arith.maximumf %23, %26 : vector<64x16xf32>
    %c7 = arith.constant 7 : index
    %c0_22 = arith.constant 0 : index
    %c0_23 = arith.constant 0 : index
    %28 = vector.load %arg1[%c7, %c0_22, %c0_23] : memref<8x64x216xbf16, #tpu.memory_space<vmem>>, vector<1x64x216xbf16>
    %29 = vector.shape_cast %28 : vector<1x64x216xbf16> to vector<64x216xbf16>
    %cst_24 = arith.constant dense<0.000000e+00> : vector<64x16xf32>
    %30 = tpu.matmul %29, %0, %cst_24 {dimension_numbers = #tpu.dot_dimension_numbers<[1], [0], [0], [1], [0, 0, 1, 1], [], []>} : vector<64x216xbf16>, vector<216x16xbf16>, vector<64x16xf32> -> vector<64x16xf32>
    %31 = arith.maximumf %27, %30 : vector<64x16xf32>
    %c0_25 = arith.constant 0 : index
    %c0_26 = arith.constant 0 : index
    %32 = vector.load %arg3[%c0_25, %c0_26] : memref<1x16xf32, #tpu.memory_space<vmem>>, vector<1x16xf32>
    %33 = vector.broadcast %32 : vector<1x16xf32> to vector<64x16xf32>
    %34 = arith.addf %31, %33 : vector<64x16xf32>
    %cst_27 = arith.constant 0.000000e+00 : f32
    %35 = vector.broadcast %cst_27 : f32 to vector<64x16xf32>
    %36 = arith.cmpf ogt, %34, %35 : vector<64x16xf32>
    %cst_28 = arith.constant 3.000000e-01 : f32
    %37 = vector.broadcast %cst_28 : f32 to vector<64x16xf32>
    %38 = arith.mulf %37, %34 : vector<64x16xf32>
    %39 = arith.select %36, %34, %38 : vector<64x16xi1>, vector<64x16xf32>
    %c0_29 = arith.constant 0 : index
    %c0_30 = arith.constant 0 : index
    %40 = vector.load %arg4[%c0_29, %c0_30] : memref<64x16xf32, #tpu.memory_space<vmem>>, vector<64x16xf32>
    tpu.vector_store %arg4[%c0_29, %c0_30], %39 {strides = array<i32>} : memref<64x16xf32, #tpu.memory_space<vmem>>, vector<64x16xf32>,
    return
  }
  func.func @transform_0(%arg0: i32) -> (i32, i32, i32) {
    %c0_i32 = arith.constant 0 : i32
    %c0_i32_0 = arith.constant 0 : i32
    %c0_i32_1 = arith.constant 0 : i32
    return %c0_i32, %arg0, %c0_i32_0 : i32, i32, i32
  }
  func.func @transform_1(%arg0: i32) -> (i32, i32) {
    %c0_i32 = arith.constant 0 : i32
    %c0_i32_0 = arith.constant 0 : i32
    %c0_i32_1 = arith.constant 0 : i32
    return %c0_i32, %c0_i32_0 : i32, i32
  }
  func.func @transform_2(%arg0: i32) -> (i32, i32) {
    %c0_i32 = arith.constant 0 : i32
    %c0_i32_0 = arith.constant 0 : i32
    %c0_i32_1 = arith.constant 0 : i32
    return %c0_i32, %c0_i32_0 : i32, i32
  }
  func.func @transform_3(%arg0: i32) -> (i32, i32) {
    %c0_i32 = arith.constant 0 : i32
    %c0_i32_0 = arith.constant 0 : i32
    return %arg0, %c0_i32 : i32, i32
  }
}

module attributes {stable_mosaic.version = 11 : i64} {
  func.func @_conv_act_pool_kernel(%arg0: i32, %arg1: memref<8x8x432xbf16, #tpu.memory_space<vmem>>, %arg2: memref<432x32xbf16, #tpu.memory_space<vmem>>, %arg3: memref<1x32xf32, #tpu.memory_space<vmem>>, %arg4: memref<8x32xf32, #tpu.memory_space<vmem>>) attributes {dimension_semantics = [#tpu.dimension_semantics<parallel>], iteration_bounds = array<i64: 2>, scalar_prefetch = 0 : i64, scratch_operands = 0 : i64, tpu.core_type = #tpu.core_type<tc>, window_params = [{transform_indices = @transform_0, window_bounds = array<i64: 8, 8, 432>}, {pipeline_mode = #tpu.pipeline_mode<synchronous>, transform_indices = @transform_1, window_bounds = array<i64: 432, 32>}, {pipeline_mode = #tpu.pipeline_mode<synchronous>, transform_indices = @transform_2, window_bounds = array<i64: 1, 32>}, {transform_indices = @transform_3, window_bounds = array<i64: 8, 32>}]} {
    %c0 = arith.constant 0 : index
    %c0_0 = arith.constant 0 : index
    %0 = vector.load %arg2[%c0, %c0_0] : memref<432x32xbf16, #tpu.memory_space<vmem>>, vector<432x32xbf16>
    %c0_1 = arith.constant 0 : index
    %c0_2 = arith.constant 0 : index
    %c0_3 = arith.constant 0 : index
    %1 = vector.load %arg1[%c0_1, %c0_2, %c0_3] : memref<8x8x432xbf16, #tpu.memory_space<vmem>>, vector<1x8x432xbf16>
    %2 = vector.shape_cast %1 : vector<1x8x432xbf16> to vector<8x432xbf16>
    %cst = arith.constant dense<0.000000e+00> : vector<8x32xf32>
    %3 = tpu.matmul %2, %0, %cst {dimension_numbers = #tpu.dot_dimension_numbers<[1], [0], [0], [1], [0, 0, 1, 1], [], []>} : vector<8x432xbf16>, vector<432x32xbf16>, vector<8x32xf32> -> vector<8x32xf32>
    %c1 = arith.constant 1 : index
    %c0_4 = arith.constant 0 : index
    %c0_5 = arith.constant 0 : index
    %4 = vector.load %arg1[%c1, %c0_4, %c0_5] : memref<8x8x432xbf16, #tpu.memory_space<vmem>>, vector<1x8x432xbf16>
    %5 = vector.shape_cast %4 : vector<1x8x432xbf16> to vector<8x432xbf16>
    %cst_6 = arith.constant dense<0.000000e+00> : vector<8x32xf32>
    %6 = tpu.matmul %5, %0, %cst_6 {dimension_numbers = #tpu.dot_dimension_numbers<[1], [0], [0], [1], [0, 0, 1, 1], [], []>} : vector<8x432xbf16>, vector<432x32xbf16>, vector<8x32xf32> -> vector<8x32xf32>
    %7 = arith.maximumf %3, %6 : vector<8x32xf32>
    %c2 = arith.constant 2 : index
    %c0_7 = arith.constant 0 : index
    %c0_8 = arith.constant 0 : index
    %8 = vector.load %arg1[%c2, %c0_7, %c0_8] : memref<8x8x432xbf16, #tpu.memory_space<vmem>>, vector<1x8x432xbf16>
    %9 = vector.shape_cast %8 : vector<1x8x432xbf16> to vector<8x432xbf16>
    %cst_9 = arith.constant dense<0.000000e+00> : vector<8x32xf32>
    %10 = tpu.matmul %9, %0, %cst_9 {dimension_numbers = #tpu.dot_dimension_numbers<[1], [0], [0], [1], [0, 0, 1, 1], [], []>} : vector<8x432xbf16>, vector<432x32xbf16>, vector<8x32xf32> -> vector<8x32xf32>
    %11 = arith.maximumf %7, %10 : vector<8x32xf32>
    %c3 = arith.constant 3 : index
    %c0_10 = arith.constant 0 : index
    %c0_11 = arith.constant 0 : index
    %12 = vector.load %arg1[%c3, %c0_10, %c0_11] : memref<8x8x432xbf16, #tpu.memory_space<vmem>>, vector<1x8x432xbf16>
    %13 = vector.shape_cast %12 : vector<1x8x432xbf16> to vector<8x432xbf16>
    %cst_12 = arith.constant dense<0.000000e+00> : vector<8x32xf32>
    %14 = tpu.matmul %13, %0, %cst_12 {dimension_numbers = #tpu.dot_dimension_numbers<[1], [0], [0], [1], [0, 0, 1, 1], [], []>} : vector<8x432xbf16>, vector<432x32xbf16>, vector<8x32xf32> -> vector<8x32xf32>
    %15 = arith.maximumf %11, %14 : vector<8x32xf32>
    %c4 = arith.constant 4 : index
    %c0_13 = arith.constant 0 : index
    %c0_14 = arith.constant 0 : index
    %16 = vector.load %arg1[%c4, %c0_13, %c0_14] : memref<8x8x432xbf16, #tpu.memory_space<vmem>>, vector<1x8x432xbf16>
    %17 = vector.shape_cast %16 : vector<1x8x432xbf16> to vector<8x432xbf16>
    %cst_15 = arith.constant dense<0.000000e+00> : vector<8x32xf32>
    %18 = tpu.matmul %17, %0, %cst_15 {dimension_numbers = #tpu.dot_dimension_numbers<[1], [0], [0], [1], [0, 0, 1, 1], [], []>} : vector<8x432xbf16>, vector<432x32xbf16>, vector<8x32xf32> -> vector<8x32xf32>
    %19 = arith.maximumf %15, %18 : vector<8x32xf32>
    %c5 = arith.constant 5 : index
    %c0_16 = arith.constant 0 : index
    %c0_17 = arith.constant 0 : index
    %20 = vector.load %arg1[%c5, %c0_16, %c0_17] : memref<8x8x432xbf16, #tpu.memory_space<vmem>>, vector<1x8x432xbf16>
    %21 = vector.shape_cast %20 : vector<1x8x432xbf16> to vector<8x432xbf16>
    %cst_18 = arith.constant dense<0.000000e+00> : vector<8x32xf32>
    %22 = tpu.matmul %21, %0, %cst_18 {dimension_numbers = #tpu.dot_dimension_numbers<[1], [0], [0], [1], [0, 0, 1, 1], [], []>} : vector<8x432xbf16>, vector<432x32xbf16>, vector<8x32xf32> -> vector<8x32xf32>
    %23 = arith.maximumf %19, %22 : vector<8x32xf32>
    %c6 = arith.constant 6 : index
    %c0_19 = arith.constant 0 : index
    %c0_20 = arith.constant 0 : index
    %24 = vector.load %arg1[%c6, %c0_19, %c0_20] : memref<8x8x432xbf16, #tpu.memory_space<vmem>>, vector<1x8x432xbf16>
    %25 = vector.shape_cast %24 : vector<1x8x432xbf16> to vector<8x432xbf16>
    %cst_21 = arith.constant dense<0.000000e+00> : vector<8x32xf32>
    %26 = tpu.matmul %25, %0, %cst_21 {dimension_numbers = #tpu.dot_dimension_numbers<[1], [0], [0], [1], [0, 0, 1, 1], [], []>} : vector<8x432xbf16>, vector<432x32xbf16>, vector<8x32xf32> -> vector<8x32xf32>
    %27 = arith.maximumf %23, %26 : vector<8x32xf32>
    %c7 = arith.constant 7 : index
    %c0_22 = arith.constant 0 : index
    %c0_23 = arith.constant 0 : index
    %28 = vector.load %arg1[%c7, %c0_22, %c0_23] : memref<8x8x432xbf16, #tpu.memory_space<vmem>>, vector<1x8x432xbf16>
    %29 = vector.shape_cast %28 : vector<1x8x432xbf16> to vector<8x432xbf16>
    %cst_24 = arith.constant dense<0.000000e+00> : vector<8x32xf32>
    %30 = tpu.matmul %29, %0, %cst_24 {dimension_numbers = #tpu.dot_dimension_numbers<[1], [0], [0], [1], [0, 0, 1, 1], [], []>} : vector<8x432xbf16>, vector<432x32xbf16>, vector<8x32xf32> -> vector<8x32xf32>
    %31 = arith.maximumf %27, %30 : vector<8x32xf32>
    %c0_25 = arith.constant 0 : index
    %c0_26 = arith.constant 0 : index
    %32 = vector.load %arg3[%c0_25, %c0_26] : memref<1x32xf32, #tpu.memory_space<vmem>>, vector<1x32xf32>
    %33 = vector.broadcast %32 : vector<1x32xf32> to vector<8x32xf32>
    %34 = arith.addf %31, %33 : vector<8x32xf32>
    %cst_27 = arith.constant 0.000000e+00 : f32
    %35 = vector.broadcast %cst_27 : f32 to vector<8x32xf32>
    %36 = arith.cmpf ogt, %34, %35 : vector<8x32xf32>
    %cst_28 = arith.constant 3.000000e-01 : f32
    %37 = vector.broadcast %cst_28 : f32 to vector<8x32xf32>
    %38 = arith.mulf %37, %34 : vector<8x32xf32>
    %39 = arith.select %36, %34, %38 : vector<8x32xi1>, vector<8x32xf32>
    %c0_29 = arith.constant 0 : index
    %c0_30 = arith.constant 0 : index
    %40 = vector.load %arg4[%c0_29, %c0_30] : memref<8x32xf32, #tpu.memory_space<vmem>>, vector<8x32xf32>
    tpu.vector_store %arg4[%c0_29, %c0_30], %39 {strides = array<i32>} : memref<8x32xf32, #tpu.memory_space<vmem>>, vector<8x32xf32>,
    return
  }
  func.func @transform_0(%arg0: i32) -> (i32, i32, i32) {
    %c0_i32 = arith.constant 0 : i32
    %c0_i32_0 = arith.constant 0 : i32
    %c0_i32_1 = arith.constant 0 : i32
    return %c0_i32, %arg0, %c0_i32_0 : i32, i32, i32
  }
  func.func @transform_1(%arg0: i32) -> (i32, i32) {
    %c0_i32 = arith.constant 0 : i32
    %c0_i32_0 = arith.constant 0 : i32
    %c0_i32_1 = arith.constant 0 : i32
    return %c0_i32, %c0_i32_0 : i32, i32
  }
  func.func @transform_2(%arg0: i32) -> (i32, i32) {
    %c0_i32 = arith.constant 0 : i32
    %c0_i32_0 = arith.constant 0 : i32
    %c0_i32_1 = arith.constant 0 : i32
    return %c0_i32, %c0_i32_0 : i32, i32
  }
  func.func @transform_3(%arg0: i32) -> (i32, i32) {
    %c0_i32 = arith.constant 0 : i32
    %c0_i32_0 = arith.constant 0 : i32
    return %arg0, %c0_i32 : i32, i32
  }
}

module attributes {stable_mosaic.version = 11 : i64} {
  func.func @_dense_head_kernel(%arg0: i32, %arg1: memref<2x128xbf16, #tpu.memory_space<vmem>>, %arg2: memref<128x128xbf16, #tpu.memory_space<vmem>>, %arg3: memref<1x128xf32, #tpu.memory_space<vmem>>, %arg4: memref<2x128xf32, #tpu.memory_space<vmem>>, %arg5: memref<128x64xf32, #tpu.memory_space<vmem>>, %arg6: memref<1x64xf32, #tpu.memory_space<vmem>>, %arg7: memref<2x64xf32, #tpu.memory_space<vmem>>, %arg8: memref<64x4xf32, #tpu.memory_space<vmem>>, %arg9: memref<1x4xf32, #tpu.memory_space<vmem>>, %arg10: memref<2x4xf32, #tpu.memory_space<vmem>>, %arg11: memref<2x128xf32, #tpu.memory_space<vmem>>) attributes {dimension_semantics = [#tpu.dimension_semantics<arbitrary>], iteration_bounds = array<i64: 2>, scalar_prefetch = 0 : i64, scratch_operands = 0 : i64, tpu.core_type = #tpu.core_type<tc>, window_params = [{transform_indices = @transform_0, window_bounds = array<i64: 2, 128>}, {transform_indices = @transform_1, window_bounds = array<i64: 128, 128>}, {pipeline_mode = #tpu.pipeline_mode<synchronous>, transform_indices = @transform_2, window_bounds = array<i64: 1, 128>}, {pipeline_mode = #tpu.pipeline_mode<synchronous>, transform_indices = @transform_3, window_bounds = array<i64: 2, 128>}, {pipeline_mode = #tpu.pipeline_mode<synchronous>, transform_indices = @transform_4, window_bounds = array<i64: 128, 64>}, {pipeline_mode = #tpu.pipeline_mode<synchronous>, transform_indices = @transform_5, window_bounds = array<i64: 1, 64>}, {pipeline_mode = #tpu.pipeline_mode<synchronous>, transform_indices = @transform_6, window_bounds = array<i64: 2, 64>}, {pipeline_mode = #tpu.pipeline_mode<synchronous>, transform_indices = @transform_7, window_bounds = array<i64: 64, 4>}, {pipeline_mode = #tpu.pipeline_mode<synchronous>, transform_indices = @transform_8, window_bounds = array<i64: 1, 4>}, {pipeline_mode = #tpu.pipeline_mode<synchronous>, transform_indices = @transform_9, window_bounds = array<i64: 2, 4>}, {pipeline_mode = #tpu.pipeline_mode<synchronous>, transform_indices = @transform_10, window_bounds = array<i64: 2, 128>}]} {
    %c0_i32 = arith.constant 0 : i32
    %0 = arith.cmpi eq, %arg0, %c0_i32 : i32
    %1 = arith.extui %0 : i1 to i32
    %c0_i32_0 = arith.constant 0 : i32
    %2 = arith.cmpi ne, %1, %c0_i32_0 : i32
    scf.if %2 {
      %cst_9 = arith.constant 0.000000e+00 : f32
      %12 = vector.broadcast %cst_9 : f32 to vector<2x128xf32>
      %c0_10 = arith.constant 0 : index
      %c0_11 = arith.constant 0 : index
      %13 = vector.load %arg11[%c0_10, %c0_11] : memref<2x128xf32, #tpu.memory_space<vmem>>, vector<2x128xf32>
      tpu.vector_store %arg11[%c0_10, %c0_11], %12 {strides = array<i32>} : memref<2x128xf32, #tpu.memory_space<vmem>>, vector<2x128xf32>,
    } else {
    }
    %c0 = arith.constant 0 : index
    %c0_1 = arith.constant 0 : index
    %3 = vector.load %arg11[%c0, %c0_1] : memref<2x128xf32, #tpu.memory_space<vmem>>, vector<2x128xf32>
    %c0_2 = arith.constant 0 : index
    %c0_3 = arith.constant 0 : index
    %4 = vector.load %arg1[%c0_2, %c0_3] : memref<2x128xbf16, #tpu.memory_space<vmem>>, vector<2x128xbf16>
    %c0_4 = arith.constant 0 : index
    %c0_5 = arith.constant 0 : index
    %5 = vector.load %arg2[%c0_4, %c0_5] : memref<128x128xbf16, #tpu.memory_space<vmem>>, vector<128x128xbf16>
    %cst = arith.constant dense<0.000000e+00> : vector<2x128xf32>
    %6 = tpu.matmul %4, %5, %cst {dimension_numbers = #tpu.dot_dimension_numbers<[1], [0], [0], [1], [0, 0, 1, 1], [], []>} : vector<2x128xbf16>, vector<128x128xbf16>, vector<2x128xf32> -> vector<2x128xf32>
    %7 = arith.addf %3, %6 : vector<2x128xf32>
    %c0_6 = arith.constant 0 : index
    %c0_7 = arith.constant 0 : index
    %8 = vector.load %arg11[%c0_6, %c0_7] : memref<2x128xf32, #tpu.memory_space<vmem>>, vector<2x128xf32>
    tpu.vector_store %arg11[%c0_6, %c0_7], %7 {strides = array<i32>} : memref<2x128xf32, #tpu.memory_space<vmem>>, vector<2x128xf32>,
    %c1_i32 = arith.constant 1 : i32
    %9 = arith.cmpi eq, %arg0, %c1_i32 : i32
    %10 = arith.extui %9 : i1 to i32
    %c0_i32_8 = arith.constant 0 : i32
    %11 = arith.cmpi ne, %10, %c0_i32_8 : i32
    scf.if %11 {
      %c0_9 = arith.constant 0 : index
      %c0_10 = arith.constant 0 : index
      %12 = vector.load %arg11[%c0_9, %c0_10] : memref<2x128xf32, #tpu.memory_space<vmem>>, vector<2x128xf32>
      %c0_11 = arith.constant 0 : index
      %c0_12 = arith.constant 0 : index
      %13 = vector.load %arg3[%c0_11, %c0_12] : memref<1x128xf32, #tpu.memory_space<vmem>>, vector<1x128xf32>
      %14 = vector.broadcast %13 : vector<1x128xf32> to vector<2x128xf32>
      %15 = arith.addf %12, %14 : vector<2x128xf32>
      %cst_13 = arith.constant 0.000000e+00 : f32
      %16 = vector.broadcast %cst_13 : f32 to vector<2x128xf32>
      %17 = arith.cmpf ogt, %15, %16 : vector<2x128xf32>
      %cst_14 = arith.constant 3.000000e-01 : f32
      %18 = vector.broadcast %cst_14 : f32 to vector<2x128xf32>
      %19 = arith.mulf %18, %15 : vector<2x128xf32>
      %20 = arith.select %17, %15, %19 : vector<2x128xi1>, vector<2x128xf32>
      %c0_15 = arith.constant 0 : index
      %c0_16 = arith.constant 0 : index
      %21 = vector.load %arg4[%c0_15, %c0_16] : memref<2x128xf32, #tpu.memory_space<vmem>>, vector<2x128xf32>
      %22 = arith.mulf %20, %21 : vector<2x128xf32>
      %c0_17 = arith.constant 0 : index
      %c0_18 = arith.constant 0 : index
      %23 = vector.load %arg5[%c0_17, %c0_18] : memref<128x64xf32, #tpu.memory_space<vmem>>, vector<128x64xf32>
      %cst_19 = arith.constant dense<0.000000e+00> : vector<2x64xf32>
      %24 = tpu.matmul %22, %23, %cst_19 {dimension_numbers = #tpu.dot_dimension_numbers<[1], [0], [0], [1], [0, 0, 1, 1], [], []>} : vector<2x128xf32>, vector<128x64xf32>, vector<2x64xf32> -> vector<2x64xf32>
      %c0_20 = arith.constant 0 : index
      %c0_21 = arith.constant 0 : index
      %25 = vector.load %arg6[%c0_20, %c0_21] : memref<1x64xf32, #tpu.memory_space<vmem>>, vector<1x64xf32>
      %26 = vector.broadcast %25 : vector<1x64xf32> to vector<2x64xf32>
      %27 = arith.addf %24, %26 : vector<2x64xf32>
      %cst_22 = arith.constant 0.000000e+00 : f32
      %28 = vector.broadcast %cst_22 : f32 to vector<2x64xf32>
      %29 = arith.cmpf ogt, %27, %28 : vector<2x64xf32>
      %cst_23 = arith.constant 3.000000e-01 : f32
      %30 = vector.broadcast %cst_23 : f32 to vector<2x64xf32>
      %31 = arith.mulf %30, %27 : vector<2x64xf32>
      %32 = arith.select %29, %27, %31 : vector<2x64xi1>, vector<2x64xf32>
      %c0_24 = arith.constant 0 : index
      %c0_25 = arith.constant 0 : index
      %33 = vector.load %arg7[%c0_24, %c0_25] : memref<2x64xf32, #tpu.memory_space<vmem>>, vector<2x64xf32>
      %34 = arith.mulf %32, %33 : vector<2x64xf32>
      %c0_26 = arith.constant 0 : index
      %c0_27 = arith.constant 0 : index
      %35 = vector.load %arg8[%c0_26, %c0_27] : memref<64x4xf32, #tpu.memory_space<vmem>>, vector<64x4xf32>
      %cst_28 = arith.constant dense<0.000000e+00> : vector<2x4xf32>
      %36 = tpu.matmul %34, %35, %cst_28 {dimension_numbers = #tpu.dot_dimension_numbers<[1], [0], [0], [1], [0, 0, 1, 1], [], []>} : vector<2x64xf32>, vector<64x4xf32>, vector<2x4xf32> -> vector<2x4xf32>
      %c0_29 = arith.constant 0 : index
      %c0_30 = arith.constant 0 : index
      %37 = vector.load %arg9[%c0_29, %c0_30] : memref<1x4xf32, #tpu.memory_space<vmem>>, vector<1x4xf32>
      %38 = vector.broadcast %37 : vector<1x4xf32> to vector<2x4xf32>
      %39 = arith.addf %36, %38 : vector<2x4xf32>
      %40 = math.tanh %39 : vector<2x4xf32>
      %cst_31 = arith.constant 1.200000e+00 : f32
      %41 = vector.broadcast %cst_31 : f32 to vector<2x4xf32>
      %42 = arith.mulf %40, %41 : vector<2x4xf32>
      %c0_32 = arith.constant 0 : index
      %c0_33 = arith.constant 0 : index
      %43 = vector.load %arg10[%c0_32, %c0_33] : memref<2x4xf32, #tpu.memory_space<vmem>>, vector<2x4xf32>
      tpu.vector_store %arg10[%c0_32, %c0_33], %42 {strides = array<i32>} : memref<2x4xf32, #tpu.memory_space<vmem>>, vector<2x4xf32>,
    } else {
    }
    return
  }
  func.func @transform_0(%arg0: i32) -> (i32, i32) {
    %c0_i32 = arith.constant 0 : i32
    %c0_i32_0 = arith.constant 0 : i32
    return %c0_i32, %arg0 : i32, i32
  }
  func.func @transform_1(%arg0: i32) -> (i32, i32) {
    %c0_i32 = arith.constant 0 : i32
    %c0_i32_0 = arith.constant 0 : i32
    return %arg0, %c0_i32 : i32, i32
  }
  func.func @transform_2(%arg0: i32) -> (i32, i32) {
    %c0_i32 = arith.constant 0 : i32
    %c0_i32_0 = arith.constant 0 : i32
    %c0_i32_1 = arith.constant 0 : i32
    return %c0_i32, %c0_i32_0 : i32, i32
  }
  func.func @transform_3(%arg0: i32) -> (i32, i32) {
    %c0_i32 = arith.constant 0 : i32
    %c0_i32_0 = arith.constant 0 : i32
    %c0_i32_1 = arith.constant 0 : i32
    return %c0_i32, %c0_i32_0 : i32, i32
  }
  func.func @transform_4(%arg0: i32) -> (i32, i32) {
    %c0_i32 = arith.constant 0 : i32
    %c0_i32_0 = arith.constant 0 : i32
    %c0_i32_1 = arith.constant 0 : i32
    return %c0_i32, %c0_i32_0 : i32, i32
  }
  func.func @transform_5(%arg0: i32) -> (i32, i32) {
    %c0_i32 = arith.constant 0 : i32
    %c0_i32_0 = arith.constant 0 : i32
    %c0_i32_1 = arith.constant 0 : i32
    return %c0_i32, %c0_i32_0 : i32, i32
  }
  func.func @transform_6(%arg0: i32) -> (i32, i32) {
    %c0_i32 = arith.constant 0 : i32
    %c0_i32_0 = arith.constant 0 : i32
    %c0_i32_1 = arith.constant 0 : i32
    return %c0_i32, %c0_i32_0 : i32, i32
  }
  func.func @transform_7(%arg0: i32) -> (i32, i32) {
    %c0_i32 = arith.constant 0 : i32
    %c0_i32_0 = arith.constant 0 : i32
    %c0_i32_1 = arith.constant 0 : i32
    return %c0_i32, %c0_i32_0 : i32, i32
  }
  func.func @transform_8(%arg0: i32) -> (i32, i32) {
    %c0_i32 = arith.constant 0 : i32
    %c0_i32_0 = arith.constant 0 : i32
    %c0_i32_1 = arith.constant 0 : i32
    return %c0_i32, %c0_i32_0 : i32, i32
  }
  func.func @transform_9(%arg0: i32) -> (i32, i32) {
    %c0_i32 = arith.constant 0 : i32
    %c0_i32_0 = arith.constant 0 : i32
    %c0_i32_1 = arith.constant 0 : i32
    return %c0_i32, %c0_i32_0 : i32, i32
  }
  func.func @transform_10(%arg0: i32) -> (i32, i32) {
    %c0_i32 = arith.constant 0 : i32
    %c0_i32_0 = arith.constant 0 : i32
    %c0_i32_1 = arith.constant 0 : i32
    return %c0_i32, %c0_i32_0 : i32, i32
  }
}

</mosaic_0001>

<bundles_post_ra>
// kernel: cosmoflow_forward.4
= control target key start
LH: loop header
LB: loop body
LE: loop exit
PB: predicated region body
PF: predicated region fallthrough
CT: control target
= control target key end

     0   :  { %s11261_s12 = smov 0   ;;  %s11263_s13 = smov 0   ;;  %s13147_s0 = inlined_call_operand.vmem [shape: bf16[8,1024,108], index: 0, kind: input, shape index: {}]   ;;  %s13148_s1 = inlined_call_operand.vmem [shape: bf16[108,8], index: 1, kind: input, shape index: {}]   ;;  %s13149_s2 = inlined_call_operand.vmem [shape: f32[1,8], index: 2, kind: input, shape index: {}]   ;;  %s13150_s3 = inlined_call_operand.vmem [shape: f32[1024,8], index: 3, kind: output, shape index: {}]  }
   0x1   :  { %s11265_s14 = smov 0  }
   0x2 LB: > { %s9158_s15 = sadd.s32 4294967295, %s11239_s14   ;;  %s11278_s16 = sadd.s32 1, %s11239_s14   ;;  %s11239_s14 = sphi %s11265_s14, %s13454_s14   ;;  %s11235_s13 = sphi %s11263_s13, %s13453_s13   ;;  %s11231_s12 = sphi %s11261_s12, %s13452_s12  }
   0x3   : > { %s17_s17 = ssub.s32 %s11239_s14, %s11278_s16  ;;  %s20_s18 = sadd.s32 1, %s11235_s13 }
   0x4   : > { %p18_p0 = scmp.eq.s32.totalorder %s17_s17, 0  ;;  %p27_p1 = scmp.ne.s32.totalorder %s11235_s13, %s11231_s12 }
   0x5   : > { %p28_p2 = scmp.eq.s32.totalorder %s11239_s14, 0  ;;  %p9161_p4 = scmp.ge.s32.totalorder %s11239_s14, 2 }
   0x6   : > { %s11287_s19 = scalar_select %p18_p0, %s11235_s13, %s20_s18  }
   0x7   : > { %p29_p3 = por %p28_p2, %p27_p1  ;;  %127 = sbr.rel (%p9161_p4) target bundleno = 272 (0x110), region = 24 }
   0xc   : > { %130 = sbr.rel (!%p29_p3) target bundleno = 272 (0x110), region = 28  ;;  %s132_s20 = sand.u32 (%p29_p3), 1, %s11235_s13  }
   0xd   : > { %s10927_s21 = sshll.u32 (%p29_p3), %s11239_s14, 8  ;;  %s9162_s22 = sshll.u32 (%p29_p3), %s132_s20, 11 }
   0xe   : > { %s11295_s25 = scalar_lea.vmem (%p29_p3), %s13147_s0, %s10927_s21  ;;  %s11300_s26 = scalar_lea.vmem (%p29_p3), [#allocation2], %s9162_s22 }
   0xf   : > { %v154_v0 = vld [vmem:[%s11295_s25] sm:$0xff] (%p29_p3)   ;;  %v158_v1 = vld [vmem:[%s11295_s25 + $0x8] sm:$0xff] (%p29_p3)   ;;  %v162_v2 = vld [vmem:[%s11295_s25 + $0x10] sm:$0xff] (%p29_p3)  }
  0x10   : > { %155 = vst [vmem:[%s11300_s26] sm:$0xff] (%p29_p3), %v154_v0   ;;  %v166_v3 = vld [vmem:[%s11295_s25 + $0x18] sm:$0xff] (%p29_p3)   ;;  %v170_v4 = vld [vmem:[%s11295_s25 + $0x20] sm:$0xff] (%p29_p3)   ;;  %v174_v5 = vld [vmem:[%s11295_s25 + $0x28] sm:$0xff] (%p29_p3)  }
  0x11   : > { %159 = vst [vmem:[%s11300_s26 + $0x8] sm:$0xff] %v158_v1   ;;  %v178_v6 = vld [vmem:[%s11295_s25 + $0x30] sm:$0xff]   ;;  %v182_v7 = vld [vmem:[%s11295_s25 + $0x38] sm:$0xff]   ;;  %v186_v8 = vld [vmem:[%s11295_s25 + $0x40] sm:$0xff]  }
  0x12   : > { %163 = vst [vmem:[%s11300_s26 + $0x10] sm:$0xff] %v162_v2   ;;  %v190_v9 = vld [vmem:[%s11295_s25 + $0x48] sm:$0xff]   ;;  %v194_v10 = vld [vmem:[%s11295_s25 + $0x50] sm:$0xff]   ;;  %v198_v11 = vld [vmem:[%s11295_s25 + $0x58] sm:$0xff]  }
  0x13   : > { %167 = vst [vmem:[%s11300_s26 + $0x18] sm:$0xff] %v166_v3   ;;  %v202_v12 = vld [vmem:[%s11295_s25 + $0x60] sm:$0xff]   ;;  %v206_v13 = vld [vmem:[%s11295_s25 + $0x68] sm:$0xff]   ;;  %v210_v14 = vld [vmem:[%s11295_s25 + $0x70] sm:$0xff]  }
  0x14   : > { %171 = vst [vmem:[%s11300_s26 + $0x20] sm:$0xff] %v170_v4   ;;  %v214_v15 = vld [vmem:[%s11295_s25 + $0x78] sm:$0xff]   ;;  %v218_v16 = vld [vmem:[%s11295_s25 + $0x80] sm:$0xff]   ;;  %v222_v17 = vld [vmem:[%s11295_s25 + $0x88] sm:$0xff]  }
  0x15   : > { %175 = vst [vmem:[%s11300_s26 + $0x28] sm:$0xff] %v174_v5   ;;  %v226_v18 = vld [vmem:[%s11295_s25 + $0x90] sm:$0xff]   ;;  %v230_v19 = vld [vmem:[%s11295_s25 + $0x98] sm:$0xff]   ;;  %v234_v20 = vld [vmem:[%s11295_s25 + $0xa0] sm:$0xff]  }
  0x16   : > { %179 = vst [vmem:[%s11300_s26 + $0x30] sm:$0xff] %v178_v6   ;;  %v238_v21 = vld [vmem:[%s11295_s25 + $0xa8] sm:$0xff]   ;;  %v242_v22 = vld [vmem:[%s11295_s25 + $0xb0] sm:$0xff]   ;;  %v246_v23 = vld [vmem:[%s11295_s25 + $0xb8] sm:$0xff]  }
  0x17   : > { %183 = vst [vmem:[%s11300_s26 + $0x38] sm:$0xff] %v182_v7   ;;  %v250_v24 = vld [vmem:[%s11295_s25 + $0xc0] sm:$0xff]   ;;  %v254_v25 = vld [vmem:[%s11295_s25 + $0xc8] sm:$0xff]   ;;  %v258_v26 = vld [vmem:[%s11295_s25 + $0xd0] sm:$0xff]  }
  0x18   : > { %187 = vst [vmem:[%s11300_s26 + $0x40] sm:$0xff] %v186_v8   ;;  %v262_v27 = vld [vmem:[%s11295_s25 + $0xd8] sm:$0xff]   ;;  %v266_v28 = vld [vmem:[%s11295_s25 + $0xe0] sm:$0xff]   ;;  %v270_v29 = vld [vmem:[%s11295_s25 + $0xe8] sm:$0xff]  }
  0x19   : > { %191 = vst [vmem:[%s11300_s26 + $0x48] sm:$0xff] %v190_v9   ;;  %v274_v30 = vld [vmem:[%s11295_s25 + $0xf0] sm:$0xff]   ;;  %v278_v31 = vld [vmem:[%s11295_s25 + $0xf8] sm:$0xff]   ;;  %v282_v32 = vld [vmem:[%s11295_s25 + $0x200] sm:$0xff]  }
  0x1a   : > { %195 = vst [vmem:[%s11300_s26 + $0x50] sm:$0xff] %v194_v10   ;;  %v286_v33 = vld [vmem:[%s11295_s25 + $0x208] sm:$0xff]   ;;  %v290_v34 = vld [vmem:[%s11295_s25 + $0x210] sm:$0xff]   ;;  %v294_v35 = vld [vmem:[%s11295_s25 + $0x218] sm:$0xff]  }
  0x1b   : > { %199 = vst [vmem:[%s11300_s26 + $0x58] sm:$0xff] %v198_v11   ;;  %v298_v36 = vld [vmem:[%s11295_s25 + $0x220] sm:$0xff]   ;;  %v302_v37 = vld [vmem:[%s11295_s25 + $0x228] sm:$0xff]   ;;  %v306_v38 = vld [vmem:[%s11295_s25 + $0x230] sm:$0xff]  }
  0x1c   : > { %203 = vst [vmem:[%s11300_s26 + $0x60] sm:$0xff] %v202_v12   ;;  %v310_v39 = vld [vmem:[%s11295_s25 + $0x238] sm:$0xff]   ;;  %v314_v40 = vld [vmem:[%s11295_s25 + $0x240] sm:$0xff]   ;;  %v318_v41 = vld [vmem:[%s11295_s25 + $0x248] sm:$0xff]  }
  0x1d   : > { %207 = vst [vmem:[%s11300_s26 + $0x68] sm:$0xff] %v206_v13   ;;  %v322_v42 = vld [vmem:[%s11295_s25 + $0x250] sm:$0xff]   ;;  %v326_v43 = vld [vmem:[%s11295_s25 + $0x258] sm:$0xff]   ;;  %v330_v44 = vld [vmem:[%s11295_s25 + $0x260] sm:$0xff]  }
  0x1e   : > { %211 = vst [vmem:[%s11300_s26 + $0x70] sm:$0xff] %v210_v14   ;;  %v334_v45 = vld [vmem:[%s11295_s25 + $0x268] sm:$0xff]   ;;  %v338_v46 = vld [vmem:[%s11295_s25 + $0x270] sm:$0xff]   ;;  %v342_v47 = vld [vmem:[%s11295_s25 + $0x278] sm:$0xff]  }
  0x1f   : > { %215 = vst [vmem:[%s11300_s26 + $0x78] sm:$0xff] %v214_v15   ;;  %v346_v48 = vld [vmem:[%s11295_s25 + $0x280] sm:$0xff]   ;;  %v350_v49 = vld [vmem:[%s11295_s25 + $0x288] sm:$0xff]   ;;  %v354_v50 = vld [vmem:[%s11295_s25 + $0x290] sm:$0xff]  }
  0x20   : > { %219 = vst [vmem:[%s11300_s26 + $0x80] sm:$0xff] %v218_v16   ;;  %v358_v51 = vld [vmem:[%s11295_s25 + $0x298] sm:$0xff]   ;;  %v362_v52 = vld [vmem:[%s11295_s25 + $0x2a0] sm:$0xff]   ;;  %v366_v53 = vld [vmem:[%s11295_s25 + $0x2a8] sm:$0xff]  }
  0x21   : > { %223 = vst [vmem:[%s11300_s26 + $0x88] sm:$0xff] %v222_v17   ;;  %v370_v54 = vld [vmem:[%s11295_s25 + $0x2b0] sm:$0xff]   ;;  %v374_v55 = vld [vmem:[%s11295_s25 + $0x2b8] sm:$0xff]   ;;  %v378_v56 = vld [vmem:[%s11295_s25 + $0x2c0] sm:$0xff]  }
  0x22   : > { %227 = vst [vmem:[%s11300_s26 + $0x90] sm:$0xff] %v226_v18   ;;  %v382_v57 = vld [vmem:[%s11295_s25 + $0x2c8] sm:$0xff]   ;;  %v386_v58 = vld [vmem:[%s11295_s25 + $0x2d0] sm:$0xff]   ;;  %v390_v59 = vld [vmem:[%s11295_s25 + $0x2d8] sm:$0xff]  }
  0x23   : > { %231 = vst [vmem:[%s11300_s26 + $0x98] sm:$0xff] %v230_v19   ;;  %v394_v60 = vld [vmem:[%s11295_s25 + $0x2e0] sm:$0xff]   ;;  %v398_v61 = vld [vmem:[%s11295_s25 + $0x2e8] sm:$0xff]   ;;  %v402_v62 = vld [vmem:[%s11295_s25 + $0x2f0] sm:$0xff]  }
  0x24   : > { %235 = vst [vmem:[%s11300_s26 + $0xa0] sm:$0xff] %v234_v20   ;;  %v406_v63 = vld [vmem:[%s11295_s25 + $0x2f8] sm:$0xff]   ;;  %v410_v0 = vld [vmem:[%s11295_s25 + $0x400] sm:$0xff]   ;;  %v414_v1 = vld [vmem:[%s11295_s25 + $0x408] sm:$0xff]  }
  0x25   : > { %239 = vst [vmem:[%s11300_s26 + $0xa8] sm:$0xff] %v238_v21   ;;  %v418_v2 = vld [vmem:[%s11295_s25 + $0x410] sm:$0xff]   ;;  %v422_v3 = vld [vmem:[%s11295_s25 + $0x418] sm:$0xff]   ;;  %v426_v4 = vld [vmem:[%s11295_s25 + $0x420] sm:$0xff]  }
  0x26   : > { %243 = vst [vmem:[%s11300_s26 + $0xb0] sm:$0xff] %v242_v22   ;;  %v430_v5 = vld [vmem:[%s11295_s25 + $0x428] sm:$0xff]   ;;  %v434_v6 = vld [vmem:[%s11295_s25 + $0x430] sm:$0xff]   ;;  %v438_v7 = vld [vmem:[%s11295_s25 + $0x438] sm:$0xff]  }
  0x27   : > { %247 = vst [vmem:[%s11300_s26 + $0xb8] sm:$0xff] %v246_v23   ;;  %v442_v8 = vld [vmem:[%s11295_s25 + $0x440] sm:$0xff]   ;;  %v446_v9 = vld [vmem:[%s11295_s25 + $0x448] sm:$0xff]   ;;  %v450_v10 = vld [vmem:[%s11295_s25 + $0x450] sm:$0xff]  }
  0x28   : > { %251 = vst [vmem:[%s11300_s26 + $0xc0] sm:$0xff] %v250_v24   ;;  %v454_v11 = vld [vmem:[%s11295_s25 + $0x458] sm:$0xff]   ;;  %v458_v12 = vld [vmem:[%s11295_s25 + $0x460] sm:$0xff]   ;;  %v462_v13 = vld [vmem:[%s11295_s25 + $0x468] sm:$0xff]  }
  0x29   : > { %255 = vst [vmem:[%s11300_s26 + $0xc8] sm:$0xff] %v254_v25   ;;  %v466_v14 = vld [vmem:[%s11295_s25 + $0x470] sm:$0xff]   ;;  %v470_v15 = vld [vmem:[%s11295_s25 + $0x478] sm:$0xff]   ;;  %v474_v16 = vld [vmem:[%s11295_s25 + $0x480] sm:$0xff]  }
  0x2a   : > { %259 = vst [vmem:[%s11300_s26 + $0xd0] sm:$0xff] %v258_v26   ;;  %v478_v17 = vld [vmem:[%s11295_s25 + $0x488] sm:$0xff]   ;;  %v482_v18 = vld [vmem:[%s11295_s25 + $0x490] sm:$0xff]   ;;  %v486_v19 = vld [vmem:[%s11295_s25 + $0x498] sm:$0xff]  }
  0x2b   : > { %263 = vst [vmem:[%s11300_s26 + $0xd8] sm:$0xff] %v262_v27   ;;  %v490_v20 = vld [vmem:[%s11295_s25 + $0x4a0] sm:$0xff]   ;;  %v494_v21 = vld [vmem:[%s11295_s25 + $0x4a8] sm:$0xff]   ;;  %v498_v22 = vld [vmem:[%s11295_s25 + $0x4b0] sm:$0xff]  }
  0x2c   : > { %267 = vst [vmem:[%s11300_s26 + $0xe0] sm:$0xff] %v266_v28   ;;  %v502_v23 = vld [vmem:[%s11295_s25 + $0x4b8] sm:$0xff]   ;;  %v506_v24 = vld [vmem:[%s11295_s25 + $0x4c0] sm:$0xff]   ;;  %v510_v25 = vld [vmem:[%s11295_s25 + $0x4c8] sm:$0xff]  }
  0x2d   : > { %271 = vst [vmem:[%s11300_s26 + $0xe8] sm:$0xff] %v270_v29   ;;  %v514_v26 = vld [vmem:[%s11295_s25 + $0x4d0] sm:$0xff]   ;;  %v518_v27 = vld [vmem:[%s11295_s25 + $0x4d8] sm:$0xff]   ;;  %v522_v28 = vld [vmem:[%s11295_s25 + $0x4e0] sm:$0xff]  }
  0x2e   : > { %275 = vst [vmem:[%s11300_s26 + $0xf0] sm:$0xff] %v274_v30   ;;  %v526_v29 = vld [vmem:[%s11295_s25 + $0x4e8] sm:$0xff]   ;;  %v530_v30 = vld [vmem:[%s11295_s25 + $0x4f0] sm:$0xff]  }
  0x2f   : > { %279 = vst [vmem:[%s11300_s26 + $0xf8] sm:$0xff] %v278_v31   ;;  %v534_v31 = vld [vmem:[%s11295_s25 + $0x4f8] sm:$0xff]  }
  0x30   : > { %283 = vst [vmem:[%s11300_s26 + $0x100] sm:$0xff] %v282_v32   ;;  %v538_v32 = vld [vmem:[%s11295_s25 + $0x600] sm:$0xff]  }
  0x31   : > { %287 = vst [vmem:[%s11300_s26 + $0x108] sm:$0xff] %v286_v33   ;;  %v542_v33 = vld [vmem:[%s11295_s25 + $0x608] sm:$0xff]  }
  0x32   : > { %291 = vst [vmem:[%s11300_s26 + $0x110] sm:$0xff] %v290_v34   ;;  %v546_v34 = vld [vmem:[%s11295_s25 + $0x610] sm:$0xff]  }
  0x33   : > { %295 = vst [vmem:[%s11300_s26 + $0x118] sm:$0xff] %v294_v35   ;;  %v550_v35 = vld [vmem:[%s11295_s25 + $0x618] sm:$0xff]  }
  0x34   : > { %299 = vst [vmem:[%s11300_s26 + $0x120] sm:$0xff] %v298_v36   ;;  %v554_v36 = vld [vmem:[%s11295_s25 + $0x620] sm:$0xff]  }
  0x35   : > { %303 = vst [vmem:[%s11300_s26 + $0x128] sm:$0xff] %v302_v37   ;;  %v558_v37 = vld [vmem:[%s11295_s25 + $0x628] sm:$0xff]  }
  0x36   : > { %307 = vst [vmem:[%s11300_s26 + $0x130] sm:$0xff] %v306_v38   ;;  %v562_v38 = vld [vmem:[%s11295_s25 + $0x630] sm:$0xff]  }
  0x37   : > { %311 = vst [vmem:[%s11300_s26 + $0x138] sm:$0xff] %v310_v39   ;;  %v566_v39 = vld [vmem:[%s11295_s25 + $0x638] sm:$0xff]  }
  0x38   : > { %315 = vst [vmem:[%s11300_s26 + $0x140] sm:$0xff] %v314_v40   ;;  %v570_v40 = vld [vmem:[%s11295_s25 + $0x640] sm:$0xff]  }
  0x39   : > { %319 = vst [vmem:[%s11300_s26 + $0x148] sm:$0xff] %v318_v41   ;;  %v574_v41 = vld [vmem:[%s11295_s25 + $0x648] sm:$0xff]  }
  0x3a   : > { %323 = vst [vmem:[%s11300_s26 + $0x150] sm:$0xff] %v322_v42   ;;  %v578_v42 = vld [vmem:[%s11295_s25 + $0x650] sm:$0xff]  }
  0x3b   : > { %327 = vst [vmem:[%s11300_s26 + $0x158] sm:$0xff] %v326_v43   ;;  %v582_v43 = vld [vmem:[%s11295_s25 + $0x658] sm:$0xff]  }
  0x3c   : > { %331 = vst [vmem:[%s11300_s26 + $0x160] sm:$0xff] %v330_v44   ;;  %v586_v44 = vld [vmem:[%s11295_s25 + $0x660] sm:$0xff]  }
  0x3d   : > { %335 = vst [vmem:[%s11300_s26 + $0x168] sm:$0xff] %v334_v45   ;;  %v590_v45 = vld [vmem:[%s11295_s25 + $0x668] sm:$0xff]  }
  0x3e   : > { %339 = vst [vmem:[%s11300_s26 + $0x170] sm:$0xff] %v338_v46   ;;  %v594_v46 = vld [vmem:[%s11295_s25 + $0x670] sm:$0xff]  }
  0x3f   : > { %343 = vst [vmem:[%s11300_s26 + $0x178] sm:$0xff] %v342_v47   ;;  %v598_v47 = vld [vmem:[%s11295_s25 + $0x678] sm:$0xff]  }
  0x40   : > { %347 = vst [vmem:[%s11300_s26 + $0x180] sm:$0xff] %v346_v48   ;;  %v602_v48 = vld [vmem:[%s11295_s25 + $0x680] sm:$0xff]  }
  0x41   : > { %351 = vst [vmem:[%s11300_s26 + $0x188] sm:$0xff] %v350_v49   ;;  %v606_v49 = vld [vmem:[%s11295_s25 + $0x688] sm:$0xff]  }
  0x42   : > { %355 = vst [vmem:[%s11300_s26 + $0x190] sm:$0xff] %v354_v50   ;;  %v610_v50 = vld [vmem:[%s11295_s25 + $0x690] sm:$0xff]  }
  0x43   : > { %359 = vst [vmem:[%s11300_s26 + $0x198] sm:$0xff] %v358_v51   ;;  %v614_v51 = vld [vmem:[%s11295_s25 + $0x698] sm:$0xff]  }
  0x44   : > { %363 = vst [vmem:[%s11300_s26 + $0x1a0] sm:$0xff] %v362_v52   ;;  %v618_v52 = vld [vmem:[%s11295_s25 + $0x6a0] sm:$0xff]  }
  0x45   : > { %367 = vst [vmem:[%s11300_s26 + $0x1a8] sm:$0xff] %v366_v53   ;;  %v622_v53 = vld [vmem:[%s11295_s25 + $0x6a8] sm:$0xff]  }
  0x46   : > { %371 = vst [vmem:[%s11300_s26 + $0x1b0] sm:$0xff] %v370_v54   ;;  %v626_v54 = vld [vmem:[%s11295_s25 + $0x6b0] sm:$0xff]  }
  0x47   : > { %375 = vst [vmem:[%s11300_s26 + $0x1b8] sm:$0xff] %v374_v55   ;;  %v630_v55 = vld [vmem:[%s11295_s25 + $0x6b8] sm:$0xff]  }
  0x48   : > { %379 = vst [vmem:[%s11300_s26 + $0x1c0] sm:$0xff] %v378_v56   ;;  %v634_v56 = vld [vmem:[%s11295_s25 + $0x6c0] sm:$0xff]  }
  0x49   : > { %383 = vst [vmem:[%s11300_s26 + $0x1c8] sm:$0xff] %v382_v57   ;;  %v638_v57 = vld [vmem:[%s11295_s25 + $0x6c8] sm:$0xff]  }
  0x4a   : > { %387 = vst [vmem:[%s11300_s26 + $0x1d0] sm:$0xff] %v386_v58   ;;  %v642_v58 = vld [vmem:[%s11295_s25 + $0x6d0] sm:$0xff]  }
  0x4b   : > { %391 = vst [vmem:[%s11300_s26 + $0x1d8] sm:$0xff] %v390_v59   ;;  %v646_v59 = vld [vmem:[%s11295_s25 + $0x6d8] sm:$0xff]  }
  0x4c   : > { %395 = vst [vmem:[%s11300_s26 + $0x1e0] sm:$0xff] %v394_v60   ;;  %v650_v60 = vld [vmem:[%s11295_s25 + $0x6e0] sm:$0xff]  }
  0x4d   : > { %399 = vst [vmem:[%s11300_s26 + $0x1e8] sm:$0xff] %v398_v61   ;;  %v654_v61 = vld [vmem:[%s11295_s25 + $0x6e8] sm:$0xff]  }
  0x4e   : > { %403 = vst [vmem:[%s11300_s26 + $0x1f0] sm:$0xff] %v402_v62   ;;  %v658_v62 = vld [vmem:[%s11295_s25 + $0x6f0] sm:$0xff]  }
  0x4f   : > { %407 = vst [vmem:[%s11300_s26 + $0x1f8] sm:$0xff] %v406_v63   ;;  %v662_v63 = vld [vmem:[%s11295_s25 + $0x6f8] sm:$0xff]  }
  0x50   : > { %411 = vst [vmem:[%s11300_s26 + $0x200] sm:$0xff] %v410_v0   ;;  %v666_v0 = vld [vmem:[%s11295_s25 + $0x800] sm:$0xff]  }
  0x51   : > { %415 = vst [vmem:[%s11300_s26 + $0x208] sm:$0xff] %v414_v1   ;;  %v670_v1 = vld [vmem:[%s11295_s25 + $0x808] sm:$0xff]  }
  0x52   : > { %419 = vst [vmem:[%s11300_s26 + $0x210] sm:$0xff] %v418_v2   ;;  %v674_v2 = vld [vmem:[%s11295_s25 + $0x810] sm:$0xff]  }
  0x53   : > { %423 = vst [vmem:[%s11300_s26 + $0x218] sm:$0xff] %v422_v3   ;;  %v678_v3 = vld [vmem:[%s11295_s25 + $0x818] sm:$0xff]  }
  0x54   : > { %427 = vst [vmem:[%s11300_s26 + $0x220] sm:$0xff] %v426_v4   ;;  %v682_v4 = vld [vmem:[%s11295_s25 + $0x820] sm:$0xff]  }
  0x55   : > { %431 = vst [vmem:[%s11300_s26 + $0x228] sm:$0xff] %v430_v5   ;;  %v686_v5 = vld [vmem:[%s11295_s25 + $0x828] sm:$0xff]  }
  0x56   : > { %435 = vst [vmem:[%s11300_s26 + $0x230] sm:$0xff] %v434_v6   ;;  %v690_v6 = vld [vmem:[%s11295_s25 + $0x830] sm:$0xff]  }
  0x57   : > { %439 = vst [vmem:[%s11300_s26 + $0x238] sm:$0xff] %v438_v7   ;;  %v694_v7 = vld [vmem:[%s11295_s25 + $0x838] sm:$0xff]  }
  0x58   : > { %443 = vst [vmem:[%s11300_s26 + $0x240] sm:$0xff] %v442_v8   ;;  %v698_v8 = vld [vmem:[%s11295_s25 + $0x840] sm:$0xff]  }
  0x59   : > { %447 = vst [vmem:[%s11300_s26 + $0x248] sm:$0xff] %v446_v9   ;;  %v702_v9 = vld [vmem:[%s11295_s25 + $0x848] sm:$0xff]  }
  0x5a   : > { %451 = vst [vmem:[%s11300_s26 + $0x250] sm:$0xff] %v450_v10   ;;  %v706_v10 = vld [vmem:[%s11295_s25 + $0x850] sm:$0xff]  }
  0x5b   : > { %455 = vst [vmem:[%s11300_s26 + $0x258] sm:$0xff] %v454_v11   ;;  %v710_v11 = vld [vmem:[%s11295_s25 + $0x858] sm:$0xff]  }
  0x5c   : > { %459 = vst [vmem:[%s11300_s26 + $0x260] sm:$0xff] %v458_v12   ;;  %v714_v12 = vld [vmem:[%s11295_s25 + $0x860] sm:$0xff]  }
  0x5d   : > { %463 = vst [vmem:[%s11300_s26 + $0x268] sm:$0xff] %v462_v13   ;;  %v718_v13 = vld [vmem:[%s11295_s25 + $0x868] sm:$0xff]  }
  0x5e   : > { %467 = vst [vmem:[%s11300_s26 + $0x270] sm:$0xff] %v466_v14   ;;  %v722_v14 = vld [vmem:[%s11295_s25 + $0x870] sm:$0xff]  }
  0x5f   : > { %471 = vst [vmem:[%s11300_s26 + $0x278] sm:$0xff] %v470_v15   ;;  %v726_v15 = vld [vmem:[%s11295_s25 + $0x878] sm:$0xff]  }
  0x60   : > { %475 = vst [vmem:[%s11300_s26 + $0x280] sm:$0xff] %v474_v16   ;;  %v730_v16 = vld [vmem:[%s11295_s25 + $0x880] sm:$0xff]  }
  0x61   : > { %479 = vst [vmem:[%s11300_s26 + $0x288] sm:$0xff] %v478_v17   ;;  %v734_v17 = vld [vmem:[%s11295_s25 + $0x888] sm:$0xff]  }
  0x62   : > { %483 = vst [vmem:[%s11300_s26 + $0x290] sm:$0xff] %v482_v18   ;;  %v738_v18 = vld [vmem:[%s11295_s25 + $0x890] sm:$0xff]  }
  0x63   : > { %487 = vst [vmem:[%s11300_s26 + $0x298] sm:$0xff] %v486_v19   ;;  %v742_v19 = vld [vmem:[%s11295_s25 + $0x898] sm:$0xff]  }
  0x64   : > { %491 = vst [vmem:[%s11300_s26 + $0x2a0] sm:$0xff] %v490_v20   ;;  %v746_v20 = vld [vmem:[%s11295_s25 + $0x8a0] sm:$0xff]  }
  0x65   : > { %495 = vst [vmem:[%s11300_s26 + $0x2a8] sm:$0xff] %v494_v21   ;;  %v750_v21 = vld [vmem:[%s11295_s25 + $0x8a8] sm:$0xff]  }
  0x66   : > { %499 = vst [vmem:[%s11300_s26 + $0x2b0] sm:$0xff] %v498_v22   ;;  %v754_v22 = vld [vmem:[%s11295_s25 + $0x8b0] sm:$0xff]  }
  0x67   : > { %503 = vst [vmem:[%s11300_s26 + $0x2b8] sm:$0xff] %v502_v23   ;;  %v758_v23 = vld [vmem:[%s11295_s25 + $0x8b8] sm:$0xff]  }
  0x68   : > { %507 = vst [vmem:[%s11300_s26 + $0x2c0] sm:$0xff] %v506_v24   ;;  %v762_v24 = vld [vmem:[%s11295_s25 + $0x8c0] sm:$0xff]  }
  0x69   : > { %511 = vst [vmem:[%s11300_s26 + $0x2c8] sm:$0xff] %v510_v25   ;;  %v766_v25 = vld [vmem:[%s11295_s25 + $0x8c8] sm:$0xff]  }
  0x6a   : > { %515 = vst [vmem:[%s11300_s26 + $0x2d0] sm:$0xff] %v514_v26   ;;  %v770_v26 = vld [vmem:[%s11295_s25 + $0x8d0] sm:$0xff]  }
  0x6b   : > { %519 = vst [vmem:[%s11300_s26 + $0x2d8] sm:$0xff] %v518_v27   ;;  %v774_v27 = vld [vmem:[%s11295_s25 + $0x8d8] sm:$0xff]  }
  0x6c   : > { %523 = vst [vmem:[%s11300_s26 + $0x2e0] sm:$0xff] %v522_v28   ;;  %v778_v28 = vld [vmem:[%s11295_s25 + $0x8e0] sm:$0xff]  }
  0x6d   : > { %527 = vst [vmem:[%s11300_s26 + $0x2e8] sm:$0xff] %v526_v29   ;;  %v782_v29 = vld [vmem:[%s11295_s25 + $0x8e8] sm:$0xff]  }
  0x6e   : > { %531 = vst [vmem:[%s11300_s26 + $0x2f0] sm:$0xff] %v530_v30   ;;  %v786_v30 = vld [vmem:[%s11295_s25 + $0x8f0] sm:$0xff]  }
  0x6f   : > { %535 = vst [vmem:[%s11300_s26 + $0x2f8] sm:$0xff] %v534_v31   ;;  %v790_v31 = vld [vmem:[%s11295_s25 + $0x8f8] sm:$0xff]  }
  0x70   : > { %539 = vst [vmem:[%s11300_s26 + $0x300] sm:$0xff] %v538_v32   ;;  %v794_v32 = vld [vmem:[%s11295_s25 + $0xa00] sm:$0xff]  }
  0x71   : > { %543 = vst [vmem:[%s11300_s26 + $0x308] sm:$0xff] %v542_v33   ;;  %v798_v33 = vld [vmem:[%s11295_s25 + $0xa08] sm:$0xff]  }
  0x72   : > { %547 = vst [vmem:[%s11300_s26 + $0x310] sm:$0xff] %v546_v34   ;;  %v802_v34 = vld [vmem:[%s11295_s25 + $0xa10] sm:$0xff]  }
  0x73   : > { %551 = vst [vmem:[%s11300_s26 + $0x318] sm:$0xff] %v550_v35   ;;  %v806_v35 = vld [vmem:[%s11295_s25 + $0xa18] sm:$0xff]  }
  0x74   : > { %555 = vst [vmem:[%s11300_s26 + $0x320] sm:$0xff] %v554_v36   ;;  %v810_v36 = vld [vmem:[%s11295_s25 + $0xa20] sm:$0xff]  }
  0x75   : > { %559 = vst [vmem:[%s11300_s26 + $0x328] sm:$0xff] %v558_v37   ;;  %v814_v37 = vld [vmem:[%s11295_s25 + $0xa28] sm:$0xff]  }
  0x76   : > { %563 = vst [vmem:[%s11300_s26 + $0x330] sm:$0xff] %v562_v38   ;;  %v818_v38 = vld [vmem:[%s11295_s25 + $0xa30] sm:$0xff]  }
  0x77   : > { %567 = vst [vmem:[%s11300_s26 + $0x338] sm:$0xff] %v566_v39   ;;  %v822_v39 = vld [vmem:[%s11295_s25 + $0xa38] sm:$0xff]  }
  0x78   : > { %571 = vst [vmem:[%s11300_s26 + $0x340] sm:$0xff] %v570_v40   ;;  %v826_v40 = vld [vmem:[%s11295_s25 + $0xa40] sm:$0xff]  }
  0x79   : > { %575 = vst [vmem:[%s11300_s26 + $0x348] sm:$0xff] %v574_v41   ;;  %v830_v41 = vld [vmem:[%s11295_s25 + $0xa48] sm:$0xff]  }
  0x7a   : > { %579 = vst [vmem:[%s11300_s26 + $0x350] sm:$0xff] %v578_v42   ;;  %v834_v42 = vld [vmem:[%s11295_s25 + $0xa50] sm:$0xff]  }
  0x7b   : > { %583 = vst [vmem:[%s11300_s26 + $0x358] sm:$0xff] %v582_v43   ;;  %v838_v43 = vld [vmem:[%s11295_s25 + $0xa58] sm:$0xff]  }
  0x7c   : > { %587 = vst [vmem:[%s11300_s26 + $0x360] sm:$0xff] %v586_v44   ;;  %v842_v44 = vld [vmem:[%s11295_s25 + $0xa60] sm:$0xff]  }
  0x7d   : > { %591 = vst [vmem:[%s11300_s26 + $0x368] sm:$0xff] %v590_v45   ;;  %v846_v45 = vld [vmem:[%s11295_s25 + $0xa68] sm:$0xff]  }
  0x7e   : > { %595 = vst [vmem:[%s11300_s26 + $0x370] sm:$0xff] %v594_v46   ;;  %v850_v46 = vld [vmem:[%s11295_s25 + $0xa70] sm:$0xff]  }
  0x7f   : > { %599 = vst [vmem:[%s11300_s26 + $0x378] sm:$0xff] %v598_v47   ;;  %v854_v47 = vld [vmem:[%s11295_s25 + $0xa78] sm:$0xff]  }
  0x80   : > { %603 = vst [vmem:[%s11300_s26 + $0x380] sm:$0xff] %v602_v48   ;;  %v858_v48 = vld [vmem:[%s11295_s25 + $0xa80] sm:$0xff]  }
  0x81   : > { %607 = vst [vmem:[%s11300_s26 + $0x388] sm:$0xff] %v606_v49   ;;  %v862_v49 = vld [vmem:[%s11295_s25 + $0xa88] sm:$0xff]  }
  0x82   : > { %611 = vst [vmem:[%s11300_s26 + $0x390] sm:$0xff] %v610_v50   ;;  %v866_v50 = vld [vmem:[%s11295_s25 + $0xa90] sm:$0xff]  }
  0x83   : > { %615 = vst [vmem:[%s11300_s26 + $0x398] sm:$0xff] %v614_v51   ;;  %v870_v51 = vld [vmem:[%s11295_s25 + $0xa98] sm:$0xff]  }
  0x84   : > { %619 = vst [vmem:[%s11300_s26 + $0x3a0] sm:$0xff] %v618_v52   ;;  %v874_v52 = vld [vmem:[%s11295_s25 + $0xaa0] sm:$0xff]  }
  0x85   : > { %623 = vst [vmem:[%s11300_s26 + $0x3a8] sm:$0xff] %v622_v53   ;;  %v878_v53 = vld [vmem:[%s11295_s25 + $0xaa8] sm:$0xff]  }
  0x86   : > { %627 = vst [vmem:[%s11300_s26 + $0x3b0] sm:$0xff] %v626_v54   ;;  %v882_v54 = vld [vmem:[%s11295_s25 + $0xab0] sm:$0xff]  }
  0x87   : > { %631 = vst [vmem:[%s11300_s26 + $0x3b8] sm:$0xff] %v630_v55   ;;  %v886_v55 = vld [vmem:[%s11295_s25 + $0xab8] sm:$0xff]  }
  0x88   : > { %635 = vst [vmem:[%s11300_s26 + $0x3c0] sm:$0xff] %v634_v56   ;;  %v890_v56 = vld [vmem:[%s11295_s25 + $0xac0] sm:$0xff]  }
  0x89   : > { %639 = vst [vmem:[%s11300_s26 + $0x3c8] sm:$0xff] %v638_v57   ;;  %v894_v57 = vld [vmem:[%s11295_s25 + $0xac8] sm:$0xff]  }
  0x8a   : > { %643 = vst [vmem:[%s11300_s26 + $0x3d0] sm:$0xff] %v642_v58   ;;  %v898_v58 = vld [vmem:[%s11295_s25 + $0xad0] sm:$0xff]  }
  0x8b   : > { %647 = vst [vmem:[%s11300_s26 + $0x3d8] sm:$0xff] %v646_v59   ;;  %v902_v59 = vld [vmem:[%s11295_s25 + $0xad8] sm:$0xff]  }
  0x8c   : > { %651 = vst [vmem:[%s11300_s26 + $0x3e0] sm:$0xff] %v650_v60   ;;  %v906_v60 = vld [vmem:[%s11295_s25 + $0xae0] sm:$0xff]  }
  0x8d   : > { %655 = vst [vmem:[%s11300_s26 + $0x3e8] sm:$0xff] %v654_v61   ;;  %v910_v61 = vld [vmem:[%s11295_s25 + $0xae8] sm:$0xff]  }
  0x8e   : > { %659 = vst [vmem:[%s11300_s26 + $0x3f0] sm:$0xff] %v658_v62   ;;  %v914_v62 = vld [vmem:[%s11295_s25 + $0xaf0] sm:$0xff]  }
  0x8f   : > { %663 = vst [vmem:[%s11300_s26 + $0x3f8] sm:$0xff] %v662_v63   ;;  %v918_v63 = vld [vmem:[%s11295_s25 + $0xaf8] sm:$0xff]  }
  0x90   : > { %667 = vst [vmem:[%s11300_s26 + $0x400] sm:$0xff] %v666_v0   ;;  %v922_v0 = vld [vmem:[%s11295_s25 + $0xc00] sm:$0xff]  }
  0x91   : > { %671 = vst [vmem:[%s11300_s26 + $0x408] sm:$0xff] %v670_v1   ;;  %v926_v1 = vld [vmem:[%s11295_s25 + $0xc08] sm:$0xff]  }
  0x92   : > { %675 = vst [vmem:[%s11300_s26 + $0x410] sm:$0xff] %v674_v2   ;;  %v930_v2 = vld [vmem:[%s11295_s25 + $0xc10] sm:$0xff]  }
  0x93   : > { %679 = vst [vmem:[%s11300_s26 + $0x418] sm:$0xff] %v678_v3   ;;  %v934_v3 = vld [vmem:[%s11295_s25 + $0xc18] sm:$0xff]  }
  0x94   : > { %683 = vst [vmem:[%s11300_s26 + $0x420] sm:$0xff] %v682_v4   ;;  %v938_v4 = vld [vmem:[%s11295_s25 + $0xc20] sm:$0xff]  }
  0x95   : > { %687 = vst [vmem:[%s11300_s26 + $0x428] sm:$0xff] %v686_v5   ;;  %v942_v5 = vld [vmem:[%s11295_s25 + $0xc28] sm:$0xff]  }
  0x96   : > { %691 = vst [vmem:[%s11300_s26 + $0x430] sm:$0xff] %v690_v6   ;;  %v946_v6 = vld [vmem:[%s11295_s25 + $0xc30] sm:$0xff]  }
  0x97   : > { %695 = vst [vmem:[%s11300_s26 + $0x438] sm:$0xff] %v694_v7   ;;  %v950_v7 = vld [vmem:[%s11295_s25 + $0xc38] sm:$0xff]  }
  0x98   : > { %699 = vst [vmem:[%s11300_s26 + $0x440] sm:$0xff] %v698_v8   ;;  %v954_v8 = vld [vmem:[%s11295_s25 + $0xc40] sm:$0xff]  }
  0x99   : > { %703 = vst [vmem:[%s11300_s26 + $0x448] sm:$0xff] %v702_v9   ;;  %v958_v9 = vld [vmem:[%s11295_s25 + $0xc48] sm:$0xff]  }
  0x9a   : > { %707 = vst [vmem:[%s11300_s26 + $0x450] sm:$0xff] %v706_v10   ;;  %v962_v10 = vld [vmem:[%s11295_s25 + $0xc50] sm:$0xff]  }
  0x9b   : > { %711 = vst [vmem:[%s11300_s26 + $0x458] sm:$0xff] %v710_v11   ;;  %v966_v11 = vld [vmem:[%s11295_s25 + $0xc58] sm:$0xff]  }
  0x9c   : > { %715 = vst [vmem:[%s11300_s26 + $0x460] sm:$0xff] %v714_v12   ;;  %v970_v12 = vld [vmem:[%s11295_s25 + $0xc60] sm:$0xff]  }
  0x9d   : > { %719 = vst [vmem:[%s11300_s26 + $0x468] sm:$0xff] %v718_v13   ;;  %v974_v13 = vld [vmem:[%s11295_s25 + $0xc68] sm:$0xff]  }
  0x9e   : > { %723 = vst [vmem:[%s11300_s26 + $0x470] sm:$0xff] %v722_v14   ;;  %v978_v14 = vld [vmem:[%s11295_s25 + $0xc70] sm:$0xff]  }
  0x9f   : > { %727 = vst [vmem:[%s11300_s26 + $0x478] sm:$0xff] %v726_v15   ;;  %v982_v15 = vld [vmem:[%s11295_s25 + $0xc78] sm:$0xff]  }
  0xa0   : > { %731 = vst [vmem:[%s11300_s26 + $0x480] sm:$0xff] %v730_v16   ;;  %v986_v16 = vld [vmem:[%s11295_s25 + $0xc80] sm:$0xff]  }
  0xa1   : > { %735 = vst [vmem:[%s11300_s26 + $0x488] sm:$0xff] %v734_v17   ;;  %v990_v17 = vld [vmem:[%s11295_s25 + $0xc88] sm:$0xff]  }
  0xa2   : > { %739 = vst [vmem:[%s11300_s26 + $0x490] sm:$0xff] %v738_v18   ;;  %v994_v18 = vld [vmem:[%s11295_s25 + $0xc90] sm:$0xff]  }
  0xa3   : > { %743 = vst [vmem:[%s11300_s26 + $0x498] sm:$0xff] %v742_v19   ;;  %v998_v19 = vld [vmem:[%s11295_s25 + $0xc98] sm:$0xff]  }
  0xa4   : > { %747 = vst [vmem:[%s11300_s26 + $0x4a0] sm:$0xff] %v746_v20   ;;  %v1002_v20 = vld [vmem:[%s11295_s25 + $0xca0] sm:$0xff]  }
  0xa5   : > { %751 = vst [vmem:[%s11300_s26 + $0x4a8] sm:$0xff] %v750_v21   ;;  %v1006_v21 = vld [vmem:[%s11295_s25 + $0xca8] sm:$0xff]  }
  0xa6   : > { %755 = vst [vmem:[%s11300_s26 + $0x4b0] sm:$0xff] %v754_v22   ;;  %v1010_v22 = vld [vmem:[%s11295_s25 + $0xcb0] sm:$0xff]  }
  0xa7   : > { %759 = vst [vmem:[%s11300_s26 + $0x4b8] sm:$0xff] %v758_v23   ;;  %v1014_v23 = vld [vmem:[%s11295_s25 + $0xcb8] sm:$0xff]  }
  0xa8   : > { %763 = vst [vmem:[%s11300_s26 + $0x4c0] sm:$0xff] %v762_v24   ;;  %v1018_v24 = vld [vmem:[%s11295_s25 + $0xcc0] sm:$0xff]  }
  0xa9   : > { %767 = vst [vmem:[%s11300_s26 + $0x4c8] sm:$0xff] %v766_v25   ;;  %v1022_v25 = vld [vmem:[%s11295_s25 + $0xcc8] sm:$0xff]  }
  0xaa   : > { %771 = vst [vmem:[%s11300_s26 + $0x4d0] sm:$0xff] %v770_v26   ;;  %v1026_v26 = vld [vmem:[%s11295_s25 + $0xcd0] sm:$0xff]  }
  0xab   : > { %775 = vst [vmem:[%s11300_s26 + $0x4d8] sm:$0xff] %v774_v27   ;;  %v1030_v27 = vld [vmem:[%s11295_s25 + $0xcd8] sm:$0xff]  }
  0xac   : > { %779 = vst [vmem:[%s11300_s26 + $0x4e0] sm:$0xff] %v778_v28   ;;  %v1034_v28 = vld [vmem:[%s11295_s25 + $0xce0] sm:$0xff]  }
  0xad   : > { %783 = vst [vmem:[%s11300_s26 + $0x4e8] sm:$0xff] %v782_v29   ;;  %v1038_v29 = vld [vmem:[%s11295_s25 + $0xce8] sm:$0xff]  }
  0xae   : > { %787 = vst [vmem:[%s11300_s26 + $0x4f0] sm:$0xff] %v786_v30   ;;  %v1042_v30 = vld [vmem:[%s11295_s25 + $0xcf0] sm:$0xff]  }
  0xaf   : > { %791 = vst [vmem:[%s11300_s26 + $0x4f8] sm:$0xff] %v790_v31   ;;  %v1046_v31 = vld [vmem:[%s11295_s25 + $0xcf8] sm:$0xff]  }
  0xb0   : > { %795 = vst [vmem:[%s11300_s26 + $0x500] sm:$0xff] %v794_v32   ;;  %v1050_v32 = vld [vmem:[%s11295_s25 + $0xe00] sm:$0xff]  }
  0xb1   : > { %799 = vst [vmem:[%s11300_s26 + $0x508] sm:$0xff] %v798_v33   ;;  %v1054_v33 = vld [vmem:[%s11295_s25 + $0xe08] sm:$0xff]  }
  0xb2   : > { %803 = vst [vmem:[%s11300_s26 + $0x510] sm:$0xff] %v802_v34   ;;  %v1058_v34 = vld [vmem:[%s11295_s25 + $0xe10] sm:$0xff]  }
  0xb3   : > { %807 = vst [vmem:[%s11300_s26 + $0x518] sm:$0xff] %v806_v35   ;;  %v1062_v35 = vld [vmem:[%s11295_s25 + $0xe18] sm:$0xff]  }
  0xb4   : > { %811 = vst [vmem:[%s11300_s26 + $0x520] sm:$0xff] %v810_v36   ;;  %v1066_v36 = vld [vmem:[%s11295_s25 + $0xe20] sm:$0xff]  }
  0xb5   : > { %815 = vst [vmem:[%s11300_s26 + $0x528] sm:$0xff] %v814_v37   ;;  %v1070_v37 = vld [vmem:[%s11295_s25 + $0xe28] sm:$0xff]  }
  0xb6   : > { %819 = vst [vmem:[%s11300_s26 + $0x530] sm:$0xff] %v818_v38   ;;  %v1074_v38 = vld [vmem:[%s11295_s25 + $0xe30] sm:$0xff]  }
  0xb7   : > { %823 = vst [vmem:[%s11300_s26 + $0x538] sm:$0xff] %v822_v39   ;;  %v1078_v39 = vld [vmem:[%s11295_s25 + $0xe38] sm:$0xff]  }
  0xb8   : > { %827 = vst [vmem:[%s11300_s26 + $0x540] sm:$0xff] %v826_v40   ;;  %v1082_v40 = vld [vmem:[%s11295_s25 + $0xe40] sm:$0xff]  }
  0xb9   : > { %831 = vst [vmem:[%s11300_s26 + $0x548] sm:$0xff] %v830_v41   ;;  %v1086_v41 = vld [vmem:[%s11295_s25 + $0xe48] sm:$0xff]  }
  0xba   : > { %835 = vst [vmem:[%s11300_s26 + $0x550] sm:$0xff] %v834_v42   ;;  %v1090_v42 = vld [vmem:[%s11295_s25 + $0xe50] sm:$0xff]  }
  0xbb   : > { %839 = vst [vmem:[%s11300_s26 + $0x558] sm:$0xff] %v838_v43   ;;  %v1094_v43 = vld [vmem:[%s11295_s25 + $0xe58] sm:$0xff]  }
  0xbc   : > { %843 = vst [vmem:[%s11300_s26 + $0x560] sm:$0xff] %v842_v44   ;;  %v1098_v44 = vld [vmem:[%s11295_s25 + $0xe60] sm:$0xff]  }
  0xbd   : > { %847 = vst [vmem:[%s11300_s26 + $0x568] sm:$0xff] %v846_v45   ;;  %v1102_v45 = vld [vmem:[%s11295_s25 + $0xe68] sm:$0xff]  }
  0xbe   : > { %851 = vst [vmem:[%s11300_s26 + $0x570] sm:$0xff] %v850_v46   ;;  %v1106_v46 = vld [vmem:[%s11295_s25 + $0xe70] sm:$0xff]  }
  0xbf   : > { %855 = vst [vmem:[%s11300_s26 + $0x578] sm:$0xff] %v854_v47   ;;  %v1110_v47 = vld [vmem:[%s11295_s25 + $0xe78] sm:$0xff]  }
  0xc0   : > { %859 = vst [vmem:[%s11300_s26 + $0x580] sm:$0xff] %v858_v48   ;;  %v1114_v48 = vld [vmem:[%s11295_s25 + $0xe80] sm:$0xff]  }
  0xc1   : > { %863 = vst [vmem:[%s11300_s26 + $0x588] sm:$0xff] %v862_v49   ;;  %v1118_v49 = vld [vmem:[%s11295_s25 + $0xe88] sm:$0xff]  }
  0xc2   : > { %867 = vst [vmem:[%s11300_s26 + $0x590] sm:$0xff] %v866_v50   ;;  %v1122_v50 = vld [vmem:[%s11295_s25 + $0xe90] sm:$0xff]  }
  0xc3   : > { %871 = vst [vmem:[%s11300_s26 + $0x598] sm:$0xff] %v870_v51   ;;  %v1126_v51 = vld [vmem:[%s11295_s25 + $0xe98] sm:$0xff]  }
  0xc4   : > { %875 = vst [vmem:[%s11300_s26 + $0x5a0] sm:$0xff] %v874_v52   ;;  %v1130_v52 = vld [vmem:[%s11295_s25 + $0xea0] sm:$0xff]  }
  0xc5   : > { %879 = vst [vmem:[%s11300_s26 + $0x5a8] sm:$0xff] %v878_v53   ;;  %v1134_v53 = vld [vmem:[%s11295_s25 + $0xea8] sm:$0xff]  }
  0xc6   : > { %883 = vst [vmem:[%s11300_s26 + $0x5b0] sm:$0xff] %v882_v54   ;;  %v1138_v54 = vld [vmem:[%s11295_s25 + $0xeb0] sm:$0xff]  }
  0xc7   : > { %887 = vst [vmem:[%s11300_s26 + $0x5b8] sm:$0xff] %v886_v55   ;;  %v1142_v55 = vld [vmem:[%s11295_s25 + $0xeb8] sm:$0xff]  }
  0xc8   : > { %891 = vst [vmem:[%s11300_s26 + $0x5c0] sm:$0xff] %v890_v56   ;;  %v1146_v56 = vld [vmem:[%s11295_s25 + $0xec0] sm:$0xff]  }
  0xc9   : > { %895 = vst [vmem:[%s11300_s26 + $0x5c8] sm:$0xff] %v894_v57   ;;  %v1150_v57 = vld [vmem:[%s11295_s25 + $0xec8] sm:$0xff]  }
  0xca   : > { %899 = vst [vmem:[%s11300_s26 + $0x5d0] sm:$0xff] %v898_v58   ;;  %v1154_v58 = vld [vmem:[%s11295_s25 + $0xed0] sm:$0xff]  }
  0xcb   : > { %903 = vst [vmem:[%s11300_s26 + $0x5d8] sm:$0xff] %v902_v59   ;;  %v1158_v59 = vld [vmem:[%s11295_s25 + $0xed8] sm:$0xff]  }
  0xcc   : > { %907 = vst [vmem:[%s11300_s26 + $0x5e0] sm:$0xff] %v906_v60   ;;  %v1162_v60 = vld [vmem:[%s11295_s25 + $0xee0] sm:$0xff]  }
  0xcd   : > { %911 = vst [vmem:[%s11300_s26 + $0x5e8] sm:$0xff] %v910_v61   ;;  %v1166_v61 = vld [vmem:[%s11295_s25 + $0xee8] sm:$0xff]  }
  0xce   : > { %915 = vst [vmem:[%s11300_s26 + $0x5f0] sm:$0xff] %v914_v62   ;;  %v1170_v62 = vld [vmem:[%s11295_s25 + $0xef0] sm:$0xff]  }
  0xcf   : > { %919 = vst [vmem:[%s11300_s26 + $0x5f8] sm:$0xff] %v918_v63   ;;  %v1174_v63 = vld [vmem:[%s11295_s25 + $0xef8] sm:$0xff]  }
  0xd0   : > { %923 = vst [vmem:[%s11300_s26 + $0x600] sm:$0xff] %v922_v0  }
  0xd1   : > { %927 = vst [vmem:[%s11300_s26 + $0x608] sm:$0xff] %v926_v1  }
  0xd2   : > { %931 = vst [vmem:[%s11300_s26 + $0x610] sm:$0xff] %v930_v2  }
  0xd3   : > { %935 = vst [vmem:[%s11300_s26 + $0x618] sm:$0xff] %v934_v3  }
  0xd4   : > { %939 = vst [vmem:[%s11300_s26 + $0x620] sm:$0xff] %v938_v4  }
  0xd5   : > { %943 = vst [vmem:[%s11300_s26 + $0x628] sm:$0xff] %v942_v5  }
  0xd6   : > { %947 = vst [vmem:[%s11300_s26 + $0x630] sm:$0xff] %v946_v6  }
  0xd7   : > { %951 = vst [vmem:[%s11300_s26 + $0x638] sm:$0xff] %v950_v7  }
  0xd8   : > { %955 = vst [vmem:[%s11300_s26 + $0x640] sm:$0xff] %v954_v8  }
  0xd9   : > { %959 = vst [vmem:[%s11300_s26 + $0x648] sm:$0xff] %v958_v9  }
  0xda   : > { %963 = vst [vmem:[%s11300_s26 + $0x650] sm:$0xff] %v962_v10  }
  0xdb   : > { %967 = vst [vmem:[%s11300_s26 + $0x658] sm:$0xff] %v966_v11  }
  0xdc   : > { %971 = vst [vmem:[%s11300_s26 + $0x660] sm:$0xff] %v970_v12  }
  0xdd   : > { %975 = vst [vmem:[%s11300_s26 + $0x668] sm:$0xff] %v974_v13  }
  0xde   : > { %979 = vst [vmem:[%s11300_s26 + $0x670] sm:$0xff] %v978_v14  }
  0xdf   : > { %983 = vst [vmem:[%s11300_s26 + $0x678] sm:$0xff] %v982_v15  }
  0xe0   : > { %987 = vst [vmem:[%s11300_s26 + $0x680] sm:$0xff] %v986_v16  }
  0xe1   : > { %991 = vst [vmem:[%s11300_s26 + $0x688] sm:$0xff] %v990_v17  }
  0xe2   : > { %995 = vst [vmem:[%s11300_s26 + $0x690] sm:$0xff] %v994_v18  }
  0xe3   : > { %999 = vst [vmem:[%s11300_s26 + $0x698] sm:$0xff] %v998_v19  }
  0xe4   : > { %1003 = vst [vmem:[%s11300_s26 + $0x6a0] sm:$0xff] %v1002_v20  }
  0xe5   : > { %1007 = vst [vmem:[%s11300_s26 + $0x6a8] sm:$0xff] %v1006_v21  }
  0xe6   : > { %1011 = vst [vmem:[%s11300_s26 + $0x6b0] sm:$0xff] %v1010_v22  }
  0xe7   : > { %1015 = vst [vmem:[%s11300_s26 + $0x6b8] sm:$0xff] %v1014_v23  }
  0xe8   : > { %1019 = vst [vmem:[%s11300_s26 + $0x6c0] sm:$0xff] %v1018_v24  }
  0xe9   : > { %1023 = vst [vmem:[%s11300_s26 + $0x6c8] sm:$0xff] %v1022_v25  }
  0xea   : > { %1027 = vst [vmem:[%s11300_s26 + $0x6d0] sm:$0xff] %v1026_v26  }
  0xeb   : > { %1031 = vst [vmem:[%s11300_s26 + $0x6d8] sm:$0xff] %v1030_v27  }
  0xec   : > { %1035 = vst [vmem:[%s11300_s26 + $0x6e0] sm:$0xff] %v1034_v28  }
  0xed   : > { %1039 = vst [vmem:[%s11300_s26 + $0x6e8] sm:$0xff] %v1038_v29  }
  0xee   : > { %1043 = vst [vmem:[%s11300_s26 + $0x6f0] sm:$0xff] %v1042_v30  }
  0xef   : > { %1047 = vst [vmem:[%s11300_s26 + $0x6f8] sm:$0xff] %v1046_v31  }
  0xf0   : > { %1051 = vst [vmem:[%s11300_s26 + $0x700] sm:$0xff] %v1050_v32  }
  0xf1   : > { %1055 = vst [vmem:[%s11300_s26 + $0x708] sm:$0xff] %v1054_v33  }
  0xf2   : > { %1059 = vst [vmem:[%s11300_s26 + $0x710] sm:$0xff] %v1058_v34  }
  0xf3   : > { %1063 = vst [vmem:[%s11300_s26 + $0x718] sm:$0xff] %v1062_v35  }
  0xf4   : > { %1067 = vst [vmem:[%s11300_s26 + $0x720] sm:$0xff] %v1066_v36  }
  0xf5   : > { %1071 = vst [vmem:[%s11300_s26 + $0x728] sm:$0xff] %v1070_v37  }
  0xf6   : > { %1075 = vst [vmem:[%s11300_s26 + $0x730] sm:$0xff] %v1074_v38  }
  0xf7   : > { %1079 = vst [vmem:[%s11300_s26 + $0x738] sm:$0xff] %v1078_v39  }
  0xf8   : > { %1083 = vst [vmem:[%s11300_s26 + $0x740] sm:$0xff] %v1082_v40  }
  0xf9   : > { %1087 = vst [vmem:[%s11300_s26 + $0x748] sm:$0xff] %v1086_v41  }
  0xfa   : > { %1091 = vst [vmem:[%s11300_s26 + $0x750] sm:$0xff] %v1090_v42  }
  0xfb   : > { %1095 = vst [vmem:[%s11300_s26 + $0x758] sm:$0xff] %v1094_v43  }
  0xfc   : > { %1099 = vst [vmem:[%s11300_s26 + $0x760] sm:$0xff] %v1098_v44  }
  0xfd   : > { %1103 = vst [vmem:[%s11300_s26 + $0x768] sm:$0xff] %v1102_v45  }
  0xfe   : > { %1107 = vst [vmem:[%s11300_s26 + $0x770] sm:$0xff] %v1106_v46  }
  0xff   : > { %1111 = vst [vmem:[%s11300_s26 + $0x778] sm:$0xff] %v1110_v47  }
 0x100   : > { %1115 = vst [vmem:[%s11300_s26 + $0x780] sm:$0xff] %v1114_v48  }
 0x101   : > { %1119 = vst [vmem:[%s11300_s26 + $0x788] sm:$0xff] %v1118_v49  }
 0x102   : > { %1123 = vst [vmem:[%s11300_s26 + $0x790] sm:$0xff] %v1122_v50  }
 0x103   : > { %1127 = vst [vmem:[%s11300_s26 + $0x798] sm:$0xff] %v1126_v51  }
 0x104   : > { %1131 = vst [vmem:[%s11300_s26 + $0x7a0] sm:$0xff] %v1130_v52  }
 0x105   : > { %1135 = vst [vmem:[%s11300_s26 + $0x7a8] sm:$0xff] %v1134_v53  }
 0x106   : > { %1139 = vst [vmem:[%s11300_s26 + $0x7b0] sm:$0xff] %v1138_v54  }
 0x107   : > { %1143 = vst [vmem:[%s11300_s26 + $0x7b8] sm:$0xff] %v1142_v55  }
 0x108   : > { %1147 = vst [vmem:[%s11300_s26 + $0x7c0] sm:$0xff] %v1146_v56  }
 0x109   : > { %1151 = vst [vmem:[%s11300_s26 + $0x7c8] sm:$0xff] %v1150_v57  }
 0x10a   : > { %1155 = vst [vmem:[%s11300_s26 + $0x7d0] sm:$0xff] %v1154_v58  }
 0x10b   : > { %1159 = vst [vmem:[%s11300_s26 + $0x7d8] sm:$0xff] %v1158_v59  }
 0x10c   : > { %1163 = vst [vmem:[%s11300_s26 + $0x7e0] sm:$0xff] %v1162_v60  }
 0x10d   : > { %1167 = vst [vmem:[%s11300_s26 + $0x7e8] sm:$0xff] %v1166_v61  }
 0x10e   : > { %1171 = vst [vmem:[%s11300_s26 + $0x7f0] sm:$0xff] %v1170_v62  }
 0x10f   : > { %1175 = vst [vmem:[%s11300_s26 + $0x7f8] sm:$0xff] %v1174_v63  }
 0x110 PF: > { %p9165_p5 = scmp.ge.s32.totalorder %s11239_s14, 1  ;;  %p4298_p6 = scmp.lt.s32.totalorder %s11239_s14, 3 }
 0x112   : > { %p4299_p7 = pnand %p9165_p5, %p4298_p6 }
 0x114   : > { %4302 = sbr.rel (%p4299_p7) target bundleno = 1471 (0x5bf), region = 80 }
 0x119   : > { %v9323_v0 = vld [vmem:[%s13148_s1 + $0x30] sm:$0xf]  ;;  %v10934_v1 = vld [vmem:[%s13148_s1 + $0x30] sm:$0x30]  ;;  %vm4712_vm0 = vcmask 1045504   ;;  %v10933_v4 = vld [vmem:[%s13148_s1 + $0x28] sm:$0xff] }
 0x11a   : > { %v9324_v2 = vor.u32 %v10934_v1, %v9323_v0  ;;  %v10932_v5 = vld [vmem:[%s13148_s1 + $0x20] sm:$0xff]  ;;  %v10931_v6 = vld [vmem:[%s13148_s1 + $0x18] sm:$0xff]  ;;  %v10930_v7 = vld [vmem:[%s13148_s1 + $0x10] sm:$0xff]  ;;  %s4305_s17 = sand.u32 1, %s11231_s12   ;;  %vm4615_vm1 = vcmask 883712   ;;  %s9167_s12 = sshll.u32 %s9158_s15, 6 }
 0x11b   : > { %v10929_v8 = vld [vmem:[%s13148_s1 + $0x8] sm:$0xff]  ;;  %s9166_s21 = sshll.u32 %s4305_s17, 11  ;;  %v10928_v9 = vld [vmem:[%s13148_s1] sm:$0xff]  ;;  %p4330_p8 = scmp.lt.s32.totalorder %s9167_s12, 127  ;;  %vm9023_vm3 = vcmask 64512  }
 0x11c   : > { %v4714_v3 = vsel %vm4712_vm0, %v9324_v2, 0  ;;  %s11838_s24 = scalar_lea.vmem [#allocation2], %s9166_s21 }
 0x11d   : > { %4717 = vmatpush.bf16.msra.mxu0 %v4714_v3  ;;  %5207 = vmatpush.bf16.msra.mxu1 %v4714_v3  ;;  %v10935_v10 = vld [vmem:[%s11838_s24] sm:$0xff]  ;;  %v10936_v14 = vld [vmem:[%s11838_s24 + $0x8] sm:$0xff]  ;;  %v10937_v18 = vld [vmem:[%s11838_s24 + $0x10] sm:$0xff]  ;;  %s13456_s12 = smov (!%p4330_p8, %s9167_s12), 127 }
 0x11e   : > { %5761 = vmatpush.bf16.msra.mxu2 %v4714_v3  ;;  %6315 = vmatpush.bf16.msra.mxu3 %v4714_v3  ;;  %v10967_v11 = vld [vmem:[%s11838_s24 + $0x100] sm:$0xff]  ;;  %v10968_v15 = vld [vmem:[%s11838_s24 + $0x108] sm:$0xff]  ;;  %v10969_v19 = vld [vmem:[%s11838_s24 + $0x110] sm:$0xff]  ;;  %s9168_s25 = sshll.u32 %s13456_s12, 3 }
 0x11f   : > { %v10999_v12 = vld [vmem:[%s11838_s24 + $0x200] sm:$0xff]  ;;  %v11000_v16 = vld [vmem:[%s11838_s24 + $0x208] sm:$0xff]  ;;  %v11001_v20 = vld [vmem:[%s11838_s24 + $0x210] sm:$0xff]  ;;  %s12569_s28 = scalar_lea.vmem %s13150_s3, %s9168_s25 }
 0x120   : > { %v11031_v13 = vld [vmem:[%s11838_s24 + $0x300] sm:$0xff]  ;;  %v11032_v17 = vld [vmem:[%s11838_s24 + $0x308] sm:$0xff]  ;;  %v11033_v21 = vld [vmem:[%s11838_s24 + $0x310] sm:$0xff] }
 0x121   : > { %4718 = vmatpush.bf16.msra.mxu0 %v10933_v4  ;;  %5208 = vmatpush.bf16.msra.mxu1 %v10933_v4  ;;  %v10938_v22 = vld [vmem:[%s11838_s24 + $0x18] sm:$0xff]  ;;  %v10939_v26 = vld [vmem:[%s11838_s24 + $0x20] sm:$0xff]  ;;  %v10940_v30 = vld [vmem:[%s11838_s24 + $0x28] sm:$0xff] }
 0x122   : > { %5762 = vmatpush.bf16.msra.mxu2 %v10933_v4  ;;  %6316 = vmatpush.bf16.msra.mxu3 %v10933_v4  ;;  %v10970_v23 = vld [vmem:[%s11838_s24 + $0x118] sm:$0xff]  ;;  %v10971_v27 = vld [vmem:[%s11838_s24 + $0x120] sm:$0xff]  ;;  %v10972_v31 = vld [vmem:[%s11838_s24 + $0x128] sm:$0xff] }
 0x123   : > { %v11002_v24 = vld [vmem:[%s11838_s24 + $0x218] sm:$0xff]  ;;  %v11003_v28 = vld [vmem:[%s11838_s24 + $0x220] sm:$0xff]  ;;  %v11004_v32 = vld [vmem:[%s11838_s24 + $0x228] sm:$0xff] }
 0x124   : > { %v11034_v25 = vld [vmem:[%s11838_s24 + $0x318] sm:$0xff]  ;;  %v11035_v29 = vld [vmem:[%s11838_s24 + $0x320] sm:$0xff]  ;;  %v11036_v33 = vld [vmem:[%s11838_s24 + $0x328] sm:$0xff] }
 0x125   : > { %4719 = vmatpush.bf16.msra.mxu0 %v10932_v5  ;;  %5209 = vmatpush.bf16.msra.mxu1 %v10932_v5  ;;  %v10941_v34 = vld [vmem:[%s11838_s24 + $0x30] sm:$0xff]  ;;  %v10942_v38 = vld [vmem:[%s11838_s24 + $0x38] sm:$0xff]  ;;  %v10943_v42 = vld [vmem:[%s11838_s24 + $0x40] sm:$0xff] }
 0x126   : > { %5763 = vmatpush.bf16.msra.mxu2 %v10932_v5  ;;  %6317 = vmatpush.bf16.msra.mxu3 %v10932_v5  ;;  %v10973_v35 = vld [vmem:[%s11838_s24 + $0x130] sm:$0xff]  ;;  %v10974_v39 = vld [vmem:[%s11838_s24 + $0x138] sm:$0xff]  ;;  %v10975_v43 = vld [vmem:[%s11838_s24 + $0x140] sm:$0xff] }
 0x127   : > { %v11005_v36 = vld [vmem:[%s11838_s24 + $0x230] sm:$0xff]  ;;  %v11006_v40 = vld [vmem:[%s11838_s24 + $0x238] sm:$0xff]  ;;  %v11007_v46 = vld [vmem:[%s11838_s24 + $0x240] sm:$0xff] }
 0x128   : > { %v11037_v37 = vld [vmem:[%s11838_s24 + $0x330] sm:$0xff]  ;;  %v11038_v41 = vld [vmem:[%s11838_s24 + $0x338] sm:$0xff]  ;;  %v11039_v47 = vld [vmem:[%s11838_s24 + $0x340] sm:$0xff] }
 0x129   : > { %4720 = vmatpush.bf16.msra.mxu0 %v10931_v6  ;;  %5210 = vmatpush.bf16.msra.mxu1 %v10931_v6  ;;  %v10944_v58 = vld [vmem:[%s11838_s24 + $0x48] sm:$0xff] }
 0x12a   : > { %5764 = vmatpush.bf16.msra.mxu2 %v10931_v6  ;;  %6318 = vmatpush.bf16.msra.mxu3 %v10931_v6  ;;  %v10976_v59 = vld [vmem:[%s11838_s24 + $0x148] sm:$0xff] }
 0x12b   : > { %v11008_v63 = vld [vmem:[%s11838_s24 + $0x248] sm:$0xff] }
 0x12c   : > { %v11040_v0 = vld [vmem:[%s11838_s24 + $0x348] sm:$0xff] }
 0x12d   : > { %4721 = vmatpush.bf16.msra.mxu0 %v10930_v7  ;;  %5211 = vmatpush.bf16.msra.mxu1 %v10930_v7  ;;  %v11020_v55 = vld [vmem:[%s11838_s24 + $0x2a8] sm:$0xff] }
 0x12e   : > { %5765 = vmatpush.bf16.msra.mxu2 %v10930_v7  ;;  %6319 = vmatpush.bf16.msra.mxu3 %v10930_v7 }
 0x131   : > { %4722 = vmatpush.bf16.msra.mxu0 %v10929_v8  ;;  %5212 = vmatpush.bf16.msra.mxu1 %v10929_v8 }
 0x132   : > { %5766 = vmatpush.bf16.msra.mxu2 %v10929_v8  ;;  %6320 = vmatpush.bf16.msra.mxu3 %v10929_v8 }
 0x135   : > { %4723 = vmatpush.bf16.msra.mxu0 %v10928_v9  ;;  %5213 = vmatpush.bf16.msra.mxu1 %v10928_v9 }
 0x136   : > { %5767 = vmatpush.bf16.msra.mxu2 %v10928_v9  ;;  %6321 = vmatpush.bf16.msra.mxu3 %v10928_v9 }
 0x138   : > { %9325 = vmatmul.msk.bf16.vlgmr.msra.gmra.mxu0 %vm4615_vm1, %v10935_v10  ;;  %9549 = vmatmul.msk.bf16.vlgmr.msra.gmra.mxu1 %vm4615_vm1, %v10967_v11 }
 0x139   : > { %6869 = vmatpush.bf16.msrb.mxu0 %v4714_v3  ;;  %9773 = vmatmul.msk.bf16.vlgmr.msra.gmra.mxu2 %vm4615_vm1, %v10999_v12  ;;  %v10945_v12 = vld [vmem:[%s11838_s24 + $0x50] sm:$0xff] }
 0x13a   : > { %7977 = vmatpush.bf16.msrb.mxu2 %v4714_v3  ;;  %9997 = vmatmul.msk.bf16.vlgmr.msra.gmra.mxu3 %vm4615_vm1, %v11031_v13  ;;  %v10977_v13 = vld [vmem:[%s11838_s24 + $0x150] sm:$0xff] }
 0x13b   : > { %8531 = vmatpush.bf16.msrb.mxu3 %v4714_v3  ;;  %7423 = vmatpush.bf16.msrb.mxu1 %v4714_v3 }
 0x13d   : > { %6870 = vmatpush.bf16.msrb.mxu0 %v10933_v4 }
 0x13e   : > { %7978 = vmatpush.bf16.msrb.mxu2 %v10933_v4 }
 0x13f   : > { %8532 = vmatpush.bf16.msrb.mxu3 %v10933_v4  ;;  %7424 = vmatpush.bf16.msrb.mxu1 %v10933_v4 }
 0x141   : > { %6871 = vmatpush.bf16.msrb.mxu0 %v10932_v5 }
 0x142   : > { %7979 = vmatpush.bf16.msrb.mxu2 %v10932_v5 }
 0x143   : > { %8533 = vmatpush.bf16.msrb.mxu3 %v10932_v5  ;;  %7425 = vmatpush.bf16.msrb.mxu1 %v10932_v5 }
 0x145   : > { %6872 = vmatpush.bf16.msrb.mxu0 %v10931_v6 }
 0x146   : > { %7980 = vmatpush.bf16.msrb.mxu2 %v10931_v6 }
 0x147   : > { %8534 = vmatpush.bf16.msrb.mxu3 %v10931_v6  ;;  %7426 = vmatpush.bf16.msrb.mxu1 %v10931_v6 }
 0x148   : > { %9326 = vmatmul.msk.bf16.gmra.mxu0 %vm4615_vm1, %v10936_v14  ;;  %9550 = vmatmul.msk.bf16.gmra.mxu1 %vm4615_vm1, %v10968_v15 }
 0x149   : > { %6873 = vmatpush.bf16.msrb.mxu0 %v10930_v7  ;;  %9774 = vmatmul.msk.bf16.gmra.mxu2 %vm4615_vm1, %v11000_v16 }
 0x14a   : > { %7981 = vmatpush.bf16.msrb.mxu2 %v10930_v7  ;;  %9998 = vmatmul.msk.bf16.gmra.mxu3 %vm4615_vm1, %v11032_v17  ;;  %v11009_v17 = vld [vmem:[%s11838_s24 + $0x250] sm:$0xff] }
 0x14b   : > { %8535 = vmatpush.bf16.msrb.mxu3 %v10930_v7  ;;  %7427 = vmatpush.bf16.msrb.mxu1 %v10930_v7 }
 0x14d   : > { %6874 = vmatpush.bf16.msrb.mxu0 %v10929_v8 }
 0x14e   : > { %7982 = vmatpush.bf16.msrb.mxu2 %v10929_v8 }
 0x14f   : > { %8536 = vmatpush.bf16.msrb.mxu3 %v10929_v8  ;;  %7428 = vmatpush.bf16.msrb.mxu1 %v10929_v8 }
 0x151   : > { %6875 = vmatpush.bf16.msrb.mxu0 %v10928_v9 }
 0x152   : > { %7983 = vmatpush.bf16.msrb.mxu2 %v10928_v9 }
 0x153   : > { %8537 = vmatpush.bf16.msrb.mxu3 %v10928_v9  ;;  %7429 = vmatpush.bf16.msrb.mxu1 %v10928_v9 }
 0x158   : > { %9327 = vmatmul.msk.bf16.gmra.mxu0 %vm4615_vm1, %v10937_v18  ;;  %9551 = vmatmul.msk.bf16.gmra.mxu1 %vm4615_vm1, %v10969_v19  ;;  %v11041_v18 = vld [vmem:[%s11838_s24 + $0x350] sm:$0xff] }
 0x159   : > { %9775 = vmatmul.msk.bf16.gmra.mxu2 %vm4615_vm1, %v11001_v20  ;;  %v11051_v20 = vld [vmem:[%s11838_s24 + $0x3a0] sm:$0xff] }
 0x15a   : > { %9999 = vmatmul.msk.bf16.gmra.mxu3 %vm4615_vm1, %v11033_v21 }
 0x168   : > { %9328 = vmatmul.msk.bf16.gmra.mxu0 %vm4615_vm1, %v10938_v22  ;;  %9552 = vmatmul.msk.bf16.gmra.mxu1 %vm4615_vm1, %v10970_v23 }
 0x169   : > { %9776 = vmatmul.msk.bf16.gmra.mxu2 %vm4615_vm1, %v11002_v24 }
 0x16a   : > { %10000 = vmatmul.msk.bf16.gmra.mxu3 %vm4615_vm1, %v11034_v25 }
 0x178   : > { %9329 = vmatmul.msk.bf16.gmra.mxu0 %vm4615_vm1, %v10939_v26  ;;  %9553 = vmatmul.msk.bf16.gmra.mxu1 %vm4615_vm1, %v10971_v27  ;;  %v11019_v27 = vld [vmem:[%s11838_s24 + $0x2a0] sm:$0xff] }
 0x179   : > { %9777 = vmatmul.msk.bf16.gmra.mxu2 %vm4615_vm1, %v11003_v28 }
 0x17a   : > { %10001 = vmatmul.msk.bf16.gmra.mxu3 %vm4615_vm1, %v11035_v29 }
 0x188   : > { %9330 = vmatmul.msk.bf16.gmra.mxu0 %vm4615_vm1, %v10940_v30  ;;  %9554 = vmatmul.msk.bf16.gmra.mxu1 %vm4615_vm1, %v10972_v31  ;;  %v10946_v30 = vld [vmem:[%s11838_s24 + $0x58] sm:$0xff] }
 0x189   : > { %9778 = vmatmul.msk.bf16.gmra.mxu2 %vm4615_vm1, %v11004_v32  ;;  %v10978_v31 = vld [vmem:[%s11838_s24 + $0x158] sm:$0xff] }
 0x18a   : > { %10002 = vmatmul.msk.bf16.gmra.mxu3 %vm4615_vm1, %v11036_v33 }
 0x198   : > { %9331 = vmatmul.msk.bf16.gmra.mxu0 %vm4615_vm1, %v10941_v34  ;;  %9555 = vmatmul.msk.bf16.gmra.mxu1 %vm4615_vm1, %v10973_v35  ;;  %v11010_v35 = vld [vmem:[%s11838_s24 + $0x258] sm:$0xff] }
 0x199   : > { %9779 = vmatmul.msk.bf16.gmra.mxu2 %vm4615_vm1, %v11005_v36  ;;  %v11042_v36 = vld [vmem:[%s11838_s24 + $0x358] sm:$0xff] }
 0x19a   : > { %10003 = vmatmul.msk.bf16.gmra.mxu3 %vm4615_vm1, %v11037_v37 }
 0x1a8   : > { %9332 = vmatmul.msk.bf16.gmra.mxu0 %vm4615_vm1, %v10942_v38  ;;  %9556 = vmatmul.msk.bf16.gmra.mxu1 %vm4615_vm1, %v10974_v39 }
 0x1a9   : > { %9780 = vmatmul.msk.bf16.gmra.mxu2 %vm4615_vm1, %v11006_v40 }
 0x1aa   : > { %10004 = vmatmul.msk.bf16.gmra.mxu3 %vm4615_vm1, %v11038_v41 }
 0x1b5   : > { %v4725_v44 = vpop.f32.mrf.mxu0  ;;  %v5215_v45 = vpop.f32.mrf.mxu1 }
 0x1b6   : > { %v5375_v48 = vmax.f32 %v4725_v44, %v5215_v45 }
 0x1b8   : > { %9333 = vmatmul.msk.bf16.gmra.mxu0 %vm4615_vm1, %v10943_v42  ;;  %9557 = vmatmul.msk.bf16.gmra.mxu1 %vm4615_vm1, %v10975_v43 }
 0x1b9   : > { %9781 = vmatmul.msk.bf16.gmra.mxu2 %vm4615_vm1, %v11007_v46 }
 0x1ba   : > { %10005 = vmatmul.msk.bf16.gmra.mxu3 %vm4615_vm1, %v11039_v47 }
 0x1bc   : > { %v5769_v49 = vpop.f32.mrf.mxu2 }
 0x1bd   : > { %v11912_v50 = vpop.f32.mrf.mxu3  ;;  %v11914_v51 = vmax.f32 %v5375_v48, %v5769_v49  ;;  %v4727_v52 = vpop.f32.mrf.mxu0  ;;  %v10947_v48 = vld [vmem:[%s11838_s24 + $0x60] sm:$0xff] }
 0x1be   : > { %v5217_v53 = vpop.f32.mrf.mxu1  ;;  %v10979_v49 = vld [vmem:[%s11838_s24 + $0x160] sm:$0xff] }
 0x1bf   : > { %v5376_v54 = vmax.f32 %v4727_v52, %v5217_v53 }
 0x1c4   : > { %v5771_v56 = vpop.f32.mrf.mxu2 }
 0x1c5   : > { %v11918_v57 = vpop.f32.mrf.mxu3  ;;  %v11922_v60 = vmax.f32 %v5376_v54, %v5771_v56  ;;  %v4730_v61 = vpop.f32.mrf.mxu0  ;;  %v11011_v56 = vld [vmem:[%s11838_s24 + $0x260] sm:$0xff] }
 0x1c6   : > { %v5220_v62 = vpop.f32.mrf.mxu1 }
 0x1c7   : > { %v5377_v1 = vmax.f32 %v4730_v61, %v5220_v62  ;;  %v11050_v61 = vld [vmem:[%s11838_s24 + $0x398] sm:$0xff] }
 0x1c8   : > { %9334 = vmatmul.msk.bf16.gmra.mxu0 %vm4615_vm1, %v10944_v58  ;;  %9558 = vmatmul.msk.bf16.gmra.mxu1 %vm4615_vm1, %v10976_v59  ;;  %v11043_v58 = vld [vmem:[%s11838_s24 + $0x360] sm:$0xff] }
 0x1c9   : > { %9782 = vmatmul.msk.bf16.gmra.mxu2 %vm4615_vm1, %v11008_v63 }
 0x1ca   : > { %10006 = vmatmul.msk.bf16.gmra.mxu3 %vm4615_vm1, %v11040_v0 }
 0x1cc   : > { %v5774_v3 = vpop.f32.mrf.mxu2 }
 0x1cd   : > { %v11932_v4 = vpop.f32.mrf.mxu3  ;;  %v11934_v5 = vmax.f32 %v5377_v1, %v5774_v3  ;;  %v4732_v6 = vpop.f32.mrf.mxu0 }
 0x1ce   : > { %v5222_v7 = vpop.f32.mrf.mxu1 }
 0x1cf   : > { %v5378_v8 = vmax.f32 %v4732_v6, %v5222_v7  ;;  %v11018_v7 = vld [vmem:[%s11838_s24 + $0x298] sm:$0xff] }
 0x1d4   : > { %v5776_v10 = vpop.f32.mrf.mxu2 }
 0x1d5   : > { %v11938_v11 = vpop.f32.mrf.mxu3  ;;  %v11942_v14 = vmax.f32 %v5378_v8, %v5776_v10  ;;  %v4735_v15 = vpop.f32.mrf.mxu0 }
 0x1d6   : > { %v5225_v16 = vpop.f32.mrf.mxu1 }
 0x1d7   : > { %v5379_v19 = vmax.f32 %v4735_v15, %v5225_v16 }
 0x1d8   : > { %9335 = vmatmul.msk.bf16.gmra.mxu0 %vm4615_vm1, %v10945_v12  ;;  %9559 = vmatmul.msk.bf16.gmra.mxu1 %vm4615_vm1, %v10977_v13  ;;  %v10948_v12 = vld [vmem:[%s11838_s24 + $0x68] sm:$0xff] }
 0x1d9   : > { %9783 = vmatmul.msk.bf16.gmra.mxu2 %vm4615_vm1, %v11009_v17  ;;  %v10980_v13 = vld [vmem:[%s11838_s24 + $0x168] sm:$0xff] }
 0x1da   : > { %10007 = vmatmul.msk.bf16.gmra.mxu3 %vm4615_vm1, %v11041_v18  ;;  %v11012_v18 = vld [vmem:[%s11838_s24 + $0x268] sm:$0xff] }
 0x1dc   : > { %v5779_v21 = vpop.f32.mrf.mxu2 }
 0x1dd   : > { %v11952_v22 = vpop.f32.mrf.mxu3  ;;  %v11954_v23 = vmax.f32 %v5379_v19, %v5779_v21  ;;  %v4737_v24 = vpop.f32.mrf.mxu0  ;;  %v11044_v19 = vld [vmem:[%s11838_s24 + $0x368] sm:$0xff] }
 0x1de   : > { %v5227_v25 = vpop.f32.mrf.mxu1 }
 0x1df   : > { %v5380_v26 = vmax.f32 %v4737_v24, %v5227_v25 }
 0x1e4   : > { %v5781_v28 = vpop.f32.mrf.mxu2 }
 0x1e5   : > { %v11958_v29 = vpop.f32.mrf.mxu3  ;;  %v11962_v32 = vmax.f32 %v5380_v26, %v5781_v28  ;;  %v4740_v33 = vpop.f32.mrf.mxu0 }
 0x1e6   : > { %v5230_v34 = vpop.f32.mrf.mxu1 }
 0x1e7   : > { %v5381_v37 = vmax.f32 %v4740_v33, %v5230_v34 }
 0x1e8   : > { %9336 = vmatmul.msk.bf16.gmra.mxu0 %vm4615_vm1, %v10946_v30  ;;  %9560 = vmatmul.msk.bf16.gmra.mxu1 %vm4615_vm1, %v10978_v31 }
 0x1e9   : > { %9784 = vmatmul.msk.bf16.gmra.mxu2 %vm4615_vm1, %v11010_v35 }
 0x1ea   : > { %10008 = vmatmul.msk.bf16.gmra.mxu3 %vm4615_vm1, %v11042_v36 }
 0x1ec   : > { %v5784_v39 = vpop.f32.mrf.mxu2 }
 0x1ed   : > { %v11972_v40 = vpop.f32.mrf.mxu3  ;;  %v11974_v41 = vmax.f32 %v5381_v37, %v5784_v39  ;;  %v4742_v42 = vpop.f32.mrf.mxu0  ;;  %v10949_v37 = vld [vmem:[%s11838_s24 + $0x70] sm:$0xff] }
 0x1ee   : > { %v5232_v43 = vpop.f32.mrf.mxu1  ;;  %v10981_v39 = vld [vmem:[%s11838_s24 + $0x170] sm:$0xff] }
 0x1ef   : > { %v5382_v44 = vmax.f32 %v4742_v42, %v5232_v43 }
 0x1f4   : > { %v5786_v46 = vpop.f32.mrf.mxu2 }
 0x1f5   : > { %v11978_v47 = vpop.f32.mrf.mxu3  ;;  %v11982_v52 = vmax.f32 %v5382_v44, %v5786_v46  ;;  %v4745_v53 = vpop.f32.mrf.mxu0  ;;  %v11013_v46 = vld [vmem:[%s11838_s24 + $0x270] sm:$0xff] }
 0x1f6   : > { %v5235_v54 = vpop.f32.mrf.mxu1 }
 0x1f7   : > { %v5383_v59 = vmax.f32 %v4745_v53, %v5235_v54  ;;  %v11049_v53 = vld [vmem:[%s11838_s24 + $0x390] sm:$0xff] }
 0x1f8   : > { %9337 = vmatmul.msk.bf16.gmra.mxu0 %vm4615_vm1, %v10947_v48  ;;  %9561 = vmatmul.msk.bf16.gmra.mxu1 %vm4615_vm1, %v10979_v49  ;;  %v11045_v48 = vld [vmem:[%s11838_s24 + $0x370] sm:$0xff] }
 0x1f9   : > { %9785 = vmatmul.msk.bf16.gmra.mxu2 %vm4615_vm1, %v11011_v56 }
 0x1fa   : > { %10009 = vmatmul.msk.bf16.gmra.mxu3 %vm4615_vm1, %v11043_v58 }
 0x1fc   : > { %v5789_v62 = vpop.f32.mrf.mxu2 }
 0x1fd   : > { %v11992_v63 = vpop.f32.mrf.mxu3  ;;  %v11994_v0 = vmax.f32 %v5383_v59, %v5789_v62  ;;  %v4747_v1 = vpop.f32.mrf.mxu0 }
 0x1fe   : > { %v5237_v3 = vpop.f32.mrf.mxu1 }
 0x1ff   : > { %v5384_v6 = vmax.f32 %v4747_v1, %v5237_v3  ;;  %v11017_v3 = vld [vmem:[%s11838_s24 + $0x290] sm:$0xff] }
 0x204   : > { %v5791_v8 = vpop.f32.mrf.mxu2 }
 0x205   : > { %v11998_v10 = vpop.f32.mrf.mxu3  ;;  %v12002_v15 = vmax.f32 %v5384_v6, %v5791_v8  ;;  %v4750_v16 = vpop.f32.mrf.mxu0 }
 0x206   : > { %v5240_v17 = vpop.f32.mrf.mxu1 }
 0x207   : > { %v5385_v21 = vmax.f32 %v4750_v16, %v5240_v17 }
 0x208   : > { %9338 = vmatmul.msk.bf16.gmra.mxu0 %vm4615_vm1, %v10948_v12  ;;  %9562 = vmatmul.msk.bf16.gmra.mxu1 %vm4615_vm1, %v10980_v13  ;;  %v10950_v12 = vld [vmem:[%s11838_s24 + $0x78] sm:$0xff] }
 0x209   : > { %9786 = vmatmul.msk.bf16.gmra.mxu2 %vm4615_vm1, %v11012_v18  ;;  %v10982_v13 = vld [vmem:[%s11838_s24 + $0x178] sm:$0xff] }
 0x20a   : > { %10010 = vmatmul.msk.bf16.gmra.mxu3 %vm4615_vm1, %v11044_v19  ;;  %v11014_v19 = vld [vmem:[%s11838_s24 + $0x278] sm:$0xff] }
 0x20c   : > { %v5794_v25 = vpop.f32.mrf.mxu2 }
 0x20d   : > { %v12012_v26 = vpop.f32.mrf.mxu3  ;;  %v12014_v28 = vmax.f32 %v5385_v21, %v5794_v25  ;;  %v4752_v30 = vpop.f32.mrf.mxu0  ;;  %v11046_v21 = vld [vmem:[%s11838_s24 + $0x378] sm:$0xff] }
 0x20e   : > { %v5242_v31 = vpop.f32.mrf.mxu1 }
 0x20f   : > { %v5386_v33 = vmax.f32 %v4752_v30, %v5242_v31 }
 0x214   : > { %v5796_v35 = vpop.f32.mrf.mxu2 }
 0x215   : > { %v12018_v36 = vpop.f32.mrf.mxu3  ;;  %v12022_v42 = vmax.f32 %v5386_v33, %v5796_v35  ;;  %v4755_v43 = vpop.f32.mrf.mxu0 }
 0x216   : > { %v5245_v44 = vpop.f32.mrf.mxu1 }
 0x217   : > { %v5387_v49 = vmax.f32 %v4755_v43, %v5245_v44 }
 0x218   : > { %9339 = vmatmul.msk.bf16.gmra.mxu0 %vm4615_vm1, %v10949_v37  ;;  %9563 = vmatmul.msk.bf16.gmra.mxu1 %vm4615_vm1, %v10981_v39 }
 0x219   : > { %9787 = vmatmul.msk.bf16.gmra.mxu2 %vm4615_vm1, %v11013_v46 }
 0x21a   : > { %10011 = vmatmul.msk.bf16.gmra.mxu3 %vm4615_vm1, %v11045_v48 }
 0x21c   : > { %v5799_v54 = vpop.f32.mrf.mxu2 }
 0x21d   : > { %v12032_v56 = vpop.f32.mrf.mxu3  ;;  %v12034_v58 = vmax.f32 %v5387_v49, %v5799_v54  ;;  %v4757_v59 = vpop.f32.mrf.mxu0  ;;  %v10951_v49 = vld [vmem:[%s11838_s24 + $0x80] sm:$0xff] }
 0x21e   : > { %v5247_v62 = vpop.f32.mrf.mxu1  ;;  %v10983_v54 = vld [vmem:[%s11838_s24 + $0x180] sm:$0xff] }
 0x21f   : > { %v5388_v1 = vmax.f32 %v4757_v59, %v5247_v62 }
 0x224   : > { %v5801_v6 = vpop.f32.mrf.mxu2 }
 0x225   : > { %v12038_v8 = vpop.f32.mrf.mxu3  ;;  %v12042_v16 = vmax.f32 %v5388_v1, %v5801_v6  ;;  %v4760_v17 = vpop.f32.mrf.mxu0  ;;  %v11015_v6 = vld [vmem:[%s11838_s24 + $0x280] sm:$0xff] }
 0x226   : > { %v5250_v18 = vpop.f32.mrf.mxu1 }
 0x227   : > { %v5389_v25 = vmax.f32 %v4760_v17, %v5250_v18  ;;  %v11048_v17 = vld [vmem:[%s11838_s24 + $0x388] sm:$0xff] }
 0x228   : > { %9340 = vmatmul.msk.bf16.gmra.mxu0 %vm4615_vm1, %v10950_v12  ;;  %9564 = vmatmul.msk.bf16.gmra.mxu1 %vm4615_vm1, %v10982_v13  ;;  %v11047_v12 = vld [vmem:[%s11838_s24 + $0x380] sm:$0xff] }
 0x229   : > { %9788 = vmatmul.msk.bf16.gmra.mxu2 %vm4615_vm1, %v11014_v19 }
 0x22a   : > { %10012 = vmatmul.msk.bf16.gmra.mxu3 %vm4615_vm1, %v11046_v21 }
 0x22c   : > { %v5804_v31 = vpop.f32.mrf.mxu2 }
 0x22d   : > { %v12052_v33 = vpop.f32.mrf.mxu3  ;;  %v12054_v35 = vmax.f32 %v5389_v25, %v5804_v31  ;;  %v4762_v37 = vpop.f32.mrf.mxu0 }
 0x22e   : > { %v5252_v39 = vpop.f32.mrf.mxu1 }
 0x22f   : > { %v5390_v43 = vmax.f32 %v4762_v37, %v5252_v39 }
 0x234   : > { %v5806_v46 = vpop.f32.mrf.mxu2 }
 0x235   : > { %v12058_v48 = vpop.f32.mrf.mxu3  ;;  %v12062_v59 = vmax.f32 %v5390_v43, %v5806_v46  ;;  %v4765_v62 = vpop.f32.mrf.mxu0 }
 0x236   : > { %v5255_v1 = vpop.f32.mrf.mxu1 }
 0x237   : > { %v5391_v13 = vmax.f32 %v4765_v62, %v5255_v1 }
 0x238   : > { %9341 = vmatmul.msk.bf16.gmra.mxu0 %vm4615_vm1, %v10951_v49  ;;  %9565 = vmatmul.msk.bf16.gmra.mxu1 %vm4615_vm1, %v10983_v54  ;;  %v10952_v49 = vld [vmem:[%s11838_s24 + $0x88] sm:$0xff] }
 0x239   : > { %9789 = vmatmul.msk.bf16.gmra.mxu2 %vm4615_vm1, %v11015_v6  ;;  %v10984_v54 = vld [vmem:[%s11838_s24 + $0x188] sm:$0xff] }
 0x23a   : > { %10013 = vmatmul.msk.bf16.gmra.mxu3 %vm4615_vm1, %v11047_v12  ;;  %v11016_v12 = vld [vmem:[%s11838_s24 + $0x288] sm:$0xff] }
 0x23c   : > { %v5809_v18 = vpop.f32.mrf.mxu2 }
 0x23d   : > { %v12072_v19 = vpop.f32.mrf.mxu3  ;;  %v12074_v21 = vmax.f32 %v5391_v13, %v5809_v18  ;;  %v4767_v25 = vpop.f32.mrf.mxu0 }
 0x23e   : > { %v5257_v31 = vpop.f32.mrf.mxu1 }
 0x23f   : > { %v5392_v37 = vmax.f32 %v4767_v25, %v5257_v31 }
 0x244   : > { %v5811_v43 = vpop.f32.mrf.mxu2 }
 0x245   : > { %v12078_v46 = vpop.f32.mrf.mxu3  ;;  %v12082_v62 = vmax.f32 %v5392_v37, %v5811_v43  ;;  %v4770_v1 = vpop.f32.mrf.mxu0 }
 0x246   : > { %v5260_v6 = vpop.f32.mrf.mxu1 }
 0x247   : > { %v5393_v13 = vmax.f32 %v4770_v1, %v5260_v6 }
 0x248   : > { %9342 = vmatmul.msk.bf16.gmra.mxu0 %vm4615_vm1, %v10952_v49  ;;  %9566 = vmatmul.msk.bf16.gmra.mxu1 %vm4615_vm1, %v10984_v54  ;;  %v10953_v54 = vld [vmem:[%s11838_s24 + $0x90] sm:$0xff] }
 0x249   : > { %9790 = vmatmul.msk.bf16.gmra.mxu2 %vm4615_vm1, %v11016_v12  ;;  %v10985_v12 = vld [vmem:[%s11838_s24 + $0x190] sm:$0xff] }
 0x24a   : > { %10014 = vmatmul.msk.bf16.gmra.mxu3 %vm4615_vm1, %v11048_v17 }
 0x24c   : > { %v5814_v25 = vpop.f32.mrf.mxu2 }
 0x24d   : > { %v12092_v31 = vpop.f32.mrf.mxu3  ;;  %v12094_v37 = vmax.f32 %v5393_v13, %v5814_v25  ;;  %v4772_v43 = vpop.f32.mrf.mxu0 }
 0x24e   : > { %v5262_v1 = vpop.f32.mrf.mxu1 }
 0x24f   : > { %v5394_v6 = vmax.f32 %v4772_v43, %v5262_v1 }
 0x254   : > { %v5816_v49 = vpop.f32.mrf.mxu2 }
 0x255   : > { %v12098_v39 = vpop.f32.mrf.mxu3  ;;  %v12102_v44 = vmax.f32 %v5394_v6, %v5816_v49  ;;  %v4775_v17 = vpop.f32.mrf.mxu0 }
 0x256   : > { %v5265_v30 = vpop.f32.mrf.mxu1 }
 0x257   : > { %v5395_v13 = vmax.f32 %v4775_v17, %v5265_v30 }
 0x258   : > { %9343 = vmatmul.msk.bf16.gmra.mxu0 %vm4615_vm1, %v10953_v54  ;;  %9567 = vmatmul.msk.bf16.gmra.mxu1 %vm4615_vm1, %v10985_v12  ;;  %v10954_v12 = vld [vmem:[%s11838_s24 + $0x98] sm:$0xff] }
 0x259   : > { %9791 = vmatmul.msk.bf16.gmra.mxu2 %vm4615_vm1, %v11017_v3  ;;  %v10986_v3 = vld [vmem:[%s11838_s24 + $0x198] sm:$0xff] }
 0x25a   : > { %10015 = vmatmul.msk.bf16.gmra.mxu3 %vm4615_vm1, %v11049_v53 }
 0x25c   : > { %v5819_v43 = vpop.f32.mrf.mxu2 }
 0x25d   : > { %v12112_v1 = vpop.f32.mrf.mxu3  ;;  %v12114_v6 = vmax.f32 %v5395_v13, %v5819_v43  ;;  %v4777_v30 = vpop.f32.mrf.mxu0 }
 0x25e   : > { %v5267_v49 = vpop.f32.mrf.mxu1 }
 0x25f   : > { %v5396_v17 = vmax.f32 %v4777_v30, %v5267_v49 }
 0x264   : > { %v5821_v54 = vpop.f32.mrf.mxu2 }
 0x265   : > { %v12118_v18 = vpop.f32.mrf.mxu3  ;;  %v12122_v34 = vmax.f32 %v5396_v17, %v5821_v54  ;;  %v4780_v53 = vpop.f32.mrf.mxu0 }
 0x266   : > { %v5270_v24 = vpop.f32.mrf.mxu1 }
 0x267   : > { %v5397_v13 = vmax.f32 %v4780_v53, %v5270_v24 }
 0x268   : > { %9344 = vmatmul.msk.bf16.gmra.mxu0 %vm4615_vm1, %v10954_v12  ;;  %9568 = vmatmul.msk.bf16.gmra.mxu1 %vm4615_vm1, %v10986_v3  ;;  %v10955_v3 = vld [vmem:[%s11838_s24 + $0xa0] sm:$0xff] }
 0x269   : > { %9792 = vmatmul.msk.bf16.gmra.mxu2 %vm4615_vm1, %v11018_v7  ;;  %v10987_v7 = vld [vmem:[%s11838_s24 + $0x1a0] sm:$0xff] }
 0x26a   : > { %10016 = vmatmul.msk.bf16.gmra.mxu3 %vm4615_vm1, %v11050_v61 }
 0x26c   : > { %v5824_v30 = vpop.f32.mrf.mxu2 }
 0x26d   : > { %v12132_v49 = vpop.f32.mrf.mxu3  ;;  %v12134_v17 = vmax.f32 %v5397_v13, %v5824_v30  ;;  %v4782_v24 = vpop.f32.mrf.mxu0 }
 0x26e   : > { %v5272_v54 = vpop.f32.mrf.mxu1 }
 0x26f   : > { %v5398_v53 = vmax.f32 %v4782_v24, %v5272_v54 }
 0x274   : > { %v5826_v12 = vpop.f32.mrf.mxu2 }
 0x275   : > { %v12138_v25 = vpop.f32.mrf.mxu3  ;;  %v12142_v45 = vmax.f32 %v5398_v53, %v5826_v12  ;;  %v4785_v61 = vpop.f32.mrf.mxu0 }
 0x276   : > { %13230 = vst [vmem:[#allocation3_spill] sm:$0xff] %v12138_v25  ;;  %v5275_v38 = vpop.f32.mrf.mxu1  ;;  %v11052_v25 = vld [vmem:[%s11838_s24 + $0x3a8] sm:$0xff] }
 0x277   : > { %v5399_v13 = vmax.f32 %v4785_v61, %v5275_v38 }
 0x278   : > { %9345 = vmatmul.msk.bf16.gmra.mxu0 %vm4615_vm1, %v10955_v3  ;;  %9569 = vmatmul.msk.bf16.gmra.mxu1 %vm4615_vm1, %v10987_v7  ;;  %v10956_v7 = vld [vmem:[%s11838_s24 + $0xa8] sm:$0xff] }
 0x279   : > { %9793 = vmatmul.msk.bf16.gmra.mxu2 %vm4615_vm1, %v11019_v27  ;;  %v10988_v27 = vld [vmem:[%s11838_s24 + $0x1a8] sm:$0xff] }
 0x27a   : > { %10017 = vmatmul.msk.bf16.gmra.mxu3 %vm4615_vm1, %v11051_v20 }
 0x27c   : > { %v5829_v24 = vpop.f32.mrf.mxu2 }
 0x27d   : > { %v12152_v54 = vpop.f32.mrf.mxu3  ;;  %v12154_v53 = vmax.f32 %v5399_v13, %v5829_v24  ;;  %v4787_v38 = vpop.f32.mrf.mxu0 }
 0x27e   : > { %13231 = vst [vmem:[#allocation4_spill] sm:$0xff] %v12152_v54  ;;  %v5277_v12 = vpop.f32.mrf.mxu1  ;;  %v11021_v54 = vld [vmem:[%s11838_s24 + $0x2b0] sm:$0xff] }
 0x27f   : > { %13232 = vst [vmem:[#allocation5_spill] sm:$0xff] %v12154_v53  ;;  %v5400_v61 = vmax.f32 %v4787_v38, %v5277_v12  ;;  %v11053_v53 = vld [vmem:[%s11838_s24 + $0x3b0] sm:$0xff] }
 0x284   : > { %v5831_v3 = vpop.f32.mrf.mxu2 }
 0x285   : > { %v12158_v43 = vpop.f32.mrf.mxu3  ;;  %v12162_v9 = vmax.f32 %v5400_v61, %v5831_v3  ;;  %v4790_v20 = vpop.f32.mrf.mxu0 }
 0x286   : > { %13233 = vst [vmem:[#allocation6_spill] sm:$0xff] %v12158_v43  ;;  %v5280_v2 = vpop.f32.mrf.mxu1 }
 0x287   : > { %13234 = vst [vmem:[#allocation7_spill] sm:$0xff] %v12162_v9  ;;  %v5401_v13 = vmax.f32 %v4790_v20, %v5280_v2 }
 0x288   : > { %9346 = vmatmul.msk.bf16.gmra.mxu0 %vm4615_vm1, %v10956_v7  ;;  %9570 = vmatmul.msk.bf16.gmra.mxu1 %vm4615_vm1, %v10988_v27  ;;  %v10957_v27 = vld [vmem:[%s11838_s24 + $0xb0] sm:$0xff] }
 0x289   : > { %9794 = vmatmul.msk.bf16.gmra.mxu2 %vm4615_vm1, %v11020_v55  ;;  %v10989_v55 = vld [vmem:[%s11838_s24 + $0x1b0] sm:$0xff] }
 0x28a   : > { %10018 = vmatmul.msk.bf16.gmra.mxu3 %vm4615_vm1, %v11052_v25 }
 0x28c   : > { %v5834_v38 = vpop.f32.mrf.mxu2 }
 0x28d   : > { %v12172_v12 = vpop.f32.mrf.mxu3  ;;  %v12174_v61 = vmax.f32 %v5401_v13, %v5834_v38  ;;  %v4792_v2 = vpop.f32.mrf.mxu0 }
 0x28e   : > { %13235 = vst [vmem:[#allocation8_spill] sm:$0xff] %v12172_v12  ;;  %v5282_v3 = vpop.f32.mrf.mxu1  ;;  %v11022_v12 = vld [vmem:[%s11838_s24 + $0x2b8] sm:$0xff] }
 0x28f   : > { %13236 = vst [vmem:[#allocation9_spill] sm:$0xff] %v12174_v61  ;;  %v5402_v20 = vmax.f32 %v4792_v2, %v5282_v3  ;;  %v11054_v61 = vld [vmem:[%s11838_s24 + $0x3b8] sm:$0xff] }
 0x294   : > { %v5836_v7 = vpop.f32.mrf.mxu2 }
 0x295   : > { %v12178_v30 = vpop.f32.mrf.mxu3  ;;  %v12182_v43 = vmax.f32 %v5402_v20, %v5836_v7  ;;  %v4795_v25 = vpop.f32.mrf.mxu0 }
 0x296   : > { %13237 = vst [vmem:[#allocation10_spill] sm:$0xff] %v12178_v30  ;;  %v5285_v9 = vpop.f32.mrf.mxu1 }
 0x297   : > { %13238 = vst [vmem:[#allocation11_spill] sm:$0xff] %v12182_v43  ;;  %v5403_v13 = vmax.f32 %v4795_v25, %v5285_v9 }
 0x298   : > { %9347 = vmatmul.msk.bf16.gmra.mxu0 %vm4615_vm1, %v10957_v27  ;;  %9571 = vmatmul.msk.bf16.gmra.mxu1 %vm4615_vm1, %v10989_v55  ;;  %v10958_v55 = vld [vmem:[%s11838_s24 + $0xb8] sm:$0xff] }
 0x299   : > { %9795 = vmatmul.msk.bf16.gmra.mxu2 %vm4615_vm1, %v11021_v54  ;;  %v10990_v54 = vld [vmem:[%s11838_s24 + $0x1b8] sm:$0xff] }
 0x29a   : > { %10019 = vmatmul.msk.bf16.gmra.mxu3 %vm4615_vm1, %v11053_v53 }
 0x29c   : > { %v5839_v2 = vpop.f32.mrf.mxu2 }
 0x29d   : > { %v12192_v3 = vpop.f32.mrf.mxu3  ;;  %v12194_v20 = vmax.f32 %v5403_v13, %v5839_v2  ;;  %v4797_v9 = vpop.f32.mrf.mxu0 }
 0x29e   : > { %13239 = vst [vmem:[#allocation12_spill] sm:$0xff] %v12192_v3  ;;  %v5287_v7 = vpop.f32.mrf.mxu1  ;;  %v11023_v3 = vld [vmem:[%s11838_s24 + $0x2c0] sm:$0xff] }
 0x29f   : > { %13240 = vst [vmem:[#allocation13_spill] sm:$0xff] %v12194_v20  ;;  %v5404_v25 = vmax.f32 %v4797_v9, %v5287_v7  ;;  %v11055_v20 = vld [vmem:[%s11838_s24 + $0x3c0] sm:$0xff] }
 0x2a4   : > { %v5841_v27 = vpop.f32.mrf.mxu2 }
 0x2a5   : > { %v12198_v24 = vpop.f32.mrf.mxu3  ;;  %v12202_v30 = vmax.f32 %v5404_v25, %v5841_v27  ;;  %v4800_v53 = vpop.f32.mrf.mxu0 }
 0x2a6   : > { %13241 = vst [vmem:[#allocation14_spill] sm:$0xff] %v12198_v24  ;;  %v5290_v43 = vpop.f32.mrf.mxu1 }
 0x2a7   : > { %13242 = vst [vmem:[#allocation15_spill] sm:$0xff] %v12202_v30  ;;  %v5405_v13 = vmax.f32 %v4800_v53, %v5290_v43 }
 0x2a8   : > { %9348 = vmatmul.msk.bf16.gmra.mxu0 %vm4615_vm1, %v10958_v55  ;;  %9572 = vmatmul.msk.bf16.gmra.mxu1 %vm4615_vm1, %v10990_v54  ;;  %v10959_v54 = vld [vmem:[%s11838_s24 + $0xc0] sm:$0xff] }
 0x2a9   : > { %9796 = vmatmul.msk.bf16.gmra.mxu2 %vm4615_vm1, %v11022_v12  ;;  %v10991_v12 = vld [vmem:[%s11838_s24 + $0x1c0] sm:$0xff] }
 0x2aa   : > { %10020 = vmatmul.msk.bf16.gmra.mxu3 %vm4615_vm1, %v11054_v61 }
 0x2ac   : > { %v5844_v9 = vpop.f32.mrf.mxu2 }
 0x2ad   : > { %v12212_v7 = vpop.f32.mrf.mxu3  ;;  %v12214_v25 = vmax.f32 %v5405_v13, %v5844_v9  ;;  %v4802_v43 = vpop.f32.mrf.mxu0 }
 0x2ae   : > { %13243 = vst [vmem:[#allocation16_spill] sm:$0xff] %v12212_v7  ;;  %v5292_v27 = vpop.f32.mrf.mxu1  ;;  %v11024_v7 = vld [vmem:[%s11838_s24 + $0x2c8] sm:$0xff] }
 0x2af   : > { %13244 = vst [vmem:[#allocation17_spill] sm:$0xff] %v12214_v25  ;;  %v5406_v53 = vmax.f32 %v4802_v43, %v5292_v27  ;;  %v11056_v25 = vld [vmem:[%s11838_s24 + $0x3c8] sm:$0xff] }
 0x2b4   : > { %v5846_v55 = vpop.f32.mrf.mxu2 }
 0x2b5   : > { %v12218_v38 = vpop.f32.mrf.mxu3  ;;  %v12222_v24 = vmax.f32 %v5406_v53, %v5846_v55  ;;  %v4805_v61 = vpop.f32.mrf.mxu0 }
 0x2b6   : > { %13245 = vst [vmem:[#allocation18_spill] sm:$0xff] %v12218_v38  ;;  %v5295_v30 = vpop.f32.mrf.mxu1 }
 0x2b7   : > { %13246 = vst [vmem:[#allocation19_spill] sm:$0xff] %v12222_v24  ;;  %v5407_v13 = vmax.f32 %v4805_v61, %v5295_v30 }
 0x2b8   : > { %9349 = vmatmul.msk.bf16.gmra.mxu0 %vm4615_vm1, %v10959_v54  ;;  %9573 = vmatmul.msk.bf16.gmra.mxu1 %vm4615_vm1, %v10991_v12  ;;  %v10960_v12 = vld [vmem:[%s11838_s24 + $0xc8] sm:$0xff] }
 0x2b9   : > { %9797 = vmatmul.msk.bf16.gmra.mxu2 %vm4615_vm1, %v11023_v3  ;;  %v10992_v3 = vld [vmem:[%s11838_s24 + $0x1c8] sm:$0xff] }
 0x2ba   : > { %10021 = vmatmul.msk.bf16.gmra.mxu3 %vm4615_vm1, %v11055_v20 }
 0x2bc   : > { %v5849_v43 = vpop.f32.mrf.mxu2 }
 0x2bd   : > { %v12232_v27 = vpop.f32.mrf.mxu3  ;;  %v12234_v53 = vmax.f32 %v5407_v13, %v5849_v43  ;;  %v4807_v30 = vpop.f32.mrf.mxu0 }
 0x2be   : > { %13247 = vst [vmem:[#allocation20_spill] sm:$0xff] %v12232_v27  ;;  %v5297_v55 = vpop.f32.mrf.mxu1  ;;  %v11025_v27 = vld [vmem:[%s11838_s24 + $0x2d0] sm:$0xff] }
 0x2bf   : > { %13248 = vst [vmem:[#allocation21_spill] sm:$0xff] %v12234_v53  ;;  %v5408_v61 = vmax.f32 %v4807_v30, %v5297_v55  ;;  %v11057_v53 = vld [vmem:[%s11838_s24 + $0x3d0] sm:$0xff] }
 0x2c4   : > { %v5851_v54 = vpop.f32.mrf.mxu2 }
 0x2c5   : > { %v12238_v2 = vpop.f32.mrf.mxu3  ;;  %v12242_v38 = vmax.f32 %v5408_v61, %v5851_v54  ;;  %v4810_v20 = vpop.f32.mrf.mxu0 }
 0x2c6   : > { %13249 = vst [vmem:[#allocation22_spill] sm:$0xff] %v12238_v2  ;;  %v5300_v24 = vpop.f32.mrf.mxu1 }
 0x2c7   : > { %13250 = vst [vmem:[#allocation23_spill] sm:$0xff] %v12242_v38  ;;  %v5409_v13 = vmax.f32 %v4810_v20, %v5300_v24 }
 0x2c8   : > { %9350 = vmatmul.msk.bf16.gmra.mxu0 %vm4615_vm1, %v10960_v12  ;;  %9574 = vmatmul.msk.bf16.gmra.mxu1 %vm4615_vm1, %v10992_v3  ;;  %v10961_v3 = vld [vmem:[%s11838_s24 + $0xd0] sm:$0xff] }
 0x2c9   : > { %9798 = vmatmul.msk.bf16.gmra.mxu2 %vm4615_vm1, %v11024_v7  ;;  %v10993_v7 = vld [vmem:[%s11838_s24 + $0x1d0] sm:$0xff] }
 0x2ca   : > { %10022 = vmatmul.msk.bf16.gmra.mxu3 %vm4615_vm1, %v11056_v25 }
 0x2cc   : > { %v5854_v30 = vpop.f32.mrf.mxu2 }
 0x2cd   : > { %v12252_v55 = vpop.f32.mrf.mxu3  ;;  %v12254_v61 = vmax.f32 %v5409_v13, %v5854_v30  ;;  %v4812_v24 = vpop.f32.mrf.mxu0 }
 0x2ce   : > { %13251 = vst [vmem:[#allocation24_spill] sm:$0xff] %v12252_v55  ;;  %v5302_v54 = vpop.f32.mrf.mxu1  ;;  %v11026_v55 = vld [vmem:[%s11838_s24 + $0x2d8] sm:$0xff] }
 0x2cf   : > { %13252 = vst [vmem:[#allocation25_spill] sm:$0xff] %v12254_v61  ;;  %v5410_v20 = vmax.f32 %v4812_v24, %v5302_v54  ;;  %v11058_v61 = vld [vmem:[%s11838_s24 + $0x3d8] sm:$0xff] }
 0x2d4   : > { %v5856_v12 = vpop.f32.mrf.mxu2 }
 0x2d5   : > { %v12258_v9 = vpop.f32.mrf.mxu3  ;;  %v12262_v2 = vmax.f32 %v5410_v20, %v5856_v12  ;;  %v4815_v25 = vpop.f32.mrf.mxu0 }
 0x2d6   : > { %13253 = vst [vmem:[#allocation26_spill] sm:$0xff] %v12258_v9  ;;  %v5305_v38 = vpop.f32.mrf.mxu1 }
 0x2d7   : > { %13254 = vst [vmem:[#allocation27_spill] sm:$0xff] %v12262_v2  ;;  %v5411_v13 = vmax.f32 %v4815_v25, %v5305_v38 }
 0x2d8   : > { %9351 = vmatmul.msk.bf16.gmra.mxu0 %vm4615_vm1, %v10961_v3  ;;  %9575 = vmatmul.msk.bf16.gmra.mxu1 %vm4615_vm1, %v10993_v7  ;;  %v10962_v7 = vld [vmem:[%s11838_s24 + $0xd8] sm:$0xff] }
 0x2d9   : > { %9799 = vmatmul.msk.bf16.gmra.mxu2 %vm4615_vm1, %v11025_v27  ;;  %v10994_v27 = vld [vmem:[%s11838_s24 + $0x1d8] sm:$0xff] }
 0x2da   : > { %10023 = vmatmul.msk.bf16.gmra.mxu3 %vm4615_vm1, %v11057_v53 }
 0x2dc   : > { %v5859_v24 = vpop.f32.mrf.mxu2 }
 0x2dd   : > { %v12272_v54 = vpop.f32.mrf.mxu3  ;;  %v12274_v20 = vmax.f32 %v5411_v13, %v5859_v24  ;;  %v4817_v38 = vpop.f32.mrf.mxu0 }
 0x2de   : > { %13255 = vst [vmem:[#allocation28_spill] sm:$0xff] %v12272_v54  ;;  %v5307_v12 = vpop.f32.mrf.mxu1  ;;  %v11027_v54 = vld [vmem:[%s11838_s24 + $0x2e0] sm:$0xff] }
 0x2df   : > { %13256 = vst [vmem:[#allocation29_spill] sm:$0xff] %v12274_v20  ;;  %v5412_v25 = vmax.f32 %v4817_v38, %v5307_v12  ;;  %v11059_v20 = vld [vmem:[%s11838_s24 + $0x3e0] sm:$0xff] }
 0x2e4   : > { %v5861_v3 = vpop.f32.mrf.mxu2 }
 0x2e5   : > { %v12278_v43 = vpop.f32.mrf.mxu3  ;;  %v12282_v9 = vmax.f32 %v5412_v25, %v5861_v3  ;;  %v4820_v53 = vpop.f32.mrf.mxu0 }
 0x2e6   : > { %13257 = vst [vmem:[#allocation30_spill] sm:$0xff] %v12278_v43  ;;  %v5310_v2 = vpop.f32.mrf.mxu1 }
 0x2e7   : > { %13258 = vst [vmem:[#allocation31_spill] sm:$0xff] %v12282_v9  ;;  %v5413_v13 = vmax.f32 %v4820_v53, %v5310_v2 }
 0x2e8   : > { %9352 = vmatmul.msk.bf16.gmra.mxu0 %vm4615_vm1, %v10962_v7  ;;  %9576 = vmatmul.msk.bf16.gmra.mxu1 %vm4615_vm1, %v10994_v27  ;;  %v10963_v27 = vld [vmem:[%s11838_s24 + $0xe0] sm:$0xff] }
 0x2e9   : > { %9800 = vmatmul.msk.bf16.gmra.mxu2 %vm4615_vm1, %v11026_v55  ;;  %v10995_v55 = vld [vmem:[%s11838_s24 + $0x1e0] sm:$0xff] }
 0x2ea   : > { %10024 = vmatmul.msk.bf16.gmra.mxu3 %vm4615_vm1, %v11058_v61 }
 0x2ec   : > { %v5864_v38 = vpop.f32.mrf.mxu2 }
 0x2ed   : > { %v12292_v12 = vpop.f32.mrf.mxu3  ;;  %v12294_v25 = vmax.f32 %v5413_v13, %v5864_v38  ;;  %v4822_v2 = vpop.f32.mrf.mxu0 }
 0x2ee   : > { %13259 = vst [vmem:[#allocation32_spill] sm:$0xff] %v12292_v12  ;;  %v5312_v3 = vpop.f32.mrf.mxu1  ;;  %v11028_v12 = vld [vmem:[%s11838_s24 + $0x2e8] sm:$0xff] }
 0x2ef   : > { %13260 = vst [vmem:[#allocation33_spill] sm:$0xff] %v12294_v25  ;;  %v5414_v53 = vmax.f32 %v4822_v2, %v5312_v3  ;;  %v11060_v25 = vld [vmem:[%s11838_s24 + $0x3e8] sm:$0xff] }
 0x2f4   : > { %v5866_v7 = vpop.f32.mrf.mxu2 }
 0x2f5   : > { %v12298_v30 = vpop.f32.mrf.mxu3  ;;  %v12302_v43 = vmax.f32 %v5414_v53, %v5866_v7  ;;  %v4825_v61 = vpop.f32.mrf.mxu0 }
 0x2f6   : > { %13261 = vst [vmem:[#allocation34_spill] sm:$0xff] %v12298_v30  ;;  %v5315_v9 = vpop.f32.mrf.mxu1 }
 0x2f7   : > { %13262 = vst [vmem:[#allocation35_spill] sm:$0xff] %v12302_v43  ;;  %v5415_v13 = vmax.f32 %v4825_v61, %v5315_v9 }
 0x2f8   : > { %9353 = vmatmul.msk.bf16.gmra.mxu0 %vm4615_vm1, %v10963_v27  ;;  %9577 = vmatmul.msk.bf16.gmra.mxu1 %vm4615_vm1, %v10995_v55  ;;  %v10964_v55 = vld [vmem:[%s11838_s24 + $0xe8] sm:$0xff] }
 0x2f9   : > { %9801 = vmatmul.msk.bf16.gmra.mxu2 %vm4615_vm1, %v11027_v54  ;;  %v10996_v54 = vld [vmem:[%s11838_s24 + $0x1e8] sm:$0xff] }
 0x2fa   : > { %10025 = vmatmul.msk.bf16.gmra.mxu3 %vm4615_vm1, %v11059_v20 }
 0x2fc   : > { %v5869_v2 = vpop.f32.mrf.mxu2 }
 0x2fd   : > { %v12312_v3 = vpop.f32.mrf.mxu3  ;;  %v12314_v53 = vmax.f32 %v5415_v13, %v5869_v2  ;;  %v4827_v9 = vpop.f32.mrf.mxu0 }
 0x2fe   : > { %13263 = vst [vmem:[#allocation36_spill] sm:$0xff] %v12312_v3  ;;  %v5317_v7 = vpop.f32.mrf.mxu1  ;;  %v11029_v3 = vld [vmem:[%s11838_s24 + $0x2f0] sm:$0xff] }
 0x2ff   : > { %13264 = vst [vmem:[#allocation37_spill] sm:$0xff] %v12314_v53  ;;  %v5416_v61 = vmax.f32 %v4827_v9, %v5317_v7  ;;  %v11061_v53 = vld [vmem:[%s11838_s24 + $0x3f0] sm:$0xff] }
 0x304   : > { %v5871_v27 = vpop.f32.mrf.mxu2 }
 0x305   : > { %v12318_v24 = vpop.f32.mrf.mxu3  ;;  %v12322_v30 = vmax.f32 %v5416_v61, %v5871_v27  ;;  %v4830_v20 = vpop.f32.mrf.mxu0 }
 0x306   : > { %13265 = vst [vmem:[#allocation38_spill] sm:$0xff] %v12318_v24  ;;  %v5320_v43 = vpop.f32.mrf.mxu1 }
 0x307   : > { %13266 = vst [vmem:[#allocation39_spill] sm:$0xff] %v12322_v30  ;;  %v5417_v13 = vmax.f32 %v4830_v20, %v5320_v43 }
 0x308   : > { %9354 = vmatmul.msk.bf16.gmra.mxu0 %vm4615_vm1, %v10964_v55  ;;  %9578 = vmatmul.msk.bf16.gmra.mxu1 %vm4615_vm1, %v10996_v54  ;;  %v10965_v54 = vld [vmem:[%s11838_s24 + $0xf0] sm:$0xff] }
 0x309   : > { %9802 = vmatmul.msk.bf16.gmra.mxu2 %vm4615_vm1, %v11028_v12  ;;  %v10997_v12 = vld [vmem:[%s11838_s24 + $0x1f0] sm:$0xff] }
 0x30a   : > { %10026 = vmatmul.msk.bf16.gmra.mxu3 %vm4615_vm1, %v11060_v25 }
 0x30c   : > { %v5874_v9 = vpop.f32.mrf.mxu2 }
 0x30d   : > { %v12332_v7 = vpop.f32.mrf.mxu3  ;;  %v12334_v61 = vmax.f32 %v5417_v13, %v5874_v9  ;;  %v4832_v43 = vpop.f32.mrf.mxu0 }
 0x30e   : > { %13267 = vst [vmem:[#allocation40_spill] sm:$0xff] %v12332_v7  ;;  %v5322_v27 = vpop.f32.mrf.mxu1  ;;  %v11030_v7 = vld [vmem:[%s11838_s24 + $0x2f8] sm:$0xff] }
 0x30f   : > { %13268 = vst [vmem:[#allocation41_spill] sm:$0xff] %v12334_v61  ;;  %v5418_v20 = vmax.f32 %v4832_v43, %v5322_v27  ;;  %v11062_v61 = vld [vmem:[%s11838_s24 + $0x3f8] sm:$0xff] }
 0x314   : > { %v5876_v55 = vpop.f32.mrf.mxu2 }
 0x315   : > { %v12338_v38 = vpop.f32.mrf.mxu3  ;;  %v12342_v24 = vmax.f32 %v5418_v20, %v5876_v55  ;;  %v4835_v25 = vpop.f32.mrf.mxu0 }
 0x316   : > { %13269 = vst [vmem:[#allocation42_spill] sm:$0xff] %v12338_v38  ;;  %v5325_v30 = vpop.f32.mrf.mxu1 }
 0x317   : > { %13270 = vst [vmem:[#allocation43_spill] sm:$0xff] %v12342_v24  ;;  %v5419_v13 = vmax.f32 %v4835_v25, %v5325_v30 }
 0x318   : > { %9355 = vmatmul.msk.bf16.gmra.mxu0 %vm4615_vm1, %v10965_v54  ;;  %9579 = vmatmul.msk.bf16.gmra.mxu1 %vm4615_vm1, %v10997_v12  ;;  %v10966_v12 = vld [vmem:[%s11838_s24 + $0xf8] sm:$0xff] }
 0x319   : > { %9803 = vmatmul.msk.bf16.gmra.mxu2 %vm4615_vm1, %v11029_v3  ;;  %v10998_v3 = vld [vmem:[%s11838_s24 + $0x1f8] sm:$0xff] }
 0x31a   : > { %10027 = vmatmul.msk.bf16.gmra.mxu3 %vm4615_vm1, %v11061_v53 }
 0x31c   : > { %v5879_v43 = vpop.f32.mrf.mxu2 }
 0x31d   : > { %v12352_v27 = vpop.f32.mrf.mxu3  ;;  %v12354_v20 = vmax.f32 %v5419_v13, %v5879_v43  ;;  %v4837_v30 = vpop.f32.mrf.mxu0 }
 0x31e   : > { %13271 = vst [vmem:[#allocation44_spill] sm:$0xff] %v12352_v27  ;;  %v5327_v55 = vpop.f32.mrf.mxu1  ;;  %v11127_v27 = vld [vmem:[%s11838_s24 + $0x600] sm:$0xff] }
 0x31f   : > { %13272 = vst [vmem:[#allocation45_spill] sm:$0xff] %v12354_v20  ;;  %v5420_v25 = vmax.f32 %v4837_v30, %v5327_v55  ;;  %v11159_v20 = vld [vmem:[%s11838_s24 + $0x700] sm:$0xff] }
 0x324   : > { %v5881_v54 = vpop.f32.mrf.mxu2 }
 0x325   : > { %v12358_v2 = vpop.f32.mrf.mxu3  ;;  %v12362_v38 = vmax.f32 %v5420_v25, %v5881_v54  ;;  %v4840_v53 = vpop.f32.mrf.mxu0 }
 0x326   : > { %13273 = vst [vmem:[#allocation46_spill] sm:$0xff] %v12358_v2  ;;  %v5330_v24 = vpop.f32.mrf.mxu1 }
 0x327   : > { %13274 = vst [vmem:[#allocation47_spill] sm:$0xff] %v12362_v38  ;;  %v5421_v13 = vmax.f32 %v4840_v53, %v5330_v24 }
 0x328   : > { %9356 = vmatmul.msk.bf16.gmra.mxu0 %vm4615_vm1, %v10966_v12  ;;  %9580 = vmatmul.msk.bf16.gmra.mxu1 %vm4615_vm1, %v10998_v3  ;;  %v11063_v3 = vld [vmem:[%s11838_s24 + $0x400] sm:$0xff] }
 0x329   : > { %9804 = vmatmul.msk.bf16.gmra.mxu2 %vm4615_vm1, %v11030_v7  ;;  %v11095_v7 = vld [vmem:[%s11838_s24 + $0x500] sm:$0xff] }
 0x32a   : > { %10028 = vmatmul.msk.bf16.gmra.mxu3 %vm4615_vm1, %v11062_v61 }
 0x32c   : > { %v5884_v30 = vpop.f32.mrf.mxu2 }
 0x32d   : > { %v12372_v55 = vpop.f32.mrf.mxu3  ;;  %v12374_v25 = vmax.f32 %v5421_v13, %v5884_v30  ;;  %v4842_v24 = vpop.f32.mrf.mxu0 }
 0x32e   : > { %13275 = vst [vmem:[#allocation48_spill] sm:$0xff] %v12372_v55  ;;  %v5332_v54 = vpop.f32.mrf.mxu1  ;;  %v11128_v55 = vld [vmem:[%s11838_s24 + $0x608] sm:$0xff] }
 0x32f   : > { %13276 = vst [vmem:[#allocation49_spill] sm:$0xff] %v12374_v25  ;;  %v5422_v53 = vmax.f32 %v4842_v24, %v5332_v54  ;;  %v11160_v25 = vld [vmem:[%s11838_s24 + $0x708] sm:$0xff] }
 0x334   : > { %v5886_v12 = vpop.f32.mrf.mxu2 }
 0x335   : > { %v12378_v9 = vpop.f32.mrf.mxu3  ;;  %v12382_v2 = vmax.f32 %v5422_v53, %v5886_v12  ;;  %v4845_v61 = vpop.f32.mrf.mxu0 }
 0x336   : > { %13277 = vst [vmem:[#allocation50_spill] sm:$0xff] %v12378_v9  ;;  %v5335_v38 = vpop.f32.mrf.mxu1 }
 0x337   : > { %13278 = vst [vmem:[#allocation51_spill] sm:$0xff] %v12382_v2  ;;  %v5423_v13 = vmax.f32 %v4845_v61, %v5335_v38 }
 0x338   : > { %10221 = vmatmul.msk.bf16.vlgmr.msrb.gmra.mxu0 %vm4615_vm1, %v11063_v3  ;;  %10445 = vmatmul.msk.bf16.vlgmr.msrb.gmra.mxu1 %vm4615_vm1, %v11095_v7  ;;  %v11064_v7 = vld [vmem:[%s11838_s24 + $0x408] sm:$0xff] }
 0x339   : > { %10669 = vmatmul.msk.bf16.vlgmr.msrb.gmra.mxu2 %vm4615_vm1, %v11127_v27  ;;  %v11096_v27 = vld [vmem:[%s11838_s24 + $0x508] sm:$0xff] }
 0x33a   : > { %10893 = vmatmul.msk.bf16.vlgmr.msrb.gmra.mxu3 %vm4615_vm1, %v11159_v20 }
 0x33c   : > { %v5889_v24 = vpop.f32.mrf.mxu2 }
 0x33d   : > { %v12392_v54 = vpop.f32.mrf.mxu3  ;;  %v12394_v53 = vmax.f32 %v5423_v13, %v5889_v24  ;;  %v4847_v38 = vpop.f32.mrf.mxu0 }
 0x33e   : > { %13279 = vst [vmem:[#allocation52_spill] sm:$0xff] %v12392_v54  ;;  %v5337_v12 = vpop.f32.mrf.mxu1  ;;  %v11129_v54 = vld [vmem:[%s11838_s24 + $0x610] sm:$0xff] }
 0x33f   : > { %13280 = vst [vmem:[#allocation53_spill] sm:$0xff] %v12394_v53  ;;  %v5424_v61 = vmax.f32 %v4847_v38, %v5337_v12  ;;  %v11161_v53 = vld [vmem:[%s11838_s24 + $0x710] sm:$0xff] }
 0x344   : > { %v5891_v3 = vpop.f32.mrf.mxu2 }
 0x345   : > { %v12398_v43 = vpop.f32.mrf.mxu3  ;;  %v12402_v9 = vmax.f32 %v5424_v61, %v5891_v3  ;;  %v4850_v20 = vpop.f32.mrf.mxu0 }
 0x346   : > { %13281 = vst [vmem:[#allocation54_spill] sm:$0xff] %v12398_v43  ;;  %v5340_v2 = vpop.f32.mrf.mxu1 }
 0x347   : > { %13282 = vst [vmem:[#allocation55_spill] sm:$0xff] %v12402_v9  ;;  %v5425_v13 = vmax.f32 %v4850_v20, %v5340_v2 }
 0x348   : > { %10222 = vmatmul.msk.bf16.gmra.mxu0 %vm4615_vm1, %v11064_v7  ;;  %10446 = vmatmul.msk.bf16.gmra.mxu1 %vm4615_vm1, %v11096_v27  ;;  %v11065_v27 = vld [vmem:[%s11838_s24 + $0x410] sm:$0xff] }
 0x349   : > { %10670 = vmatmul.msk.bf16.gmra.mxu2 %vm4615_vm1, %v11128_v55  ;;  %v11097_v55 = vld [vmem:[%s11838_s24 + $0x510] sm:$0xff] }
 0x34a   : > { %10894 = vmatmul.msk.bf16.gmra.mxu3 %vm4615_vm1, %v11160_v25 }
 0x34c   : > { %v5894_v38 = vpop.f32.mrf.mxu2 }
 0x34d   : > { %v12412_v12 = vpop.f32.mrf.mxu3  ;;  %v12414_v61 = vmax.f32 %v5425_v13, %v5894_v38  ;;  %v4852_v2 = vpop.f32.mrf.mxu0 }
 0x34e   : > { %13283 = vst [vmem:[#allocation56_spill] sm:$0xff] %v12412_v12  ;;  %v5342_v3 = vpop.f32.mrf.mxu1  ;;  %v11130_v12 = vld [vmem:[%s11838_s24 + $0x618] sm:$0xff] }
 0x34f   : > { %13284 = vst [vmem:[#allocation57_spill] sm:$0xff] %v12414_v61  ;;  %v5426_v20 = vmax.f32 %v4852_v2, %v5342_v3  ;;  %v11162_v61 = vld [vmem:[%s11838_s24 + $0x718] sm:$0xff] }
 0x354   : > { %v5896_v7 = vpop.f32.mrf.mxu2 }
 0x355   : > { %v12418_v30 = vpop.f32.mrf.mxu3  ;;  %v12422_v43 = vmax.f32 %v5426_v20, %v5896_v7  ;;  %v4855_v25 = vpop.f32.mrf.mxu0 }
 0x356   : > { %13285 = vst [vmem:[#allocation58_spill] sm:$0xff] %v12418_v30  ;;  %v5345_v9 = vpop.f32.mrf.mxu1 }
 0x357   : > { %13286 = vst [vmem:[#allocation59_spill] sm:$0xff] %v12422_v43  ;;  %v5427_v13 = vmax.f32 %v4855_v25, %v5345_v9 }
 0x358   : > { %10223 = vmatmul.msk.bf16.gmra.mxu0 %vm4615_vm1, %v11065_v27  ;;  %10447 = vmatmul.msk.bf16.gmra.mxu1 %vm4615_vm1, %v11097_v55  ;;  %v11066_v55 = vld [vmem:[%s11838_s24 + $0x418] sm:$0xff] }
 0x359   : > { %10671 = vmatmul.msk.bf16.gmra.mxu2 %vm4615_vm1, %v11129_v54  ;;  %v11098_v54 = vld [vmem:[%s11838_s24 + $0x518] sm:$0xff] }
 0x35a   : > { %10895 = vmatmul.msk.bf16.gmra.mxu3 %vm4615_vm1, %v11161_v53 }
 0x35c   : > { %v5899_v2 = vpop.f32.mrf.mxu2 }
 0x35d   : > { %v12432_v3 = vpop.f32.mrf.mxu3  ;;  %v12434_v20 = vmax.f32 %v5427_v13, %v5899_v2  ;;  %v4857_v9 = vpop.f32.mrf.mxu0 }
 0x35e   : > { %13287 = vst [vmem:[#allocation60_spill] sm:$0xff] %v12432_v3  ;;  %v5347_v7 = vpop.f32.mrf.mxu1  ;;  %v11131_v3 = vld [vmem:[%s11838_s24 + $0x620] sm:$0xff] }
 0x35f   : > { %13288 = vst [vmem:[#allocation61_spill] sm:$0xff] %v12434_v20  ;;  %v5428_v25 = vmax.f32 %v4857_v9, %v5347_v7  ;;  %v11163_v20 = vld [vmem:[%s11838_s24 + $0x720] sm:$0xff] }
 0x364   : > { %v5901_v27 = vpop.f32.mrf.mxu2 }
 0x365   : > { %v12438_v24 = vpop.f32.mrf.mxu3  ;;  %v12442_v30 = vmax.f32 %v5428_v25, %v5901_v27  ;;  %v4860_v53 = vpop.f32.mrf.mxu0 }
 0x366   : > { %13289 = vst [vmem:[#allocation62_spill] sm:$0xff] %v12438_v24  ;;  %v5350_v43 = vpop.f32.mrf.mxu1 }
 0x367   : > { %13290 = vst [vmem:[#allocation63_spill] sm:$0xff] %v12442_v30  ;;  %v5429_v13 = vmax.f32 %v4860_v53, %v5350_v43 }
 0x368   : > { %10224 = vmatmul.msk.bf16.gmra.mxu0 %vm4615_vm1, %v11066_v55  ;;  %10448 = vmatmul.msk.bf16.gmra.mxu1 %vm4615_vm1, %v11098_v54  ;;  %v11067_v54 = vld [vmem:[%s11838_s24 + $0x420] sm:$0xff] }
 0x369   : > { %10672 = vmatmul.msk.bf16.gmra.mxu2 %vm4615_vm1, %v11130_v12  ;;  %v11099_v12 = vld [vmem:[%s11838_s24 + $0x520] sm:$0xff] }
 0x36a   : > { %10896 = vmatmul.msk.bf16.gmra.mxu3 %vm4615_vm1, %v11162_v61 }
 0x36c   : > { %v5904_v9 = vpop.f32.mrf.mxu2 }
 0x36d   : > { %v12452_v7 = vpop.f32.mrf.mxu3  ;;  %v12454_v25 = vmax.f32 %v5429_v13, %v5904_v9  ;;  %v4862_v43 = vpop.f32.mrf.mxu0 }
 0x36e   : > { %13291 = vst [vmem:[#allocation64_spill] sm:$0xff] %v12452_v7  ;;  %v5352_v27 = vpop.f32.mrf.mxu1  ;;  %v11132_v7 = vld [vmem:[%s11838_s24 + $0x628] sm:$0xff] }
 0x36f   : > { %13292 = vst [vmem:[#allocation65_spill] sm:$0xff] %v12454_v25  ;;  %v5430_v53 = vmax.f32 %v4862_v43, %v5352_v27  ;;  %v11164_v25 = vld [vmem:[%s11838_s24 + $0x728] sm:$0xff] }
 0x374   : > { %v5906_v55 = vpop.f32.mrf.mxu2 }
 0x375   : > { %v12458_v38 = vpop.f32.mrf.mxu3  ;;  %v12462_v24 = vmax.f32 %v5430_v53, %v5906_v55  ;;  %v4865_v61 = vpop.f32.mrf.mxu0 }
 0x376   : > { %13293 = vst [vmem:[#allocation66_spill] sm:$0xff] %v12458_v38  ;;  %v5355_v30 = vpop.f32.mrf.mxu1 }
 0x377   : > { %13294 = vst [vmem:[#allocation67_spill] sm:$0xff] %v12462_v24  ;;  %v5431_v13 = vmax.f32 %v4865_v61, %v5355_v30 }
 0x378   : > { %10225 = vmatmul.msk.bf16.gmra.mxu0 %vm4615_vm1, %v11067_v54  ;;  %10449 = vmatmul.msk.bf16.gmra.mxu1 %vm4615_vm1, %v11099_v12  ;;  %v11068_v12 = vld [vmem:[%s11838_s24 + $0x428] sm:$0xff] }
 0x379   : > { %10673 = vmatmul.msk.bf16.gmra.mxu2 %vm4615_vm1, %v11131_v3  ;;  %v11100_v3 = vld [vmem:[%s11838_s24 + $0x528] sm:$0xff] }
 0x37a   : > { %10897 = vmatmul.msk.bf16.gmra.mxu3 %vm4615_vm1, %v11163_v20 }
 0x37c   : > { %v5909_v43 = vpop.f32.mrf.mxu2 }
 0x37d   : > { %v12472_v27 = vpop.f32.mrf.mxu3  ;;  %v12474_v53 = vmax.f32 %v5431_v13, %v5909_v43  ;;  %v4867_v30 = vpop.f32.mrf.mxu0 }
 0x37e   : > { %13295 = vst [vmem:[#allocation68_spill] sm:$0xff] %v12472_v27  ;;  %v5357_v55 = vpop.f32.mrf.mxu1  ;;  %v11133_v27 = vld [vmem:[%s11838_s24 + $0x630] sm:$0xff] }
 0x37f   : > { %13296 = vst [vmem:[#allocation69_spill] sm:$0xff] %v12474_v53  ;;  %v5432_v61 = vmax.f32 %v4867_v30, %v5357_v55  ;;  %v11165_v53 = vld [vmem:[%s11838_s24 + $0x730] sm:$0xff] }
 0x384   : > { %v5911_v54 = vpop.f32.mrf.mxu2 }
 0x385   : > { %v12478_v2 = vpop.f32.mrf.mxu3  ;;  %v12482_v38 = vmax.f32 %v5432_v61, %v5911_v54  ;;  %v4870_v20 = vpop.f32.mrf.mxu0 }
 0x386   : > { %13297 = vst [vmem:[#allocation70_spill] sm:$0xff] %v12478_v2  ;;  %v5360_v24 = vpop.f32.mrf.mxu1 }
 0x387   : > { %13298 = vst [vmem:[#allocation71_spill] sm:$0xff] %v12482_v38  ;;  %v5433_v13 = vmax.f32 %v4870_v20, %v5360_v24 }
 0x388   : > { %10226 = vmatmul.msk.bf16.gmra.mxu0 %vm4615_vm1, %v11068_v12  ;;  %10450 = vmatmul.msk.bf16.gmra.mxu1 %vm4615_vm1, %v11100_v3  ;;  %v11069_v3 = vld [vmem:[%s11838_s24 + $0x430] sm:$0xff] }
 0x389   : > { %10674 = vmatmul.msk.bf16.gmra.mxu2 %vm4615_vm1, %v11132_v7  ;;  %v11101_v7 = vld [vmem:[%s11838_s24 + $0x530] sm:$0xff] }
 0x38a   : > { %10898 = vmatmul.msk.bf16.gmra.mxu3 %vm4615_vm1, %v11164_v25 }
 0x38c   : > { %v5914_v30 = vpop.f32.mrf.mxu2 }
 0x38d   : > { %v12492_v55 = vpop.f32.mrf.mxu3  ;;  %v12494_v61 = vmax.f32 %v5433_v13, %v5914_v30  ;;  %v4872_v24 = vpop.f32.mrf.mxu0  ;;  %v11103_v30 = vld [vmem:[%s11838_s24 + $0x540] sm:$0xff] }
 0x38e   : > { %13299 = vst [vmem:[#allocation72_spill] sm:$0xff] %v12492_v55  ;;  %v5362_v54 = vpop.f32.mrf.mxu1  ;;  %v11134_v55 = vld [vmem:[%s11838_s24 + $0x638] sm:$0xff] }
 0x38f   : > { %13300 = vst [vmem:[#allocation73_spill] sm:$0xff] %v12494_v61  ;;  %v5434_v20 = vmax.f32 %v4872_v24, %v5362_v54  ;;  %v11166_v61 = vld [vmem:[%s11838_s24 + $0x738] sm:$0xff] }
 0x394   : > { %v5916_v12 = vpop.f32.mrf.mxu2 }
 0x395   : > { %v12498_v9 = vpop.f32.mrf.mxu3  ;;  %v12502_v2 = vmax.f32 %v5434_v20, %v5916_v12  ;;  %v4875_v25 = vpop.f32.mrf.mxu0 }
 0x396   : > { %13301 = vst [vmem:[#allocation74_spill] sm:$0xff] %v12498_v9  ;;  %v5365_v38 = vpop.f32.mrf.mxu1 }
 0x397   : > { %13302 = vst [vmem:[#allocation75_spill] sm:$0xff] %v12502_v2  ;;  %v5435_v13 = vmax.f32 %v4875_v25, %v5365_v38 }
 0x398   : > { %10227 = vmatmul.msk.bf16.gmra.mxu0 %vm4615_vm1, %v11069_v3  ;;  %10451 = vmatmul.msk.bf16.gmra.mxu1 %vm4615_vm1, %v11101_v7  ;;  %v11070_v7 = vld [vmem:[%s11838_s24 + $0x438] sm:$0xff] }
 0x399   : > { %10675 = vmatmul.msk.bf16.gmra.mxu2 %vm4615_vm1, %v11133_v27  ;;  %v11102_v27 = vld [vmem:[%s11838_s24 + $0x538] sm:$0xff] }
 0x39a   : > { %10899 = vmatmul.msk.bf16.gmra.mxu3 %vm4615_vm1, %v11165_v53 }
 0x39c   : > { %v5919_v24 = vpop.f32.mrf.mxu2 }
 0x39d   : > { %v12512_v54 = vpop.f32.mrf.mxu3  ;;  %v12514_v20 = vmax.f32 %v5435_v13, %v5919_v24  ;;  %v4877_v38 = vpop.f32.mrf.mxu0 }
 0x39e   : > { %13303 = vst [vmem:[#allocation76_spill] sm:$0xff] %v12512_v54  ;;  %v5367_v12 = vpop.f32.mrf.mxu1  ;;  %v11135_v54 = vld [vmem:[%s11838_s24 + $0x640] sm:$0xff] }
 0x39f   : > { %13304 = vst [vmem:[#allocation77_spill] sm:$0xff] %v12514_v20  ;;  %v5436_v25 = vmax.f32 %v4877_v38, %v5367_v12  ;;  %v11167_v20 = vld [vmem:[%s11838_s24 + $0x740] sm:$0xff] }
 0x3a4   : > { %v5921_v3 = vpop.f32.mrf.mxu2 }
 0x3a5   : > { %v12518_v43 = vpop.f32.mrf.mxu3  ;;  %v12522_v9 = vmax.f32 %v5436_v25, %v5921_v3  ;;  %v4880_v53 = vpop.f32.mrf.mxu0 }
 0x3a6   : > { %13305 = vst [vmem:[#allocation78_spill] sm:$0xff] %v12518_v43  ;;  %v5370_v2 = vpop.f32.mrf.mxu1 }
 0x3a7   : > { %13306 = vst [vmem:[#allocation79_spill] sm:$0xff] %v12522_v9  ;;  %v5437_v13 = vmax.f32 %v4880_v53, %v5370_v2 }
 0x3a8   : > { %10228 = vmatmul.msk.bf16.gmra.mxu0 %vm4615_vm1, %v11070_v7  ;;  %10452 = vmatmul.msk.bf16.gmra.mxu1 %vm4615_vm1, %v11102_v27 }
 0x3a9   : > { %10676 = vmatmul.msk.bf16.gmra.mxu2 %vm4615_vm1, %v11134_v55  ;;  %v11071_v55 = vld [vmem:[%s11838_s24 + $0x440] sm:$0xff] }
 0x3aa   : > { %10900 = vmatmul.msk.bf16.gmra.mxu3 %vm4615_vm1, %v11166_v61 }
 0x3ac   : > { %v5924_v38 = vpop.f32.mrf.mxu2 }
 0x3ad   : > { %v12532_v12 = vpop.f32.mrf.mxu3  ;;  %v12534_v25 = vmax.f32 %v5437_v13, %v5924_v38  ;;  %v4882_v2 = vpop.f32.mrf.mxu0  ;;  %v13309_v38 = vmax.f32 %v11914_v51, %v11912_v50  ;;  %v12560_v50 = vld [vmem:[%s13149_s2] ss:$0 sm:$0xff] }
 0x3ae   : > { %v5372_v3 = vpop.f32.mrf.mxu1 }
 0x3af   : > { %v5438_v53 = vmax.f32 %v4882_v2, %v5372_v3 }
 0x3b4   : > { %v5926_v24 = vpop.f32.mrf.mxu2 }
 0x3b5   : > { %v12538_v27 = vpop.f32.mrf.mxu3  ;;  %v12542_v43 = vmax.f32 %v5438_v53, %v5926_v24  ;;  %v6877_v61 = vpop.f32.mrf.mxu0 }
 0x3b6   : > { %13307 = vst [vmem:[#allocation80_spill] sm:$0xff] %v12538_v27  ;;  %v7431_v9 = vpop.f32.mrf.mxu1  ;;  %v7037_v2 = vmax.f32 %v13309_v38, %v6877_v61  ;;  %v13311_v27 = vmax.f32 %v11934_v5, %v11932_v4 }
 0x3b7   : > { %13308 = vst [vmem:[#allocation81_spill] sm:$0xff] %v12542_v43 }
 0x3b8   : > { %10229 = vmatmul.msk.bf16.gmra.mxu0 %vm4615_vm1, %v11071_v55  ;;  %10453 = vmatmul.msk.bf16.gmra.mxu1 %vm4615_vm1, %v11103_v30  ;;  %v7591_v24 = vmax.f32 %v7037_v2, %v7431_v9 }
 0x3b9   : > { %10677 = vmatmul.msk.bf16.gmra.mxu2 %vm4615_vm1, %v11135_v54  ;;  %v13310_v54 = vmax.f32 %v11922_v60, %v11918_v57  ;;  %v11104_v57 = vld [vmem:[%s11838_s24 + $0x548] sm:$0xff] }
 0x3ba   : > { %10901 = vmatmul.msk.bf16.gmra.mxu3 %vm4615_vm1, %v11167_v20 }
 0x3bc   : > { %v7985_v3 = vpop.f32.mrf.mxu2 }
 0x3bd   : > { %v8539_v53 = vpop.f32.mrf.mxu3  ;;  %v8145_v7 = vmax.f32 %v7591_v24, %v7985_v3  ;;  %v6879_v51 = vpop.f32.mrf.mxu0  ;;  %v11072_v24 = vld [vmem:[%s11838_s24 + $0x448] sm:$0xff] }
 0x3be   : > { %v7433_v55 = vpop.f32.mrf.mxu1  ;;  %v7038_v61 = vmax.f32 %v13310_v54, %v6879_v51  ;;  %v11136_v54 = vld [vmem:[%s11838_s24 + $0x648] sm:$0xff] }
 0x3bf   : > { %v8699_v30 = vmax.f32 %v8145_v7, %v8539_v53 }
 0x3c0   : > { %v7592_v38 = vmax.f32 %v7038_v61, %v7433_v55 }
 0x3c1   : > { %v8767_v9 = vadd.f32 %v12560_v50, %v8699_v30  ;;  %v11168_v30 = vld [vmem:[%s11838_s24 + $0x748] sm:$0xff] }
 0x3c3   : > { %vm8831_vm2 = vcmp.gt.f32.partialorder %v8767_v9, 0.0  ;;  %v8895_v20 = vmul.f32 0.3, %v8767_v9 }
 0x3c4   : > { %v7987_v7 = vpop.f32.mrf.mxu2 }
 0x3c5   : > { %v8541_v2 = vpop.f32.mrf.mxu3  ;;  %v8959_v60 = vsel %vm8831_vm2, %v8767_v9, %v8895_v20  ;;  %v8146_v3 = vmax.f32 %v7592_v38, %v7987_v7  ;;  %v6882_v53 = vpop.f32.mrf.mxu0 }
 0x3c6   : > { %v7436_v51 = vpop.f32.mrf.mxu1  ;;  %9024 = vst.msk [vmem:[%s12569_s28] sm:$0xff] %vm9023_vm3, %v8959_v60  ;;  %v7039_v43 = vmax.f32 %v13311_v27, %v6882_v53 }
 0x3c7   : > { %v8700_v13 = vmax.f32 %v8146_v3, %v8541_v2  ;;  %v13312_v2 = vmax.f32 %v11942_v14, %v11938_v11  ;;  %v13313_v14 = vmax.f32 %v11954_v23, %v11952_v22 }
 0x3c8   : > { %10230 = vmatmul.msk.bf16.gmra.mxu0 %vm4615_vm1, %v11072_v24  ;;  %10454 = vmatmul.msk.bf16.gmra.mxu1 %vm4615_vm1, %v11104_v57  ;;  %v7593_v9 = vmax.f32 %v7039_v43, %v7436_v51  ;;  %v11073_v51 = vld [vmem:[%s11838_s24 + $0x450] sm:$0xff] }
 0x3c9   : > { %v8768_v55 = vadd.f32 %v12560_v50, %v8700_v13  ;;  %10678 = vmatmul.msk.bf16.gmra.mxu2 %vm4615_vm1, %v11136_v54  ;;  %v11105_v54 = vld [vmem:[%s11838_s24 + $0x550] sm:$0xff] }
 0x3ca   : > { %10902 = vmatmul.msk.bf16.gmra.mxu3 %vm4615_vm1, %v11168_v30 }
 0x3cb   : > { %vm8832_vm4 = vcmp.gt.f32.partialorder %v8768_v55, 0.0  ;;  %v8896_v61 = vmul.f32 0.3, %v8768_v55 }
 0x3cc   : > { %v7990_v20 = vpop.f32.mrf.mxu2 }
 0x3cd   : > { %v8544_v38 = vpop.f32.mrf.mxu3  ;;  %v8960_v4 = vsel %vm8832_vm4, %v8768_v55, %v8896_v61  ;;  %v8147_v5 = vmax.f32 %v7593_v9, %v7990_v20  ;;  %v6884_v27 = vpop.f32.mrf.mxu0  ;;  %v11137_v20 = vld [vmem:[%s11838_s24 + $0x650] sm:$0xff] }
 0x3ce   : > { %v7438_v7 = vpop.f32.mrf.mxu1  ;;  %9025 = vst.msk [vmem:[%s12569_s28 + $0x8] sm:$0xff] %vm9023_vm3, %v8960_v4  ;;  %v7040_v24 = vmax.f32 %v13312_v2, %v6884_v27 }
 0x3cf   : > { %v8701_v13 = vmax.f32 %v8147_v5, %v8544_v38  ;;  %v11169_v38 = vld [vmem:[%s11838_s24 + $0x750] sm:$0xff] }
 0x3d0   : > { %v7594_v60 = vmax.f32 %v7040_v24, %v7438_v7 }
 0x3d1   : > { %v8769_v43 = vadd.f32 %v12560_v50, %v8701_v13 }
 0x3d3   : > { %vm8833_vm5 = vcmp.gt.f32.partialorder %v8769_v43, 0.0  ;;  %v8897_v57 = vmul.f32 0.3, %v8769_v43 }
 0x3d4   : > { %v7992_v3 = vpop.f32.mrf.mxu2 }
 0x3d5   : > { %v8546_v53 = vpop.f32.mrf.mxu3  ;;  %v8961_v30 = vsel %vm8833_vm5, %v8769_v43, %v8897_v57  ;;  %v8148_v55 = vmax.f32 %v7594_v60, %v7992_v3  ;;  %v6887_v61 = vpop.f32.mrf.mxu0  ;;  %v13314_v60 = vmax.f32 %v11962_v32, %v11958_v29  ;;  %v13315_v32 = vmax.f32 %v11974_v41, %v11972_v40 }
 0x3d6   : > { %v7441_v9 = vpop.f32.mrf.mxu1  ;;  %9026 = vst.msk [vmem:[%s12569_s28 + $0x10] sm:$0xff] %vm9023_vm3, %v8961_v30  ;;  %v7041_v4 = vmax.f32 %v13313_v14, %v6887_v61  ;;  %v11074_v61 = vld [vmem:[%s11838_s24 + $0x458] sm:$0xff] }
 0x3d7   : > { %v8702_v11 = vmax.f32 %v8148_v55, %v8546_v53 }
 0x3d8   : > { %10231 = vmatmul.msk.bf16.gmra.mxu0 %vm4615_vm1, %v11073_v51  ;;  %10455 = vmatmul.msk.bf16.gmra.mxu1 %vm4615_vm1, %v11105_v54  ;;  %v7595_v7 = vmax.f32 %v7041_v4, %v7441_v9  ;;  %v11106_v9 = vld [vmem:[%s11838_s24 + $0x558] sm:$0xff] }
 0x3d9   : > { %v8770_v5 = vadd.f32 %v12560_v50, %v8702_v11  ;;  %10679 = vmatmul.msk.bf16.gmra.mxu2 %vm4615_vm1, %v11137_v20  ;;  %v11138_v4 = vld [vmem:[%s11838_s24 + $0x658] sm:$0xff] }
 0x3da   : > { %10903 = vmatmul.msk.bf16.gmra.mxu3 %vm4615_vm1, %v11169_v38 }
 0x3db   : > { %vm8834_vm6 = vcmp.gt.f32.partialorder %v8770_v5, 0.0  ;;  %v8898_v27 = vmul.f32 0.3, %v8770_v5 }
 0x3dc   : > { %v7995_v13 = vpop.f32.mrf.mxu2 }
 0x3dd   : > { %v8549_v2 = vpop.f32.mrf.mxu3  ;;  %v8962_v22 = vsel %vm8834_vm6, %v8770_v5, %v8898_v27  ;;  %v8149_v23 = vmax.f32 %v7595_v7, %v7995_v13  ;;  %v6889_v24 = vpop.f32.mrf.mxu0  ;;  %v11170_v5 = vld [vmem:[%s11838_s24 + $0x758] sm:$0xff] }
 0x3de   : > { %v7443_v43 = vpop.f32.mrf.mxu1  ;;  %9027 = vst.msk [vmem:[%s12569_s28 + $0x18] sm:$0xff] %vm9023_vm3, %v8962_v22  ;;  %v7042_v3 = vmax.f32 %v13314_v60, %v6889_v24  ;;  %v13316_v60 = vmax.f32 %v11982_v52, %v11978_v47  ;;  %v13317_v52 = vmax.f32 %v11994_v0, %v11992_v63 }
 0x3df   : > { %v8703_v57 = vmax.f32 %v8149_v23, %v8549_v2 }
 0x3e0   : > { %v7596_v54 = vmax.f32 %v7042_v3, %v7443_v43 }
 0x3e1   : > { %v8771_v53 = vadd.f32 %v12560_v50, %v8703_v57 }
 0x3e3   : > { %vm8835_vm7 = vcmp.gt.f32.partialorder %v8771_v53, 0.0  ;;  %v8899_v51 = vmul.f32 0.3, %v8771_v53 }
 0x3e4   : > { %v7997_v30 = vpop.f32.mrf.mxu2 }
 0x3e5   : > { %v8551_v55 = vpop.f32.mrf.mxu3  ;;  %v8963_v20 = vsel %vm8835_vm7, %v8771_v53, %v8899_v51  ;;  %v8150_v38 = vmax.f32 %v7596_v54, %v7997_v30  ;;  %v6892_v11 = vpop.f32.mrf.mxu0 }
 0x3e6   : > { %v7446_v14 = vpop.f32.mrf.mxu1  ;;  %9028 = vst.msk [vmem:[%s12569_s28 + $0x20] sm:$0xff] %vm9023_vm3, %v8963_v20  ;;  %v7043_v27 = vmax.f32 %v13315_v32, %v6892_v11 }
 0x3e7   : > { %v8704_v29 = vmax.f32 %v8150_v38, %v8551_v55 }
 0x3e8   : > { %10232 = vmatmul.msk.bf16.gmra.mxu0 %vm4615_vm1, %v11074_v61  ;;  %10456 = vmatmul.msk.bf16.gmra.mxu1 %vm4615_vm1, %v11106_v9  ;;  %v7597_v2 = vmax.f32 %v7043_v27, %v7446_v14  ;;  %v11075_v61 = vld [vmem:[%s11838_s24 + $0x460] sm:$0xff] }
 0x3e9   : > { %v8772_v7 = vadd.f32 %v12560_v50, %v8704_v29  ;;  %10680 = vmatmul.msk.bf16.gmra.mxu2 %vm4615_vm1, %v11138_v4  ;;  %v11107_v9 = vld [vmem:[%s11838_s24 + $0x560] sm:$0xff] }
 0x3ea   : > { %10904 = vmatmul.msk.bf16.gmra.mxu3 %vm4615_vm1, %v11170_v5  ;;  %v11139_v4 = vld [vmem:[%s11838_s24 + $0x660] sm:$0xff] }
 0x3eb   : > { %vm8836_vm8 = vcmp.gt.f32.partialorder %v8772_v7, 0.0  ;;  %v8900_v13 = vmul.f32 0.3, %v8772_v7  ;;  %v11171_v5 = vld [vmem:[%s11838_s24 + $0x760] sm:$0xff] }
 0x3ec   : > { %v8000_v22 = vpop.f32.mrf.mxu2 }
 0x3ed   : > { %v8554_v23 = vpop.f32.mrf.mxu3  ;;  %v8964_v40 = vsel %vm8836_vm8, %v8772_v7, %v8900_v13  ;;  %v8151_v41 = vmax.f32 %v7597_v2, %v8000_v22  ;;  %v6894_v24 = vpop.f32.mrf.mxu0 }
 0x3ee   : > { %v7448_v43 = vpop.f32.mrf.mxu1  ;;  %9029 = vst.msk [vmem:[%s12569_s28 + $0x28] sm:$0xff] %vm9023_vm3, %v8964_v40  ;;  %v7044_v3 = vmax.f32 %v13316_v60, %v6894_v24 }
 0x3ef   : > { %v8705_v57 = vmax.f32 %v8151_v41, %v8554_v23  ;;  %v13318_v41 = vmax.f32 %v12002_v15, %v11998_v10  ;;  %v13319_v15 = vmax.f32 %v12014_v28, %v12012_v26 }
 0x3f0   : > { %v7598_v54 = vmax.f32 %v7044_v3, %v7448_v43 }
 0x3f1   : > { %v8773_v53 = vadd.f32 %v12560_v50, %v8705_v57 }
 0x3f3   : > { %vm8837_vm9 = vcmp.gt.f32.partialorder %v8773_v53, 0.0  ;;  %v8901_v51 = vmul.f32 0.3, %v8773_v53 }
 0x3f4   : > { %v8002_v30 = vpop.f32.mrf.mxu2 }
 0x3f5   : > { %v8556_v55 = vpop.f32.mrf.mxu3  ;;  %v8965_v20 = vsel %vm8837_vm9, %v8773_v53, %v8901_v51  ;;  %v8152_v38 = vmax.f32 %v7598_v54, %v8002_v30  ;;  %v6897_v11 = vpop.f32.mrf.mxu0  ;;  %v11076_v51 = vld [vmem:[%s11838_s24 + $0x468] sm:$0xff] }
 0x3f6   : > { %v7451_v14 = vpop.f32.mrf.mxu1  ;;  %9030 = vst.msk [vmem:[%s12569_s28 + $0x30] sm:$0xff] %vm9023_vm3, %v8965_v20  ;;  %v7045_v29 = vmax.f32 %v13317_v52, %v6897_v11  ;;  %v11108_v54 = vld [vmem:[%s11838_s24 + $0x568] sm:$0xff] }
 0x3f7   : > { %v8706_v47 = vmax.f32 %v8152_v38, %v8556_v55  ;;  %v11140_v20 = vld [vmem:[%s11838_s24 + $0x668] sm:$0xff] }
 0x3f8   : > { %10233 = vmatmul.msk.bf16.gmra.mxu0 %vm4615_vm1, %v11075_v61  ;;  %10457 = vmatmul.msk.bf16.gmra.mxu1 %vm4615_vm1, %v11107_v9  ;;  %v7599_v7 = vmax.f32 %v7045_v29, %v7451_v14  ;;  %v11172_v38 = vld [vmem:[%s11838_s24 + $0x768] sm:$0xff] }
 0x3f9   : > { %v8774_v32 = vadd.f32 %v12560_v50, %v8706_v47  ;;  %10681 = vmatmul.msk.bf16.gmra.mxu2 %vm4615_vm1, %v11139_v4 }
 0x3fa   : > { %10905 = vmatmul.msk.bf16.gmra.mxu3 %vm4615_vm1, %v11171_v5 }
 0x3fb   : > { %vm8838_vm10 = vcmp.gt.f32.partialorder %v8774_v32, 0.0  ;;  %v8902_v27 = vmul.f32 0.3, %v8774_v32 }
 0x3fc   : > { %v8005_v13 = vpop.f32.mrf.mxu2 }
 0x3fd   : > { %v8559_v2 = vpop.f32.mrf.mxu3  ;;  %v8966_v63 = vsel %vm8838_vm10, %v8774_v32, %v8902_v27  ;;  %v8153_v0 = vmax.f32 %v7599_v7, %v8005_v13  ;;  %v6899_v22 = vpop.f32.mrf.mxu0  ;;  %v13320_v7 = vmax.f32 %v12022_v42, %v12018_v36  ;;  %v13321_v42 = vmax.f32 %v12034_v58, %v12032_v56 }
 0x3fe   : > { %v7453_v23 = vpop.f32.mrf.mxu1  ;;  %9031 = vst.msk [vmem:[%s12569_s28 + $0x38] sm:$0xff] %vm9023_vm3, %v8966_v63  ;;  %v7046_v24 = vmax.f32 %v13318_v41, %v6899_v22  ;;  %v11109_v41 = vld [vmem:[%s11838_s24 + $0x570] sm:$0xff] }
 0x3ff   : > { %v8707_v40 = vmax.f32 %v8153_v0, %v8559_v2 }
 0x400   : > { %v7600_v60 = vmax.f32 %v7046_v24, %v7453_v23 }
 0x401   : > { %v8775_v43 = vadd.f32 %v12560_v50, %v8707_v40  ;;  %v11077_v40 = vld [vmem:[%s11838_s24 + $0x470] sm:$0xff] }
 0x403   : > { %vm8839_vm11 = vcmp.gt.f32.partialorder %v8775_v43, 0.0  ;;  %v8903_v57 = vmul.f32 0.3, %v8775_v43 }
 0x404   : > { %v8007_v3 = vpop.f32.mrf.mxu2 }
 0x405   : > { %v8561_v53 = vpop.f32.mrf.mxu3  ;;  %v8967_v30 = vsel %vm8839_vm11, %v8775_v43, %v8903_v57  ;;  %v8154_v55 = vmax.f32 %v7600_v60, %v8007_v3  ;;  %v6902_v61 = vpop.f32.mrf.mxu0  ;;  %v11141_v3 = vld [vmem:[%s11838_s24 + $0x670] sm:$0xff] }
 0x406   : > { %v7456_v9 = vpop.f32.mrf.mxu1  ;;  %9032 = vst.msk [vmem:[%s12569_s28 + $0x40] sm:$0xff] %vm9023_vm3, %v8967_v30  ;;  %v7047_v11 = vmax.f32 %v13319_v15, %v6902_v61  ;;  %v13322_v15 = vmax.f32 %v12042_v16, %v12038_v8  ;;  %v13323_v16 = vmax.f32 %v12054_v35, %v12052_v33 }
 0x407   : > { %v8708_v10 = vmax.f32 %v8154_v55, %v8561_v53  ;;  %v11173_v53 = vld [vmem:[%s11838_s24 + $0x770] sm:$0xff] }
 0x408   : > { %10234 = vmatmul.msk.bf16.gmra.mxu0 %vm4615_vm1, %v11076_v51  ;;  %10458 = vmatmul.msk.bf16.gmra.mxu1 %vm4615_vm1, %v11108_v54  ;;  %v7601_v5 = vmax.f32 %v7047_v11, %v7456_v9 }
 0x409   : > { %v8776_v14 = vadd.f32 %v12560_v50, %v8708_v10  ;;  %10682 = vmatmul.msk.bf16.gmra.mxu2 %vm4615_vm1, %v11140_v20 }
 0x40a   : > { %10906 = vmatmul.msk.bf16.gmra.mxu3 %vm4615_vm1, %v11172_v38 }
 0x40b   : > { %vm8840_vm12 = vcmp.gt.f32.partialorder %v8776_v14, 0.0  ;;  %v8904_v4 = vmul.f32 0.3, %v8776_v14 }
 0x40c   : > { %v8010_v47 = vpop.f32.mrf.mxu2 }
 0x40d   : > { %v8564_v52 = vpop.f32.mrf.mxu3  ;;  %v8968_v26 = vsel %vm8840_vm12, %v8776_v14, %v8904_v4  ;;  %v8155_v28 = vmax.f32 %v7601_v5, %v8010_v47  ;;  %v6904_v29 = vpop.f32.mrf.mxu0 }
 0x40e   : > { %v7458_v32 = vpop.f32.mrf.mxu1  ;;  %9033 = vst.msk [vmem:[%s12569_s28 + $0x48] sm:$0xff] %vm9023_vm3, %v8968_v26  ;;  %v7048_v13 = vmax.f32 %v13320_v7, %v6904_v29  ;;  %v11078_v26 = vld [vmem:[%s11838_s24 + $0x478] sm:$0xff] }
 0x40f   : > { %v8709_v27 = vmax.f32 %v8155_v28, %v8564_v52  ;;  %v11110_v28 = vld [vmem:[%s11838_s24 + $0x578] sm:$0xff] }
 0x410   : > { %v7602_v0 = vmax.f32 %v7048_v13, %v7458_v32  ;;  %v11142_v13 = vld [vmem:[%s11838_s24 + $0x678] sm:$0xff] }
 0x411   : > { %v8777_v2 = vadd.f32 %v12560_v50, %v8709_v27 }
 0x413   : > { %vm8841_vm13 = vcmp.gt.f32.partialorder %v8777_v2, 0.0  ;;  %v8905_v63 = vmul.f32 0.3, %v8777_v2 }
 0x414   : > { %v8012_v22 = vpop.f32.mrf.mxu2 }
 0x415   : > { %v8566_v23 = vpop.f32.mrf.mxu3  ;;  %v8969_v24 = vsel %vm8841_vm13, %v8777_v2, %v8905_v63  ;;  %v8156_v43 = vmax.f32 %v7602_v0, %v8012_v22  ;;  %v6907_v57 = vpop.f32.mrf.mxu0  ;;  %v11174_v2 = vld [vmem:[%s11838_s24 + $0x778] sm:$0xff] }
 0x416   : > { %v7461_v60 = vpop.f32.mrf.mxu1  ;;  %9034 = vst.msk [vmem:[%s12569_s28 + $0x50] sm:$0xff] %vm9023_vm3, %v8969_v24  ;;  %v7049_v51 = vmax.f32 %v13321_v42, %v6907_v57 }
 0x417   : > { %v8710_v36 = vmax.f32 %v8156_v43, %v8566_v23 }
 0x418   : > { %10235 = vmatmul.msk.bf16.gmra.mxu0 %vm4615_vm1, %v11077_v40  ;;  %10459 = vmatmul.msk.bf16.gmra.mxu1 %vm4615_vm1, %v11109_v41  ;;  %v7603_v55 = vmax.f32 %v7049_v51, %v7461_v60  ;;  %v13324_v60 = vmax.f32 %v12062_v59, %v12058_v48  ;;  %v13325_v59 = vmax.f32 %v12074_v21, %v12072_v19 }
 0x419   : > { %v8778_v54 = vadd.f32 %v12560_v50, %v8710_v36  ;;  %10683 = vmatmul.msk.bf16.gmra.mxu2 %vm4615_vm1, %v11141_v3 }
 0x41a   : > { %10907 = vmatmul.msk.bf16.gmra.mxu3 %vm4615_vm1, %v11173_v53 }
 0x41b   : > { %vm8842_vm14 = vcmp.gt.f32.partialorder %v8778_v54, 0.0  ;;  %v8906_v30 = vmul.f32 0.3, %v8778_v54 }
 0x41c   : > { %v8015_v61 = vpop.f32.mrf.mxu2 }
 0x41d   : > { %v8569_v9 = vpop.f32.mrf.mxu3  ;;  %v8970_v56 = vsel %vm8842_vm14, %v8778_v54, %v8906_v30  ;;  %v8157_v58 = vmax.f32 %v7603_v55, %v8015_v61  ;;  %v6909_v20 = vpop.f32.mrf.mxu0  ;;  %v11079_v30 = vld [vmem:[%s11838_s24 + $0x480] sm:$0xff] }
 0x41e   : > { %v7463_v38 = vpop.f32.mrf.mxu1  ;;  %9035 = vst.msk [vmem:[%s12569_s28 + $0x58] sm:$0xff] %vm9023_vm3, %v8970_v56  ;;  %v7050_v11 = vmax.f32 %v13322_v15, %v6909_v20  ;;  %v11111_v55 = vld [vmem:[%s11838_s24 + $0x580] sm:$0xff] }
 0x41f   : > { %v8711_v10 = vmax.f32 %v8157_v58, %v8569_v9  ;;  %v11143_v20 = vld [vmem:[%s11838_s24 + $0x680] sm:$0xff] }
 0x420   : > { %v7604_v5 = vmax.f32 %v7050_v11, %v7463_v38  ;;  %v11175_v38 = vld [vmem:[%s11838_s24 + $0x780] sm:$0xff] }
 0x421   : > { %v8779_v14 = vadd.f32 %v12560_v50, %v8711_v10 }
 0x423   : > { %vm8843_vm15 = vcmp.gt.f32.partialorder %v8779_v14, 0.0  ;;  %v8907_v4 = vmul.f32 0.3, %v8779_v14 }
 0x424   : > { %v8017_v47 = vpop.f32.mrf.mxu2 }
 0x425   : > { %v8571_v52 = vpop.f32.mrf.mxu3  ;;  %v8971_v29 = vsel %vm8843_vm15, %v8779_v14, %v8907_v4  ;;  %v8158_v32 = vmax.f32 %v7604_v5, %v8017_v47  ;;  %v6912_v27 = vpop.f32.mrf.mxu0 }
 0x426   : > { %v7466_v7 = vpop.f32.mrf.mxu1  ;;  %9036 = vst.msk [vmem:[%s12569_s28 + $0x60] sm:$0xff] %vm9023_vm3, %v8971_v29  ;;  %v7051_v63 = vmax.f32 %v13323_v16, %v6912_v27  ;;  %v11112_v16 = vld [vmem:[%s11838_s24 + $0x588] sm:$0xff] }
 0x427   : > { %v8712_v8 = vmax.f32 %v8158_v32, %v8571_v52 }
 0x428   : > { %10236 = vmatmul.msk.bf16.gmra.mxu0 %vm4615_vm1, %v11078_v26  ;;  %10460 = vmatmul.msk.bf16.gmra.mxu1 %vm4615_vm1, %v11110_v28  ;;  %v7605_v23 = vmax.f32 %v7051_v63, %v7466_v7  ;;  %v13326_v28 = vmax.f32 %v12082_v62, %v12078_v46  ;;  %v13327_v62 = vmax.f32 %v12094_v37, %v12092_v31 }
 0x429   : > { %v8780_v0 = vadd.f32 %v12560_v50, %v8712_v8  ;;  %10684 = vmatmul.msk.bf16.gmra.mxu2 %vm4615_vm1, %v11142_v13  ;;  %v11080_v8 = vld [vmem:[%s11838_s24 + $0x488] sm:$0xff] }
 0x42a   : > { %10908 = vmatmul.msk.bf16.gmra.mxu3 %vm4615_vm1, %v11174_v2 }
 0x42b   : > { %vm8844_vm0 = vcmp.gt.f32.partialorder %v8780_v0, 0.0  ;;  %v8908_v22 = vmul.f32 0.3, %v8780_v0 }
 0x42c   : > { %v8020_v40 = vpop.f32.mrf.mxu2 }
 0x42d   : > { %v8574_v41 = vpop.f32.mrf.mxu3  ;;  %v8972_v33 = vsel %vm8844_vm0, %v8780_v0, %v8908_v22  ;;  %v8159_v35 = vmax.f32 %v7605_v23, %v8020_v40  ;;  %v6914_v24 = vpop.f32.mrf.mxu0  ;;  %v11144_v40 = vld [vmem:[%s11838_s24 + $0x688] sm:$0xff] }
 0x42e   : > { %v7468_v43 = vpop.f32.mrf.mxu1  ;;  %9037 = vst.msk [vmem:[%s12569_s28 + $0x68] sm:$0xff] %vm9023_vm3, %v8972_v33  ;;  %v7052_v3 = vmax.f32 %v13324_v60, %v6914_v24 }
 0x42f   : > { %v8713_v57 = vmax.f32 %v8159_v35, %v8574_v41  ;;  %v11176_v41 = vld [vmem:[%s11838_s24 + $0x788] sm:$0xff] }
 0x430   : > { %v7606_v42 = vmax.f32 %v7052_v3, %v7468_v43 }
 0x431   : > { %v8781_v53 = vadd.f32 %v12560_v50, %v8713_v57 }
 0x433   : > { %vm8845_vm2 = vcmp.gt.f32.partialorder %v8781_v53, 0.0  ;;  %v8909_v36 = vmul.f32 0.3, %v8781_v53 }
 0x434   : > { %v8022_v51 = vpop.f32.mrf.mxu2 }
 0x435   : > { %v8576_v54 = vpop.f32.mrf.mxu3  ;;  %v8973_v61 = vsel %vm8845_vm2, %v8781_v53, %v8909_v36  ;;  %v8160_v9 = vmax.f32 %v7606_v42, %v8022_v51  ;;  %v6917_v56 = vpop.f32.mrf.mxu0  ;;  %v13328_v42 = vmax.f32 %v12102_v44, %v12098_v39  ;;  %v13329_v39 = vmax.f32 %v12114_v6, %v12112_v1 }
 0x436   : > { %v7471_v58 = vpop.f32.mrf.mxu1  ;;  %9038 = vst.msk [vmem:[%s12569_s28 + $0x70] sm:$0xff] %vm9023_vm3, %v8973_v61  ;;  %v7053_v10 = vmax.f32 %v13325_v59, %v6917_v56  ;;  %v11081_v56 = vld [vmem:[%s11838_s24 + $0x490] sm:$0xff] }
 0x437   : > { %v8714_v48 = vmax.f32 %v8160_v9, %v8576_v54 }
 0x438   : > { %10237 = vmatmul.msk.bf16.gmra.mxu0 %vm4615_vm1, %v11079_v30  ;;  %10461 = vmatmul.msk.bf16.gmra.mxu1 %vm4615_vm1, %v11111_v55  ;;  %v7607_v14 = vmax.f32 %v7053_v10, %v7471_v58  ;;  %v11113_v58 = vld [vmem:[%s11838_s24 + $0x590] sm:$0xff] }
 0x439   : > { %v8782_v15 = vadd.f32 %v12560_v50, %v8714_v48  ;;  %10685 = vmatmul.msk.bf16.gmra.mxu2 %vm4615_vm1, %v11143_v20  ;;  %v11145_v10 = vld [vmem:[%s11838_s24 + $0x690] sm:$0xff] }
 0x43a   : > { %10909 = vmatmul.msk.bf16.gmra.mxu3 %vm4615_vm1, %v11175_v38 }
 0x43b   : > { %vm8846_vm4 = vcmp.gt.f32.partialorder %v8782_v15, 0.0  ;;  %v8910_v11 = vmul.f32 0.3, %v8782_v15 }
 0x43c   : > { %v8025_v4 = vpop.f32.mrf.mxu2 }
 0x43d   : > { %v8579_v5 = vpop.f32.mrf.mxu3  ;;  %v8974_v19 = vsel %vm8846_vm4, %v8782_v15, %v8910_v11  ;;  %v8161_v21 = vmax.f32 %v7607_v14, %v8025_v4  ;;  %v6919_v47 = vpop.f32.mrf.mxu0  ;;  %v11177_v15 = vld [vmem:[%s11838_s24 + $0x790] sm:$0xff] }
 0x43e   : > { %v7473_v52 = vpop.f32.mrf.mxu1  ;;  %9039 = vst.msk [vmem:[%s12569_s28 + $0x78] sm:$0xff] %vm9023_vm3, %v8974_v19  ;;  %v7054_v29 = vmax.f32 %v13326_v28, %v6919_v47  ;;  %v13330_v28 = vmax.f32 %v12122_v34, %v12118_v18  ;;  %v13331_v18 = vmax.f32 %v12134_v17, %v12132_v49 }
 0x43f   : > { %v8715_v26 = vmax.f32 %v8161_v21, %v8579_v5 }
 0x440   : > { %v7608_v7 = vmax.f32 %v7054_v29, %v7473_v52 }
 0x441   : > { %v8783_v32 = vadd.f32 %v12560_v50, %v8715_v26 }
 0x443   : > { %vm8847_vm5 = vcmp.gt.f32.partialorder %v8783_v32, 0.0  ;;  %v8911_v27 = vmul.f32 0.3, %v8783_v32 }
 0x444   : > { %v8027_v13 = vpop.f32.mrf.mxu2 }
 0x445   : > { %v8581_v2 = vpop.f32.mrf.mxu3  ;;  %v8975_v63 = vsel %vm8847_vm5, %v8783_v32, %v8911_v27  ;;  %v8162_v0 = vmax.f32 %v7608_v7, %v8027_v13  ;;  %v6922_v22 = vpop.f32.mrf.mxu0 }
 0x446   : > { %v7476_v23 = vpop.f32.mrf.mxu1  ;;  %9040 = vst.msk [vmem:[%s12569_s28 + $0x80] sm:$0xff] %vm9023_vm3, %v8975_v63  ;;  %v7055_v33 = vmax.f32 %v13327_v62, %v6922_v22 }
 0x447   : > { %v8716_v46 = vmax.f32 %v8162_v0, %v8581_v2 }
 0x448   : > { %10238 = vmatmul.msk.bf16.gmra.mxu0 %vm4615_vm1, %v11080_v8  ;;  %10462 = vmatmul.msk.bf16.gmra.mxu1 %vm4615_vm1, %v11112_v16  ;;  %v7609_v43 = vmax.f32 %v7055_v33, %v7476_v23  ;;  %v11082_v8 = vld [vmem:[%s11838_s24 + $0x498] sm:$0xff] }
 0x449   : > { %v8784_v35 = vadd.f32 %v12560_v50, %v8716_v46  ;;  %10686 = vmatmul.msk.bf16.gmra.mxu2 %vm4615_vm1, %v11144_v40  ;;  %v11114_v16 = vld [vmem:[%s11838_s24 + $0x598] sm:$0xff] }
 0x44a   : > { %10910 = vmatmul.msk.bf16.gmra.mxu3 %vm4615_vm1, %v11176_v41  ;;  %v11146_v40 = vld [vmem:[%s11838_s24 + $0x698] sm:$0xff] }
 0x44b   : > { %vm8848_vm6 = vcmp.gt.f32.partialorder %v8784_v35, 0.0  ;;  %v8912_v24 = vmul.f32 0.3, %v8784_v35  ;;  %v11178_v41 = vld [vmem:[%s11838_s24 + $0x798] sm:$0xff] }
 0x44c   : > { %v8030_v57 = vpop.f32.mrf.mxu2 }
 0x44d   : > { %v8584_v60 = vpop.f32.mrf.mxu3  ;;  %v8976_v31 = vsel %vm8848_vm6, %v8784_v35, %v8912_v24  ;;  %v8163_v37 = vmax.f32 %v7609_v43, %v8030_v57  ;;  %v6924_v3 = vpop.f32.mrf.mxu0 }
 0x44e   : > { %v7478_v53 = vpop.f32.mrf.mxu1  ;;  %9041 = vst.msk [vmem:[%s12569_s28 + $0x88] sm:$0xff] %vm9023_vm3, %v8976_v31  ;;  %v7056_v51 = vmax.f32 %v13328_v42, %v6924_v3 }
 0x44f   : > { %v8717_v36 = vmax.f32 %v8163_v37, %v8584_v60  ;;  %v13332_v37 = vld [vmem:[#allocation3_spill] sm:$0xff] }
 0x450   : > { %v7610_v55 = vmax.f32 %v7056_v51, %v7478_v53  ;;  %v13333_v3 = vmax.f32 %v12142_v45, %v13332_v37 }
 0x451   : > { %v8785_v54 = vadd.f32 %v12560_v50, %v8717_v36 }
 0x453   : > { %vm8849_vm7 = vcmp.gt.f32.partialorder %v8785_v54, 0.0  ;;  %v8913_v30 = vmul.f32 0.3, %v8785_v54 }
 0x454   : > { %v8032_v61 = vpop.f32.mrf.mxu2 }
 0x455   : > { %v8586_v9 = vpop.f32.mrf.mxu3  ;;  %v8977_v20 = vsel %vm8849_vm7, %v8785_v54, %v8913_v30  ;;  %v8164_v38 = vmax.f32 %v7610_v55, %v8032_v61  ;;  %v6927_v48 = vpop.f32.mrf.mxu0  ;;  %v11083_v55 = vld [vmem:[%s11838_s24 + $0x4a0] sm:$0xff] }
 0x456   : > { %v7481_v59 = vpop.f32.mrf.mxu1  ;;  %9042 = vst.msk [vmem:[%s12569_s28 + $0x90] sm:$0xff] %vm9023_vm3, %v8977_v20  ;;  %v7057_v11 = vmax.f32 %v13329_v39, %v6927_v48  ;;  %v11115_v61 = vld [vmem:[%s11838_s24 + $0x5a0] sm:$0xff] }
 0x457   : > { %v8718_v44 = vmax.f32 %v8164_v38, %v8586_v9  ;;  %v11147_v38 = vld [vmem:[%s11838_s24 + $0x6a0] sm:$0xff] }
 0x458   : > { %10239 = vmatmul.msk.bf16.gmra.mxu0 %vm4615_vm1, %v11081_v56  ;;  %10463 = vmatmul.msk.bf16.gmra.mxu1 %vm4615_vm1, %v11113_v58  ;;  %v7611_v5 = vmax.f32 %v7057_v11, %v7481_v59  ;;  %v11179_v48 = vld [vmem:[%s11838_s24 + $0x7a0] sm:$0xff]  ;;  %v13334_v59 = vld [vmem:[#allocation5_spill] sm:$0xff] }
 0x459   : > { %v8786_v14 = vadd.f32 %v12560_v50, %v8718_v44  ;;  %10687 = vmatmul.msk.bf16.gmra.mxu2 %vm4615_vm1, %v11145_v10  ;;  %v13335_v10 = vld [vmem:[#allocation4_spill] sm:$0xff] }
 0x45a   : > { %10911 = vmatmul.msk.bf16.gmra.mxu3 %vm4615_vm1, %v11177_v15  ;;  %v13336_v15 = vmax.f32 %v13334_v59, %v13335_v10  ;;  %v11149_v59 = vld [vmem:[%s11838_s24 + $0x6b0] sm:$0xff] }
 0x45b   : > { %vm8850_vm8 = vcmp.gt.f32.partialorder %v8786_v14, 0.0  ;;  %v8914_v4 = vmul.f32 0.3, %v8786_v14  ;;  %v11181_v10 = vld [vmem:[%s11838_s24 + $0x7b0] sm:$0xff] }
 0x45c   : > { %v8035_v19 = vpop.f32.mrf.mxu2 }
 0x45d   : > { %v8589_v21 = vpop.f32.mrf.mxu3  ;;  %v8978_v1 = vsel %vm8850_vm8, %v8786_v14, %v8914_v4  ;;  %v8165_v6 = vmax.f32 %v7611_v5, %v8035_v19  ;;  %v6929_v47 = vpop.f32.mrf.mxu0 }
 0x45e   : > { %v7483_v52 = vpop.f32.mrf.mxu1  ;;  %9043 = vst.msk [vmem:[%s12569_s28 + $0x98] sm:$0xff] %vm9023_vm3, %v8978_v1  ;;  %v7058_v29 = vmax.f32 %v13330_v28, %v6929_v47 }
 0x45f   : > { %v8719_v26 = vmax.f32 %v8165_v6, %v8589_v21 }
 0x460   : > { %v7612_v7 = vmax.f32 %v7058_v29, %v7483_v52  ;;  %v13337_v52 = vld [vmem:[#allocation7_spill] sm:$0xff] }
 0x461   : > { %v8787_v32 = vadd.f32 %v12560_v50, %v8719_v26  ;;  %v13338_v26 = vld [vmem:[#allocation6_spill] sm:$0xff] }
 0x462   : > { %v13339_v28 = vmax.f32 %v13337_v52, %v13338_v26 }
 0x463   : > { %vm8851_vm9 = vcmp.gt.f32.partialorder %v8787_v32, 0.0  ;;  %v8915_v27 = vmul.f32 0.3, %v8787_v32 }
 0x464   : > { %v8037_v13 = vpop.f32.mrf.mxu2 }
 0x465   : > { %v8591_v2 = vpop.f32.mrf.mxu3  ;;  %v8979_v63 = vsel %vm8851_vm9, %v8787_v32, %v8915_v27  ;;  %v8166_v0 = vmax.f32 %v7612_v7, %v8037_v13  ;;  %v6932_v22 = vpop.f32.mrf.mxu0 }
 0x466   : > { %v7486_v23 = vpop.f32.mrf.mxu1  ;;  %9044 = vst.msk [vmem:[%s12569_s28 + $0xa0] sm:$0xff] %vm9023_vm3, %v8979_v63  ;;  %v7059_v46 = vmax.f32 %v13331_v18, %v6932_v22  ;;  %v13340_v18 = vld [vmem:[#allocation9_spill] sm:$0xff] }
 0x467   : > { %v8720_v34 = vmax.f32 %v8166_v0, %v8591_v2 }
 0x468   : > { %10240 = vmatmul.msk.bf16.gmra.mxu0 %vm4615_vm1, %v11082_v8  ;;  %10464 = vmatmul.msk.bf16.gmra.mxu1 %vm4615_vm1, %v11114_v16  ;;  %v7613_v35 = vmax.f32 %v7059_v46, %v7486_v23  ;;  %v11084_v8 = vld [vmem:[%s11838_s24 + $0x4a8] sm:$0xff] }
 0x469   : > { %v8788_v62 = vadd.f32 %v12560_v50, %v8720_v34  ;;  %10688 = vmatmul.msk.bf16.gmra.mxu2 %vm4615_vm1, %v11146_v40  ;;  %v11116_v16 = vld [vmem:[%s11838_s24 + $0x5a8] sm:$0xff] }
 0x46a   : > { %10912 = vmatmul.msk.bf16.gmra.mxu3 %vm4615_vm1, %v11178_v41  ;;  %v11148_v40 = vld [vmem:[%s11838_s24 + $0x6a8] sm:$0xff] }
 0x46b   : > { %vm8852_vm10 = vcmp.gt.f32.partialorder %v8788_v62, 0.0  ;;  %v8916_v33 = vmul.f32 0.3, %v8788_v62  ;;  %v11180_v41 = vld [vmem:[%s11838_s24 + $0x7a8] sm:$0xff] }
 0x46c   : > { %v8040_v24 = vpop.f32.mrf.mxu2  ;;  %v13341_v46 = vld [vmem:[#allocation8_spill] sm:$0xff] }
 0x46d   : > { %v8594_v43 = vpop.f32.mrf.mxu3  ;;  %v8980_v49 = vsel %vm8852_vm10, %v8788_v62, %v8916_v33  ;;  %v8167_v17 = vmax.f32 %v7613_v35, %v8040_v24  ;;  %v6934_v57 = vpop.f32.mrf.mxu0  ;;  %v13342_v62 = vmax.f32 %v13340_v18, %v13341_v46  ;;  %v11150_v18 = vld [vmem:[%s11838_s24 + $0x6b8] sm:$0xff] }
 0x46e   : > { %v7488_v60 = vpop.f32.mrf.mxu1  ;;  %9045 = vst.msk [vmem:[%s12569_s28 + $0xa8] sm:$0xff] %vm9023_vm3, %v8980_v49  ;;  %v7060_v53 = vmax.f32 %v13333_v3, %v6934_v57  ;;  %v11182_v46 = vld [vmem:[%s11838_s24 + $0x7b8] sm:$0xff] }
 0x46f   : > { %v8721_v31 = vmax.f32 %v8167_v17, %v8594_v43 }
 0x470   : > { %v7614_v51 = vmax.f32 %v7060_v53, %v7488_v60  ;;  %v13343_v53 = vld [vmem:[#allocation11_spill] sm:$0xff] }
 0x471   : > { %v8789_v36 = vadd.f32 %v12560_v50, %v8721_v31 }
 0x473   : > { %vm8853_vm11 = vcmp.gt.f32.partialorder %v8789_v36, 0.0  ;;  %v8917_v42 = vmul.f32 0.3, %v8789_v36 }
 0x474   : > { %v8042_v54 = vpop.f32.mrf.mxu2 }
 0x475   : > { %v8596_v30 = vpop.f32.mrf.mxu3  ;;  %v8981_v9 = vsel %vm8853_vm11, %v8789_v36, %v8917_v42  ;;  %v8168_v56 = vmax.f32 %v7614_v51, %v8042_v54  ;;  %v6937_v58 = vpop.f32.mrf.mxu0  ;;  %v13344_v36 = vld [vmem:[#allocation10_spill] sm:$0xff] }
 0x476   : > { %v7491_v20 = vpop.f32.mrf.mxu1  ;;  %9046 = vst.msk [vmem:[%s12569_s28 + $0xb0] sm:$0xff] %vm9023_vm3, %v8981_v9  ;;  %v7061_v44 = vmax.f32 %v13336_v15, %v6937_v58  ;;  %v13345_v42 = vmax.f32 %v13343_v53, %v13344_v36  ;;  %v11117_v58 = vld [vmem:[%s11838_s24 + $0x5b0] sm:$0xff] }
 0x477   : > { %v8722_v45 = vmax.f32 %v8168_v56, %v8596_v30  ;;  %v11085_v56 = vld [vmem:[%s11838_s24 + $0x4b0] sm:$0xff] }
 0x478   : > { %10241 = vmatmul.msk.bf16.gmra.mxu0 %vm4615_vm1, %v11083_v55  ;;  %10465 = vmatmul.msk.bf16.gmra.mxu1 %vm4615_vm1, %v11115_v61  ;;  %v7615_v14 = vmax.f32 %v7061_v44, %v7491_v20  ;;  %v13346_v44 = vld [vmem:[#allocation13_spill] sm:$0xff] }
 0x479   : > { %v8790_v39 = vadd.f32 %v12560_v50, %v8722_v45  ;;  %10689 = vmatmul.msk.bf16.gmra.mxu2 %vm4615_vm1, %v11147_v38 }
 0x47a   : > { %10913 = vmatmul.msk.bf16.gmra.mxu3 %vm4615_vm1, %v11179_v48 }
 0x47b   : > { %vm8854_vm12 = vcmp.gt.f32.partialorder %v8790_v39, 0.0  ;;  %v8918_v11 = vmul.f32 0.3, %v8790_v39 }
 0x47c   : > { %v8045_v4 = vpop.f32.mrf.mxu2 }
 0x47d   : > { %v8599_v5 = vpop.f32.mrf.mxu3  ;;  %v8982_v19 = vsel %vm8854_vm12, %v8790_v39, %v8918_v11  ;;  %v8169_v21 = vmax.f32 %v7615_v14, %v8045_v4  ;;  %v6939_v1 = vpop.f32.mrf.mxu0  ;;  %v13347_v39 = vld [vmem:[#allocation12_spill] sm:$0xff] }
 0x47e   : > { %v7493_v6 = vpop.f32.mrf.mxu1  ;;  %9047 = vst.msk [vmem:[%s12569_s28 + $0xb8] sm:$0xff] %vm9023_vm3, %v8982_v19  ;;  %v7062_v29 = vmax.f32 %v13339_v28, %v6939_v1  ;;  %v13348_v11 = vmax.f32 %v13346_v44, %v13347_v39  ;;  %v11151_v44 = vld [vmem:[%s11838_s24 + $0x6c0] sm:$0xff] }
 0x47f   : > { %v8723_v47 = vmax.f32 %v8169_v21, %v8599_v5  ;;  %v11183_v39 = vld [vmem:[%s11838_s24 + $0x7c0] sm:$0xff] }
 0x480   : > { %v7616_v7 = vmax.f32 %v7062_v29, %v7493_v6  ;;  %v13349_v29 = vld [vmem:[#allocation15_spill] sm:$0xff] }
 0x481   : > { %v8791_v32 = vadd.f32 %v12560_v50, %v8723_v47 }
 0x483   : > { %vm8855_vm13 = vcmp.gt.f32.partialorder %v8791_v32, 0.0  ;;  %v8919_v27 = vmul.f32 0.3, %v8791_v32 }
 0x484   : > { %v8047_v13 = vpop.f32.mrf.mxu2 }
 0x485   : > { %v8601_v2 = vpop.f32.mrf.mxu3  ;;  %v8983_v63 = vsel %vm8855_vm13, %v8791_v32, %v8919_v27  ;;  %v8170_v0 = vmax.f32 %v7616_v7, %v8047_v13  ;;  %v6942_v22 = vpop.f32.mrf.mxu0  ;;  %v13350_v32 = vld [vmem:[#allocation14_spill] sm:$0xff] }
 0x486   : > { %v7496_v23 = vpop.f32.mrf.mxu1  ;;  %9048 = vst.msk [vmem:[%s12569_s28 + $0xc0] sm:$0xff] %vm9023_vm3, %v8983_v63  ;;  %v7063_v33 = vmax.f32 %v13342_v62, %v6942_v22  ;;  %v13351_v27 = vmax.f32 %v13349_v29, %v13350_v32  ;;  %v11118_v22 = vld [vmem:[%s11838_s24 + $0x5b8] sm:$0xff] }
 0x487   : > { %v8724_v34 = vmax.f32 %v8170_v0, %v8601_v2  ;;  %v11086_v0 = vld [vmem:[%s11838_s24 + $0x4b8] sm:$0xff] }
 0x488   : > { %10242 = vmatmul.msk.bf16.gmra.mxu0 %vm4615_vm1, %v11084_v8  ;;  %10466 = vmatmul.msk.bf16.gmra.mxu1 %vm4615_vm1, %v11116_v16  ;;  %v7617_v43 = vmax.f32 %v7063_v33, %v7496_v23  ;;  %v13352_v33 = vld [vmem:[#allocation17_spill] sm:$0xff] }
 0x489   : > { %v8792_v35 = vadd.f32 %v12560_v50, %v8724_v34  ;;  %10690 = vmatmul.msk.bf16.gmra.mxu2 %vm4615_vm1, %v11148_v40 }
 0x48a   : > { %10914 = vmatmul.msk.bf16.gmra.mxu3 %vm4615_vm1, %v11180_v41 }
 0x48b   : > { %vm8856_vm14 = vcmp.gt.f32.partialorder %v8792_v35, 0.0  ;;  %v8920_v24 = vmul.f32 0.3, %v8792_v35 }
 0x48c   : > { %v8050_v49 = vpop.f32.mrf.mxu2 }
 0x48d   : > { %v8604_v17 = vpop.f32.mrf.mxu3  ;;  %v8984_v57 = vsel %vm8856_vm14, %v8792_v35, %v8920_v24  ;;  %v8171_v60 = vmax.f32 %v7617_v43, %v8050_v49  ;;  %v6944_v31 = vpop.f32.mrf.mxu0  ;;  %v13353_v35 = vld [vmem:[#allocation16_spill] sm:$0xff] }
 0x48e   : > { %v7498_v37 = vpop.f32.mrf.mxu1  ;;  %9049 = vst.msk [vmem:[%s12569_s28 + $0xc8] sm:$0xff] %vm9023_vm3, %v8984_v57  ;;  %v7064_v51 = vmax.f32 %v13345_v42, %v6944_v31  ;;  %v13354_v24 = vmax.f32 %v13352_v33, %v13353_v35  ;;  %v11152_v33 = vld [vmem:[%s11838_s24 + $0x6c8] sm:$0xff] }
 0x48f   : > { %v8725_v3 = vmax.f32 %v8171_v60, %v8604_v17  ;;  %v11184_v35 = vld [vmem:[%s11838_s24 + $0x7c8] sm:$0xff] }
 0x490   : > { %v7618_v55 = vmax.f32 %v7064_v51, %v7498_v37  ;;  %v13356_v51 = vld [vmem:[#allocation18_spill] sm:$0xff] }
 0x491   : > { %v8793_v54 = vadd.f32 %v12560_v50, %v8725_v3 }
 0x493   : > { %vm8857_vm15 = vcmp.gt.f32.partialorder %v8793_v54, 0.0  ;;  %v8921_v30 = vmul.f32 0.3, %v8793_v54 }
 0x494   : > { %v8052_v61 = vpop.f32.mrf.mxu2 }
 0x495   : > { %v8606_v9 = vpop.f32.mrf.mxu3  ;;  %v8985_v20 = vsel %vm8857_vm15, %v8793_v54, %v8921_v30  ;;  %v8172_v38 = vmax.f32 %v7618_v55, %v8052_v61  ;;  %v6947_v48 = vpop.f32.mrf.mxu0  ;;  %v12873_v55 = vld [vmem:[%s13149_s2] ss:$0 sm:$0xff] }
 0x496   : > { %v7501_v45 = vpop.f32.mrf.mxu1  ;;  %9050 = vst.msk [vmem:[%s12569_s28 + $0xd0] sm:$0xff] %vm9023_vm3, %v8985_v20  ;;  %v7065_v14 = vmax.f32 %v13348_v11, %v6947_v48  ;;  %v11119_v48 = vld [vmem:[%s11838_s24 + $0x5c0] sm:$0xff] }
 0x497   : > { %v8726_v15 = vmax.f32 %v8172_v38, %v8606_v9  ;;  %v11087_v38 = vld [vmem:[%s11838_s24 + $0x4c0] sm:$0xff] }
 0x498   : > { %10243 = vmatmul.msk.bf16.gmra.mxu0 %vm4615_vm1, %v11085_v56  ;;  %10467 = vmatmul.msk.bf16.gmra.mxu1 %vm4615_vm1, %v11117_v58  ;;  %v7619_v19 = vmax.f32 %v7065_v14, %v7501_v45  ;;  %v13358_v14 = vld [vmem:[#allocation21_spill] sm:$0xff] }
 0x499   : > { %v8794_v4 = vadd.f32 %v12560_v50, %v8726_v15  ;;  %10691 = vmatmul.msk.bf16.gmra.mxu2 %vm4615_vm1, %v11149_v59 }
 0x49a   : > { %10915 = vmatmul.msk.bf16.gmra.mxu3 %vm4615_vm1, %v11181_v10 }
 0x49b   : > { %vm8858_vm0 = vcmp.gt.f32.partialorder %v8794_v4, 0.0  ;;  %v8922_v5 = vmul.f32 0.3, %v8794_v4 }
 0x49c   : > { %v8055_v21 = vpop.f32.mrf.mxu2 }
 0x49d   : > { %v8609_v1 = vpop.f32.mrf.mxu3  ;;  %v8986_v6 = vsel %vm8858_vm0, %v8794_v4, %v8922_v5  ;;  %v8173_v47 = vmax.f32 %v7619_v19, %v8055_v21  ;;  %v6949_v52 = vpop.f32.mrf.mxu0  ;;  %v13359_v4 = vld [vmem:[#allocation20_spill] sm:$0xff] }
 0x49e   : > { %v7503_v26 = vpop.f32.mrf.mxu1  ;;  %9051 = vst.msk [vmem:[%s12569_s28 + $0xd8] sm:$0xff] %vm9023_vm3, %v8986_v6  ;;  %v7066_v7 = vmax.f32 %v13351_v27, %v6949_v52  ;;  %v13360_v5 = vmax.f32 %v13358_v14, %v13359_v4  ;;  %v11153_v14 = vld [vmem:[%s11838_s24 + $0x6d0] sm:$0xff] }
 0x49f   : > { %v8727_v28 = vmax.f32 %v8173_v47, %v8609_v1  ;;  %v11185_v4 = vld [vmem:[%s11838_s24 + $0x7d0] sm:$0xff] }
 0x4a0   : > { %v7620_v8 = vmax.f32 %v7066_v7, %v7503_v26  ;;  %v13361_v7 = vld [vmem:[#allocation23_spill] sm:$0xff] }
 0x4a1   : > { %v8795_v13 = vadd.f32 %v12560_v50, %v8727_v28 }
 0x4a3   : > { %vm8859_vm2 = vcmp.gt.f32.partialorder %v8795_v13, 0.0  ;;  %v8923_v2 = vmul.f32 0.3, %v8795_v13 }
 0x4a4   : > { %v8057_v16 = vpop.f32.mrf.mxu2 }
 0x4a5   : > { %v8611_v63 = vpop.f32.mrf.mxu3  ;;  %v8987_v23 = vsel %vm8859_vm2, %v8795_v13, %v8923_v2  ;;  %v8174_v40 = vmax.f32 %v7620_v8, %v8057_v16  ;;  %v6952_v41 = vpop.f32.mrf.mxu0  ;;  %v13362_v13 = vld [vmem:[#allocation22_spill] sm:$0xff] }
 0x4a6   : > { %v7506_v34 = vpop.f32.mrf.mxu1  ;;  %9052 = vst.msk [vmem:[%s12569_s28 + $0xe0] sm:$0xff] %vm9023_vm3, %v8987_v23  ;;  %v7067_v43 = vmax.f32 %v13354_v24, %v6952_v41  ;;  %v13363_v2 = vmax.f32 %v13361_v7, %v13362_v13  ;;  %v11120_v41 = vld [vmem:[%s11838_s24 + $0x5c8] sm:$0xff] }
 0x4a7   : > { %v8728_v62 = vmax.f32 %v8174_v40, %v8611_v63  ;;  %v11088_v40 = vld [vmem:[%s11838_s24 + $0x4c8] sm:$0xff] }
 0x4a8   : > { %10244 = vmatmul.msk.bf16.gmra.mxu0 %vm4615_vm1, %v11086_v0  ;;  %10468 = vmatmul.msk.bf16.gmra.mxu1 %vm4615_vm1, %v11118_v22  ;;  %v7621_v57 = vmax.f32 %v7067_v43, %v7506_v34  ;;  %v13364_v43 = vld [vmem:[#allocation25_spill] sm:$0xff] }
 0x4a9   : > { %v8796_v49 = vadd.f32 %v12560_v50, %v8728_v62  ;;  %10692 = vmatmul.msk.bf16.gmra.mxu2 %vm4615_vm1, %v11150_v18  ;;  %v13355_v50 = vld [vmem:[#allocation19_spill] sm:$0xff] }
 0x4aa   : > { %10916 = vmatmul.msk.bf16.gmra.mxu3 %vm4615_vm1, %v11182_v46  ;;  %v13357_v54 = vmax.f32 %v13355_v50, %v13356_v51 }
 0x4ab   : > { %vm8860_vm4 = vcmp.gt.f32.partialorder %v8796_v49, 0.0  ;;  %v8924_v17 = vmul.f32 0.3, %v8796_v49 }
 0x4ac   : > { %v8060_v60 = vpop.f32.mrf.mxu2 }
 0x4ad   : > { %v8614_v31 = vpop.f32.mrf.mxu3  ;;  %v8988_v37 = vsel %vm8860_vm4, %v8796_v49, %v8924_v17  ;;  %v8175_v3 = vmax.f32 %v7621_v57, %v8060_v60  ;;  %v6954_v53 = vpop.f32.mrf.mxu0  ;;  %v13365_v49 = vld [vmem:[#allocation24_spill] sm:$0xff] }
 0x4ae   : > { %v7508_v36 = vpop.f32.mrf.mxu1  ;;  %9053 = vst.msk [vmem:[%s12569_s28 + $0xe8] sm:$0xff] %vm9023_vm3, %v8988_v37  ;;  %v7068_v30 = vmax.f32 %v13357_v54, %v6954_v53  ;;  %v13366_v17 = vmax.f32 %v13364_v43, %v13365_v49  ;;  %v11154_v43 = vld [vmem:[%s11838_s24 + $0x6d8] sm:$0xff] }
 0x4af   : > { %v8729_v42 = vmax.f32 %v8175_v3, %v8614_v31  ;;  %v11186_v49 = vld [vmem:[%s11838_s24 + $0x7d8] sm:$0xff] }
 0x4b0   : > { %v7622_v56 = vmax.f32 %v7068_v30, %v7508_v36  ;;  %v13367_v30 = vld [vmem:[#allocation27_spill] sm:$0xff] }
 0x4b1   : > { %v8797_v61 = vadd.f32 %v12873_v55, %v8729_v42 }
 0x4b3   : > { %vm8861_vm5 = vcmp.gt.f32.partialorder %v8797_v61, 0.0  ;;  %v8925_v9 = vmul.f32 0.3, %v8797_v61 }
 0x4b4   : > { %v8062_v58 = vpop.f32.mrf.mxu2 }
 0x4b5   : > { %v8616_v20 = vpop.f32.mrf.mxu3  ;;  %v8989_v45 = vsel %vm8861_vm5, %v8797_v61, %v8925_v9  ;;  %v8176_v59 = vmax.f32 %v7622_v56, %v8062_v58  ;;  %v6957_v10 = vpop.f32.mrf.mxu0  ;;  %v13368_v61 = vld [vmem:[#allocation26_spill] sm:$0xff] }
 0x4b6   : > { %v7511_v15 = vpop.f32.mrf.mxu1  ;;  %9054 = vst.msk [vmem:[%s12569_s28 + $0xf0] sm:$0xff] %vm9023_vm3, %v8989_v45  ;;  %v7069_v19 = vmax.f32 %v13360_v5, %v6957_v10  ;;  %v13369_v9 = vmax.f32 %v13367_v30, %v13368_v61  ;;  %v11121_v10 = vld [vmem:[%s11838_s24 + $0x5d0] sm:$0xff] }
 0x4b7   : > { %v8730_v11 = vmax.f32 %v8176_v59, %v8616_v20  ;;  %v11089_v59 = vld [vmem:[%s11838_s24 + $0x4d0] sm:$0xff] }
 0x4b8   : > { %10245 = vmatmul.msk.bf16.gmra.mxu0 %vm4615_vm1, %v11087_v38  ;;  %10469 = vmatmul.msk.bf16.gmra.mxu1 %vm4615_vm1, %v11119_v48  ;;  %v7623_v6 = vmax.f32 %v7069_v19, %v7511_v15  ;;  %v13370_v19 = vld [vmem:[#allocation29_spill] sm:$0xff] }
 0x4b9   : > { %v8798_v21 = vadd.f32 %v12873_v55, %v8730_v11  ;;  %10693 = vmatmul.msk.bf16.gmra.mxu2 %vm4615_vm1, %v11151_v44 }
 0x4ba   : > { %10917 = vmatmul.msk.bf16.gmra.mxu3 %vm4615_vm1, %v11183_v39 }
 0x4bb   : > { %vm8862_vm6 = vcmp.gt.f32.partialorder %v8798_v21, 0.0  ;;  %v8926_v1 = vmul.f32 0.3, %v8798_v21 }
 0x4bc   : > { %v8065_v47 = vpop.f32.mrf.mxu2 }
 0x4bd   : > { %v8619_v52 = vpop.f32.mrf.mxu3  ;;  %v8990_v26 = vsel %vm8862_vm6, %v8798_v21, %v8926_v1  ;;  %v8177_v28 = vmax.f32 %v7623_v6, %v8065_v47  ;;  %v6959_v29 = vpop.f32.mrf.mxu0  ;;  %v13371_v21 = vld [vmem:[#allocation28_spill] sm:$0xff] }
 0x4be   : > { %v7513_v32 = vpop.f32.mrf.mxu1  ;;  %9055 = vst.msk [vmem:[%s12569_s28 + $0xf8] sm:$0xff] %vm9023_vm3, %v8990_v26  ;;  %v7070_v8 = vmax.f32 %v13363_v2, %v6959_v29  ;;  %v13372_v1 = vmax.f32 %v13370_v19, %v13371_v21  ;;  %v11155_v19 = vld [vmem:[%s11838_s24 + $0x6e0] sm:$0xff] }
 0x4bf   : > { %v8731_v27 = vmax.f32 %v8177_v28, %v8619_v52  ;;  %v11187_v21 = vld [vmem:[%s11838_s24 + $0x7e0] sm:$0xff] }
 0x4c0   : > { %v7624_v0 = vmax.f32 %v7070_v8, %v7513_v32  ;;  %v13373_v8 = vld [vmem:[#allocation31_spill] sm:$0xff] }
 0x4c1   : > { %v8799_v16 = vadd.f32 %v12873_v55, %v8731_v27 }
 0x4c3   : > { %vm8863_vm7 = vcmp.gt.f32.partialorder %v8799_v16, 0.0  ;;  %v8927_v63 = vmul.f32 0.3, %v8799_v16 }
 0x4c4   : > { %v8067_v22 = vpop.f32.mrf.mxu2 }
 0x4c5   : > { %v8621_v23 = vpop.f32.mrf.mxu3  ;;  %v8991_v34 = vsel %vm8863_vm7, %v8799_v16, %v8927_v63  ;;  %v8178_v18 = vmax.f32 %v7624_v0, %v8067_v22  ;;  %v6962_v46 = vpop.f32.mrf.mxu0  ;;  %v13374_v16 = vld [vmem:[#allocation30_spill] sm:$0xff] }
 0x4c6   : > { %v7516_v62 = vpop.f32.mrf.mxu1  ;;  %9056 = vst.msk [vmem:[%s12569_s28 + $0x100] sm:$0xff] %vm9023_vm3, %v8991_v34  ;;  %v7071_v57 = vmax.f32 %v13366_v17, %v6962_v46  ;;  %v13375_v63 = vmax.f32 %v13373_v8, %v13374_v16  ;;  %v11122_v46 = vld [vmem:[%s11838_s24 + $0x5d8] sm:$0xff] }
 0x4c7   : > { %v8732_v24 = vmax.f32 %v8178_v18, %v8621_v23  ;;  %v11090_v18 = vld [vmem:[%s11838_s24 + $0x4d8] sm:$0xff] }
 0x4c8   : > { %10246 = vmatmul.msk.bf16.gmra.mxu0 %vm4615_vm1, %v11088_v40  ;;  %10470 = vmatmul.msk.bf16.gmra.mxu1 %vm4615_vm1, %v11120_v41  ;;  %v7625_v37 = vmax.f32 %v7071_v57, %v7516_v62  ;;  %v13376_v57 = vld [vmem:[#allocation33_spill] sm:$0xff] }
 0x4c9   : > { %v8800_v60 = vadd.f32 %v12873_v55, %v8732_v24  ;;  %10694 = vmatmul.msk.bf16.gmra.mxu2 %vm4615_vm1, %v11152_v33 }
 0x4ca   : > { %10918 = vmatmul.msk.bf16.gmra.mxu3 %vm4615_vm1, %v11184_v35 }
 0x4cb   : > { %vm8864_vm8 = vcmp.gt.f32.partialorder %v8800_v60, 0.0  ;;  %v8928_v31 = vmul.f32 0.3, %v8800_v60 }
 0x4cc   : > { %v8070_v3 = vpop.f32.mrf.mxu2 }
 0x4cd   : > { %v8624_v53 = vpop.f32.mrf.mxu3  ;;  %v8992_v36 = vsel %vm8864_vm8, %v8800_v60, %v8928_v31  ;;  %v8179_v42 = vmax.f32 %v7625_v37, %v8070_v3  ;;  %v6964_v50 = vpop.f32.mrf.mxu0  ;;  %v13377_v60 = vld [vmem:[#allocation32_spill] sm:$0xff] }
 0x4ce   : > { %v7518_v51 = vpop.f32.mrf.mxu1  ;;  %9057 = vst.msk [vmem:[%s12569_s28 + $0x108] sm:$0xff] %vm9023_vm3, %v8992_v36  ;;  %v7072_v56 = vmax.f32 %v13369_v9, %v6964_v50  ;;  %v13378_v31 = vmax.f32 %v13376_v57, %v13377_v60  ;;  %v11156_v57 = vld [vmem:[%s11838_s24 + $0x6e8] sm:$0xff] }
 0x4cf   : > { %v8733_v54 = vmax.f32 %v8179_v42, %v8624_v53  ;;  %v11188_v60 = vld [vmem:[%s11838_s24 + $0x7e8] sm:$0xff] }
 0x4d0   : > { %v7626_v38 = vmax.f32 %v7072_v56, %v7518_v51  ;;  %v13379_v56 = vld [vmem:[#allocation35_spill] sm:$0xff] }
 0x4d1   : > { %v8801_v58 = vadd.f32 %v12873_v55, %v8733_v54 }
 0x4d3   : > { %vm8865_vm9 = vcmp.gt.f32.partialorder %v8801_v58, 0.0  ;;  %v8929_v20 = vmul.f32 0.3, %v8801_v58 }
 0x4d4   : > { %v8072_v48 = vpop.f32.mrf.mxu2 }
 0x4d5   : > { %v8626_v45 = vpop.f32.mrf.mxu3  ;;  %v8993_v15 = vsel %vm8865_vm9, %v8801_v58, %v8929_v20  ;;  %v8180_v44 = vmax.f32 %v7626_v38, %v8072_v48  ;;  %v6967_v39 = vpop.f32.mrf.mxu0  ;;  %v13380_v58 = vld [vmem:[#allocation34_spill] sm:$0xff] }
 0x4d6   : > { %v7521_v11 = vpop.f32.mrf.mxu1  ;;  %9058 = vst.msk [vmem:[%s12569_s28 + $0x110] sm:$0xff] %vm9023_vm3, %v8993_v15  ;;  %v7073_v6 = vmax.f32 %v13372_v1, %v6967_v39  ;;  %v13381_v20 = vmax.f32 %v13379_v56, %v13380_v58  ;;  %v11123_v39 = vld [vmem:[%s11838_s24 + $0x5e0] sm:$0xff] }
 0x4d7   : > { %v8734_v5 = vmax.f32 %v8180_v44, %v8626_v45  ;;  %v11091_v44 = vld [vmem:[%s11838_s24 + $0x4e0] sm:$0xff] }
 0x4d8   : > { %10247 = vmatmul.msk.bf16.gmra.mxu0 %vm4615_vm1, %v11089_v59  ;;  %10471 = vmatmul.msk.bf16.gmra.mxu1 %vm4615_vm1, %v11121_v10  ;;  %v7627_v26 = vmax.f32 %v7073_v6, %v7521_v11  ;;  %v13382_v6 = vld [vmem:[#allocation37_spill] sm:$0xff] }
 0x4d9   : > { %v8802_v47 = vadd.f32 %v12873_v55, %v8734_v5  ;;  %10695 = vmatmul.msk.bf16.gmra.mxu2 %vm4615_vm1, %v11153_v14 }
 0x4da   : > { %10919 = vmatmul.msk.bf16.gmra.mxu3 %vm4615_vm1, %v11185_v4 }
 0x4db   : > { %vm8866_vm10 = vcmp.gt.f32.partialorder %v8802_v47, 0.0  ;;  %v8930_v52 = vmul.f32 0.3, %v8802_v47 }
 0x4dc   : > { %v8075_v28 = vpop.f32.mrf.mxu2 }
 0x4dd   : > { %v8629_v29 = vpop.f32.mrf.mxu3  ;;  %v8994_v32 = vsel %vm8866_vm10, %v8802_v47, %v8930_v52  ;;  %v8181_v27 = vmax.f32 %v7627_v26, %v8075_v28  ;;  %v6969_v7 = vpop.f32.mrf.mxu0  ;;  %v13383_v47 = vld [vmem:[#allocation36_spill] sm:$0xff] }
 0x4de   : > { %v7523_v13 = vpop.f32.mrf.mxu1  ;;  %9059 = vst.msk [vmem:[%s12569_s28 + $0x118] sm:$0xff] %vm9023_vm3, %v8994_v32  ;;  %v7074_v0 = vmax.f32 %v13375_v63, %v6969_v7  ;;  %v13384_v52 = vmax.f32 %v13382_v6, %v13383_v47  ;;  %v11157_v6 = vld [vmem:[%s11838_s24 + $0x6f0] sm:$0xff] }
 0x4df   : > { %v8735_v2 = vmax.f32 %v8181_v27, %v8629_v29  ;;  %v11189_v47 = vld [vmem:[%s11838_s24 + $0x7f0] sm:$0xff] }
 0x4e0   : > { %v7628_v40 = vmax.f32 %v7074_v0, %v7523_v13  ;;  %v13385_v0 = vld [vmem:[#allocation39_spill] sm:$0xff] }
 0x4e1   : > { %v8803_v22 = vadd.f32 %v12873_v55, %v8735_v2 }
 0x4e3   : > { %vm8867_vm11 = vcmp.gt.f32.partialorder %v8803_v22, 0.0  ;;  %v8931_v23 = vmul.f32 0.3, %v8803_v22 }
 0x4e4   : > { %v8077_v41 = vpop.f32.mrf.mxu2 }
 0x4e5   : > { %v8631_v34 = vpop.f32.mrf.mxu3  ;;  %v8995_v62 = vsel %vm8867_vm11, %v8803_v22, %v8931_v23  ;;  %v8182_v33 = vmax.f32 %v7628_v40, %v8077_v41  ;;  %v6972_v35 = vpop.f32.mrf.mxu0  ;;  %v13386_v22 = vld [vmem:[#allocation38_spill] sm:$0xff] }
 0x4e6   : > { %v7526_v24 = vpop.f32.mrf.mxu1  ;;  %9060 = vst.msk [vmem:[%s12569_s28 + $0x120] sm:$0xff] %vm9023_vm3, %v8995_v62  ;;  %v7075_v37 = vmax.f32 %v13378_v31, %v6972_v35  ;;  %v13387_v23 = vmax.f32 %v13385_v0, %v13386_v22  ;;  %v11124_v35 = vld [vmem:[%s11838_s24 + $0x5e8] sm:$0xff] }
 0x4e7   : > { %v8736_v17 = vmax.f32 %v8182_v33, %v8631_v34  ;;  %v11092_v33 = vld [vmem:[%s11838_s24 + $0x4e8] sm:$0xff] }
 0x4e8   : > { %10248 = vmatmul.msk.bf16.gmra.mxu0 %vm4615_vm1, %v11090_v18  ;;  %10472 = vmatmul.msk.bf16.gmra.mxu1 %vm4615_vm1, %v11122_v46  ;;  %v7629_v36 = vmax.f32 %v7075_v37, %v7526_v24  ;;  %v13388_v37 = vld [vmem:[#allocation41_spill] sm:$0xff] }
 0x4e9   : > { %v8804_v3 = vadd.f32 %v12873_v55, %v8736_v17  ;;  %10696 = vmatmul.msk.bf16.gmra.mxu2 %vm4615_vm1, %v11154_v43 }
 0x4ea   : > { %10920 = vmatmul.msk.bf16.gmra.mxu3 %vm4615_vm1, %v11186_v49 }
 0x4eb   : > { %vm8868_vm12 = vcmp.gt.f32.partialorder %v8804_v3, 0.0  ;;  %v8932_v53 = vmul.f32 0.3, %v8804_v3 }
 0x4ec   : > { %v8080_v42 = vpop.f32.mrf.mxu2 }
 0x4ed   : > { %v8634_v50 = vpop.f32.mrf.mxu3  ;;  %v8996_v51 = vsel %vm8868_vm12, %v8804_v3, %v8932_v53  ;;  %v8183_v54 = vmax.f32 %v7629_v36, %v8080_v42  ;;  %v6974_v30 = vpop.f32.mrf.mxu0  ;;  %v13389_v3 = vld [vmem:[#allocation40_spill] sm:$0xff] }
 0x4ee   : > { %v7528_v61 = vpop.f32.mrf.mxu1  ;;  %9061 = vst.msk [vmem:[%s12569_s28 + $0x128] sm:$0xff] %vm9023_vm3, %v8996_v51  ;;  %v7076_v38 = vmax.f32 %v13381_v20, %v6974_v30  ;;  %v13390_v53 = vmax.f32 %v13388_v37, %v13389_v3  ;;  %v11158_v37 = vld [vmem:[%s11838_s24 + $0x6f8] sm:$0xff] }
 0x4ef   : > { %v8737_v9 = vmax.f32 %v8183_v54, %v8634_v50  ;;  %v11190_v3 = vld [vmem:[%s11838_s24 + $0x7f8] sm:$0xff] }
 0x4f0   : > { %v7630_v59 = vmax.f32 %v7076_v38, %v7528_v61  ;;  %v13391_v38 = vld [vmem:[#allocation43_spill] sm:$0xff] }
 0x4f1   : > { %v8805_v48 = vadd.f32 %v12873_v55, %v8737_v9 }
 0x4f3   : > { %vm8869_vm13 = vcmp.gt.f32.partialorder %v8805_v48, 0.0  ;;  %v8933_v45 = vmul.f32 0.3, %v8805_v48 }
 0x4f4   : > { %v8082_v10 = vpop.f32.mrf.mxu2 }
 0x4f5   : > { %v8636_v15 = vpop.f32.mrf.mxu3  ;;  %v8997_v11 = vsel %vm8869_vm13, %v8805_v48, %v8933_v45  ;;  %v8184_v14 = vmax.f32 %v7630_v59, %v8082_v10  ;;  %v6977_v4 = vpop.f32.mrf.mxu0  ;;  %v13392_v48 = vld [vmem:[#allocation42_spill] sm:$0xff] }
 0x4f6   : > { %v7531_v5 = vpop.f32.mrf.mxu1  ;;  %9062 = vst.msk [vmem:[%s12569_s28 + $0x130] sm:$0xff] %vm9023_vm3, %v8997_v11  ;;  %v7077_v26 = vmax.f32 %v13384_v52, %v6977_v4  ;;  %v13393_v45 = vmax.f32 %v13391_v38, %v13392_v48  ;;  %v11125_v4 = vld [vmem:[%s11838_s24 + $0x5f0] sm:$0xff] }
 0x4f7   : > { %v8738_v1 = vmax.f32 %v8184_v14, %v8636_v15  ;;  %v11093_v14 = vld [vmem:[%s11838_s24 + $0x4f0] sm:$0xff] }
 0x4f8   : > { %10249 = vmatmul.msk.bf16.gmra.mxu0 %vm4615_vm1, %v11091_v44  ;;  %10473 = vmatmul.msk.bf16.gmra.mxu1 %vm4615_vm1, %v11123_v39  ;;  %v7631_v32 = vmax.f32 %v7077_v26, %v7531_v5  ;;  %v13394_v26 = vld [vmem:[#allocation45_spill] sm:$0xff] }
 0x4f9   : > { %v8806_v28 = vadd.f32 %v12873_v55, %v8738_v1  ;;  %10697 = vmatmul.msk.bf16.gmra.mxu2 %vm4615_vm1, %v11155_v19 }
 0x4fa   : > { %10921 = vmatmul.msk.bf16.gmra.mxu3 %vm4615_vm1, %v11187_v21 }
 0x4fb   : > { %vm8870_vm14 = vcmp.gt.f32.partialorder %v8806_v28, 0.0  ;;  %v8934_v29 = vmul.f32 0.3, %v8806_v28 }
 0x4fc   : > { %v8085_v27 = vpop.f32.mrf.mxu2 }
 0x4fd   : > { %v8639_v7 = vpop.f32.mrf.mxu3  ;;  %v8998_v13 = vsel %vm8870_vm14, %v8806_v28, %v8934_v29  ;;  %v8185_v2 = vmax.f32 %v7631_v32, %v8085_v27  ;;  %v6979_v8 = vpop.f32.mrf.mxu0  ;;  %v13395_v28 = vld [vmem:[#allocation44_spill] sm:$0xff] }
 0x4fe   : > { %v7533_v16 = vpop.f32.mrf.mxu1  ;;  %9063 = vst.msk [vmem:[%s12569_s28 + $0x138] sm:$0xff] %vm9023_vm3, %v8998_v13  ;;  %v7078_v40 = vmax.f32 %v13387_v23, %v6979_v8  ;;  %v13396_v29 = vmax.f32 %v13394_v26, %v13395_v28  ;;  %v13407_v26 = vld [vmem:[#allocation52_spill] sm:$0xff] }
 0x4ff   : > { %v8739_v63 = vmax.f32 %v8185_v2, %v8639_v7 }
 0x500   : > { %v7632_v18 = vmax.f32 %v7078_v40, %v7533_v16  ;;  %v13397_v40 = vld [vmem:[#allocation47_spill] sm:$0xff] }
 0x501   : > { %v8807_v41 = vadd.f32 %v12873_v55, %v8739_v63 }
 0x503   : > { %vm8871_vm15 = vcmp.gt.f32.partialorder %v8807_v41, 0.0  ;;  %v8935_v34 = vmul.f32 0.3, %v8807_v41 }
 0x504   : > { %v8087_v46 = vpop.f32.mrf.mxu2 }
 0x505   : > { %v8641_v62 = vpop.f32.mrf.mxu3  ;;  %v8999_v24 = vsel %vm8871_vm15, %v8807_v41, %v8935_v34  ;;  %v8186_v43 = vmax.f32 %v7632_v18, %v8087_v46  ;;  %v6982_v49 = vpop.f32.mrf.mxu0  ;;  %v13398_v41 = vld [vmem:[#allocation46_spill] sm:$0xff] }
 0x506   : > { %v7536_v17 = vpop.f32.mrf.mxu1  ;;  %9064 = vst.msk [vmem:[%s12569_s28 + $0x140] sm:$0xff] %vm9023_vm3, %v8999_v24  ;;  %v7079_v36 = vmax.f32 %v13390_v53, %v6982_v49  ;;  %v13399_v34 = vmax.f32 %v13397_v40, %v13398_v41  ;;  %v11126_v49 = vld [vmem:[%s11838_s24 + $0x5f8] sm:$0xff] }
 0x507   : > { %v8740_v31 = vmax.f32 %v8186_v43, %v8641_v62  ;;  %v11094_v43 = vld [vmem:[%s11838_s24 + $0x4f8] sm:$0xff] }
 0x508   : > { %10250 = vmatmul.msk.bf16.gmra.mxu0 %vm4615_vm1, %v11092_v33  ;;  %10474 = vmatmul.msk.bf16.gmra.mxu1 %vm4615_vm1, %v11124_v35  ;;  %v7633_v51 = vmax.f32 %v7079_v36, %v7536_v17  ;;  %v13400_v36 = vld [vmem:[#allocation49_spill] sm:$0xff]  ;;  %v13410_v40 = vld [vmem:[#allocation54_spill] sm:$0xff] }
 0x509   : > { %v8808_v42 = vadd.f32 %v12873_v55, %v8740_v31  ;;  %10698 = vmatmul.msk.bf16.gmra.mxu2 %vm4615_vm1, %v11156_v57 }
 0x50a   : > { %10922 = vmatmul.msk.bf16.gmra.mxu3 %vm4615_vm1, %v11188_v60 }
 0x50b   : > { %vm8872_vm0 = vcmp.gt.f32.partialorder %v8808_v42, 0.0  ;;  %v8936_v50 = vmul.f32 0.3, %v8808_v42 }
 0x50c   : > { %v8090_v54 = vpop.f32.mrf.mxu2 }
 0x50d   : > { %v8644_v30 = vpop.f32.mrf.mxu3  ;;  %v9000_v61 = vsel %vm8872_vm0, %v8808_v42, %v8936_v50  ;;  %v8187_v9 = vmax.f32 %v7633_v51, %v8090_v54  ;;  %v6984_v56 = vpop.f32.mrf.mxu0  ;;  %v13401_v42 = vld [vmem:[#allocation48_spill] sm:$0xff] }
 0x50e   : > { %v7538_v58 = vpop.f32.mrf.mxu1  ;;  %9065 = vst.msk [vmem:[%s12569_s28 + $0x148] sm:$0xff] %vm9023_vm3, %v9000_v61  ;;  %v7080_v59 = vmax.f32 %v13393_v45, %v6984_v56  ;;  %v13402_v50 = vmax.f32 %v13400_v36, %v13401_v42 }
 0x50f   : > { %v8741_v20 = vmax.f32 %v8187_v9, %v8644_v30 }
 0x510   : > { %v7634_v44 = vmax.f32 %v7080_v59, %v7538_v58  ;;  %v13403_v59 = vld [vmem:[#allocation51_spill] sm:$0xff] }
 0x511   : > { %v8809_v10 = vadd.f32 %v12873_v55, %v8741_v20 }
 0x513   : > { %vm8873_vm2 = vcmp.gt.f32.partialorder %v8809_v10, 0.0  ;;  %v8937_v15 = vmul.f32 0.3, %v8809_v10 }
 0x514   : > { %v8092_v39 = vpop.f32.mrf.mxu2 }
 0x515   : > { %v8646_v11 = vpop.f32.mrf.mxu3  ;;  %v9001_v5 = vsel %vm8873_vm2, %v8809_v10, %v8937_v15  ;;  %v8188_v19 = vmax.f32 %v7634_v44, %v8092_v39  ;;  %v6987_v21 = vpop.f32.mrf.mxu0  ;;  %v13404_v10 = vld [vmem:[#allocation50_spill] sm:$0xff] }
 0x516   : > { %v7541_v1 = vpop.f32.mrf.mxu1  ;;  %9066 = vst.msk [vmem:[%s12569_s28 + $0x150] sm:$0xff] %vm9023_vm3, %v9001_v5  ;;  %v7081_v32 = vmax.f32 %v13396_v29, %v6987_v21  ;;  %v13405_v15 = vmax.f32 %v13403_v59, %v13404_v10 }
 0x517   : > { %v8742_v52 = vmax.f32 %v8188_v19, %v8646_v11 }
 0x518   : > { %10251 = vmatmul.msk.bf16.gmra.mxu0 %vm4615_vm1, %v11093_v14  ;;  %10475 = vmatmul.msk.bf16.gmra.mxu1 %vm4615_vm1, %v11125_v4  ;;  %v7635_v13 = vmax.f32 %v7081_v32, %v7541_v1 }
 0x519   : > { %v8810_v27 = vadd.f32 %v12873_v55, %v8742_v52  ;;  %10699 = vmatmul.msk.bf16.gmra.mxu2 %vm4615_vm1, %v11157_v6  ;;  %v13406_v52 = vld [vmem:[#allocation53_spill] sm:$0xff] }
 0x51a   : > { %10923 = vmatmul.msk.bf16.gmra.mxu3 %vm4615_vm1, %v11189_v47  ;;  %v13408_v28 = vmax.f32 %v13406_v52, %v13407_v26 }
 0x51b   : > { %vm8874_vm4 = vcmp.gt.f32.partialorder %v8810_v27, 0.0  ;;  %v8938_v7 = vmul.f32 0.3, %v8810_v27 }
 0x51c   : > { %v8095_v2 = vpop.f32.mrf.mxu2 }
 0x51d   : > { %v8649_v8 = vpop.f32.mrf.mxu3  ;;  %v9002_v16 = vsel %vm8874_vm4, %v8810_v27, %v8938_v7  ;;  %v8189_v63 = vmax.f32 %v7635_v13, %v8095_v2  ;;  %v6989_v0 = vpop.f32.mrf.mxu0 }
 0x51e   : > { %v7543_v22 = vpop.f32.mrf.mxu1  ;;  %9067 = vst.msk [vmem:[%s12569_s28 + $0x158] sm:$0xff] %vm9023_vm3, %v9002_v16  ;;  %v7082_v18 = vmax.f32 %v13399_v34, %v6989_v0 }
 0x51f   : > { %v8743_v23 = vmax.f32 %v8189_v63, %v8649_v8 }
 0x520   : > { %v7636_v33 = vmax.f32 %v7082_v18, %v7543_v22 }
 0x521   : > { %v8811_v46 = vadd.f32 %v12873_v55, %v8743_v23  ;;  %v13409_v23 = vld [vmem:[#allocation55_spill] sm:$0xff] }
 0x522   : > { %v13411_v41 = vmax.f32 %v13409_v23, %v13410_v40 }
 0x523   : > { %vm8875_vm5 = vcmp.gt.f32.partialorder %v8811_v46, 0.0  ;;  %v8939_v62 = vmul.f32 0.3, %v8811_v46 }
 0x524   : > { %v8097_v35 = vpop.f32.mrf.mxu2 }
 0x525   : > { %v8651_v24 = vpop.f32.mrf.mxu3  ;;  %v9003_v17 = vsel %vm8875_vm5, %v8811_v46, %v8939_v62  ;;  %v8190_v57 = vmax.f32 %v7636_v33, %v8097_v35  ;;  %v6992_v60 = vpop.f32.mrf.mxu0 }
 0x526   : > { %v7546_v31 = vpop.f32.mrf.mxu1  ;;  %9068 = vst.msk [vmem:[%s12569_s28 + $0x160] sm:$0xff] %vm9023_vm3, %v9003_v17  ;;  %v7083_v51 = vmax.f32 %v13402_v50, %v6992_v60  ;;  %v13412_v60 = vld [vmem:[#allocation57_spill] sm:$0xff] }
 0x527   : > { %v8744_v53 = vmax.f32 %v8190_v57, %v8651_v24 }
 0x528   : > { %10252 = vmatmul.msk.bf16.gmra.mxu0 %vm4615_vm1, %v11094_v43  ;;  %10476 = vmatmul.msk.bf16.gmra.mxu1 %vm4615_vm1, %v11126_v49  ;;  %v7637_v61 = vmax.f32 %v7083_v51, %v7546_v31  ;;  %v13413_v31 = vld [vmem:[#allocation56_spill] sm:$0xff] }
 0x529   : > { %v8812_v54 = vadd.f32 %v12873_v55, %v8744_v53  ;;  %10700 = vmatmul.msk.bf16.gmra.mxu2 %vm4615_vm1, %v11158_v37  ;;  %v13414_v37 = vmax.f32 %v13412_v60, %v13413_v31 }
 0x52a   : > { %10924 = vmatmul.msk.bf16.gmra.mxu3 %vm4615_vm1, %v11190_v3 }
 0x52b   : > { %vm8876_vm6 = vcmp.gt.f32.partialorder %v8812_v54, 0.0  ;;  %v8940_v30 = vmul.f32 0.3, %v8812_v54 }
 0x52c   : > { %v8100_v9 = vpop.f32.mrf.mxu2 }
 0x52d   : > { %v8654_v56 = vpop.f32.mrf.mxu3  ;;  %v9004_v58 = vsel %vm8876_vm6, %v8812_v54, %v8940_v30  ;;  %v8191_v20 = vmax.f32 %v7637_v61, %v8100_v9  ;;  %v6994_v38 = vpop.f32.mrf.mxu0 }
 0x52e   : > { %v7548_v48 = vpop.f32.mrf.mxu1  ;;  %9069 = vst.msk [vmem:[%s12569_s28 + $0x168] sm:$0xff] %vm9023_vm3, %v9004_v58  ;;  %v7084_v44 = vmax.f32 %v13405_v15, %v6994_v38  ;;  %v13415_v58 = vld [vmem:[#allocation59_spill] sm:$0xff] }
 0x52f   : > { %v8745_v45 = vmax.f32 %v8191_v20, %v8654_v56  ;;  %v13416_v20 = vld [vmem:[#allocation58_spill] sm:$0xff] }
 0x530   : > { %v7638_v14 = vmax.f32 %v7084_v44, %v7548_v48  ;;  %v13417_v38 = vmax.f32 %v13415_v58, %v13416_v20 }
 0x531   : > { %v8813_v39 = vadd.f32 %v12873_v55, %v8745_v45 }
 0x533   : > { %vm8877_vm1 = vcmp.gt.f32.partialorder %v8813_v39, 0.0  ;;  %v8941_v11 = vmul.f32 0.3, %v8813_v39 }
 0x534   : > { %v8102_v4 = vpop.f32.mrf.mxu2 }
 0x535   : > { %v8656_v5 = vpop.f32.mrf.mxu3  ;;  %v9005_v19 = vsel %vm8877_vm1, %v8813_v39, %v8941_v11  ;;  %v8192_v21 = vmax.f32 %v7638_v14, %v8102_v4  ;;  %v6997_v1 = vpop.f32.mrf.mxu0 }
 0x536   : > { %v7551_v6 = vpop.f32.mrf.mxu1  ;;  %9070 = vst.msk [vmem:[%s12569_s28 + $0x170] sm:$0xff] %vm9023_vm3, %v9005_v19  ;;  %v7085_v29 = vmax.f32 %v13408_v28, %v6997_v1  ;;  %v13418_v19 = vld [vmem:[#allocation61_spill] sm:$0xff] }
 0x537   : > { %v8746_v47 = vmax.f32 %v8192_v21, %v8656_v5  ;;  %v13419_v21 = vld [vmem:[#allocation60_spill] sm:$0xff] }
 0x538   : > { %v7639_v7 = vmax.f32 %v7085_v29, %v7551_v6  ;;  %v13420_v1 = vmax.f32 %v13418_v19, %v13419_v21 }
 0x539   : > { %v8814_v32 = vadd.f32 %v12873_v55, %v8746_v47 }
 0x53b   : > { %vm8878_vm7 = vcmp.gt.f32.partialorder %v8814_v32, 0.0  ;;  %v8942_v27 = vmul.f32 0.3, %v8814_v32 }
 0x53c   : > { %v8105_v13 = vpop.f32.mrf.mxu2 }
 0x53d   : > { %v8659_v2 = vpop.f32.mrf.mxu3  ;;  %v9006_v8 = vsel %vm8878_vm7, %v8814_v32, %v8942_v27  ;;  %v8193_v16 = vmax.f32 %v7639_v7, %v8105_v13  ;;  %v6999_v63 = vpop.f32.mrf.mxu0 }
 0x53e   : > { %v7553_v0 = vpop.f32.mrf.mxu1  ;;  %9071 = vst.msk [vmem:[%s12569_s28 + $0x178] sm:$0xff] %vm9023_vm3, %v9006_v8  ;;  %v7086_v34 = vmax.f32 %v13411_v41, %v6999_v63  ;;  %v13421_v8 = vld [vmem:[#allocation63_spill] sm:$0xff] }
 0x53f   : > { %v8747_v22 = vmax.f32 %v8193_v16, %v8659_v2  ;;  %v13422_v16 = vld [vmem:[#allocation62_spill] sm:$0xff] }
 0x540   : > { %v7640_v62 = vmax.f32 %v7086_v34, %v7553_v0  ;;  %v13423_v63 = vmax.f32 %v13421_v8, %v13422_v16 }
 0x541   : > { %v8815_v18 = vadd.f32 %v12873_v55, %v8747_v22 }
 0x543   : > { %vm8879_vm8 = vcmp.gt.f32.partialorder %v8815_v18, 0.0  ;;  %v8943_v46 = vmul.f32 0.3, %v8815_v18 }
 0x544   : > { %v8107_v33 = vpop.f32.mrf.mxu2 }
 0x545   : > { %v8661_v35 = vpop.f32.mrf.mxu3  ;;  %v9007_v24 = vsel %vm8879_vm8, %v8815_v18, %v8943_v46  ;;  %v8194_v43 = vmax.f32 %v7640_v62, %v8107_v33  ;;  %v7002_v49 = vpop.f32.mrf.mxu0 }
 0x546   : > { %v7556_v17 = vpop.f32.mrf.mxu1  ;;  %9072 = vst.msk [vmem:[%s12569_s28 + $0x180] sm:$0xff] %vm9023_vm3, %v9007_v24  ;;  %v7087_v3 = vmax.f32 %v13414_v37, %v7002_v49  ;;  %v13424_v24 = vld [vmem:[#allocation65_spill] sm:$0xff] }
 0x547   : > { %v8748_v57 = vmax.f32 %v8194_v43, %v8661_v35  ;;  %v13425_v43 = vld [vmem:[#allocation64_spill] sm:$0xff] }
 0x548   : > { %v7641_v42 = vmax.f32 %v7087_v3, %v7556_v17  ;;  %v13426_v49 = vmax.f32 %v13424_v24, %v13425_v43 }
 0x549   : > { %v8816_v53 = vadd.f32 %v12873_v55, %v8748_v57 }
 0x54b   : > { %vm8880_vm9 = vcmp.gt.f32.partialorder %v8816_v53, 0.0  ;;  %v8944_v36 = vmul.f32 0.3, %v8816_v53 }
 0x54c   : > { %v8110_v50 = vpop.f32.mrf.mxu2 }
 0x54d   : > { %v8664_v51 = vpop.f32.mrf.mxu3  ;;  %v9008_v54 = vsel %vm8880_vm9, %v8816_v53, %v8944_v36  ;;  %v8195_v30 = vmax.f32 %v7641_v42, %v8110_v50  ;;  %v7004_v61 = vpop.f32.mrf.mxu0 }
 0x54e   : > { %v7558_v9 = vpop.f32.mrf.mxu1  ;;  %9073 = vst.msk [vmem:[%s12569_s28 + $0x188] sm:$0xff] %vm9023_vm3, %v9008_v54  ;;  %v7088_v48 = vmax.f32 %v13417_v38, %v7004_v61  ;;  %v13427_v54 = vld [vmem:[#allocation67_spill] sm:$0xff] }
 0x54f   : > { %v8749_v56 = vmax.f32 %v8195_v30, %v8664_v51  ;;  %v13428_v30 = vld [vmem:[#allocation66_spill] sm:$0xff] }
 0x550   : > { %v7642_v10 = vmax.f32 %v7088_v48, %v7558_v9  ;;  %v13429_v61 = vmax.f32 %v13427_v54, %v13428_v30 }
 0x551   : > { %v8817_v45 = vadd.f32 %v12873_v55, %v8749_v56 }
 0x553   : > { %vm8881_vm10 = vcmp.gt.f32.partialorder %v8817_v45, 0.0  ;;  %v8945_v59 = vmul.f32 0.3, %v8817_v45 }
 0x554   : > { %v8112_v15 = vpop.f32.mrf.mxu2 }
 0x555   : > { %v8666_v44 = vpop.f32.mrf.mxu3  ;;  %v9009_v39 = vsel %vm8881_vm10, %v8817_v45, %v8945_v59  ;;  %v8196_v11 = vmax.f32 %v7642_v10, %v8112_v15  ;;  %v7007_v14 = vpop.f32.mrf.mxu0 }
 0x556   : > { %v7561_v4 = vpop.f32.mrf.mxu1  ;;  %9074 = vst.msk [vmem:[%s12569_s28 + $0x190] sm:$0xff] %vm9023_vm3, %v9009_v39  ;;  %v7089_v6 = vmax.f32 %v13420_v1, %v7007_v14  ;;  %v13430_v39 = vld [vmem:[#allocation69_spill] sm:$0xff] }
 0x557   : > { %v8750_v5 = vmax.f32 %v8196_v11, %v8666_v44  ;;  %v13431_v11 = vld [vmem:[#allocation68_spill] sm:$0xff] }
 0x558   : > { %v7643_v26 = vmax.f32 %v7089_v6, %v7561_v4  ;;  %v13432_v14 = vmax.f32 %v13430_v39, %v13431_v11 }
 0x559   : > { %v8818_v47 = vadd.f32 %v12873_v55, %v8750_v5 }
 0x55b   : > { %vm8882_vm11 = vcmp.gt.f32.partialorder %v8818_v47, 0.0  ;;  %v8946_v52 = vmul.f32 0.3, %v8818_v47 }
 0x55c   : > { %v8115_v28 = vpop.f32.mrf.mxu2 }
 0x55d   : > { %v8669_v29 = vpop.f32.mrf.mxu3  ;;  %v9010_v32 = vsel %vm8882_vm11, %v8818_v47, %v8946_v52  ;;  %v8197_v27 = vmax.f32 %v7643_v26, %v8115_v28  ;;  %v7009_v7 = vpop.f32.mrf.mxu0 }
 0x55e   : > { %v7563_v13 = vpop.f32.mrf.mxu1  ;;  %9075 = vst.msk [vmem:[%s12569_s28 + $0x198] sm:$0xff] %vm9023_vm3, %v9010_v32  ;;  %v7090_v0 = vmax.f32 %v13423_v63, %v7009_v7  ;;  %v13433_v32 = vld [vmem:[#allocation71_spill] sm:$0xff] }
 0x55f   : > { %v8751_v2 = vmax.f32 %v8197_v27, %v8669_v29  ;;  %v13434_v27 = vld [vmem:[#allocation70_spill] sm:$0xff] }
 0x560   : > { %v7644_v40 = vmax.f32 %v7090_v0, %v7563_v13  ;;  %v13435_v7 = vmax.f32 %v13433_v32, %v13434_v27 }
 0x561   : > { %v8819_v22 = vadd.f32 %v12873_v55, %v8751_v2 }
 0x563   : > { %vm8883_vm12 = vcmp.gt.f32.partialorder %v8819_v22, 0.0  ;;  %v8947_v23 = vmul.f32 0.3, %v8819_v22 }
 0x564   : > { %v8117_v41 = vpop.f32.mrf.mxu2 }
 0x565   : > { %v8671_v34 = vpop.f32.mrf.mxu3  ;;  %v9011_v18 = vsel %vm8883_vm12, %v8819_v22, %v8947_v23  ;;  %v8198_v46 = vmax.f32 %v7644_v40, %v8117_v41  ;;  %v7012_v62 = vpop.f32.mrf.mxu0 }
 0x566   : > { %v7566_v33 = vpop.f32.mrf.mxu1  ;;  %9076 = vst.msk [vmem:[%s12569_s28 + $0x1a0] sm:$0xff] %vm9023_vm3, %v9011_v18  ;;  %v7091_v17 = vmax.f32 %v13426_v49, %v7012_v62  ;;  %v13436_v18 = vld [vmem:[#allocation73_spill] sm:$0xff] }
 0x567   : > { %v8752_v35 = vmax.f32 %v8198_v46, %v8671_v34  ;;  %v13437_v46 = vld [vmem:[#allocation72_spill] sm:$0xff] }
 0x568   : > { %v7645_v31 = vmax.f32 %v7091_v17, %v7566_v33  ;;  %v13438_v62 = vmax.f32 %v13436_v18, %v13437_v46 }
 0x569   : > { %v8820_v57 = vadd.f32 %v12873_v55, %v8752_v35 }
 0x56b   : > { %vm8884_vm13 = vcmp.gt.f32.partialorder %v8820_v57, 0.0  ;;  %v8948_v60 = vmul.f32 0.3, %v8820_v57 }
 0x56c   : > { %v8120_v37 = vpop.f32.mrf.mxu2 }
 0x56d   : > { %v8674_v3 = vpop.f32.mrf.mxu3  ;;  %v9012_v53 = vsel %vm8884_vm13, %v8820_v57, %v8948_v60  ;;  %v8199_v36 = vmax.f32 %v7645_v31, %v8120_v37  ;;  %v7014_v42 = vpop.f32.mrf.mxu0 }
 0x56e   : > { %v7568_v50 = vpop.f32.mrf.mxu1  ;;  %9077 = vst.msk [vmem:[%s12569_s28 + $0x1a8] sm:$0xff] %vm9023_vm3, %v9012_v53  ;;  %v7092_v9 = vmax.f32 %v13429_v61, %v7014_v42  ;;  %v13439_v53 = vld [vmem:[#allocation75_spill] sm:$0xff] }
 0x56f   : > { %v8753_v51 = vmax.f32 %v8199_v36, %v8674_v3  ;;  %v13440_v36 = vld [vmem:[#allocation74_spill] sm:$0xff] }
 0x570   : > { %v7646_v20 = vmax.f32 %v7092_v9, %v7568_v50  ;;  %v13441_v42 = vmax.f32 %v13439_v53, %v13440_v36 }
 0x571   : > { %v8821_v56 = vadd.f32 %v12873_v55, %v8753_v51 }
 0x573   : > { %vm8885_vm14 = vcmp.gt.f32.partialorder %v8821_v56, 0.0  ;;  %v8949_v58 = vmul.f32 0.3, %v8821_v56 }
 0x574   : > { %v8122_v38 = vpop.f32.mrf.mxu2 }
 0x575   : > { %v8676_v48 = vpop.f32.mrf.mxu3  ;;  %v9013_v45 = vsel %vm8885_vm14, %v8821_v56, %v8949_v58  ;;  %v8200_v59 = vmax.f32 %v7646_v20, %v8122_v38  ;;  %v7017_v10 = vpop.f32.mrf.mxu0 }
 0x576   : > { %v7571_v15 = vpop.f32.mrf.mxu1  ;;  %9078 = vst.msk [vmem:[%s12569_s28 + $0x1b0] sm:$0xff] %vm9023_vm3, %v9013_v45  ;;  %v7093_v4 = vmax.f32 %v13432_v14, %v7017_v10  ;;  %v13442_v45 = vld [vmem:[#allocation77_spill] sm:$0xff] }
 0x577   : > { %v8754_v44 = vmax.f32 %v8200_v59, %v8676_v48  ;;  %v13443_v59 = vld [vmem:[#allocation76_spill] sm:$0xff] }
 0x578   : > { %v7647_v21 = vmax.f32 %v7093_v4, %v7571_v15  ;;  %v13444_v10 = vmax.f32 %v13442_v45, %v13443_v59 }
 0x579   : > { %v8822_v5 = vadd.f32 %v12873_v55, %v8754_v44 }
 0x57b   : > { %vm8886_vm15 = vcmp.gt.f32.partialorder %v8822_v5, 0.0  ;;  %v8950_v19 = vmul.f32 0.3, %v8822_v5 }
 0x57c   : > { %v8125_v1 = vpop.f32.mrf.mxu2 }
 0x57d   : > { %v8679_v6 = vpop.f32.mrf.mxu3  ;;  %v9014_v47 = vsel %vm8886_vm15, %v8822_v5, %v8950_v19  ;;  %v8201_v52 = vmax.f32 %v7647_v21, %v8125_v1  ;;  %v7019_v26 = vpop.f32.mrf.mxu0 }
 0x57e   : > { %v7573_v28 = vpop.f32.mrf.mxu1  ;;  %9079 = vst.msk [vmem:[%s12569_s28 + $0x1b8] sm:$0xff] %vm9023_vm3, %v9014_v47  ;;  %v7094_v13 = vmax.f32 %v13435_v7, %v7019_v26  ;;  %v13445_v47 = vld [vmem:[#allocation79_spill] sm:$0xff] }
 0x57f   : > { %v8755_v29 = vmax.f32 %v8201_v52, %v8679_v6  ;;  %v13446_v52 = vld [vmem:[#allocation78_spill] sm:$0xff] }
 0x580   : > { %v7648_v16 = vmax.f32 %v7094_v13, %v7573_v28  ;;  %v13447_v26 = vmax.f32 %v13445_v47, %v13446_v52 }
 0x581   : > { %v8823_v2 = vadd.f32 %v12873_v55, %v8755_v29 }
 0x583   : > { %vm8887_vm0 = vcmp.gt.f32.partialorder %v8823_v2, 0.0  ;;  %v8951_v8 = vmul.f32 0.3, %v8823_v2 }
 0x584   : > { %v8127_v63 = vpop.f32.mrf.mxu2 }
 0x585   : > { %v8681_v0 = vpop.f32.mrf.mxu3  ;;  %v9015_v22 = vsel %vm8887_vm0, %v8823_v2, %v8951_v8  ;;  %v8202_v23 = vmax.f32 %v7648_v16, %v8127_v63  ;;  %v7022_v40 = vpop.f32.mrf.mxu0 }
 0x586   : > { %v7576_v41 = vpop.f32.mrf.mxu1  ;;  %9080 = vst.msk [vmem:[%s12569_s28 + $0x1c0] sm:$0xff] %vm9023_vm3, %v9015_v22  ;;  %v7095_v33 = vmax.f32 %v13438_v62, %v7022_v40 }
 0x587   : > { %v8756_v34 = vmax.f32 %v8202_v23, %v8681_v0  ;;  %v13448_v0 = vmax.f32 %v12534_v25, %v12532_v12 }
 0x588   : > { %v7649_v43 = vmax.f32 %v7095_v33, %v7576_v41 }
 0x589   : > { %v8824_v35 = vadd.f32 %v12873_v55, %v8756_v34 }
 0x58b   : > { %vm8888_vm2 = vcmp.gt.f32.partialorder %v8824_v35, 0.0  ;;  %v8952_v24 = vmul.f32 0.3, %v8824_v35 }
 0x58c   : > { %v8130_v49 = vpop.f32.mrf.mxu2 }
 0x58d   : > { %v8684_v17 = vpop.f32.mrf.mxu3  ;;  %v9016_v57 = vsel %vm8888_vm2, %v8824_v35, %v8952_v24  ;;  %v8203_v60 = vmax.f32 %v7649_v43, %v8130_v49  ;;  %v7024_v31 = vpop.f32.mrf.mxu0  ;;  %v13449_v43 = vld [vmem:[#allocation81_spill] sm:$0xff]  ;;  %v13450_v49 = vld [vmem:[#allocation80_spill] sm:$0xff] }
 0x58e   : > { %v7578_v37 = vpop.f32.mrf.mxu1  ;;  %9081 = vst.msk [vmem:[%s12569_s28 + $0x1c8] sm:$0xff] %vm9023_vm3, %v9016_v57  ;;  %v7096_v50 = vmax.f32 %v13441_v42, %v7024_v31 }
 0x58f   : > { %v8757_v3 = vmax.f32 %v8203_v60, %v8684_v17  ;;  %v13451_v17 = vmax.f32 %v13449_v43, %v13450_v49 }
 0x590   : > { %v7650_v30 = vmax.f32 %v7096_v50, %v7578_v37 }
 0x591   : > { %v8825_v51 = vadd.f32 %v12873_v55, %v8757_v3 }
 0x593   : > { %vm8889_vm4 = vcmp.gt.f32.partialorder %v8825_v51, 0.0  ;;  %v8953_v54 = vmul.f32 0.3, %v8825_v51 }
 0x594   : > { %v8132_v61 = vpop.f32.mrf.mxu2 }
 0x595   : > { %v8686_v9 = vpop.f32.mrf.mxu3  ;;  %v9017_v56 = vsel %vm8889_vm4, %v8825_v51, %v8953_v54  ;;  %v8204_v58 = vmax.f32 %v7650_v30, %v8132_v61  ;;  %v7027_v20 = vpop.f32.mrf.mxu0 }
 0x596   : > { %v7581_v38 = vpop.f32.mrf.mxu1  ;;  %9082 = vst.msk [vmem:[%s12569_s28 + $0x1d0] sm:$0xff] %vm9023_vm3, %v9017_v56  ;;  %v7097_v15 = vmax.f32 %v13444_v10, %v7027_v20 }
 0x597   : > { %v8758_v48 = vmax.f32 %v8204_v58, %v8686_v9 }
 0x598   : > { %v7651_v11 = vmax.f32 %v7097_v15, %v7581_v38 }
 0x599   : > { %v8826_v44 = vadd.f32 %v12873_v55, %v8758_v48 }
 0x59b   : > { %vm8890_vm5 = vcmp.gt.f32.partialorder %v8826_v44, 0.0  ;;  %v8954_v39 = vmul.f32 0.3, %v8826_v44 }
 0x59c   : > { %v8135_v14 = vpop.f32.mrf.mxu2 }
 0x59d   : > { %v8689_v4 = vpop.f32.mrf.mxu3  ;;  %v9018_v5 = vsel %vm8890_vm5, %v8826_v44, %v8954_v39  ;;  %v8205_v19 = vmax.f32 %v7651_v11, %v8135_v14  ;;  %v7029_v21 = vpop.f32.mrf.mxu0 }
 0x59e   : > { %9083 = vst.msk [vmem:[%s12569_s28 + $0x1d8] sm:$0xff] %vm9023_vm3, %v9018_v5  ;;  %v7583_v1 = vpop.f32.mrf.mxu1  ;;  %v7098_v28 = vmax.f32 %v13447_v26, %v7029_v21 }
 0x59f   : > { %v8759_v6 = vmax.f32 %v8205_v19, %v8689_v4 }
 0x5a0   : > { %v7652_v27 = vmax.f32 %v7098_v28, %v7583_v1 }
 0x5a1   : > { %v8827_v29 = vadd.f32 %v12873_v55, %v8759_v6 }
 0x5a3   : > { %vm8891_vm6 = vcmp.gt.f32.partialorder %v8827_v29, 0.0  ;;  %v8955_v32 = vmul.f32 0.3, %v8827_v29 }
 0x5a4   : > { %v8137_v7 = vpop.f32.mrf.mxu2 }
 0x5a5   : > { %v8691_v13 = vpop.f32.mrf.mxu3  ;;  %v9019_v2 = vsel %vm8891_vm6, %v8827_v29, %v8955_v32  ;;  %v8206_v8 = vmax.f32 %v7652_v27, %v8137_v7  ;;  %v7032_v16 = vpop.f32.mrf.mxu0 }
 0x5a6   : > { %9084 = vst.msk [vmem:[%s12569_s28 + $0x1e0] sm:$0xff] %vm9023_vm3, %v9019_v2  ;;  %v7099_v22 = vmax.f32 %v13448_v0, %v7032_v16  ;;  %v7586_v23 = vpop.f32.mrf.mxu1 }
 0x5a7   : > { %v8760_v63 = vmax.f32 %v8206_v8, %v8691_v13 }
 0x5a8   : > { %v7653_v34 = vmax.f32 %v7099_v22, %v7586_v23 }
 0x5a9   : > { %v8828_v40 = vadd.f32 %v12873_v55, %v8760_v63 }
 0x5ab   : > { %vm8892_vm1 = vcmp.gt.f32.partialorder %v8828_v40, 0.0  ;;  %v8956_v41 = vmul.f32 0.3, %v8828_v40 }
 0x5ac   : > { %v8140_v18 = vpop.f32.mrf.mxu2 }
 0x5ad   : > { %v8694_v46 = vpop.f32.mrf.mxu3  ;;  %v9020_v62 = vsel %vm8892_vm1, %v8828_v40, %v8956_v41  ;;  %v8207_v33 = vmax.f32 %v7653_v34, %v8140_v18  ;;  %v7034_v35 = vpop.f32.mrf.mxu0 }
 0x5ae   : > { %9085 = vst.msk [vmem:[%s12569_s28 + $0x1e8] sm:$0xff] %vm9023_vm3, %v9020_v62  ;;  %v7100_v12 = vmax.f32 %v13451_v17, %v7034_v35  ;;  %v7588_v57 = vpop.f32.mrf.mxu1 }
 0x5af   : > { %v8761_v24 = vmax.f32 %v8207_v33, %v8694_v46 }
 0x5b0   : > { %v7654_v31 = vmax.f32 %v7100_v12, %v7588_v57 }
 0x5b1   : > { %v8829_v25 = vadd.f32 %v12873_v55, %v8761_v24 }
 0x5b3   : > { %vm8893_vm7 = vcmp.gt.f32.partialorder %v8829_v25, 0.0  ;;  %v8957_v60 = vmul.f32 0.3, %v8829_v25 }
 0x5b4   : > { %v8142_v37 = vpop.f32.mrf.mxu2 }
 0x5b5   : > { %v9021_v3 = vsel %vm8893_vm7, %v8829_v25, %v8957_v60  ;;  %v8208_v53 = vmax.f32 %v7654_v31, %v8142_v37  ;;  %v8696_v36 = vpop.f32.mrf.mxu3 }
 0x5b6   : > { %9086 = vst.msk [vmem:[%s12569_s28 + $0x1f0] sm:$0xff] %vm9023_vm3, %v9021_v3 }
 0x5b7   : > { %v8762_v42 = vmax.f32 %v8208_v53, %v8696_v36 }
 0x5b9   : > { %v8830_v50 = vadd.f32 %v12873_v55, %v8762_v42 }
 0x5bb   : > { %vm8894_vm8 = vcmp.gt.f32.partialorder %v8830_v50, 0.0  ;;  %v8958_v51 = vmul.f32 0.3, %v8830_v50 }
 0x5bd   : > { %v9022_v54 = vsel %vm8894_vm8, %v8830_v50, %v8958_v51 }
 0x5be   : > { %9087 = vst.msk [vmem:[%s12569_s28 + $0x1f8] sm:$0xff] %vm9023_vm3, %v9022_v54 }
 0x5bf PF: > { %p10_p9 = scmp.ge.s32.totalorder %s11278_s16, 4   ;;  %s13452_s12 = smov %s11235_s13 }
 0x5c0   : > { %s13453_s13 = smov %s11287_s19  ;;  %s13454_s14 = smov %s11278_s16 }
 0x5c1   :  { %12 = sbr.rel (!%p10_p9) target bundleno = 2 (0x2), region = 130 }

// kernel: cosmoflow_forward.5
= control target key start
LH: loop header
LB: loop body
LE: loop exit
PB: predicated region body
PF: predicated region fallthrough
CT: control target
= control target key end

     0   :  { %s2216_s12 = smov 0   ;;  %s2218_s13 = smov 0   ;;  %s2979_s0 = inlined_call_operand.vmem [shape: bf16[8,128,216], index: 0, kind: input, shape index: {}]   ;;  %s2980_s1 = inlined_call_operand.vmem [shape: bf16[216,16], index: 1, kind: input, shape index: {}]   ;;  %s2981_s2 = inlined_call_operand.vmem [shape: f32[1,16], index: 2, kind: input, shape index: {}]   ;;  %s2982_s3 = inlined_call_operand.vmem [shape: f32[128,16], index: 3, kind: output, shape index: {}]  }
   0x1   :  { %s2220_s14 = smov 0  }
   0x2 LB: > { %s1658_s15 = sadd.s32 4294967295, %s2194_s14   ;;  %s2233_s16 = sadd.s32 1, %s2194_s14   ;;  %s2194_s14 = sphi %s2220_s14, %s2991_s14   ;;  %s2190_s13 = sphi %s2218_s13, %s2990_s13   ;;  %s2186_s12 = sphi %s2216_s12, %s2989_s12  }
   0x3   : > { %s17_s17 = ssub.s32 %s2194_s14, %s2233_s16  ;;  %s20_s18 = sadd.s32 1, %s2190_s13 }
   0x4   : > { %p18_p0 = scmp.eq.s32.totalorder %s17_s17, 0  ;;  %p27_p1 = scmp.ne.s32.totalorder %s2190_s13, %s2186_s12 }
   0x5   : > { %p28_p2 = scmp.eq.s32.totalorder %s2194_s14, 0  ;;  %p1661_p4 = scmp.ge.s32.totalorder %s2194_s14, 2 }
   0x6   : > { %s2242_s19 = scalar_select %p18_p0, %s2190_s13, %s20_s18  }
   0x7   : > { %p29_p3 = por %p28_p2, %p27_p1  ;;  %127 = sbr.rel (%p1661_p4) target bundleno = 80 (0x50), region = 24 }
   0xc   : > { %130 = sbr.rel (!%p29_p3) target bundleno = 80 (0x50), region = 28  ;;  %s132_s20 = sand.u32 (%p29_p3), 1, %s2190_s13  }
   0xd   : > { %s2069_s21 = sshll.u32 (%p29_p3), %s2194_s14, 6  ;;  %s1662_s22 = sshll.u32 (%p29_p3), %s132_s20, 9 }
   0xe   : > { %s2250_s25 = scalar_lea.vmem (%p29_p3), %s2979_s0, %s2069_s21  ;;  %s2255_s26 = scalar_lea.vmem (%p29_p3), [#allocation2], %s1662_s22 }
   0xf   : > { %v293_v0 = vld [vmem:[%s2250_s25] sm:$0xff] (%p29_p3)  ;;  %v295_v1 = vld [vmem:[%s2250_s25 + $0x8] sm:$0xff] (%p29_p3)  ;;  %v297_v2 = vld [vmem:[%s2250_s25 + $0x10] sm:$0xff] (%p29_p3) }
  0x10   : > { %294 = vst [vmem:[%s2255_s26] sm:$0xff] (%p29_p3), %v293_v0  ;;  %v299_v3 = vld [vmem:[%s2250_s25 + $0x18] sm:$0xff] (%p29_p3)  ;;  %v301_v4 = vld [vmem:[%s2250_s25 + $0x20] sm:$0xff] (%p29_p3)  ;;  %v303_v5 = vld [vmem:[%s2250_s25 + $0x28] sm:$0xff] (%p29_p3) }
  0x11   : > { %296 = vst [vmem:[%s2255_s26 + $0x8] sm:$0xff] %v295_v1  ;;  %v305_v6 = vld [vmem:[%s2250_s25 + $0x30] sm:$0xff]  ;;  %v307_v7 = vld [vmem:[%s2250_s25 + $0x38] sm:$0xff]  ;;  %v309_v8 = vld [vmem:[%s2250_s25 + $0x80] sm:$0xff] }
  0x12   : > { %298 = vst [vmem:[%s2255_s26 + $0x10] sm:$0xff] %v297_v2  ;;  %v311_v9 = vld [vmem:[%s2250_s25 + $0x88] sm:$0xff]  ;;  %v313_v10 = vld [vmem:[%s2250_s25 + $0x90] sm:$0xff]  ;;  %v315_v11 = vld [vmem:[%s2250_s25 + $0x98] sm:$0xff] }
  0x13   : > { %300 = vst [vmem:[%s2255_s26 + $0x18] sm:$0xff] %v299_v3  ;;  %v317_v12 = vld [vmem:[%s2250_s25 + $0xa0] sm:$0xff]  ;;  %v319_v13 = vld [vmem:[%s2250_s25 + $0xa8] sm:$0xff]  ;;  %v321_v14 = vld [vmem:[%s2250_s25 + $0xb0] sm:$0xff] }
  0x14   : > { %302 = vst [vmem:[%s2255_s26 + $0x20] sm:$0xff] %v301_v4  ;;  %v323_v15 = vld [vmem:[%s2250_s25 + $0xb8] sm:$0xff]  ;;  %v325_v16 = vld [vmem:[%s2250_s25 + $0x100] sm:$0xff]  ;;  %v327_v17 = vld [vmem:[%s2250_s25 + $0x108] sm:$0xff] }
  0x15   : > { %304 = vst [vmem:[%s2255_s26 + $0x28] sm:$0xff] %v303_v5  ;;  %v329_v18 = vld [vmem:[%s2250_s25 + $0x110] sm:$0xff]  ;;  %v331_v19 = vld [vmem:[%s2250_s25 + $0x118] sm:$0xff]  ;;  %v333_v20 = vld [vmem:[%s2250_s25 + $0x120] sm:$0xff] }
  0x16   : > { %306 = vst [vmem:[%s2255_s26 + $0x30] sm:$0xff] %v305_v6  ;;  %v335_v21 = vld [vmem:[%s2250_s25 + $0x128] sm:$0xff]  ;;  %v337_v22 = vld [vmem:[%s2250_s25 + $0x130] sm:$0xff]  ;;  %v339_v23 = vld [vmem:[%s2250_s25 + $0x138] sm:$0xff] }
  0x17   : > { %308 = vst [vmem:[%s2255_s26 + $0x38] sm:$0xff] %v307_v7  ;;  %v341_v24 = vld [vmem:[%s2250_s25 + $0x180] sm:$0xff]  ;;  %v343_v25 = vld [vmem:[%s2250_s25 + $0x188] sm:$0xff]  ;;  %v345_v26 = vld [vmem:[%s2250_s25 + $0x190] sm:$0xff] }
  0x18   : > { %310 = vst [vmem:[%s2255_s26 + $0x40] sm:$0xff] %v309_v8  ;;  %v347_v27 = vld [vmem:[%s2250_s25 + $0x198] sm:$0xff]  ;;  %v349_v28 = vld [vmem:[%s2250_s25 + $0x1a0] sm:$0xff]  ;;  %v351_v29 = vld [vmem:[%s2250_s25 + $0x1a8] sm:$0xff] }
  0x19   : > { %312 = vst [vmem:[%s2255_s26 + $0x48] sm:$0xff] %v311_v9  ;;  %v353_v30 = vld [vmem:[%s2250_s25 + $0x1b0] sm:$0xff]  ;;  %v355_v31 = vld [vmem:[%s2250_s25 + $0x1b8] sm:$0xff]  ;;  %v357_v32 = vld [vmem:[%s2250_s25 + $0x200] sm:$0xff] }
  0x1a   : > { %314 = vst [vmem:[%s2255_s26 + $0x50] sm:$0xff] %v313_v10  ;;  %v359_v33 = vld [vmem:[%s2250_s25 + $0x208] sm:$0xff]  ;;  %v361_v34 = vld [vmem:[%s2250_s25 + $0x210] sm:$0xff]  ;;  %v363_v35 = vld [vmem:[%s2250_s25 + $0x218] sm:$0xff] }
  0x1b   : > { %316 = vst [vmem:[%s2255_s26 + $0x58] sm:$0xff] %v315_v11  ;;  %v365_v36 = vld [vmem:[%s2250_s25 + $0x220] sm:$0xff]  ;;  %v367_v37 = vld [vmem:[%s2250_s25 + $0x228] sm:$0xff]  ;;  %v369_v38 = vld [vmem:[%s2250_s25 + $0x230] sm:$0xff] }
  0x1c   : > { %318 = vst [vmem:[%s2255_s26 + $0x60] sm:$0xff] %v317_v12  ;;  %v371_v39 = vld [vmem:[%s2250_s25 + $0x238] sm:$0xff]  ;;  %v373_v40 = vld [vmem:[%s2250_s25 + $0x280] sm:$0xff]  ;;  %v375_v41 = vld [vmem:[%s2250_s25 + $0x288] sm:$0xff] }
  0x1d   : > { %320 = vst [vmem:[%s2255_s26 + $0x68] sm:$0xff] %v319_v13  ;;  %v377_v42 = vld [vmem:[%s2250_s25 + $0x290] sm:$0xff]  ;;  %v379_v43 = vld [vmem:[%s2250_s25 + $0x298] sm:$0xff]  ;;  %v381_v44 = vld [vmem:[%s2250_s25 + $0x2a0] sm:$0xff] }
  0x1e   : > { %322 = vst [vmem:[%s2255_s26 + $0x70] sm:$0xff] %v321_v14  ;;  %v383_v45 = vld [vmem:[%s2250_s25 + $0x2a8] sm:$0xff]  ;;  %v385_v46 = vld [vmem:[%s2250_s25 + $0x2b0] sm:$0xff]  ;;  %v387_v47 = vld [vmem:[%s2250_s25 + $0x2b8] sm:$0xff] }
  0x1f   : > { %324 = vst [vmem:[%s2255_s26 + $0x78] sm:$0xff] %v323_v15  ;;  %v389_v48 = vld [vmem:[%s2250_s25 + $0x300] sm:$0xff]  ;;  %v391_v49 = vld [vmem:[%s2250_s25 + $0x308] sm:$0xff]  ;;  %v393_v50 = vld [vmem:[%s2250_s25 + $0x310] sm:$0xff] }
  0x20   : > { %326 = vst [vmem:[%s2255_s26 + $0x80] sm:$0xff] %v325_v16  ;;  %v395_v51 = vld [vmem:[%s2250_s25 + $0x318] sm:$0xff]  ;;  %v397_v52 = vld [vmem:[%s2250_s25 + $0x320] sm:$0xff]  ;;  %v399_v53 = vld [vmem:[%s2250_s25 + $0x328] sm:$0xff] }
  0x21   : > { %328 = vst [vmem:[%s2255_s26 + $0x88] sm:$0xff] %v327_v17  ;;  %v401_v54 = vld [vmem:[%s2250_s25 + $0x330] sm:$0xff]  ;;  %v403_v55 = vld [vmem:[%s2250_s25 + $0x338] sm:$0xff]  ;;  %v405_v56 = vld [vmem:[%s2250_s25 + $0x380] sm:$0xff] }
  0x22   : > { %330 = vst [vmem:[%s2255_s26 + $0x90] sm:$0xff] %v329_v18  ;;  %v407_v57 = vld [vmem:[%s2250_s25 + $0x388] sm:$0xff]  ;;  %v409_v58 = vld [vmem:[%s2250_s25 + $0x390] sm:$0xff]  ;;  %v411_v59 = vld [vmem:[%s2250_s25 + $0x398] sm:$0xff] }
  0x23   : > { %332 = vst [vmem:[%s2255_s26 + $0x98] sm:$0xff] %v331_v19  ;;  %v413_v60 = vld [vmem:[%s2250_s25 + $0x3a0] sm:$0xff]  ;;  %v415_v61 = vld [vmem:[%s2250_s25 + $0x3a8] sm:$0xff]  ;;  %v417_v62 = vld [vmem:[%s2250_s25 + $0x3b0] sm:$0xff] }
  0x24   : > { %334 = vst [vmem:[%s2255_s26 + $0xa0] sm:$0xff] %v333_v20  ;;  %v419_v63 = vld [vmem:[%s2250_s25 + $0x3b8] sm:$0xff] }
  0x25   : > { %336 = vst [vmem:[%s2255_s26 + $0xa8] sm:$0xff] %v335_v21 }
  0x26   : > { %338 = vst [vmem:[%s2255_s26 + $0xb0] sm:$0xff] %v337_v22 }
  0x27   : > { %340 = vst [vmem:[%s2255_s26 + $0xb8] sm:$0xff] %v339_v23 }
  0x28   : > { %342 = vst [vmem:[%s2255_s26 + $0xc0] sm:$0xff] %v341_v24 }
  0x29   : > { %344 = vst [vmem:[%s2255_s26 + $0xc8] sm:$0xff] %v343_v25 }
  0x2a   : > { %346 = vst [vmem:[%s2255_s26 + $0xd0] sm:$0xff] %v345_v26 }
  0x2b   : > { %348 = vst [vmem:[%s2255_s26 + $0xd8] sm:$0xff] %v347_v27 }
  0x2c   : > { %350 = vst [vmem:[%s2255_s26 + $0xe0] sm:$0xff] %v349_v28 }
  0x2d   : > { %352 = vst [vmem:[%s2255_s26 + $0xe8] sm:$0xff] %v351_v29 }
  0x2e   : > { %354 = vst [vmem:[%s2255_s26 + $0xf0] sm:$0xff] %v353_v30 }
  0x2f   : > { %356 = vst [vmem:[%s2255_s26 + $0xf8] sm:$0xff] %v355_v31 }
  0x30   : > { %358 = vst [vmem:[%s2255_s26 + $0x100] sm:$0xff] %v357_v32 }
  0x31   : > { %360 = vst [vmem:[%s2255_s26 + $0x108] sm:$0xff] %v359_v33 }
  0x32   : > { %362 = vst [vmem:[%s2255_s26 + $0x110] sm:$0xff] %v361_v34 }
  0x33   : > { %364 = vst [vmem:[%s2255_s26 + $0x118] sm:$0xff] %v363_v35 }
  0x34   : > { %366 = vst [vmem:[%s2255_s26 + $0x120] sm:$0xff] %v365_v36 }
  0x35   : > { %368 = vst [vmem:[%s2255_s26 + $0x128] sm:$0xff] %v367_v37 }
  0x36   : > { %370 = vst [vmem:[%s2255_s26 + $0x130] sm:$0xff] %v369_v38 }
  0x37   : > { %372 = vst [vmem:[%s2255_s26 + $0x138] sm:$0xff] %v371_v39 }
  0x38   : > { %374 = vst [vmem:[%s2255_s26 + $0x140] sm:$0xff] %v373_v40 }
  0x39   : > { %376 = vst [vmem:[%s2255_s26 + $0x148] sm:$0xff] %v375_v41 }
  0x3a   : > { %378 = vst [vmem:[%s2255_s26 + $0x150] sm:$0xff] %v377_v42 }
  0x3b   : > { %380 = vst [vmem:[%s2255_s26 + $0x158] sm:$0xff] %v379_v43 }
  0x3c   : > { %382 = vst [vmem:[%s2255_s26 + $0x160] sm:$0xff] %v381_v44 }
  0x3d   : > { %384 = vst [vmem:[%s2255_s26 + $0x168] sm:$0xff] %v383_v45 }
  0x3e   : > { %386 = vst [vmem:[%s2255_s26 + $0x170] sm:$0xff] %v385_v46 }
  0x3f   : > { %388 = vst [vmem:[%s2255_s26 + $0x178] sm:$0xff] %v387_v47 }
  0x40   : > { %390 = vst [vmem:[%s2255_s26 + $0x180] sm:$0xff] %v389_v48 }
  0x41   : > { %392 = vst [vmem:[%s2255_s26 + $0x188] sm:$0xff] %v391_v49 }
  0x42   : > { %394 = vst [vmem:[%s2255_s26 + $0x190] sm:$0xff] %v393_v50 }
  0x43   : > { %396 = vst [vmem:[%s2255_s26 + $0x198] sm:$0xff] %v395_v51 }
  0x44   : > { %398 = vst [vmem:[%s2255_s26 + $0x1a0] sm:$0xff] %v397_v52 }
  0x45   : > { %400 = vst [vmem:[%s2255_s26 + $0x1a8] sm:$0xff] %v399_v53 }
  0x46   : > { %402 = vst [vmem:[%s2255_s26 + $0x1b0] sm:$0xff] %v401_v54 }
  0x47   : > { %404 = vst [vmem:[%s2255_s26 + $0x1b8] sm:$0xff] %v403_v55 }
  0x48   : > { %406 = vst [vmem:[%s2255_s26 + $0x1c0] sm:$0xff] %v405_v56 }
  0x49   : > { %408 = vst [vmem:[%s2255_s26 + $0x1c8] sm:$0xff] %v407_v57 }
  0x4a   : > { %410 = vst [vmem:[%s2255_s26 + $0x1d0] sm:$0xff] %v409_v58 }
  0x4b   : > { %412 = vst [vmem:[%s2255_s26 + $0x1d8] sm:$0xff] %v411_v59 }
  0x4c   : > { %414 = vst [vmem:[%s2255_s26 + $0x1e0] sm:$0xff] %v413_v60 }
  0x4d   : > { %416 = vst [vmem:[%s2255_s26 + $0x1e8] sm:$0xff] %v415_v61 }
  0x4e   : > { %418 = vst [vmem:[%s2255_s26 + $0x1f0] sm:$0xff] %v417_v62 }
  0x4f   : > { %420 = vst [vmem:[%s2255_s26 + $0x1f8] sm:$0xff] %v419_v63 }
  0x50 PF: > { %p1666_p5 = scmp.ge.s32.totalorder %s2194_s14, 1  ;;  %p425_p6 = scmp.lt.s32.totalorder %s2194_s14, 3 }
  0x52   : > { %p426_p7 = pnand %p1666_p5, %p425_p6 }
  0x53   : > { %s432_s20 = sand.u32 (!%p426_p7), 1, %s2186_s12   ;;  %s1668_s9 = sshll.u32 (!%p426_p7), %s1658_s15, 3 }
  0x54   : > { %429 = sbr.rel (%p426_p7) target bundleno = 515 (0x203), region = 66  ;;  %s1667_s25 = sshll.u32 (!%p426_p7), %s432_s20, 9 }
  0x55   : > { %s2470_s6 = scalar_lea.vmem (!%p426_p7), [#allocation2], %s1667_s25  ;;  %p457_p8 = scmp.lt.s32.totalorder (!%p426_p7), %s1668_s9, 15 }
  0x59   : > { %v2387_v0 = vld [vmem:[%s2980_s1 + $0x38] sm:$0xff]  ;;  %v489_v1 = vld [vmem:[%s2980_s1 + $0x68] sm:$0xf]  ;;  %vm628_vm0 = vcmask 1043456   ;;  %v2397_v3 = vld [vmem:[%s2980_s1 + $0x30] sm:$0xff]  ;;  %vm615_vm1 = vcmask 719872  }
  0x5a   : > { %v587_v2 = vunpack.c.l.b16 %v489_v1  ;;  %632 = vmatpush.bf16.msra.mxu0 %v2387_v0  ;;  %747 = vmatpush.bf16.msra.mxu2 %v2387_v0  ;;  %v2406_v6 = vld [vmem:[%s2980_s1 + $0x60] sm:$0xff]  ;;  %v2411_v7 = vld [vmem:[%s2980_s1 + $0x28] sm:$0xff]  ;;  %v2420_v8 = vld [vmem:[%s2980_s1 + $0x58] sm:$0xff]  ;;  %s2993_s9 = smov (!%p457_p8, %s1668_s9), 15  ;;  %vm1587_vm3 = vcmask 130048  }
  0x5b   : > { %v2425_v9 = vld [vmem:[%s2980_s1 + $0x20] sm:$0xff]  ;;  %v2435_v10 = vld [vmem:[%s2980_s1 + $0x50] sm:$0xff]  ;;  %v2440_v11 = vld [vmem:[%s2980_s1 + $0x18] sm:$0xff]  ;;  %s1669_s14 = sshll.u32 %s2993_s9, 3 }
  0x5c   : > { %v601_v4 = vpack.c.b16 %v587_v2, %v587_v2  ;;  %v2449_v12 = vld [vmem:[%s2980_s1 + $0x48] sm:$0xff]  ;;  %v2454_v13 = vld [vmem:[%s2980_s1 + $0x10] sm:$0xff]  ;;  %v2461_v14 = vld [vmem:[%s2980_s1 + $0x40] sm:$0xff]  ;;  %s2906_s18 = scalar_lea.vmem %s2982_s3, %s1669_s14 }
  0x5d   : > { %v2468_v15 = vld [vmem:[%s2980_s1 + $0x8] sm:$0xff]  ;;  %v2091_v16 = vld [vmem:[%s2470_s6 + $0x44] sm:$0xf]  ;;  %v1672_v23 = vld [vmem:[%s2470_s6] sm:$0xf] }
  0x5e   : > { %v2399_v5 = vsel %vm628_vm0, %v601_v4, 0  ;;  %633 = vmatpush.bf16.msra.mxu0 %v2397_v3  ;;  %748 = vmatpush.bf16.msra.mxu2 %v2397_v3  ;;  %v1770_v17 = vld [vmem:[%s2470_s6 + $0x48] sm:$0xf0]  ;;  %v2083_v18 = vld [vmem:[%s2470_s6 + $0x4] sm:$0xf] }
  0x5f   : > { %778 = vmatpush.bf16.msra.mxu3 %v2399_v5  ;;  %663 = vmatpush.bf16.msra.mxu1 %v2399_v5  ;;  %v1674_v19 = vld [vmem:[%s2470_s6 + $0x8] sm:$0xf0]  ;;  %v1773_v20 = vor.u32 %v2091_v16, %v1770_v17  ;;  %v2483_v22 = vld [vmem:[%s2980_s1] sm:$0xff]  ;;  %v2084_v24 = vld [vmem:[%s2470_s6 + $0x4] sm:$0xf0] }
  0x60   : > { %v1677_v21 = vor.u32 %v2083_v18, %v1674_v19  ;;  %v1768_v25 = vld [vmem:[%s2470_s6 + $0x40] sm:$0xf]  ;;  %v2092_v26 = vld [vmem:[%s2470_s6 + $0x44] sm:$0xf0]  ;;  %v1673_v27 = vor.u32 %v2084_v24, %v1672_v23  ;;  %v2093_v29 = vld [vmem:[%s2470_s6 + $0x54] sm:$0xf] }
  0x61   : > { %v1769_v28 = vor.u32 %v2092_v26, %v1768_v25  ;;  %v1778_v30 = vld [vmem:[%s2470_s6 + $0x58] sm:$0xf0]  ;;  %v2085_v31 = vld [vmem:[%s2470_s6 + $0x14] sm:$0xf]  ;;  %v1680_v35 = vld [vmem:[%s2470_s6 + $0x10] sm:$0xf] }
  0x62   : > { %634 = vmatpush.bf16.msra.mxu0 %v2411_v7  ;;  %749 = vmatpush.bf16.msra.mxu2 %v2411_v7  ;;  %v1682_v32 = vld [vmem:[%s2470_s6 + $0x18] sm:$0xf0]  ;;  %v1781_v33 = vor.u32 %v2093_v29, %v1778_v30  ;;  %v2086_v36 = vld [vmem:[%s2470_s6 + $0x14] sm:$0xf0]  ;;  %v1776_v37 = vld [vmem:[%s2470_s6 + $0x50] sm:$0xf] }
  0x63   : > { %779 = vmatpush.bf16.msra.mxu3 %v2406_v6  ;;  %664 = vmatpush.bf16.msra.mxu1 %v2406_v6  ;;  %v1685_v34 = vor.u32 %v2085_v31, %v1682_v32  ;;  %v2094_v38 = vld [vmem:[%s2470_s6 + $0x54] sm:$0xf0]  ;;  %v1681_v39 = vor.u32 %v2086_v36, %v1680_v35  ;;  %v2095_v41 = vld [vmem:[%s2470_s6 + $0x64] sm:$0xf]  ;;  %v1786_v42 = vld [vmem:[%s2470_s6 + $0x68] sm:$0xf0] }
  0x64   : > { %v1777_v40 = vor.u32 %v2094_v38, %v1776_v37  ;;  %v2087_v43 = vld [vmem:[%s2470_s6 + $0x24] sm:$0xf]  ;;  %v1690_v44 = vld [vmem:[%s2470_s6 + $0x28] sm:$0xf0]  ;;  %v1789_v45 = vor.u32 %v2095_v41, %v1786_v42  ;;  %v1688_v47 = vld [vmem:[%s2470_s6 + $0x20] sm:$0xf] }
  0x65   : > { %v1693_v46 = vor.u32 %v2087_v43, %v1690_v44  ;;  %v2088_v48 = vld [vmem:[%s2470_s6 + $0x24] sm:$0xf0]  ;;  %v1784_v49 = vld [vmem:[%s2470_s6 + $0x60] sm:$0xf]  ;;  %v2097_v53 = vld [vmem:[%s2470_s6 + $0x74] sm:$0xf] }
  0x66   : > { %635 = vmatpush.bf16.msra.mxu0 %v2425_v9  ;;  %750 = vmatpush.bf16.msra.mxu2 %v2425_v9  ;;  %v2096_v50 = vld [vmem:[%s2470_s6 + $0x64] sm:$0xf0]  ;;  %v1689_v51 = vor.u32 %v2088_v48, %v1688_v47  ;;  %v1794_v54 = vld [vmem:[%s2470_s6 + $0x78] sm:$0xf0]  ;;  %v2089_v55 = vld [vmem:[%s2470_s6 + $0x34] sm:$0xf] }
  0x67   : > { %780 = vmatpush.bf16.msra.mxu3 %v2420_v8  ;;  %665 = vmatpush.bf16.msra.mxu1 %v2420_v8  ;;  %v1785_v52 = vor.u32 %v2096_v50, %v1784_v49  ;;  %v1698_v56 = vld [vmem:[%s2470_s6 + $0x38] sm:$0xf0]  ;;  %v1797_v57 = vor.u32 %v2097_v53, %v1794_v54  ;;  %v1696_v59 = vld [vmem:[%s2470_s6 + $0x30] sm:$0xf]  ;;  %v2090_v60 = vld [vmem:[%s2470_s6 + $0x34] sm:$0xf0] }
  0x68   : > { %v1701_v58 = vor.u32 %v2089_v55, %v1698_v56  ;;  %v1792_v61 = vld [vmem:[%s2470_s6 + $0x70] sm:$0xf]  ;;  %v2098_v62 = vld [vmem:[%s2470_s6 + $0x74] sm:$0xf0]  ;;  %v1697_v63 = vor.u32 %v2090_v60, %v1696_v59  ;;  %v2099_v2 = vld [vmem:[%s2470_s6 + $0x84] sm:$0xf] }
  0x69   : > { %v1793_v1 = vor.u32 %v2098_v62, %v1792_v61  ;;  %v1814_v4 = vld [vmem:[%s2470_s6 + $0x88] sm:$0xf0]  ;;  %v1812_v16 = vld [vmem:[%s2470_s6 + $0x80] sm:$0xf]  ;;  %v2100_v17 = vld [vmem:[%s2470_s6 + $0x84] sm:$0xf0] }
  0x6a   : > { %636 = vmatpush.bf16.msra.mxu0 %v2440_v11  ;;  %751 = vmatpush.bf16.msra.mxu2 %v2440_v11  ;;  %v1817_v18 = vor.u32 %v2099_v2, %v1814_v4  ;;  %v1813_v19 = vor.u32 %v2100_v17, %v1812_v16  ;;  %v2107_v23 = vld [vmem:[%s2470_s6 + $0xc4] sm:$0xf]  ;;  %v1858_v24 = vld [vmem:[%s2470_s6 + $0xc8] sm:$0xf0]  ;;  %v1820_v29 = vld [vmem:[%s2470_s6 + $0x90] sm:$0xf] }
  0x6b   : > { %781 = vmatpush.bf16.msra.mxu3 %v2435_v10  ;;  %666 = vmatpush.bf16.msra.mxu1 %v2435_v10  ;;  %v1861_v26 = vor.u32 %v2107_v23, %v1858_v24  ;;  %v2102_v30 = vld [vmem:[%s2470_s6 + $0x94] sm:$0xf0]  ;;  %v1864_v31 = vld [vmem:[%s2470_s6 + $0xd0] sm:$0xf]  ;;  %v2112_v36 = vld [vmem:[%s2470_s6 + $0xe4] sm:$0xf0] }
  0x6c   : > { %v2110_v32 = vld [vmem:[%s2470_s6 + $0xd4] sm:$0xf0]  ;;  %v2111_v37 = vld [vmem:[%s2470_s6 + $0xe4] sm:$0xf]  ;;  %v1874_v38 = vld [vmem:[%s2470_s6 + $0xe8] sm:$0xf0] }
  0x6d   : > { %v2106_v41 = vld [vmem:[%s2470_s6 + $0xb4] sm:$0xf0]  ;;  %v1880_v44 = vld [vmem:[%s2470_s6 + $0xf0] sm:$0xf]  ;;  %v1882_v47 = vld [vmem:[%s2470_s6 + $0xf8] sm:$0xf0] }
  0x6e   : > { %637 = vmatpush.bf16.msra.mxu0 %v2454_v13  ;;  %752 = vmatpush.bf16.msra.mxu2 %v2454_v13  ;;  %v2115_v49 = vld [vmem:[%s2470_s6 + $0x104] sm:$0xf]  ;;  %v1902_v50 = vld [vmem:[%s2470_s6 + $0x108] sm:$0xf0]  ;;  %v1944_v55 = vld [vmem:[%s2470_s6 + $0x140] sm:$0xf] }
  0x6f   : > { %782 = vmatpush.bf16.msra.mxu3 %v2449_v12  ;;  %667 = vmatpush.bf16.msra.mxu1 %v2449_v12  ;;  %v1905_v53 = vor.u32 %v2115_v49, %v1902_v50  ;;  %v2124_v56 = vld [vmem:[%s2470_s6 + $0x144] sm:$0xf0]  ;;  %v1946_v59 = vld [vmem:[%s2470_s6 + $0x148] sm:$0xf0]  ;;  %v2118_v23 = vld [vmem:[%s2470_s6 + $0x114] sm:$0xf0] }
  0x70   : > { %v1945_v60 = vor.u32 %v2124_v56, %v1944_v55 }
  0x72   : > { %638 = vmatpush.bf16.msra.mxu0 %v2468_v15  ;;  %753 = vmatpush.bf16.msra.mxu2 %v2468_v15 }
  0x73   : > { %783 = vmatpush.bf16.msra.mxu3 %v2461_v14  ;;  %668 = vmatpush.bf16.msra.mxu1 %v2461_v14 }
  0x76   : > { %1798 = vmatmul.msk.bf16.vlgmr.msra.gmra.mxu3 %vm615_vm1, %v1773_v20  ;;  %1754 = vmatmul.msk.bf16.vlgmr.msra.gmra.mxu1 %vm615_vm1, %v1677_v21  ;;  %v1856_v20 = vld [vmem:[%s2470_s6 + $0xc0] sm:$0xf]  ;;  %v2108_v21 = vld [vmem:[%s2470_s6 + $0xc4] sm:$0xf0] }
  0x77   : > { %901 = vmatpush.bf16.msrb.mxu3 %v2399_v5  ;;  %870 = vmatpush.bf16.msrb.mxu1 %v2387_v0  ;;  %v1857_v25 = vor.u32 %v2108_v21, %v1856_v20  ;;  %v1908_v21 = vld [vmem:[%s2470_s6 + $0x110] sm:$0xf] }
  0x78   : > { %639 = vmatpush.bf16.msra.mxu0 %v2483_v22  ;;  %754 = vmatpush.bf16.msra.mxu2 %v2483_v22 }
  0x7b   : > { %902 = vmatpush.bf16.msrb.mxu3 %v2406_v6  ;;  %640 = vmatmul.bf16.vlgmr.msra.gmra.mxu0 %v1673_v27  ;;  %v2101_v27 = vld [vmem:[%s2470_s6 + $0x94] sm:$0xf] }
  0x7c   : > { %993 = vmatpush.bf16.msrb.mxu0 %v2387_v0  ;;  %1024 = vmatpush.bf16.msrb.mxu2 %v2399_v5 }
  0x7d   : > { %871 = vmatpush.bf16.msrb.mxu1 %v2397_v3  ;;  %755 = vmatmul.bf16.vlgmr.msra.gmra.mxu2 %v1769_v28  ;;  %v1822_v28 = vld [vmem:[%s2470_s6 + $0x98] sm:$0xf0] }
  0x7f   : > { %903 = vmatpush.bf16.msrb.mxu3 %v2420_v8 }
  0x80   : > { %994 = vmatpush.bf16.msrb.mxu0 %v2397_v3  ;;  %1025 = vmatpush.bf16.msrb.mxu2 %v2406_v6 }
  0x81   : > { %872 = vmatpush.bf16.msrb.mxu1 %v2411_v7 }
  0x83   : > { %904 = vmatpush.bf16.msrb.mxu3 %v2435_v10 }
  0x84   : > { %995 = vmatpush.bf16.msrb.mxu0 %v2411_v7  ;;  %1026 = vmatpush.bf16.msrb.mxu2 %v2420_v8 }
  0x85   : > { %873 = vmatpush.bf16.msrb.mxu1 %v2425_v9 }
  0x86   : > { %1799 = vmatmul.msk.bf16.gmra.mxu3 %vm615_vm1, %v1781_v33  ;;  %1755 = vmatmul.msk.bf16.gmra.mxu1 %vm615_vm1, %v1685_v34  ;;  %v2109_v33 = vld [vmem:[%s2470_s6 + $0xd4] sm:$0xf]  ;;  %v1866_v34 = vld [vmem:[%s2470_s6 + $0xd8] sm:$0xf0] }
  0x87   : > { %905 = vmatpush.bf16.msrb.mxu3 %v2449_v12 }
  0x88   : > { %996 = vmatpush.bf16.msrb.mxu0 %v2425_v9  ;;  %1027 = vmatpush.bf16.msrb.mxu2 %v2435_v10 }
  0x89   : > { %874 = vmatpush.bf16.msrb.mxu1 %v2440_v11 }
  0x8b   : > { %906 = vmatpush.bf16.msrb.mxu3 %v2461_v14  ;;  %645 = vmatmul.bf16.gmra.mxu0 %v1681_v39  ;;  %v2105_v39 = vld [vmem:[%s2470_s6 + $0xb4] sm:$0xf] }
  0x8c   : > { %997 = vmatpush.bf16.msrb.mxu0 %v2440_v11  ;;  %1028 = vmatpush.bf16.msrb.mxu2 %v2449_v12 }
  0x8d   : > { %875 = vmatpush.bf16.msrb.mxu1 %v2454_v13  ;;  %760 = vmatmul.bf16.gmra.mxu2 %v1777_v40  ;;  %v1836_v40 = vld [vmem:[%s2470_s6 + $0xb0] sm:$0xf] }
  0x8e   : > { %v1837_v43 = vor.u32 %v2106_v41, %v1836_v40  ;;  %v1960_v41 = vld [vmem:[%s2470_s6 + $0x160] sm:$0xf] }
  0x8f   : > { %1147 = vmatpush.bf16.msra.mxu3 %v2399_v5 }
  0x90   : > { %998 = vmatpush.bf16.msrb.mxu0 %v2454_v13  ;;  %1029 = vmatpush.bf16.msrb.mxu2 %v2461_v14 }
  0x91   : > { %876 = vmatpush.bf16.msrb.mxu1 %v2468_v15 }
  0x93   : > { %1148 = vmatpush.bf16.msra.mxu3 %v2406_v6 }
  0x94   : > { %1270 = vmatpush.bf16.msra.mxu2 %v2399_v5  ;;  %999 = vmatpush.bf16.msrb.mxu0 %v2468_v15 }
  0x95   : > { %877 = vmatpush.bf16.msrb.mxu1 %v2483_v22 }
  0x96   : > { %1800 = vmatmul.msk.bf16.gmra.mxu3 %vm615_vm1, %v1789_v45  ;;  %1756 = vmatmul.msk.bf16.gmra.mxu1 %vm615_vm1, %v1693_v46  ;;  %v2114_v45 = vld [vmem:[%s2470_s6 + $0xf4] sm:$0xf0]  ;;  %v2113_v46 = vld [vmem:[%s2470_s6 + $0xf4] sm:$0xf] }
  0x97   : > { %1149 = vmatpush.bf16.msra.mxu3 %v2420_v8  ;;  %v1885_v48 = vor.u32 %v2113_v46, %v1882_v47 }
  0x98   : > { %1271 = vmatpush.bf16.msra.mxu2 %v2406_v6  ;;  %1000 = vmatpush.bf16.msrb.mxu0 %v2483_v22 }
  0x99   : > { %1116 = vmatpush.bf16.msra.mxu1 %v2387_v0 }
  0x9b   : > { %1150 = vmatpush.bf16.msra.mxu3 %v2435_v10  ;;  %650 = vmatmul.bf16.gmra.mxu0 %v1689_v51  ;;  %v1900_v51 = vld [vmem:[%s2470_s6 + $0x100] sm:$0xf] }
  0x9c   : > { %1239 = vmatpush.bf16.msra.mxu0 %v2387_v0  ;;  %1272 = vmatpush.bf16.msra.mxu2 %v2420_v8 }
  0x9d   : > { %1117 = vmatpush.bf16.msra.mxu1 %v2397_v3  ;;  %765 = vmatmul.bf16.gmra.mxu2 %v1785_v52  ;;  %v2116_v52 = vld [vmem:[%s2470_s6 + $0x104] sm:$0xf0] }
  0x9e   : > { %v1901_v54 = vor.u32 %v2116_v52, %v1900_v51 }
  0x9f   : > { %1151 = vmatpush.bf16.msra.mxu3 %v2449_v12 }
  0xa0   : > { %1240 = vmatpush.bf16.msra.mxu0 %v2397_v3  ;;  %1273 = vmatpush.bf16.msra.mxu2 %v2435_v10 }
  0xa1   : > { %1118 = vmatpush.bf16.msra.mxu1 %v2411_v7 }
  0xa3   : > { %1152 = vmatpush.bf16.msra.mxu3 %v2461_v14 }
  0xa4   : > { %1241 = vmatpush.bf16.msra.mxu0 %v2411_v7  ;;  %1274 = vmatpush.bf16.msra.mxu2 %v2449_v12 }
  0xa5   : > { %1119 = vmatpush.bf16.msra.mxu1 %v2425_v9 }
  0xa6   : > { %1801 = vmatmul.msk.bf16.gmra.mxu3 %vm615_vm1, %v1797_v57  ;;  %1757 = vmatmul.msk.bf16.gmra.mxu1 %vm615_vm1, %v1701_v58  ;;  %v2123_v58 = vld [vmem:[%s2470_s6 + $0x144] sm:$0xf] }
  0xa7   : > { %v1949_v62 = vor.u32 %v2123_v58, %v1946_v59  ;;  %v1926_v58 = vld [vmem:[%s2470_s6 + $0x138] sm:$0xf0] }
  0xa8   : > { %1242 = vmatpush.bf16.msra.mxu0 %v2425_v9  ;;  %1275 = vmatpush.bf16.msra.mxu2 %v2461_v14 }
  0xa9   : > { %1120 = vmatpush.bf16.msra.mxu1 %v2440_v11 }
  0xab   : > { %655 = vmatmul.bf16.gmra.mxu0 %v1697_v63 }
  0xac   : > { %1243 = vmatpush.bf16.msra.mxu0 %v2440_v11 }
  0xad   : > { %1121 = vmatpush.bf16.msra.mxu1 %v2454_v13  ;;  %770 = vmatmul.bf16.gmra.mxu2 %v1793_v1 }
  0xb0   : > { %1244 = vmatpush.bf16.msra.mxu0 %v2454_v13 }
  0xb1   : > { %1122 = vmatpush.bf16.msra.mxu1 %v2468_v15 }
  0xb4   : > { %1245 = vmatpush.bf16.msra.mxu0 %v2468_v15 }
  0xb5   : > { %1123 = vmatpush.bf16.msra.mxu1 %v2483_v22 }
  0xb6   : > { %1842 = vmatmul.msk.bf16.vlgmr.msrb.gmra.mxu3 %vm615_vm1, %v1817_v18  ;;  %878 = vmatmul.bf16.vlgmr.msrb.gmra.mxu1 %v1813_v19  ;;  %v2117_v18 = vld [vmem:[%s2470_s6 + $0x114] sm:$0xf]  ;;  %v1910_v19 = vld [vmem:[%s2470_s6 + $0x118] sm:$0xf0] }
  0xb7   : > { %1393 = vmatpush.bf16.msrb.mxu3 %v2399_v5 }
  0xb8   : > { %1246 = vmatpush.bf16.msra.mxu0 %v2483_v22 }
  0xb9   : > { %1362 = vmatpush.bf16.msrb.mxu1 %v2387_v0 }
  0xbb   : > { %1001 = vmatmul.bf16.vlgmr.msrb.gmra.mxu0 %v1857_v25  ;;  %1394 = vmatpush.bf16.msrb.mxu3 %v2406_v6 }
  0xbc   : > { %1485 = vmatpush.bf16.msrb.mxu0 %v2387_v0  ;;  %v1825_v0 = vor.u32 %v2101_v27, %v1822_v28  ;;  %v1909_v27 = vor.u32 %v2118_v23, %v1908_v21  ;;  %v1952_v28 = vld [vmem:[%s2470_s6 + $0x150] sm:$0xf]  ;;  %v2129_v21 = vld [vmem:[%s2470_s6 + $0x174] sm:$0xf]  ;;  %v1970_v23 = vld [vmem:[%s2470_s6 + $0x178] sm:$0xf0] }
  0xbd   : > { %1886 = vmatmul.msk.bf16.vlgmr.msrb.gmra.mxu2 %vm615_vm1, %v1861_v26  ;;  %1363 = vmatpush.bf16.msrb.mxu1 %v2397_v3  ;;  %v1913_v26 = vor.u32 %v2117_v18, %v1910_v19  ;;  %v2130_v18 = vld [vmem:[%s2470_s6 + $0x174] sm:$0xf0] }
  0xbe   : > { %1516 = vmatpush.bf16.msrb.mxu2 %v2399_v5  ;;  %v1821_v5 = vor.u32 %v2102_v30, %v1820_v29  ;;  %v2126_v29 = vld [vmem:[%s2470_s6 + $0x154] sm:$0xf0] }
  0xbf   : > { %1395 = vmatpush.bf16.msrb.mxu3 %v2420_v8 }
  0xc0   : > { %1486 = vmatpush.bf16.msrb.mxu0 %v2397_v3  ;;  %v1865_v3 = vor.u32 %v2110_v32, %v1864_v31  ;;  %v1953_v32 = vor.u32 %v2126_v29, %v1952_v28  ;;  %v1973_v29 = vor.u32 %v2129_v21, %v1970_v23  ;;  %v2142_v21 = vld [vmem:[%s2470_s6 + $0x1d4] sm:$0xf0] }
  0xc1   : > { %1364 = vmatpush.bf16.msrb.mxu1 %v2411_v7 }
  0xc2   : > { %1517 = vmatpush.bf16.msrb.mxu2 %v2406_v6  ;;  %v1869_v6 = vor.u32 %v2109_v33, %v1866_v34 }
  0xc3   : > { %1396 = vmatpush.bf16.msrb.mxu3 %v2435_v10 }
  0xc4   : > { %1487 = vmatpush.bf16.msrb.mxu0 %v2411_v7  ;;  %v2103_v7 = vld [vmem:[%s2470_s6 + $0xa4] sm:$0xf] }
  0xc5   : > { %1365 = vmatpush.bf16.msrb.mxu1 %v2425_v9 }
  0xc6   : > { %1518 = vmatpush.bf16.msrb.mxu2 %v2420_v8  ;;  %1843 = vmatmul.msk.bf16.gmra.mxu3 %vm615_vm1, %v1825_v0  ;;  %v1830_v8 = vld [vmem:[%s2470_s6 + $0xa8] sm:$0xf0]  ;;  %v2125_v0 = vld [vmem:[%s2470_s6 + $0x154] sm:$0xf] }
  0xc7   : > { %883 = vmatmul.bf16.gmra.mxu1 %v1821_v5  ;;  %1397 = vmatpush.bf16.msrb.mxu3 %v2449_v12  ;;  %v1954_v5 = vld [vmem:[%s2470_s6 + $0x158] sm:$0xf0] }
  0xc8   : > { %1488 = vmatpush.bf16.msrb.mxu0 %v2425_v9  ;;  %v1828_v9 = vld [vmem:[%s2470_s6 + $0xa0] sm:$0xf] }
  0xc9   : > { %1366 = vmatpush.bf16.msrb.mxu1 %v2440_v11 }
  0xca   : > { %1519 = vmatpush.bf16.msrb.mxu2 %v2435_v10  ;;  %v2104_v10 = vld [vmem:[%s2470_s6 + $0xa4] sm:$0xf0] }
  0xcb   : > { %1006 = vmatmul.bf16.gmra.mxu0 %v1865_v3  ;;  %1398 = vmatpush.bf16.msrb.mxu3 %v2461_v14  ;;  %v1829_v35 = vor.u32 %v2104_v10, %v1828_v9  ;;  %v1957_v3 = vor.u32 %v2125_v0, %v1954_v5 }
  0xcc   : > { %1489 = vmatpush.bf16.msrb.mxu0 %v2440_v11  ;;  %v1833_v11 = vor.u32 %v2103_v7, %v1830_v8 }
  0xcd   : > { %1887 = vmatmul.msk.bf16.gmra.mxu2 %vm615_vm1, %v1869_v6  ;;  %1367 = vmatpush.bf16.msrb.mxu1 %v2454_v13 }
  0xce   : > { %1520 = vmatpush.bf16.msrb.mxu2 %v2449_v12  ;;  %v1872_v12 = vld [vmem:[%s2470_s6 + $0xe0] sm:$0xf] }
  0xd0   : > { %1490 = vmatpush.bf16.msrb.mxu0 %v2454_v13  ;;  %v1873_v13 = vor.u32 %v2112_v36, %v1872_v12  ;;  %v2119_v12 = vld [vmem:[%s2470_s6 + $0x124] sm:$0xf]  ;;  %v1918_v36 = vld [vmem:[%s2470_s6 + $0x128] sm:$0xf0] }
  0xd1   : > { %1368 = vmatpush.bf16.msrb.mxu1 %v2468_v15 }
  0xd2   : > { %1521 = vmatpush.bf16.msrb.mxu2 %v2461_v14  ;;  %v1877_v14 = vor.u32 %v2111_v37, %v1874_v38  ;;  %v1916_v38 = vld [vmem:[%s2470_s6 + $0x120] sm:$0xf] }
  0xd4   : > { %1491 = vmatpush.bf16.msrb.mxu0 %v2468_v15  ;;  %v1838_v15 = vld [vmem:[%s2470_s6 + $0xb8] sm:$0xf0] }
  0xd5   : > { %1369 = vmatpush.bf16.msrb.mxu1 %v2483_v22  ;;  %v1841_v42 = vor.u32 %v2105_v39, %v1838_v15  ;;  %v1921_v15 = vor.u32 %v2119_v12, %v1918_v36  ;;  %v2132_v12 = vld [vmem:[%s2470_s6 + $0x184] sm:$0xf0] }
  0xd6   : > { %1844 = vmatmul.msk.bf16.gmra.mxu3 %vm615_vm1, %v1833_v11 }
  0xd7   : > { %888 = vmatmul.bf16.gmra.mxu1 %v1829_v35 }
  0xd8   : > { %1492 = vmatpush.bf16.msrb.mxu0 %v2483_v22  ;;  %v1881_v22 = vor.u32 %v2114_v45, %v1880_v44  ;;  %v2127_v44 = vld [vmem:[%s2470_s6 + $0x164] sm:$0xf]  ;;  %v1962_v45 = vld [vmem:[%s2470_s6 + $0x168] sm:$0xf0] }
  0xd9   : > { %v1965_v49 = vor.u32 %v2127_v44, %v1962_v45 }
  0xdb   : > { %1011 = vmatmul.bf16.gmra.mxu0 %v1873_v13  ;;  %v2120_v13 = vld [vmem:[%s2470_s6 + $0x124] sm:$0xf0] }
  0xdc   : > { %v1917_v40 = vor.u32 %v2120_v13, %v1916_v38 }
  0xdd   : > { %1888 = vmatmul.msk.bf16.gmra.mxu2 %vm615_vm1, %v1877_v14 }
  0xe6   : > { %1845 = vmatmul.msk.bf16.gmra.mxu3 %vm615_vm1, %v1841_v42  ;;  %v2128_v42 = vld [vmem:[%s2470_s6 + $0x164] sm:$0xf0] }
  0xe7   : > { %893 = vmatmul.bf16.gmra.mxu1 %v1837_v43  ;;  %v1961_v47 = vor.u32 %v2128_v42, %v1960_v41  ;;  %v2139_v42 = vld [vmem:[%s2470_s6 + $0x1c4] sm:$0xf] }
  0xeb   : > { %1016 = vmatmul.bf16.gmra.mxu0 %v1881_v22 }
  0xed   : > { %1889 = vmatmul.msk.bf16.gmra.mxu2 %vm615_vm1, %v1885_v48 }
  0xf3   : > { %v670_v57 = vpop.f32.mrf.mxu1 }
  0xf6   : > { %1930 = vmatmul.msk.bf16.vlgmr.msra.gmra.mxu3 %vm615_vm1, %v1905_v53 }
  0xf7   : > { %1124 = vmatmul.bf16.vlgmr.msra.gmra.mxu1 %v1901_v54 }
  0xf8   : > { %v641_v61 = vpop.f32.mrf.mxu0 }
  0xf9   : > { %v2658_v63 = vadd.f32 %v670_v57, %v641_v61  ;;  %v785_v1 = vpop.f32.mrf.mxu3  ;;  %v2121_v57 = vld [vmem:[%s2470_s6 + $0x134] sm:$0xf]  ;;  %v2122_v61 = vld [vmem:[%s2470_s6 + $0x134] sm:$0xf0] }
  0xfb   : > { %1247 = vmatmul.bf16.vlgmr.msra.gmra.mxu0 %v1945_v60  ;;  %v672_v2 = vpop.f32.mrf.mxu1  ;;  %v1924_v60 = vld [vmem:[%s2470_s6 + $0x130] sm:$0xf] }
  0xfd   : > { %1974 = vmatmul.msk.bf16.vlgmr.msra.gmra.mxu2 %vm615_vm1, %v1949_v62 }
 0x100   : > { %v756_v4 = vpop.f32.mrf.mxu2  ;;  %v643_v17 = vpop.f32.mrf.mxu0 }
 0x101   : > { %v2661_v16 = vadd.f32 %v785_v1, %v756_v4  ;;  %v2665_v20 = vadd.f32 %v672_v2, %v643_v17  ;;  %v787_v25 = vpop.f32.mrf.mxu3  ;;  %v1929_v2 = vor.u32 %v2121_v57, %v1926_v58  ;;  %v1925_v4 = vor.u32 %v2122_v61, %v1924_v60  ;;  %v1968_v17 = vld [vmem:[%s2470_s6 + $0x170] sm:$0xf]  ;;  %v2133_v61 = vld [vmem:[%s2470_s6 + $0x194] sm:$0xf] }
 0x103   : > { %v805_v24 = vmax.f32 %v2658_v63, %v2661_v16  ;;  %v675_v30 = vpop.f32.mrf.mxu1 }
 0x106   : > { %1931 = vmatmul.msk.bf16.gmra.mxu3 %vm615_vm1, %v1913_v26  ;;  %v1969_v26 = vor.u32 %v2130_v18, %v1968_v17 }
 0x107   : > { %1129 = vmatmul.bf16.gmra.mxu1 %v1909_v27 }
 0x108   : > { %v758_v31 = vpop.f32.mrf.mxu2  ;;  %v646_v34 = vpop.f32.mrf.mxu0 }
 0x109   : > { %v2676_v33 = vadd.f32 %v787_v25, %v758_v31  ;;  %v2678_v6 = vadd.f32 %v675_v30, %v646_v34  ;;  %v790_v8 = vpop.f32.mrf.mxu3 }
 0x10b   : > { %v806_v7 = vmax.f32 %v2665_v20, %v2676_v33  ;;  %1252 = vmatmul.bf16.gmra.mxu0 %v1953_v32  ;;  %v677_v9 = vpop.f32.mrf.mxu1 }
 0x10d   : > { %1975 = vmatmul.msk.bf16.gmra.mxu2 %vm615_vm1, %v1957_v3 }
 0x110   : > { %v761_v10 = vpop.f32.mrf.mxu2  ;;  %v648_v35 = vpop.f32.mrf.mxu0 }
 0x111   : > { %v2683_v11 = vadd.f32 %v790_v8, %v761_v10  ;;  %v2687_v37 = vadd.f32 %v677_v9, %v648_v35  ;;  %v792_v39 = vpop.f32.mrf.mxu3  ;;  %v2131_v8 = vld [vmem:[%s2470_s6 + $0x184] sm:$0xf]  ;;  %v1990_v9 = vld [vmem:[%s2470_s6 + $0x188] sm:$0xf0]  ;;  %v1988_v35 = vld [vmem:[%s2470_s6 + $0x180] sm:$0xf] }
 0x112   : > { %v1993_v13 = vor.u32 %v2131_v8, %v1990_v9 }
 0x113   : > { %v807_v14 = vmax.f32 %v2678_v6, %v2683_v11  ;;  %v680_v43 = vpop.f32.mrf.mxu1 }
 0x116   : > { %1932 = vmatmul.msk.bf16.gmra.mxu3 %vm615_vm1, %v1921_v15  ;;  %v2032_v15 = vld [vmem:[%s2470_s6 + $0x1c0] sm:$0xf] }
 0x117   : > { %1134 = vmatmul.bf16.gmra.mxu1 %v1917_v40  ;;  %v2140_v40 = vld [vmem:[%s2470_s6 + $0x1c4] sm:$0xf0] }
 0x118   : > { %v763_v46 = vpop.f32.mrf.mxu2  ;;  %v651_v48 = vpop.f32.mrf.mxu0  ;;  %v2033_v45 = vor.u32 %v2140_v40, %v2032_v15  ;;  %v2004_v15 = vld [vmem:[%s2470_s6 + $0x1a0] sm:$0xf]  ;;  %v2136_v40 = vld [vmem:[%s2470_s6 + $0x1a4] sm:$0xf0] }
 0x119   : > { %v2698_v22 = vadd.f32 %v792_v39, %v763_v46  ;;  %v2700_v50 = vadd.f32 %v680_v43, %v651_v48  ;;  %v795_v52 = vpop.f32.mrf.mxu3  ;;  %v1989_v39 = vor.u32 %v2132_v12, %v1988_v35  ;;  %v2034_v43 = vld [vmem:[%s2470_s6 + $0x1c8] sm:$0xf0]  ;;  %v2005_v11 = vor.u32 %v2136_v40, %v2004_v15 }
 0x11a   : > { %v2037_v48 = vor.u32 %v2139_v42, %v2034_v43 }
 0x11b   : > { %v808_v51 = vmax.f32 %v2687_v37, %v2698_v22  ;;  %1257 = vmatmul.bf16.gmra.mxu0 %v1961_v47  ;;  %v682_v53 = vpop.f32.mrf.mxu1 }
 0x11d   : > { %1976 = vmatmul.msk.bf16.gmra.mxu2 %vm615_vm1, %v1965_v49 }
 0x120   : > { %v766_v54 = vpop.f32.mrf.mxu2  ;;  %v653_v56 = vpop.f32.mrf.mxu0 }
 0x121   : > { %v2705_v55 = vadd.f32 %v795_v52, %v766_v54  ;;  %v2709_v59 = vadd.f32 %v682_v53, %v653_v56  ;;  %v797_v1 = vpop.f32.mrf.mxu3 }
 0x123   : > { %v809_v62 = vmax.f32 %v2700_v50, %v2705_v55  ;;  %v685_v19 = vpop.f32.mrf.mxu1 }
 0x126   : > { %1933 = vmatmul.msk.bf16.gmra.mxu3 %vm615_vm1, %v1929_v2  ;;  %v1996_v2 = vld [vmem:[%s2470_s6 + $0x190] sm:$0xf] }
 0x127   : > { %1139 = vmatmul.bf16.gmra.mxu1 %v1925_v4  ;;  %v2134_v4 = vld [vmem:[%s2470_s6 + $0x194] sm:$0xf0] }
 0x128   : > { %v768_v25 = vpop.f32.mrf.mxu2  ;;  %v656_v28 = vpop.f32.mrf.mxu0  ;;  %v1997_v16 = vor.u32 %v2134_v4, %v1996_v2 }
 0x129   : > { %v2720_v27 = vadd.f32 %v797_v1, %v768_v25  ;;  %v2722_v30 = vadd.f32 %v685_v19, %v656_v28  ;;  %v800_v5 = vpop.f32.mrf.mxu3  ;;  %v1998_v1 = vld [vmem:[%s2470_s6 + $0x198] sm:$0xf0] }
 0x12a   : > { %v2001_v63 = vor.u32 %v2133_v61, %v1998_v1  ;;  %v2042_v28 = vld [vmem:[%s2470_s6 + $0x1d8] sm:$0xf0] }
 0x12b   : > { %v810_v0 = vmax.f32 %v2709_v59, %v2720_v27  ;;  %1262 = vmatmul.bf16.gmra.mxu0 %v1969_v26  ;;  %v687_v31 = vpop.f32.mrf.mxu1  ;;  %v2141_v26 = vld [vmem:[%s2470_s6 + $0x1d4] sm:$0xf] }
 0x12d   : > { %1977 = vmatmul.msk.bf16.gmra.mxu2 %vm615_vm1, %v1973_v29 }
 0x130   : > { %v771_v32 = vpop.f32.mrf.mxu2  ;;  %v658_v3 = vpop.f32.mrf.mxu0 }
 0x131   : > { %v2727_v34 = vadd.f32 %v800_v5, %v771_v32  ;;  %v2731_v10 = vadd.f32 %v687_v31, %v658_v3  ;;  %v802_v38 = vpop.f32.mrf.mxu3  ;;  %v2045_v3 = vor.u32 %v2141_v26, %v2042_v28 }
 0x133   : > { %v811_v36 = vmax.f32 %v2722_v30, %v2727_v34  ;;  %v879_v41 = vpop.f32.mrf.mxu1 }
 0x136   : > { %2018 = vmatmul.msk.bf16.vlgmr.msrb.gmra.mxu3 %vm615_vm1, %v1993_v13  ;;  %v2135_v13 = vld [vmem:[%s2470_s6 + $0x1a4] sm:$0xf] }
 0x137   : > { %1370 = vmatmul.bf16.vlgmr.msrb.gmra.mxu1 %v1989_v39  ;;  %v2006_v39 = vld [vmem:[%s2470_s6 + $0x1a8] sm:$0xf0] }
 0x138   : > { %v773_v44 = vpop.f32.mrf.mxu2  ;;  %v1002_v47 = vpop.f32.mrf.mxu0  ;;  %v2009_v6 = vor.u32 %v2135_v13, %v2006_v39 }
 0x139   : > { %v2742_v46 = vadd.f32 %v802_v38, %v773_v44  ;;  %v908_v52 = vpop.f32.mrf.mxu3  ;;  %v2144_v44 = vld [vmem:[%s2470_s6 + $0x1e4] sm:$0xf0] }
 0x13a   : > { %v909_v53 = vadd.f32 %v908_v52, %v879_v41  ;;  %v2050_v52 = vld [vmem:[%s2470_s6 + $0x1e8] sm:$0xf0] }
 0x13b   : > { %v812_v49 = vmax.f32 %v2731_v10, %v2742_v46  ;;  %1493 = vmatmul.bf16.vlgmr.msrb.gmra.mxu0 %v2033_v45  ;;  %v881_v56 = vpop.f32.mrf.mxu1 }
 0x13c   : > { %v2750_v54 = vmax.f32 %v805_v24, %v909_v53  ;;  %v2040_v24 = vld [vmem:[%s2470_s6 + $0x1d0] sm:$0xf] }
 0x13d   : > { %2062 = vmatmul.msk.bf16.vlgmr.msrb.gmra.mxu2 %vm615_vm1, %v2037_v48  ;;  %v2041_v5 = vor.u32 %v2142_v21, %v2040_v24  ;;  %v2143_v48 = vld [vmem:[%s2470_s6 + $0x1e4] sm:$0xf]  ;;  %v2012_v24 = vld [vmem:[%s2470_s6 + $0x1b0] sm:$0xf]  ;;  %v2138_v21 = vld [vmem:[%s2470_s6 + $0x1b4] sm:$0xf0] }
 0x13e   : > { %v2053_v61 = vor.u32 %v2143_v48, %v2050_v52  ;;  %v2013_v55 = vor.u32 %v2138_v21, %v2012_v24 }
 0x140   : > { %v1031_v57 = vpop.f32.mrf.mxu2  ;;  %v1004_v60 = vpop.f32.mrf.mxu0 }
 0x141   : > { %v2752_v58 = vadd.f32 %v1031_v57, %v1002_v47  ;;  %v910_v18 = vpop.f32.mrf.mxu3 }
 0x142   : > { %v911_v19 = vadd.f32 %v910_v18, %v881_v56 }
 0x143   : > { %v1051_v17 = vmax.f32 %v2750_v54, %v2752_v58 }
 0x144   : > { %v2765_v23 = vmax.f32 %v806_v7, %v911_v19  ;;  %v884_v25 = vpop.f32.mrf.mxu1 }
 0x146   : > { %2019 = vmatmul.msk.bf16.gmra.mxu3 %vm615_vm1, %v2001_v63  ;;  %v2137_v63 = vld [vmem:[%s2470_s6 + $0x1b4] sm:$0xf] }
 0x147   : > { %1375 = vmatmul.bf16.gmra.mxu1 %v1997_v16  ;;  %v2014_v16 = vld [vmem:[%s2470_s6 + $0x1b8] sm:$0xf0] }
 0x148   : > { %v1033_v29 = vpop.f32.mrf.mxu2  ;;  %v1007_v32 = vpop.f32.mrf.mxu0  ;;  %v2017_v50 = vor.u32 %v2137_v63, %v2014_v16 }
 0x149   : > { %v2770_v31 = vadd.f32 %v1033_v29, %v1004_v60  ;;  %v913_v33 = vpop.f32.mrf.mxu3  ;;  %v2146_v29 = vld [vmem:[%s2470_s6 + $0x1f4] sm:$0xf0] }
 0x14a   : > { %v914_v7 = vadd.f32 %v913_v33, %v884_v25  ;;  %v2058_v33 = vld [vmem:[%s2470_s6 + $0x1f8] sm:$0xf0] }
 0x14b   : > { %v1052_v20 = vmax.f32 %v2765_v23, %v2770_v31  ;;  %1498 = vmatmul.bf16.gmra.mxu0 %v2041_v5 }
 0x14c   : > { %v2778_v8 = vmax.f32 %v807_v14, %v914_v7  ;;  %v886_v9 = vpop.f32.mrf.mxu1  ;;  %v2048_v14 = vld [vmem:[%s2470_s6 + $0x1e0] sm:$0xf] }
 0x14d   : > { %2063 = vmatmul.msk.bf16.gmra.mxu2 %vm615_vm1, %v2045_v3  ;;  %v2049_v56 = vor.u32 %v2144_v44, %v2048_v14  ;;  %v2145_v3 = vld [vmem:[%s2470_s6 + $0x1f4] sm:$0xf] }
 0x14e   : > { %v2061_v13 = vor.u32 %v2145_v3, %v2058_v33 }
 0x150   : > { %v1036_v35 = vpop.f32.mrf.mxu2  ;;  %v1009_v38 = vpop.f32.mrf.mxu0 }
 0x151   : > { %v2780_v12 = vadd.f32 %v1036_v35, %v1007_v32  ;;  %v915_v42 = vpop.f32.mrf.mxu3 }
 0x152   : > { %v916_v43 = vadd.f32 %v915_v42, %v886_v9 }
 0x154   : > { %v2793_v45 = vmax.f32 %v808_v51, %v916_v43  ;;  %v889_v47 = vpop.f32.mrf.mxu1 }
 0x156   : > { %2020 = vmatmul.msk.bf16.gmra.mxu3 %vm615_vm1, %v2009_v6 }
 0x157   : > { %1380 = vmatmul.bf16.gmra.mxu1 %v2005_v11 }
 0x158   : > { %v1038_v53 = vpop.f32.mrf.mxu2  ;;  %v1012_v60 = vpop.f32.mrf.mxu0 }
 0x159   : > { %v2798_v57 = vadd.f32 %v1038_v53, %v1009_v38  ;;  %v918_v22 = vpop.f32.mrf.mxu3 }
 0x15a   : > { %v919_v51 = vadd.f32 %v918_v22, %v889_v47 }
 0x15b   : > { %1503 = vmatmul.bf16.gmra.mxu0 %v2049_v56 }
 0x15c   : > { %v2806_v1 = vmax.f32 %v809_v62, %v919_v51  ;;  %v891_v2 = vpop.f32.mrf.mxu1  ;;  %v2056_v62 = vld [vmem:[%s2470_s6 + $0x1f0] sm:$0xf] }
 0x15d   : > { %2064 = vmatmul.msk.bf16.gmra.mxu2 %vm615_vm1, %v2053_v61  ;;  %v2057_v9 = vor.u32 %v2146_v29, %v2056_v62 }
 0x160   : > { %v1041_v4 = vpop.f32.mrf.mxu2  ;;  %v1014_v19 = vpop.f32.mrf.mxu0 }
 0x161   : > { %v2808_v18 = vadd.f32 %v1041_v4, %v1012_v60  ;;  %v920_v26 = vpop.f32.mrf.mxu3 }
 0x162   : > { %v921_v28 = vadd.f32 %v920_v26, %v891_v2 }
 0x164   : > { %v2821_v5 = vmax.f32 %v810_v0, %v921_v28  ;;  %v894_v32 = vpop.f32.mrf.mxu1 }
 0x166   : > { %2021 = vmatmul.msk.bf16.gmra.mxu3 %vm615_vm1, %v2017_v50 }
 0x167   : > { %1385 = vmatmul.bf16.gmra.mxu1 %v2013_v55 }
 0x168   : > { %v1043_v7 = vpop.f32.mrf.mxu2  ;;  %v1017_v38 = vpop.f32.mrf.mxu0 }
 0x169   : > { %v2826_v35 = vadd.f32 %v1043_v7, %v1014_v19  ;;  %v923_v15 = vpop.f32.mrf.mxu3 }
 0x16a   : > { %v924_v40 = vadd.f32 %v923_v15, %v894_v32 }
 0x16b   : > { %1508 = vmatmul.bf16.gmra.mxu0 %v2057_v9 }
 0x16c   : > { %v2834_v59 = vmax.f32 %v811_v36, %v924_v40  ;;  %v896_v27 = vpop.f32.mrf.mxu1 }
 0x16d   : > { %2065 = vmatmul.msk.bf16.gmra.mxu2 %vm615_vm1, %v2061_v13 }
 0x170   : > { %v1046_v0 = vpop.f32.mrf.mxu2  ;;  %v1019_v43 = vpop.f32.mrf.mxu0 }
 0x171   : > { %v2836_v42 = vadd.f32 %v1046_v0, %v1017_v38  ;;  %v925_v11 = vpop.f32.mrf.mxu3 }
 0x172   : > { %v926_v14 = vadd.f32 %v925_v11, %v896_v27 }
 0x174   : > { %v2843_v44 = vmax.f32 %v812_v49, %v926_v14  ;;  %v1125_v47 = vpop.f32.mrf.mxu1 }
 0x178   : > { %v1048_v48 = vpop.f32.mrf.mxu2  ;;  %v1248_v34 = vpop.f32.mrf.mxu0 }
 0x179   : > { %v2845_v30 = vadd.f32 %v1048_v48, %v1019_v43  ;;  %v1154_v52 = vpop.f32.mrf.mxu3 }
 0x17a   : > { %v1155_v40 = vadd.f32 %v1154_v52, %v1125_v47  ;;  %v2897_v47 = vld [vmem:[%s2981_s2] ss:$0 sm:$0xff] }
 0x17c   : > { %v1127_v53 = vpop.f32.mrf.mxu1  ;;  %v1174_v11 = vmax.f32 %v1051_v17, %v1155_v40 }
 0x180   : > { %v1277_v56 = vpop.f32.mrf.mxu2  ;;  %v1250_v60 = vpop.f32.mrf.mxu0 }
 0x181   : > { %v1156_v61 = vpop.f32.mrf.mxu3  ;;  %v1278_v0 = vadd.f32 %v1277_v56, %v1248_v34 }
 0x182   : > { %v1157_v39 = vadd.f32 %v1156_v61, %v1127_v53 }
 0x183   : > { %v1297_v36 = vmax.f32 %v1174_v11, %v1278_v0 }
 0x184   : > { %v1130_v22 = vpop.f32.mrf.mxu1  ;;  %v1175_v54 = vmax.f32 %v1052_v20, %v1157_v39 }
 0x188   : > { %v1279_v51 = vpop.f32.mrf.mxu2  ;;  %v1253_v2 = vpop.f32.mrf.mxu0 }
 0x189   : > { %v1159_v4 = vpop.f32.mrf.mxu3  ;;  %v1280_v52 = vadd.f32 %v1279_v51, %v1250_v60  ;;  %v2983_v51 = vmax.f32 %v2778_v8, %v2780_v12 }
 0x18c   : > { %v2849_v10 = vpop.f32.mrf.mxu1 }
 0x190   : > { %v1282_v46 = vpop.f32.mrf.mxu2  ;;  %v2851_v49 = vpop.f32.mrf.mxu0 }
 0x191   : > { %v2853_v19 = vpop.f32.mrf.mxu3  ;;  %v1283_v20 = vadd.f32 %v1282_v46, %v1253_v2 }
 0x192   : > { %v1162_v11 = vadd.f32 %v2853_v19, %v2849_v10 }
 0x194   : > { %v2855_v63 = vpop.f32.mrf.mxu1 }
 0x198   : > { %v2857_v16 = vpop.f32.mrf.mxu2  ;;  %v2859_v24 = vpop.f32.mrf.mxu0 }
 0x199   : > { %v2861_v21 = vpop.f32.mrf.mxu3  ;;  %v1285_v8 = vadd.f32 %v2857_v16, %v2851_v49 }
 0x19c   : > { %v2863_v26 = vpop.f32.mrf.mxu1 }
 0x1a0   : > { %v2865_v28 = vpop.f32.mrf.mxu2  ;;  %v2867_v50 = vpop.f32.mrf.mxu0 }
 0x1a1   : > { %v2869_v55 = vpop.f32.mrf.mxu3 }
 0x1a4   : > { %v2871_v62 = vpop.f32.mrf.mxu1 }
 0x1a8   : > { %v2873_v29 = vpop.f32.mrf.mxu2  ;;  %v2875_v32 = vpop.f32.mrf.mxu0 }
 0x1a9   : > { %v2877_v3 = vpop.f32.mrf.mxu3 }
 0x1ac   : > { %v2879_v33 = vpop.f32.mrf.mxu1 }
 0x1b0   : > { %v2881_v7 = vpop.f32.mrf.mxu2  ;;  %v2883_v9 = vpop.f32.mrf.mxu0 }
 0x1b1   : > { %v2885_v38 = vpop.f32.mrf.mxu3 }
 0x1b4   : > { %v1371_v13 = vpop.f32.mrf.mxu1 }
 0x1b8   : > { %v2887_v15 = vpop.f32.mrf.mxu2  ;;  %v1494_v27 = vpop.f32.mrf.mxu0 }
 0x1b9   : > { %v1400_v43 = vpop.f32.mrf.mxu3 }
 0x1ba   : > { %v1401_v14 = vadd.f32 %v1400_v43, %v1371_v13 }
 0x1bc   : > { %v1373_v48 = vpop.f32.mrf.mxu1  ;;  %v1420_v25 = vmax.f32 %v1297_v36, %v1401_v14  ;;  %v1298_v36 = vmax.f32 %v1175_v54, %v1280_v52  ;;  %v2984_v52 = vmax.f32 %v2793_v45, %v2798_v57  ;;  %v1288_v45 = vadd.f32 %v2865_v28, %v2859_v24 }
 0x1c0   : > { %v1523_v6 = vpop.f32.mrf.mxu2  ;;  %v1496_v34 = vpop.f32.mrf.mxu0 }
 0x1c1   : > { %v1524_v37 = vadd.f32 %v1523_v6, %v1494_v27  ;;  %v1402_v41 = vpop.f32.mrf.mxu3 }
 0x1c2   : > { %v1403_v17 = vadd.f32 %v1402_v41, %v1373_v48 }
 0x1c3   : > { %v1543_v56 = vmax.f32 %v1420_v25, %v1524_v37  ;;  %v1160_v25 = vadd.f32 %v1159_v4, %v1130_v22 }
 0x1c4   : > { %v1376_v53 = vpop.f32.mrf.mxu1  ;;  %v1421_v61 = vmax.f32 %v1298_v36, %v1403_v17  ;;  %v1165_v36 = vadd.f32 %v2861_v21, %v2855_v63 }
 0x1c5   : > { %v1555_v58 = vadd.f32 %v2897_v47, %v1543_v56  ;;  %v1176_v13 = vmax.f32 %v2983_v51, %v1160_v25  ;;  %v1177_v56 = vmax.f32 %v2984_v52, %v1162_v11  ;;  %v1170_v11 = vadd.f32 %v2877_v3, %v2871_v62 }
 0x1c7   : > { %vm1563_vm2 = vcmp.gt.f32.partialorder %v1555_v58, 0.0  ;;  %v1571_v6 = vmul.f32 0.3, %v1555_v58  ;;  %v1299_v43 = vmax.f32 %v1176_v13, %v1283_v20  ;;  %v1300_v19 = vmax.f32 %v1177_v56, %v1285_v8 }
 0x1c8   : > { %v1525_v37 = vpop.f32.mrf.mxu2  ;;  %v1499_v31 = vpop.f32.mrf.mxu0 }
 0x1c9   : > { %v1579_v60 = vsel %vm1563_vm2, %v1555_v58, %v1571_v6  ;;  %v1526_v23 = vadd.f32 %v1525_v37, %v1496_v34  ;;  %v1405_v39 = vpop.f32.mrf.mxu3 }
 0x1ca   : > { %1588 = vst.msk [vmem:[%s2906_s18] sm:$0xff] %vm1587_vm3, %v1579_v60  ;;  %v1406_v27 = vadd.f32 %v1405_v39, %v1376_v53  ;;  %v2985_v60 = vmax.f32 %v2806_v1, %v2808_v18  ;;  %v1167_v39 = vadd.f32 %v2869_v55, %v2863_v26  ;;  %v1290_v1 = vadd.f32 %v2873_v29, %v2867_v50 }
 0x1cb   : > { %v1544_v41 = vmax.f32 %v1421_v61, %v1526_v23 }
 0x1cc   : > { %v1378_v0 = vpop.f32.mrf.mxu1  ;;  %v1422_v2 = vmax.f32 %v1299_v43, %v1406_v27  ;;  %v1178_v61 = vmax.f32 %v2985_v60, %v1165_v36  ;;  %v2986_v27 = vmax.f32 %v2821_v5, %v2826_v35  ;;  %v1293_v5 = vadd.f32 %v2881_v7, %v2875_v32 }
 0x1cd   : > { %v1556_v40 = vadd.f32 %v2897_v47, %v1544_v41 }
 0x1ce   : > { %v1301_v63 = vmax.f32 %v1178_v61, %v1288_v45 }
 0x1cf   : > { %vm1564_vm4 = vcmp.gt.f32.partialorder %v1556_v40, 0.0  ;;  %v1572_v22 = vmul.f32 0.3, %v1556_v40 }
 0x1d0   : > { %v1528_v4 = vpop.f32.mrf.mxu2  ;;  %v1501_v48 = vpop.f32.mrf.mxu0 }
 0x1d1   : > { %v1580_v14 = vsel %vm1564_vm4, %v1556_v40, %v1572_v22  ;;  %v1529_v46 = vadd.f32 %v1528_v4, %v1499_v31  ;;  %v1407_v34 = vpop.f32.mrf.mxu3 }
 0x1d2   : > { %1589 = vst.msk [vmem:[%s2906_s18 + $0x8] sm:$0xff] %vm1587_vm3, %v1580_v14  ;;  %v1408_v58 = vadd.f32 %v1407_v34, %v1378_v0  ;;  %v1179_v0 = vmax.f32 %v2986_v27, %v1167_v39 }
 0x1d3   : > { %v1545_v12 = vmax.f32 %v1422_v2, %v1529_v46 }
 0x1d4   : > { %v1381_v10 = vpop.f32.mrf.mxu1  ;;  %v1423_v37 = vmax.f32 %v1300_v19, %v1408_v58  ;;  %v1302_v26 = vmax.f32 %v1179_v0, %v1290_v1 }
 0x1d5   : > { %v1557_v54 = vadd.f32 %v2897_v47, %v1545_v12 }
 0x1d7   : > { %vm1565_vm5 = vcmp.gt.f32.partialorder %v1557_v54, 0.0  ;;  %v1573_v17 = vmul.f32 0.3, %v1557_v54 }
 0x1d8   : > { %v1530_v53 = vpop.f32.mrf.mxu2  ;;  %v1504_v16 = vpop.f32.mrf.mxu0 }
 0x1d9   : > { %v1581_v6 = vsel %vm1565_vm5, %v1557_v54, %v1573_v17  ;;  %v1531_v49 = vadd.f32 %v1530_v53, %v1501_v48  ;;  %v1410_v25 = vpop.f32.mrf.mxu3  ;;  %v2987_v48 = vmax.f32 %v2834_v59, %v2836_v42  ;;  %v1172_v54 = vadd.f32 %v2885_v38, %v2879_v33 }
 0x1da   : > { %1590 = vst.msk [vmem:[%s2906_s18 + $0x10] sm:$0xff] %vm1587_vm3, %v1581_v6  ;;  %v1411_v31 = vadd.f32 %v1410_v25, %v1381_v10  ;;  %v1295_v59 = vadd.f32 %v2887_v15, %v2883_v9  ;;  %v2988_v17 = vmax.f32 %v2843_v44, %v2845_v30 }
 0x1db   : > { %v1546_v57 = vmax.f32 %v1423_v37, %v1531_v49  ;;  %v1180_v8 = vmax.f32 %v2987_v48, %v1170_v11 }
 0x1dc   : > { %v1383_v20 = vpop.f32.mrf.mxu1  ;;  %v1424_v13 = vmax.f32 %v1301_v63, %v1411_v31  ;;  %v1181_v53 = vmax.f32 %v2988_v17, %v1172_v54 }
 0x1dd   : > { %v1558_v23 = vadd.f32 %v2897_v47, %v1546_v57  ;;  %v1303_v3 = vmax.f32 %v1180_v8, %v1293_v5 }
 0x1de   : > { %v1304_v38 = vmax.f32 %v1181_v53, %v1295_v59 }
 0x1df   : > { %vm1566_vm6 = vcmp.gt.f32.partialorder %v1558_v23, 0.0  ;;  %v1574_v21 = vmul.f32 0.3, %v1558_v23 }
 0x1e0   : > { %v1533_v41 = vpop.f32.mrf.mxu2  ;;  %v1506_v40 = vpop.f32.mrf.mxu0 }
 0x1e1   : > { %v1582_v51 = vsel %vm1566_vm6, %v1558_v23, %v1574_v21  ;;  %v1534_v24 = vadd.f32 %v1533_v41, %v1504_v16  ;;  %v1412_v28 = vpop.f32.mrf.mxu3 }
 0x1e2   : > { %1591 = vst.msk [vmem:[%s2906_s18 + $0x18] sm:$0xff] %vm1587_vm3, %v1582_v51  ;;  %v1413_v22 = vadd.f32 %v1412_v28, %v1383_v20 }
 0x1e3   : > { %v1547_v18 = vmax.f32 %v1424_v13, %v1534_v24 }
 0x1e4   : > { %v1425_v2 = vmax.f32 %v1302_v26, %v1413_v22  ;;  %v1386_v29 = vpop.f32.mrf.mxu1 }
 0x1e5   : > { %v1559_v43 = vadd.f32 %v2897_v47, %v1547_v18 }
 0x1e7   : > { %vm1567_vm7 = vcmp.gt.f32.partialorder %v1559_v43, 0.0  ;;  %v1575_v55 = vmul.f32 0.3, %v1559_v43 }
 0x1e8   : > { %v1535_v4 = vpop.f32.mrf.mxu2  ;;  %v1509_v62 = vpop.f32.mrf.mxu0 }
 0x1e9   : > { %v1583_v14 = vsel %vm1567_vm7, %v1559_v43, %v1575_v55  ;;  %v1536_v50 = vadd.f32 %v1535_v4, %v1506_v40  ;;  %v1415_v46 = vpop.f32.mrf.mxu3 }
 0x1ea   : > { %1592 = vst.msk [vmem:[%s2906_s18 + $0x20] sm:$0xff] %vm1587_vm3, %v1583_v14  ;;  %v1416_v34 = vadd.f32 %v1415_v46, %v1386_v29 }
 0x1eb   : > { %v1548_v35 = vmax.f32 %v1425_v2, %v1536_v50 }
 0x1ec   : > { %v1426_v10 = vmax.f32 %v1303_v3, %v1416_v34  ;;  %v1388_v19 = vpop.f32.mrf.mxu1 }
 0x1ed   : > { %v1560_v12 = vadd.f32 %v2897_v47, %v1548_v35 }
 0x1ef   : > { %vm1568_vm8 = vcmp.gt.f32.partialorder %v1560_v12, 0.0  ;;  %v1576_v52 = vmul.f32 0.3, %v1560_v12 }
 0x1f0   : > { %v1538_v56 = vpop.f32.mrf.mxu2  ;;  %v1511_v37 = vpop.f32.mrf.mxu0 }
 0x1f1   : > { %v1584_v58 = vsel %vm1568_vm8, %v1560_v12, %v1576_v52  ;;  %v1539_v32 = vadd.f32 %v1538_v56, %v1509_v62  ;;  %v1417_v7 = vpop.f32.mrf.mxu3 }
 0x1f2   : > { %1593 = vst.msk [vmem:[%s2906_s18 + $0x28] sm:$0xff] %vm1587_vm3, %v1584_v58  ;;  %v1418_v33 = vadd.f32 %v1417_v7, %v1388_v19 }
 0x1f3   : > { %v1549_v42 = vmax.f32 %v1426_v10, %v1539_v32 }
 0x1f4   : > { %v1427_v45 = vmax.f32 %v1304_v38, %v1418_v33 }
 0x1f5   : > { %v1561_v36 = vadd.f32 %v2897_v47, %v1549_v42 }
 0x1f7   : > { %vm1569_vm9 = vcmp.gt.f32.partialorder %v1561_v36, 0.0  ;;  %v1577_v6 = vmul.f32 0.3, %v1561_v36 }
 0x1f8   : > { %v1540_v49 = vpop.f32.mrf.mxu2 }
 0x1f9   : > { %v1585_v16 = vsel %vm1569_vm9, %v1561_v36, %v1577_v6  ;;  %v1541_v57 = vadd.f32 %v1540_v49, %v1511_v37 }
 0x1fa   : > { %1594 = vst.msk [vmem:[%s2906_s18 + $0x30] sm:$0xff] %vm1587_vm3, %v1585_v16 }
 0x1fb   : > { %v1550_v9 = vmax.f32 %v1427_v45, %v1541_v57 }
 0x1fd   : > { %v1562_v15 = vadd.f32 %v2897_v47, %v1550_v9 }
 0x1ff   : > { %vm1570_vm10 = vcmp.gt.f32.partialorder %v1562_v15, 0.0  ;;  %v1578_v44 = vmul.f32 0.3, %v1562_v15 }
 0x201   : > { %v1586_v30 = vsel %vm1570_vm10, %v1562_v15, %v1578_v44 }
 0x202   : > { %1595 = vst.msk [vmem:[%s2906_s18 + $0x38] sm:$0xff] %vm1587_vm3, %v1586_v30 }
 0x203 PF: > { %p10_p9 = scmp.ge.s32.totalorder %s2233_s16, 4   ;;  %s2989_s12 = smov %s2190_s13 }
 0x204   : > { %s2990_s13 = smov %s2242_s19  ;;  %s2991_s14 = smov %s2233_s16 }
 0x205   :  { %12 = sbr.rel (!%p10_p9) target bundleno = 2 (0x2), region = 112 }

// kernel: cosmoflow_forward.6
= control target key start
LH: loop header
LB: loop body
LE: loop exit
PB: predicated region body
PF: predicated region fallthrough
CT: control target
= control target key end

     0   :  { %s1319_s12 = smov 0   ;;  %s1321_s13 = smov 0   ;;  %s1774_s0 = inlined_call_operand.vmem [shape: bf16[8,16,432], index: 0, kind: input, shape index: {}]   ;;  %s1775_s1 = inlined_call_operand.vmem [shape: bf16[432,32], index: 1, kind: input, shape index: {}]   ;;  %s1776_s2 = inlined_call_operand.vmem [shape: f32[1,32], index: 2, kind: input, shape index: {}]   ;;  %s1777_s3 = inlined_call_operand.vmem [shape: f32[16,32], index: 3, kind: output, shape index: {}]  }
   0x1   :  { %s1323_s14 = smov 0  }
   0x2 LB: > { %s1080_s15 = sadd.s32 4294967295, %s1297_s14   ;;  %s1336_s16 = sadd.s32 1, %s1297_s14   ;;  %s1297_s14 = sphi %s1323_s14, %s1780_s14   ;;  %s1293_s13 = sphi %s1321_s13, %s1779_s13   ;;  %s1289_s12 = sphi %s1319_s12, %s1778_s12  }
   0x3   : > { %s17_s17 = ssub.s32 %s1297_s14, %s1336_s16  ;;  %s20_s18 = sadd.s32 1, %s1293_s13 }
   0x4   : > { %p18_p0 = scmp.eq.s32.totalorder %s17_s17, 0  ;;  %p27_p1 = scmp.ne.s32.totalorder %s1293_s13, %s1289_s12 }
   0x5   : > { %p28_p2 = scmp.eq.s32.totalorder %s1297_s14, 0  ;;  %p1083_p4 = scmp.ge.s32.totalorder %s1297_s14, 2 }
   0x6   : > { %s1345_s19 = scalar_select %p18_p0, %s1293_s13, %s20_s18  }
   0x7   : > { %p29_p3 = por %p28_p2, %p27_p1  ;;  %127 = sbr.rel (%p1083_p4) target bundleno = 32 (0x20), region = 24 }
   0xc   : > { %130 = sbr.rel (!%p29_p3) target bundleno = 32 (0x20), region = 28  ;;  %s132_s20 = sand.u32 (%p29_p3), 1, %s1293_s13  }
   0xd   : > { %s1222_s21 = sshll.u32 (%p29_p3), %s1297_s14, 4  ;;  %s1084_s22 = sshll.u32 (%p29_p3), %s132_s20, 7 }
   0xe   : > { %s1353_s25 = scalar_lea.vmem (%p29_p3), %s1774_s0, %s1222_s21  ;;  %s134_s26 = scalar_lea.vmem (%p29_p3), [#allocation2], %s1084_s22 }
   0xf   : > { %v150_v0 = vld [vmem:[%s1353_s25] sm:$0xff] (%p29_p3)  ;;  %v152_v1 = vld [vmem:[%s1353_s25 + $0x8] sm:$0xff] (%p29_p3) }
  0x10   : > { %v154_v2 = vld [vmem:[%s1353_s25 + $0x20] sm:$0xff] (%p29_p3)  ;;  %151 = vst [vmem:[%s134_s26] sm:$0xff] (%p29_p3), %v150_v0  ;;  %v156_v3 = vld [vmem:[%s1353_s25 + $0x28] sm:$0xff] (%p29_p3) }
  0x11   : > { %153 = vst [vmem:[%s134_s26 + $0x8] sm:$0xff] %v152_v1  ;;  %v158_v4 = vld [vmem:[%s1353_s25 + $0x40] sm:$0xff]  ;;  %v160_v5 = vld [vmem:[%s1353_s25 + $0x48] sm:$0xff] }
  0x12   : > { %155 = vst [vmem:[%s134_s26 + $0x10] sm:$0xff] %v154_v2  ;;  %v162_v6 = vld [vmem:[%s1353_s25 + $0x60] sm:$0xff]  ;;  %v164_v7 = vld [vmem:[%s1353_s25 + $0x68] sm:$0xff] }
  0x13   : > { %157 = vst [vmem:[%s134_s26 + $0x18] sm:$0xff] %v156_v3  ;;  %v166_v8 = vld [vmem:[%s1353_s25 + $0x80] sm:$0xff]  ;;  %v168_v9 = vld [vmem:[%s1353_s25 + $0x88] sm:$0xff] }
  0x14   : > { %159 = vst [vmem:[%s134_s26 + $0x20] sm:$0xff] %v158_v4  ;;  %v170_v10 = vld [vmem:[%s1353_s25 + $0xa0] sm:$0xff]  ;;  %v172_v11 = vld [vmem:[%s1353_s25 + $0xa8] sm:$0xff] }
  0x15   : > { %161 = vst [vmem:[%s134_s26 + $0x28] sm:$0xff] %v160_v5  ;;  %v174_v12 = vld [vmem:[%s1353_s25 + $0xc0] sm:$0xff]  ;;  %v176_v13 = vld [vmem:[%s1353_s25 + $0xc8] sm:$0xff] }
  0x16   : > { %163 = vst [vmem:[%s134_s26 + $0x30] sm:$0xff] %v162_v6  ;;  %v178_v14 = vld [vmem:[%s1353_s25 + $0xe0] sm:$0xff]  ;;  %v180_v15 = vld [vmem:[%s1353_s25 + $0xe8] sm:$0xff] }
  0x17   : > { %165 = vst [vmem:[%s134_s26 + $0x38] sm:$0xff] %v164_v7 }
  0x18   : > { %167 = vst [vmem:[%s134_s26 + $0x40] sm:$0xff] %v166_v8 }
  0x19   : > { %169 = vst [vmem:[%s134_s26 + $0x48] sm:$0xff] %v168_v9 }
  0x1a   : > { %171 = vst [vmem:[%s134_s26 + $0x50] sm:$0xff] %v170_v10 }
  0x1b   : > { %173 = vst [vmem:[%s134_s26 + $0x58] sm:$0xff] %v172_v11 }
  0x1c   : > { %175 = vst [vmem:[%s134_s26 + $0x60] sm:$0xff] %v174_v12 }
  0x1d   : > { %177 = vst [vmem:[%s134_s26 + $0x68] sm:$0xff] %v176_v13 }
  0x1e   : > { %179 = vst [vmem:[%s134_s26 + $0x70] sm:$0xff] %v178_v14 }
  0x1f   : > { %181 = vst [vmem:[%s134_s26 + $0x78] sm:$0xff] %v180_v15 }
  0x20 PF: > { %p1087_p5 = scmp.ge.s32.totalorder %s1297_s14, 1  ;;  %p186_p6 = scmp.lt.s32.totalorder %s1297_s14, 3 }
  0x22   : > { %p187_p7 = pnand %p1087_p5, %p186_p6 }
  0x23   : > { %s193_s6 = sand.u32 (!%p187_p7), 1, %s1289_s12   ;;  %p215_p8 = scmp.lt.s32.totalorder (!%p187_p7), %s1080_s15, 1 }
  0x24   : > { %190 = sbr.rel (%p187_p7) target bundleno = 403 (0x193), region = 51  ;;  %s1088_s22 = sshll.u32 (!%p187_p7), %s193_s6, 7 }
  0x25   : > { %s1442_s4 = scalar_lea.vmem (!%p187_p7), [#allocation2], %s1088_s22 }
  0x29   : > { %v1376_v16 = vld [vmem:[%s1775_s1 + $0x38] sm:$0xff]  ;;  %v1386_v18 = vld [vmem:[%s1775_s1 + $0xd0] sm:$0xff]  ;;  %v1411_v22 = vld [vmem:[%s1775_s1 + $0xc8] sm:$0xff]  ;;  %vm451_vm0 = vcmask 392192   ;;  %s1782_s15 = smov (!%p215_p8, %s1080_s15), 1  ;;  %vm1019_vm2 = vcmask 261120  }
  0x2a   : > { %v1381_v17 = vld [vmem:[%s1775_s1 + $0xb8] sm:$0xff]  ;;  %455 = vmatpush.bf16.msra.mxu0 %v1376_v16  ;;  %v1399_v20 = vld [vmem:[%s1775_s1 + $0x30] sm:$0xff]  ;;  %499 = vmatpush.bf16.msra.mxu3 %v1386_v18  ;;  %v1423_v24 = vld [vmem:[%s1775_s1 + $0x28] sm:$0xff]  ;;  %s1089_s20 = sshll.u32 %s1782_s15, 3 }
  0x2b   : > { %v1392_v19 = vld [vmem:[%s1775_s1 + $0x78] sm:$0xff]  ;;  %481 = vmatpush.bf16.msra.mxu2 %v1381_v17  ;;  %v1404_v21 = vld [vmem:[%s1775_s1 + $0xb0] sm:$0xff]  ;;  %v1428_v25 = vld [vmem:[%s1775_s1 + $0xa8] sm:$0xff]  ;;  %s218_s23 = scalar_lea.vmem %s1777_s3, %s1089_s20 }
  0x2c   : > { %468 = vmatpush.bf16.msra.mxu1 %v1392_v19  ;;  %v1416_v23 = vld [vmem:[%s1775_s1 + $0x70] sm:$0xff]  ;;  %v1435_v26 = vld [vmem:[%s1775_s1 + $0xc0] sm:$0xff]  ;;  %v1440_v27 = vld [vmem:[%s1775_s1 + $0x68] sm:$0xff] }
  0x2d   : > { %v275_v28 = vld [vmem:[%s1442_s4 + $0x8] sm:$0xff]  ;;  %v1450_v29 = vld [vmem:[%s1775_s1 + $0x20] sm:$0xff]  ;;  %v1470_v34 = vld [vmem:[%s1775_s1 + $0x18] sm:$0xff] }
  0x2e   : > { %456 = vmatpush.bf16.msra.mxu0 %v1399_v20  ;;  %500 = vmatpush.bf16.msra.mxu3 %v1411_v22  ;;  %v1455_v30 = vld [vmem:[%s1775_s1 + $0xa0] sm:$0xff]  ;;  %v281_v31 = vunpack.c.h.b16 %v275_v28  ;;  %v1475_v35 = vld [vmem:[%s1775_s1 + $0x98] sm:$0xff]  ;;  %v1490_v37 = vld [vmem:[%s1775_s1 + $0x10] sm:$0xff]  ;;  %v280_v44 = vunpack.c.l.b16 %v275_v28 }
  0x2f   : > { %482 = vmatpush.bf16.msra.mxu2 %v1404_v21  ;;  %v1462_v32 = vld [vmem:[%s1775_s1 + $0x60] sm:$0xff]  ;;  %v1481_v36 = vld [vmem:[%s1775_s1 + $0x58] sm:$0xff]  ;;  %v1495_v38 = vld [vmem:[%s1775_s1 + $0x90] sm:$0xff] }
  0x30   : > { %469 = vmatpush.bf16.msra.mxu1 %v1416_v23  ;;  %v285_v33 = vpack.c.b16 %v281_v31, %v281_v31  ;;  %v1501_v39 = vld [vmem:[%s1775_s1 + $0x50] sm:$0xff]  ;;  %v1509_v40 = vld [vmem:[%s1775_s1 + $0x8] sm:$0xff]  ;;  %v274_v43 = vld [vmem:[%s1442_s4] sm:$0xff]  ;;  %v284_v50 = vpack.c.b16 %v280_v44, %v280_v44 }
  0x31   : > { %v1514_v41 = vld [vmem:[%s1775_s1 + $0x88] sm:$0xff]  ;;  %v1529_v45 = vld [vmem:[%s1775_s1] sm:$0xff]  ;;  %v278_v47 = vunpack.c.l.b16 %v274_v43  ;;  %v279_v48 = vunpack.c.h.b16 %v274_v43  ;;  %v1199_v53 = vld [vmem:[%s1442_s4 + $0x10] sm:$0xff] }
  0x32   : > { %457 = vmatpush.bf16.msra.mxu0 %v1423_v24  ;;  %501 = vmatpush.bf16.msra.mxu3 %v1435_v26  ;;  %v1520_v42 = vld [vmem:[%s1775_s1 + $0x48] sm:$0xff]  ;;  %v1534_v46 = vld [vmem:[%s1775_s1 + $0x80] sm:$0xff]  ;;  %v512_v54 = vunpack.c.l.b16 %v1199_v53  ;;  %v1200_v56 = vld [vmem:[%s1442_s4 + $0x18] sm:$0xff]  ;;  %v513_v59 = vunpack.c.h.b16 %v1199_v53 }
  0x33   : > { %483 = vmatpush.bf16.msra.mxu2 %v1428_v25  ;;  %v1540_v49 = vld [vmem:[%s1775_s1 + $0x40] sm:$0xff]  ;;  %v282_v51 = vpack.c.b16 %v278_v47, %v278_v47  ;;  %v283_v52 = vpack.c.b16 %v279_v48, %v279_v48  ;;  %v515_v57 = vunpack.c.h.b16 %v1200_v56  ;;  %v514_v60 = vunpack.c.l.b16 %v1200_v56  ;;  %v1203_v4 = vld [vmem:[%s1442_s4 + $0x28] sm:$0xff]  ;;  %v1205_v9 = vld [vmem:[%s1442_s4 + $0x30] sm:$0xff] }
  0x34   : > { %470 = vmatpush.bf16.msra.mxu1 %v1440_v27  ;;  %v516_v55 = vpack.c.b16 %v512_v54, %v512_v54  ;;  %v517_v61 = vpack.c.b16 %v513_v59, %v513_v59  ;;  %v1202_v63 = vld [vmem:[%s1442_s4 + $0x20] sm:$0xff]  ;;  %v587_v5 = vunpack.c.h.b16 %v1203_v4  ;;  %v586_v7 = vunpack.c.l.b16 %v1203_v4  ;;  %v1206_v10 = vld [vmem:[%s1442_s4 + $0x38] sm:$0xff]  ;;  %v1209_v43 = vld [vmem:[%s1442_s4 + $0x48] sm:$0xff] }
  0x35   : > { %1198 = vmatmul.msk.bf16.vlgmr.msra.gmra.mxu3 %vm451_vm0, %v285_v33  ;;  %v519_v58 = vpack.c.b16 %v515_v57, %v515_v57  ;;  %v518_v62 = vpack.c.b16 %v514_v60, %v514_v60  ;;  %v584_v0 = vunpack.c.l.b16 %v1202_v63  ;;  %v585_v1 = vunpack.c.h.b16 %v1202_v63  ;;  %v1208_v48 = vld [vmem:[%s1442_s4 + $0x40] sm:$0xff]  ;;  %v1211_v56 = vld [vmem:[%s1442_s4 + $0x50] sm:$0xff]  ;;  %v1212_v59 = vld [vmem:[%s1442_s4 + $0x58] sm:$0xff] }
  0x36   : > { %526 = vmatpush.bf16.msrb.mxu3 %v1376_v16  ;;  %458 = vmatpush.bf16.msra.mxu0 %v1450_v29  ;;  %v591_v6 = vpack.c.b16 %v587_v5, %v587_v5  ;;  %v590_v8 = vpack.c.b16 %v586_v7, %v586_v7  ;;  %v656_v11 = vunpack.c.l.b16 %v1205_v9  ;;  %v658_v12 = vunpack.c.l.b16 %v1206_v10  ;;  %v1214_v7 = vld [vmem:[%s1442_s4 + $0x60] sm:$0xff] }
  0x37   : > { %484 = vmatpush.bf16.msra.mxu2 %v1455_v30  ;;  %v588_v2 = vpack.c.b16 %v584_v0, %v584_v0  ;;  %v589_v3 = vpack.c.b16 %v585_v1, %v585_v1  ;;  %v657_v13 = vunpack.c.h.b16 %v1205_v9  ;;  %v659_v31 = vunpack.c.h.b16 %v1206_v10 }
  0x38   : > { %471 = vmatpush.bf16.msra.mxu1 %v1462_v32  ;;  %v660_v14 = vpack.c.b16 %v656_v11, %v656_v11  ;;  %v662_v15 = vpack.c.b16 %v658_v12, %v658_v12  ;;  %v731_v44 = vunpack.c.h.b16 %v1209_v43  ;;  %v800_v57 = vunpack.c.l.b16 %v1211_v56  ;;  %v1215_v12 = vld [vmem:[%s1442_s4 + $0x68] sm:$0xff] }
  0x39   : > { %v661_v28 = vpack.c.b16 %v657_v13, %v657_v13  ;;  %v663_v33 = vpack.c.b16 %v659_v31, %v659_v31  ;;  %v803_v60 = vunpack.c.h.b16 %v1212_v59  ;;  %v801_v63 = vunpack.c.h.b16 %v1211_v56 }
  0x3a   : > { %527 = vmatpush.bf16.msrb.mxu3 %v1399_v20  ;;  %459 = vmatpush.bf16.msra.mxu0 %v1470_v34  ;;  %v735_v47 = vpack.c.b16 %v731_v44, %v731_v44  ;;  %v802_v0 = vunpack.c.l.b16 %v1212_v59  ;;  %v872_v9 = vunpack.c.l.b16 %v1214_v7 }
  0x3b   : > { %485 = vmatpush.bf16.msra.mxu2 %v1475_v35 }
  0x3c   : > { %472 = vmatpush.bf16.msra.mxu1 %v1481_v36  ;;  %v876_v31 = vpack.c.b16 %v872_v9, %v872_v9 }
  0x3e   : > { %528 = vmatpush.bf16.msrb.mxu3 %v1423_v24  ;;  %460 = vmatpush.bf16.msra.mxu0 %v1490_v37 }
  0x3f   : > { %486 = vmatpush.bf16.msra.mxu2 %v1495_v38 }
  0x40   : > { %473 = vmatpush.bf16.msra.mxu1 %v1501_v39 }
  0x42   : > { %529 = vmatpush.bf16.msrb.mxu3 %v1450_v29  ;;  %461 = vmatpush.bf16.msra.mxu0 %v1509_v40 }
  0x43   : > { %487 = vmatpush.bf16.msra.mxu2 %v1514_v41 }
  0x44   : > { %474 = vmatpush.bf16.msra.mxu1 %v1520_v42 }
  0x46   : > { %530 = vmatpush.bf16.msrb.mxu3 %v1470_v34  ;;  %462 = vmatpush.bf16.msra.mxu0 %v1529_v45 }
  0x47   : > { %488 = vmatpush.bf16.msra.mxu2 %v1534_v46 }
  0x48   : > { %475 = vmatpush.bf16.msra.mxu1 %v1540_v49 }
  0x49   : > { %463 = vmatmul.bf16.vlgmr.msra.gmra.mxu0 %v282_v51  ;;  %v729_v51 = vunpack.c.h.b16 %v1208_v48 }
  0x4a   : > { %539 = vmatpush.bf16.msrb.mxu0 %v1392_v19  ;;  %531 = vmatpush.bf16.msrb.mxu3 %v1490_v37 }
  0x4b   : > { %570 = vmatpush.bf16.msrb.mxu2 %v1386_v18  ;;  %476 = vmatmul.bf16.vlgmr.msra.gmra.mxu1 %v283_v52  ;;  %v730_v52 = vunpack.c.l.b16 %v1209_v43  ;;  %v733_v54 = vpack.c.b16 %v729_v51, %v729_v51 }
  0x4c   : > { %552 = vmatpush.bf16.msrb.mxu1 %v1381_v17  ;;  %489 = vmatmul.bf16.vlgmr.msra.gmra.mxu2 %v284_v50  ;;  %v728_v50 = vunpack.c.l.b16 %v1208_v48 }
  0x4e   : > { %540 = vmatpush.bf16.msrb.mxu0 %v1416_v23  ;;  %532 = vmatpush.bf16.msrb.mxu3 %v1509_v40  ;;  %v732_v53 = vpack.c.b16 %v728_v50, %v728_v50 }
  0x4f   : > { %571 = vmatpush.bf16.msrb.mxu2 %v1411_v22 }
  0x50   : > { %553 = vmatpush.bf16.msrb.mxu1 %v1404_v21 }
  0x52   : > { %541 = vmatpush.bf16.msrb.mxu0 %v1440_v27  ;;  %533 = vmatpush.bf16.msrb.mxu3 %v1529_v45 }
  0x53   : > { %572 = vmatpush.bf16.msrb.mxu2 %v1435_v26 }
  0x54   : > { %554 = vmatpush.bf16.msrb.mxu1 %v1428_v25 }
  0x55   : > { %534 = vmatmul.bf16.vlgmr.msrb.gmra.mxu3 %v516_v55  ;;  %v734_v55 = vpack.c.b16 %v730_v52, %v730_v52 }
  0x56   : > { %598 = vmatpush.bf16.msra.mxu3 %v1376_v16  ;;  %542 = vmatpush.bf16.msrb.mxu0 %v1462_v32 }
  0x57   : > { %611 = vmatpush.bf16.msra.mxu2 %v1392_v19 }
  0x58   : > { %555 = vmatpush.bf16.msrb.mxu1 %v1455_v30 }
  0x5a   : > { %599 = vmatpush.bf16.msra.mxu3 %v1399_v20  ;;  %543 = vmatpush.bf16.msrb.mxu0 %v1481_v36 }
  0x5b   : > { %612 = vmatpush.bf16.msra.mxu2 %v1416_v23 }
  0x5c   : > { %556 = vmatpush.bf16.msrb.mxu1 %v1475_v35  ;;  %1201 = vmatmul.msk.bf16.vlgmr.msrb.gmra.mxu2 %vm451_vm0, %v519_v58  ;;  %v804_v58 = vpack.c.b16 %v800_v57, %v800_v57 }
  0x5e   : > { %600 = vmatpush.bf16.msra.mxu3 %v1423_v24  ;;  %544 = vmatpush.bf16.msrb.mxu0 %v1501_v39 }
  0x5f   : > { %613 = vmatpush.bf16.msra.mxu2 %v1440_v27 }
  0x60   : > { %557 = vmatpush.bf16.msrb.mxu1 %v1495_v38 }
  0x62   : > { %601 = vmatpush.bf16.msra.mxu3 %v1450_v29  ;;  %545 = vmatpush.bf16.msrb.mxu0 %v1520_v42 }
  0x63   : > { %614 = vmatpush.bf16.msra.mxu2 %v1462_v32 }
  0x64   : > { %558 = vmatpush.bf16.msrb.mxu1 %v1514_v41 }
  0x66   : > { %602 = vmatpush.bf16.msra.mxu3 %v1470_v34  ;;  %546 = vmatpush.bf16.msrb.mxu0 %v1540_v49 }
  0x67   : > { %615 = vmatpush.bf16.msra.mxu2 %v1481_v36 }
  0x68   : > { %559 = vmatpush.bf16.msrb.mxu1 %v1534_v46 }
  0x69   : > { %547 = vmatmul.bf16.vlgmr.msrb.gmra.mxu0 %v517_v61  ;;  %v807_v61 = vpack.c.b16 %v803_v60, %v803_v60 }
  0x6a   : > { %624 = vmatpush.bf16.msra.mxu0 %v1381_v17  ;;  %603 = vmatpush.bf16.msra.mxu3 %v1490_v37 }
  0x6b   : > { %616 = vmatpush.bf16.msra.mxu2 %v1501_v39  ;;  %560 = vmatmul.bf16.vlgmr.msrb.gmra.mxu1 %v518_v62 }
  0x6c   : > { %642 = vmatpush.bf16.msra.mxu1 %v1386_v18 }
  0x6e   : > { %625 = vmatpush.bf16.msra.mxu0 %v1404_v21  ;;  %604 = vmatpush.bf16.msra.mxu3 %v1509_v40 }
  0x6f   : > { %617 = vmatpush.bf16.msra.mxu2 %v1520_v42 }
  0x70   : > { %643 = vmatpush.bf16.msra.mxu1 %v1411_v22 }
  0x72   : > { %626 = vmatpush.bf16.msra.mxu0 %v1428_v25  ;;  %605 = vmatpush.bf16.msra.mxu3 %v1529_v45 }
  0x73   : > { %618 = vmatpush.bf16.msra.mxu2 %v1540_v49 }
  0x74   : > { %644 = vmatpush.bf16.msra.mxu1 %v1435_v26 }
  0x75   : > { %606 = vmatmul.bf16.vlgmr.msra.gmra.mxu3 %v588_v2  ;;  %v805_v2 = vpack.c.b16 %v801_v63, %v801_v63 }
  0x76   : > { %670 = vmatpush.bf16.msrb.mxu3 %v1376_v16  ;;  %627 = vmatpush.bf16.msra.mxu0 %v1455_v30 }
  0x77   : > { %696 = vmatpush.bf16.msrb.mxu2 %v1381_v17 }
  0x78   : > { %683 = vmatpush.bf16.msrb.mxu1 %v1392_v19  ;;  %619 = vmatmul.bf16.vlgmr.msra.gmra.mxu2 %v589_v3  ;;  %v806_v3 = vpack.c.b16 %v802_v0, %v802_v0 }
  0x7a   : > { %671 = vmatpush.bf16.msrb.mxu3 %v1399_v20  ;;  %628 = vmatpush.bf16.msra.mxu0 %v1475_v35 }
  0x7b   : > { %697 = vmatpush.bf16.msrb.mxu2 %v1404_v21  ;;  %1204 = vmatmul.msk.bf16.vlgmr.msra.gmra.mxu1 %vm451_vm0, %v591_v6 }
  0x7c   : > { %684 = vmatpush.bf16.msrb.mxu1 %v1416_v23 }
  0x7e   : > { %672 = vmatpush.bf16.msrb.mxu3 %v1423_v24  ;;  %629 = vmatpush.bf16.msra.mxu0 %v1495_v38 }
  0x7f   : > { %698 = vmatpush.bf16.msrb.mxu2 %v1428_v25 }
  0x80   : > { %685 = vmatpush.bf16.msrb.mxu1 %v1440_v27 }
  0x82   : > { %673 = vmatpush.bf16.msrb.mxu3 %v1450_v29  ;;  %630 = vmatpush.bf16.msra.mxu0 %v1514_v41 }
  0x83   : > { %699 = vmatpush.bf16.msrb.mxu2 %v1455_v30 }
  0x84   : > { %686 = vmatpush.bf16.msrb.mxu1 %v1462_v32 }
  0x86   : > { %674 = vmatpush.bf16.msrb.mxu3 %v1470_v34  ;;  %631 = vmatpush.bf16.msra.mxu0 %v1534_v46 }
  0x87   : > { %700 = vmatpush.bf16.msrb.mxu2 %v1475_v35 }
  0x88   : > { %687 = vmatpush.bf16.msrb.mxu1 %v1481_v36 }
  0x89   : > { %632 = vmatmul.bf16.vlgmr.msra.gmra.mxu0 %v590_v8  ;;  %v873_v8 = vunpack.c.h.b16 %v1214_v7 }
  0x8a   : > { %714 = vmatpush.bf16.msrb.mxu0 %v1386_v18  ;;  %675 = vmatpush.bf16.msrb.mxu3 %v1490_v37 }
  0x8b   : > { %701 = vmatpush.bf16.msrb.mxu2 %v1495_v38 }
  0x8c   : > { %688 = vmatpush.bf16.msrb.mxu1 %v1501_v39 }
  0x8e   : > { %715 = vmatpush.bf16.msrb.mxu0 %v1411_v22  ;;  %676 = vmatpush.bf16.msrb.mxu3 %v1509_v40 }
  0x8f   : > { %702 = vmatpush.bf16.msrb.mxu2 %v1514_v41 }
  0x90   : > { %689 = vmatpush.bf16.msrb.mxu1 %v1520_v42 }
  0x92   : > { %716 = vmatpush.bf16.msrb.mxu0 %v1435_v26  ;;  %677 = vmatpush.bf16.msrb.mxu3 %v1529_v45 }
  0x93   : > { %703 = vmatpush.bf16.msrb.mxu2 %v1534_v46 }
  0x94   : > { %690 = vmatpush.bf16.msrb.mxu1 %v1540_v49 }
  0x95   : > { %678 = vmatmul.bf16.vlgmr.msrb.gmra.mxu3 %v660_v14  ;;  %v877_v14 = vpack.c.b16 %v873_v8, %v873_v8 }
  0x96   : > { %755 = vmatpush.bf16.msra.mxu0 %v1392_v19  ;;  %742 = vmatpush.bf16.msra.mxu3 %v1376_v16 }
  0x97   : > { %786 = vmatpush.bf16.msra.mxu2 %v1386_v18  ;;  %691 = vmatmul.bf16.vlgmr.msrb.gmra.mxu1 %v661_v28 }
  0x98   : > { %768 = vmatpush.bf16.msra.mxu1 %v1381_v17  ;;  %704 = vmatmul.bf16.vlgmr.msrb.gmra.mxu2 %v662_v15 }
  0x99   : > { %1207 = vmatmul.msk.bf16.vlgmr.msrb.gmra.mxu0 %vm451_vm0, %v663_v33  ;;  %v875_v33 = vunpack.c.h.b16 %v1215_v12 }
  0x9a   : > { %756 = vmatpush.bf16.msra.mxu0 %v1416_v23  ;;  %743 = vmatpush.bf16.msra.mxu3 %v1399_v20 }
  0x9b   : > { %787 = vmatpush.bf16.msra.mxu2 %v1411_v22  ;;  %v879_v43 = vpack.c.b16 %v875_v33, %v875_v33 }
  0x9c   : > { %769 = vmatpush.bf16.msra.mxu1 %v1404_v21 }
  0x9e   : > { %757 = vmatpush.bf16.msra.mxu0 %v1440_v27  ;;  %744 = vmatpush.bf16.msra.mxu3 %v1423_v24 }
  0x9f   : > { %788 = vmatpush.bf16.msra.mxu2 %v1435_v26 }
  0xa0   : > { %770 = vmatpush.bf16.msra.mxu1 %v1428_v25 }
  0xa2   : > { %758 = vmatpush.bf16.msra.mxu0 %v1462_v32  ;;  %745 = vmatpush.bf16.msra.mxu3 %v1450_v29 }
  0xa3   : > { %814 = vmatpush.bf16.msrb.mxu2 %v1376_v16 }
  0xa4   : > { %771 = vmatpush.bf16.msra.mxu1 %v1455_v30 }
  0xa6   : > { %759 = vmatpush.bf16.msra.mxu0 %v1481_v36  ;;  %746 = vmatpush.bf16.msra.mxu3 %v1470_v34 }
  0xa7   : > { %815 = vmatpush.bf16.msrb.mxu2 %v1399_v20 }
  0xa8   : > { %772 = vmatpush.bf16.msra.mxu1 %v1475_v35  ;;  %1210 = vmatmul.msk.bf16.vlgmr.msra.gmra.mxu2 %vm451_vm0, %v735_v47 }
  0xaa   : > { %760 = vmatpush.bf16.msra.mxu0 %v1501_v39  ;;  %747 = vmatpush.bf16.msra.mxu3 %v1490_v37 }
  0xab   : > { %816 = vmatpush.bf16.msrb.mxu2 %v1423_v24 }
  0xac   : > { %773 = vmatpush.bf16.msra.mxu1 %v1495_v38 }
  0xae   : > { %761 = vmatpush.bf16.msra.mxu0 %v1520_v42  ;;  %748 = vmatpush.bf16.msra.mxu3 %v1509_v40 }
  0xaf   : > { %817 = vmatpush.bf16.msrb.mxu2 %v1450_v29 }
  0xb0   : > { %774 = vmatpush.bf16.msra.mxu1 %v1514_v41 }
  0xb2   : > { %762 = vmatpush.bf16.msra.mxu0 %v1540_v49  ;;  %749 = vmatpush.bf16.msra.mxu3 %v1529_v45 }
  0xb3   : > { %818 = vmatpush.bf16.msrb.mxu2 %v1470_v34 }
  0xb4   : > { %775 = vmatpush.bf16.msra.mxu1 %v1534_v46 }
  0xb5   : > { %750 = vmatmul.bf16.vlgmr.msra.gmra.mxu3 %v732_v53  ;;  %763 = vmatmul.bf16.vlgmr.msra.gmra.mxu0 %v733_v54 }
  0xb6   : > { %840 = vmatpush.bf16.msrb.mxu0 %v1381_v17  ;;  %827 = vmatpush.bf16.msrb.mxu3 %v1392_v19 }
  0xb7   : > { %819 = vmatpush.bf16.msrb.mxu2 %v1490_v37  ;;  %776 = vmatmul.bf16.vlgmr.msra.gmra.mxu1 %v734_v55 }
  0xb8   : > { %858 = vmatpush.bf16.msrb.mxu1 %v1386_v18  ;;  %v503_v62 = vpop.f32.mrf.mxu3 }
  0xba   : > { %841 = vmatpush.bf16.msrb.mxu0 %v1404_v21  ;;  %828 = vmatpush.bf16.msrb.mxu3 %v1416_v23 }
  0xbb   : > { %820 = vmatpush.bf16.msrb.mxu2 %v1509_v40 }
  0xbc   : > { %859 = vmatpush.bf16.msrb.mxu1 %v1411_v22 }
  0xbe   : > { %842 = vmatpush.bf16.msrb.mxu0 %v1428_v25  ;;  %829 = vmatpush.bf16.msrb.mxu3 %v1440_v27 }
  0xbf   : > { %821 = vmatpush.bf16.msrb.mxu2 %v1529_v45 }
  0xc0   : > { %860 = vmatpush.bf16.msrb.mxu1 %v1435_v26  ;;  %v505_v1 = vpop.f32.mrf.mxu3 }
  0xc2   : > { %843 = vmatpush.bf16.msrb.mxu0 %v1455_v30  ;;  %830 = vmatpush.bf16.msrb.mxu3 %v1462_v32 }
  0xc3   : > { %899 = vmatpush.bf16.msra.mxu2 %v1392_v19 }
  0xc4   : > { %886 = vmatpush.bf16.msra.mxu1 %v1376_v16  ;;  %822 = vmatmul.bf16.vlgmr.msrb.gmra.mxu2 %v804_v58 }
  0xc6   : > { %844 = vmatpush.bf16.msrb.mxu0 %v1475_v35  ;;  %831 = vmatpush.bf16.msrb.mxu3 %v1481_v36  ;;  %v464_v4 = vpop.f32.mrf.mxu0 }
  0xc7   : > { %900 = vmatpush.bf16.msra.mxu2 %v1416_v23  ;;  %1213 = vmatmul.msk.bf16.vlgmr.msrb.gmra.mxu1 %vm451_vm0, %v807_v61 }
  0xc8   : > { %887 = vmatpush.bf16.msra.mxu1 %v1399_v20  ;;  %v477_v5 = vpop.f32.mrf.mxu1 }
  0xc9   : > { %v478_v6 = vadd.f32 %v477_v5, %v464_v4 }
  0xca   : > { %845 = vmatpush.bf16.msrb.mxu0 %v1495_v38  ;;  %832 = vmatpush.bf16.msrb.mxu3 %v1501_v39 }
  0xcb   : > { %901 = vmatpush.bf16.msra.mxu2 %v1440_v27 }
  0xcc   : > { %888 = vmatpush.bf16.msra.mxu1 %v1423_v24 }
  0xce   : > { %846 = vmatpush.bf16.msrb.mxu0 %v1514_v41  ;;  %833 = vmatpush.bf16.msrb.mxu3 %v1520_v42  ;;  %v466_v15 = vpop.f32.mrf.mxu0 }
  0xcf   : > { %902 = vmatpush.bf16.msra.mxu2 %v1462_v32  ;;  %v490_v10 = vpop.f32.mrf.mxu2 }
  0xd0   : > { %889 = vmatpush.bf16.msra.mxu1 %v1450_v29  ;;  %v491_v11 = vadd.f32 %v490_v10, %v478_v6  ;;  %v479_v28 = vpop.f32.mrf.mxu1 }
  0xd2   : > { %847 = vmatpush.bf16.msrb.mxu0 %v1534_v46  ;;  %834 = vmatpush.bf16.msrb.mxu3 %v1540_v49  ;;  %v1716_v13 = vadd.f32 %v503_v62, %v491_v11 }
  0xd3   : > { %903 = vmatpush.bf16.msra.mxu2 %v1481_v36 }
  0xd4   : > { %890 = vmatpush.bf16.msra.mxu1 %v1470_v34 }
  0xd5   : > { %835 = vmatmul.bf16.vlgmr.msrb.gmra.mxu3 %v805_v2  ;;  %848 = vmatmul.bf16.vlgmr.msrb.gmra.mxu0 %v806_v3 }
  0xd6   : > { %930 = vmatpush.bf16.msra.mxu0 %v1386_v18  ;;  %912 = vmatpush.bf16.msra.mxu3 %v1381_v17 }
  0xd7   : > { %904 = vmatpush.bf16.msra.mxu2 %v1501_v39 }
  0xd8   : > { %891 = vmatpush.bf16.msra.mxu1 %v1490_v37 }
  0xda   : > { %931 = vmatpush.bf16.msra.mxu0 %v1411_v22  ;;  %913 = vmatpush.bf16.msra.mxu3 %v1404_v21 }
  0xdb   : > { %905 = vmatpush.bf16.msra.mxu2 %v1520_v42 }
  0xdc   : > { %892 = vmatpush.bf16.msra.mxu1 %v1509_v40 }
  0xde   : > { %932 = vmatpush.bf16.msra.mxu0 %v1435_v26  ;;  %914 = vmatpush.bf16.msra.mxu3 %v1428_v25 }
  0xdf   : > { %906 = vmatpush.bf16.msra.mxu2 %v1540_v49 }
  0xe0   : > { %893 = vmatpush.bf16.msra.mxu1 %v1529_v45 }
  0xe2   : > { %958 = vmatpush.bf16.msrb.mxu0 %v1376_v16  ;;  %915 = vmatpush.bf16.msra.mxu3 %v1455_v30  ;;  %v492_v16 = vpop.f32.mrf.mxu2 }
  0xe3   : > { %984 = vmatpush.bf16.msrb.mxu2 %v1381_v17  ;;  %894 = vmatmul.bf16.vlgmr.msra.gmra.mxu1 %v876_v31  ;;  %v535_v17 = vpop.f32.mrf.mxu3 }
  0xe4   : > { %971 = vmatpush.bf16.msrb.mxu1 %v1392_v19  ;;  %907 = vmatmul.bf16.vlgmr.msra.gmra.mxu2 %v877_v14  ;;  %v874_v19 = vunpack.c.l.b16 %v1215_v12 }
  0xe5   : > { %1216 = vmatmul.msk.bf16.vlgmr.msra.gmra.mxu0 %vm451_vm0, %v879_v43 }
  0xe6   : > { %959 = vmatpush.bf16.msrb.mxu0 %v1399_v20  ;;  %916 = vmatpush.bf16.msra.mxu3 %v1475_v35 }
  0xe7   : > { %985 = vmatpush.bf16.msrb.mxu2 %v1404_v21 }
  0xe8   : > { %972 = vmatpush.bf16.msrb.mxu1 %v1416_v23  ;;  %v878_v23 = vpack.c.b16 %v874_v19, %v874_v19 }
  0xea   : > { %960 = vmatpush.bf16.msrb.mxu0 %v1423_v24  ;;  %917 = vmatpush.bf16.msra.mxu3 %v1495_v38  ;;  %v574_v20 = vpop.f32.mrf.mxu2  ;;  %v1217_v24 = vld [vmem:[%s1442_s4 + $0x70] sm:$0xff] }
  0xeb   : > { %986 = vmatpush.bf16.msrb.mxu2 %v1428_v25  ;;  %v537_v21 = vpop.f32.mrf.mxu3  ;;  %v548_v25 = vpop.f32.mrf.mxu0 }
  0xec   : > { %973 = vmatpush.bf16.msrb.mxu1 %v1440_v27  ;;  %v1218_v27 = vld [vmem:[%s1442_s4 + $0x78] sm:$0xff] }
  0xee   : > { %961 = vmatpush.bf16.msrb.mxu0 %v1450_v29  ;;  %918 = vmatpush.bf16.msra.mxu3 %v1514_v41  ;;  %v549_v29 = vadd.f32 %v548_v25, %v535_v17 }
  0xef   : > { %987 = vmatpush.bf16.msrb.mxu2 %v1455_v30  ;;  %v561_v30 = vpop.f32.mrf.mxu1 }
  0xf0   : > { %974 = vmatpush.bf16.msrb.mxu1 %v1462_v32  ;;  %v944_v32 = vunpack.c.l.b16 %v1217_v24 }
  0xf2   : > { %962 = vmatpush.bf16.msrb.mxu0 %v1470_v34  ;;  %919 = vmatpush.bf16.msra.mxu3 %v1534_v46  ;;  %v576_v34 = vpop.f32.mrf.mxu2 }
  0xf3   : > { %988 = vmatpush.bf16.msrb.mxu2 %v1475_v35  ;;  %v562_v35 = vadd.f32 %v561_v30, %v549_v29 }
  0xf4   : > { %975 = vmatpush.bf16.msrb.mxu1 %v1481_v36  ;;  %v946_v36 = vunpack.c.l.b16 %v1218_v27 }
  0xf5   : > { %920 = vmatmul.bf16.vlgmr.msra.gmra.mxu3 %v878_v23 }
  0xf6   : > { %963 = vmatpush.bf16.msrb.mxu0 %v1490_v37  ;;  %1002 = vmatpush.bf16.msrb.mxu3 %v1386_v18  ;;  %v945_v37 = vunpack.c.h.b16 %v1217_v24  ;;  %v575_v18 = vadd.f32 %v574_v20, %v562_v35  ;;  %v950_v44 = vpack.c.b16 %v946_v36, %v946_v36 }
  0xf7   : > { %989 = vmatpush.bf16.msrb.mxu2 %v1495_v38  ;;  %v948_v38 = vpack.c.b16 %v944_v32, %v944_v32 }
  0xf8   : > { %976 = vmatpush.bf16.msrb.mxu1 %v1501_v39  ;;  %v578_v39 = vmax.f32 %v1716_v13, %v575_v18  ;;  %v949_v47 = vpack.c.b16 %v945_v37, %v945_v37  ;;  %v607_v48 = vpop.f32.mrf.mxu3 }
  0xfa   : > { %964 = vmatpush.bf16.msrb.mxu0 %v1509_v40  ;;  %1003 = vmatpush.bf16.msrb.mxu3 %v1411_v22  ;;  %v550_v22 = vpop.f32.mrf.mxu0  ;;  %v947_v40 = vunpack.c.h.b16 %v1218_v27 }
  0xfb   : > { %990 = vmatpush.bf16.msrb.mxu2 %v1514_v41  ;;  %v563_v41 = vpop.f32.mrf.mxu1  ;;  %v620_v50 = vpop.f32.mrf.mxu2 }
  0xfc   : > { %977 = vmatpush.bf16.msrb.mxu1 %v1520_v42  ;;  %v951_v42 = vpack.c.b16 %v947_v40, %v947_v40 }
  0xfe   : > { %965 = vmatpush.bf16.msrb.mxu0 %v1529_v45  ;;  %1004 = vmatpush.bf16.msrb.mxu3 %v1435_v26  ;;  %v621_v45 = vadd.f32 %v620_v50, %v607_v48 }
  0xff   : > { %991 = vmatpush.bf16.msrb.mxu2 %v1534_v46 }
 0x100   : > { %978 = vmatpush.bf16.msrb.mxu1 %v1540_v49  ;;  %v609_v52 = vpop.f32.mrf.mxu3 }
 0x101   : > { %966 = vmatmul.bf16.vlgmr.msrb.gmra.mxu0 %v948_v38 }
 0x102   : > { %992 = vmatmul.bf16.vlgmr.msrb.gmra.mxu2 %v950_v44 }
 0x103   : > { %979 = vmatmul.bf16.vlgmr.msrb.gmra.mxu1 %v949_v47  ;;  %v646_v51 = vpop.f32.mrf.mxu1  ;;  %v622_v53 = vpop.f32.mrf.mxu2 }
 0x104   : > { %v1274_v53 = vld [vmem:[%s1776_s2] ss:$0 sm:$0xff] }
 0x105   : > { %1219 = vmatmul.msk.bf16.vlgmr.msrb.gmra.mxu3 %vm451_vm0, %v951_v42 }
 0x106   : > { %v633_v54 = vpop.f32.mrf.mxu0 }
 0x107   : > { %v634_v46 = vadd.f32 %v633_v54, %v621_v45 }
 0x109   : > { %v647_v55 = vadd.f32 %v646_v51, %v634_v46 }
 0x10b   : > { %v648_v26 = vpop.f32.mrf.mxu1  ;;  %v650_v49 = vmax.f32 %v578_v39, %v647_v55 }
 0x10e   : > { %v635_v56 = vpop.f32.mrf.mxu0 }
 0x114   : > { %v692_v57 = vpop.f32.mrf.mxu1 }
 0x116   : > { %v718_v61 = vpop.f32.mrf.mxu0 }
 0x118   : > { %v679_v58 = vpop.f32.mrf.mxu3 }
 0x119   : > { %v693_v60 = vadd.f32 %v692_v57, %v679_v58 }
 0x11b   : > { %v705_v59 = vpop.f32.mrf.mxu2 }
 0x11c   : > { %v706_v62 = vadd.f32 %v705_v59, %v693_v60  ;;  %v694_v63 = vpop.f32.mrf.mxu1 }
 0x11e   : > { %v719_v0 = vadd.f32 %v718_v61, %v706_v62  ;;  %v720_v4 = vpop.f32.mrf.mxu0 }
 0x120   : > { %v722_v1 = vmax.f32 %v650_v49, %v719_v0  ;;  %v681_v3 = vpop.f32.mrf.mxu3 }
 0x123   : > { %v707_v2 = vpop.f32.mrf.mxu2 }
 0x12b   : > { %v790_v5 = vpop.f32.mrf.mxu2 }
 0x132   : > { %v764_v6 = vpop.f32.mrf.mxu0 }
 0x133   : > { %v792_v8 = vpop.f32.mrf.mxu2 }
 0x134   : > { %v777_v7 = vpop.f32.mrf.mxu1 }
 0x138   : > { %v751_v9 = vpop.f32.mrf.mxu3 }
 0x139   : > { %v765_v10 = vadd.f32 %v764_v6, %v751_v9 }
 0x13a   : > { %v766_v11 = vpop.f32.mrf.mxu0 }
 0x13b   : > { %v778_v12 = vadd.f32 %v777_v7, %v765_v10 }
 0x13c   : > { %v779_v13 = vpop.f32.mrf.mxu1 }
 0x13d   : > { %v791_v14 = vadd.f32 %v790_v5, %v778_v12 }
 0x13f   : > { %v794_v15 = vmax.f32 %v722_v1, %v791_v14 }
 0x140   : > { %v753_v28 = vpop.f32.mrf.mxu3 }
 0x144   : > { %v862_v33 = vpop.f32.mrf.mxu1 }
 0x147   : > { %v823_v31 = vpop.f32.mrf.mxu2 }
 0x14c   : > { %v864_v43 = vpop.f32.mrf.mxu1 }
 0x14f   : > { %v825_v16 = vpop.f32.mrf.mxu2 }
 0x152   : > { %v849_v17 = vpop.f32.mrf.mxu0 }
 0x158   : > { %v836_v19 = vpop.f32.mrf.mxu3 }
 0x159   : > { %v837_v35 = vadd.f32 %v836_v19, %v823_v31 }
 0x15a   : > { %v851_v20 = vpop.f32.mrf.mxu0 }
 0x15b   : > { %v850_v37 = vadd.f32 %v849_v17, %v837_v35 }
 0x15d   : > { %v863_v40 = vadd.f32 %v862_v33, %v850_v37 }
 0x15f   : > { %v866_v50 = vmax.f32 %v794_v15, %v863_v40 }
 0x160   : > { %v895_v21 = vpop.f32.mrf.mxu1  ;;  %v838_v23 = vpop.f32.mrf.mxu3 }
 0x162   : > { %v934_v24 = vpop.f32.mrf.mxu0 }
 0x167   : > { %v908_v25 = vpop.f32.mrf.mxu2 }
 0x168   : > { %v897_v27 = vpop.f32.mrf.mxu1  ;;  %v909_v18 = vadd.f32 %v908_v25, %v895_v21 }
 0x16a   : > { %v936_v29 = vpop.f32.mrf.mxu0 }
 0x16f   : > { %v910_v30 = vpop.f32.mrf.mxu2 }
 0x178   : > { %v921_v32 = vpop.f32.mrf.mxu3 }
 0x179   : > { %v922_v39 = vadd.f32 %v921_v32, %v909_v18 }
 0x17b   : > { %v935_v42 = vadd.f32 %v934_v24, %v922_v39 }
 0x17d   : > { %v938_v51 = vmax.f32 %v866_v50, %v935_v42 }
 0x17e   : > { %v967_v34 = vpop.f32.mrf.mxu0 }
 0x180   : > { %v980_v36 = vpop.f32.mrf.mxu1  ;;  %v923_v38 = vpop.f32.mrf.mxu3 }
 0x181   : > { %v981_v44 = vadd.f32 %v980_v36, %v967_v34 }
 0x185   : > { %v993_v47 = vpop.f32.mrf.mxu2 }
 0x186   : > { %v969_v22 = vpop.f32.mrf.mxu0  ;;  %v994_v48 = vadd.f32 %v993_v47, %v981_v44 }
 0x188   : > { %v982_v41 = vpop.f32.mrf.mxu1  ;;  %v1006_v45 = vpop.f32.mrf.mxu3 }
 0x189   : > { %v1007_v52 = vadd.f32 %v1006_v45, %v994_v48 }
 0x18b   : > { %v1010_v54 = vmax.f32 %v938_v51, %v1007_v52 }
 0x18d   : > { %v995_v26 = vpop.f32.mrf.mxu2  ;;  %v1015_v46 = vadd.f32 %v1274_v53, %v1010_v54 }
 0x18f   : > { %vm1016_vm1 = vcmp.gt.f32.partialorder %v1015_v46, 0.0  ;;  %v1017_v55 = vmul.f32 0.3, %v1015_v46 }
 0x190   : > { %v1008_v49 = vpop.f32.mrf.mxu3 }
 0x191   : > { %v1018_v56 = vsel %vm1016_vm1, %v1015_v46, %v1017_v55 }
 0x192   : > { %1020 = vst.msk [vmem:[%s218_s23] sm:$0xff] %vm1019_vm2, %v1018_v56 }
 0x193 PF: > { %p10_p9 = scmp.ge.s32.totalorder %s1336_s16, 4   ;;  %s1778_s12 = smov %s1293_s13 }
 0x194   : > { %s1779_s13 = smov %s1345_s19  ;;  %s1780_s14 = smov %s1336_s16 }
 0x195   :  { %12 = sbr.rel (!%p10_p9) target bundleno = 2 (0x2), region = 97 }

// kernel: cosmoflow_forward.7
= control target key start
LH: loop header
LB: loop body
LE: loop exit
PB: predicated region body
PF: predicated region fallthrough
CT: control target
= control target key end

     0   :  { %16 = vsyncpa [#allocation3], 0  ;;  %s971_s0 = inlined_call_operand.vmem [shape: bf16[2,256], index: 0, kind: input, shape index: {}]   ;;  %s972_s1 = inlined_call_operand.vmem [shape: bf16[256,128], index: 1, kind: input, shape index: {}]   ;;  %s973_s2 = inlined_call_operand.vmem [shape: f32[1,128], index: 2, kind: input, shape index: {}]   ;;  %s974_s3 = inlined_call_operand.vmem [shape: f32[2,128], index: 3, kind: input, shape index: {}]   ;;  %s975_s4 = inlined_call_operand.vmem [shape: f32[128,64], index: 4, kind: input, shape index: {}]   ;;  %s976_s5 = inlined_call_operand.vmem [shape: f32[1,64], index: 5, kind: input, shape index: {}]   ;;  %s977_s6 = inlined_call_operand.vmem [shape: f32[2,64], index: 6, kind: input, shape index: {}]   ;;  %s978_s7 = inlined_call_operand.vmem [shape: f32[64,4], index: 7, kind: input, shape index: {}]   ;;  %s979_s8 = inlined_call_operand.vmem [shape: f32[1,4], index: 8, kind: input, shape index: {}]   ;;  %s980_s9 = inlined_call_operand.hbm [shape: f32[2,4], index: 9, kind: output, shape index: {0}]   ;;  %s981_s10 = inlined_call_operand.hbm [shape: f32[2,128], index: 10, kind: output, shape index: {1}]  }
   0x1   :  { %17 = vsyncpa [#allocation5], 0  ;;  %s841_s13 = smov 0  }
   0x2 LB: > { %s847_s14 = sadd.s32 4294967295, %s781_s13   ;;  %p631_p0 = scmp.ge.s32.totalorder %s781_s13, 1  ;;  %s781_s13 = sphi %s841_s13, %s23_s13  }
   0x3   : > { %p316_p1 = scmp.lt.s32.totalorder %s781_s13, 3 }
   0x5   : > { %p317_p2 = pnand %p631_p0, %p316_p1 }
   0x6   : > { %p352_p3 = scmp.lt.s32.totalorder (!%p317_p2), %s847_s14, 1  ;;  %s632_s15 = sshll.u32 (!%p317_p2), %s847_s14, 4 }
   0x7   : > { %320 = sbr.rel (%p317_p2) target bundleno = 499 (0x1f3), region = 56  ;;  %p356_p4 = scmp.lt.s32.totalorder (!%p317_p2), %s632_s15, 31 }
   0x8   : > { %p634_p5 = scmp.ne.s32.totalorder (!%p317_p2), %s847_s14, 0 }
   0xc   : > { %s353_s16 = scalar_select %p352_p3, %s847_s14, 1 }
   0xd   : > { %s983_s15 = smov (!%p356_p4, %s632_s15), 31  ;;  %364 = sbr.rel (%p634_p5) target bundleno = 20 (0x14), region = 60 }
   0xe   : > { %s354_s19 = scalar_lea.vmem %s971_s0, %s353_s16  ;;  %s633_s20 = sshll.u32 %s983_s15, 2 }
   0xf   : > { %s359_s23 = scalar_lea.vmem %s972_s1, %s633_s20 }
  0x12   : > { %v783_v0 = vmov 0.0  }
  0x13   : > { %365 = vst [vmem:[#allocation4] sm:$0x3] %v783_v0 }
  0x14 PF: > { %v682_v1 = vld [vmem:[%s359_s23 + $0x38] sm:$0xff]  ;;  %v681_v2 = vld [vmem:[%s359_s23 + $0x30] sm:$0xff]  ;;  %v680_v3 = vld [vmem:[%s359_s23 + $0x28] sm:$0xff]  ;;  %p667_p6 = scmp.ne.s32.totalorder %s847_s14, 1 }
  0x15   : > { %432 = vmatpush.bf16.msra.mxu0 %v682_v1  ;;  %v679_v4 = vld [vmem:[%s359_s23 + $0x20] sm:$0xff]  ;;  %v678_v5 = vld [vmem:[%s359_s23 + $0x18] sm:$0xff]  ;;  %v677_v6 = vld [vmem:[%s359_s23 + $0x10] sm:$0xff] }
  0x16   : > { %v676_v7 = vld [vmem:[%s359_s23 + $0x8] sm:$0xff]  ;;  %v675_v8 = vld [vmem:[%s359_s23] sm:$0xff] }
  0x17   : > { %v367_v9 = vld [vmem:[%s354_s19] sm:$0x1] }
  0x19   : > { %433 = vmatpush.bf16.msra.mxu0 %v681_v2 }
  0x1a   : > { %v366_v10 = vld [vmem:[#allocation4] sm:$0x3] }
  0x1d   : > { %434 = vmatpush.bf16.msra.mxu0 %v680_v3 }
  0x21   : > { %435 = vmatpush.bf16.msra.mxu0 %v679_v4 }
  0x25   : > { %436 = vmatpush.bf16.msra.mxu0 %v678_v5 }
  0x29   : > { %437 = vmatpush.bf16.msra.mxu0 %v677_v6 }
  0x2d   : > { %438 = vmatpush.bf16.msra.mxu0 %v676_v7 }
  0x31   : > { %439 = vmatpush.bf16.msra.mxu0 %v675_v8 }
  0x34   : > { %440 = vmatmul.bf16.vlgmr.msra.gmra.mxu0 %v367_v9 }
  0xb1   : > { %v441_v11 = vpop.f32.mrf.mxu0 }
  0xb2   : > { %v445_v12 = vadd.f32 %v441_v11, %v366_v10 }
  0xb4   : > { %446 = vst [vmem:[#allocation4] sm:$0x3] %v445_v12 }
  0xb5   : > { %450 = sbr.rel (%p667_p6) target bundleno = 489 (0x1e9), region = 64 }
  0xb9   : > { %v443_v13 = vpop.f32.mrf.mxu0 }
  0xba   : > { %v477_v14 = vld [vmem:[%s975_s4 + $0x78] sm:$0xff]  ;;  %v476_v15 = vld [vmem:[%s975_s4 + $0x70] sm:$0xff]  ;;  %v475_v16 = vld [vmem:[%s975_s4 + $0x68] sm:$0xff]  ;;  %vm519_vm2 = vcmask 523264   ;;  %vm545_vm3 = vcmask 25600  }
  0xbb   : > { %482 = vmatpush.msra.mxu0 %v477_v14  ;;  %v474_v17 = vld [vmem:[%s975_s4 + $0x60] sm:$0xff]  ;;  %v473_v18 = vld [vmem:[%s975_s4 + $0x58] sm:$0xff]  ;;  %v472_v20 = vld [vmem:[%s975_s4 + $0x50] sm:$0xff] }
  0xbc   : > { %v514_v19 = vld [vmem:[%s978_s7 + $0x38] sm:$0xff]  ;;  %v513_v21 = vld [vmem:[%s978_s7 + $0x30] sm:$0xff]  ;;  %v512_v22 = vld [vmem:[%s978_s7 + $0x28] sm:$0xff] }
  0xbd   : > { %483 = vmatpush.msra.mxu0 %v476_v15  ;;  %531 = vmatpush.msra.mxu1 %v514_v19  ;;  %v471_v23 = vld [vmem:[%s975_s4 + $0x48] sm:$0xff]  ;;  %v511_v24 = vld [vmem:[%s978_s7 + $0x20] sm:$0xff]  ;;  %v469_v27 = vld [vmem:[%s975_s4 + $0x38] sm:$0xff] }
  0xbe   : > { %v470_v25 = vld [vmem:[%s975_s4 + $0x40] sm:$0xff]  ;;  %v468_v29 = vld [vmem:[%s975_s4 + $0x30] sm:$0xff]  ;;  %v467_v31 = vld [vmem:[%s975_s4 + $0x28] sm:$0xff] }
  0xbf   : > { %484 = vmatpush.msra.mxu0 %v475_v16  ;;  %532 = vmatpush.msra.mxu1 %v513_v21  ;;  %v706_v26 = vld [vmem:[%s973_s2] ss:$0 sm:$0xff]  ;;  %v451_v28 = vld [vmem:[#allocation4] sm:$0x3]  ;;  %v465_v34 = vld [vmem:[%s975_s4 + $0x18] sm:$0xff] }
  0xc0   : > { %v456_v30 = vadd.f32 %v706_v26, %v451_v28  ;;  %v466_v32 = vld [vmem:[%s975_s4 + $0x20] sm:$0xff]  ;;  %v464_v35 = vld [vmem:[%s975_s4 + $0x10] sm:$0xff]  ;;  %v463_v38 = vld [vmem:[%s975_s4 + $0x8] sm:$0xff] }
  0xc1   : > { %485 = vmatpush.msra.mxu0 %v474_v17  ;;  %533 = vmatpush.msra.mxu1 %v512_v22  ;;  %v460_v37 = vld [vmem:[%s974_s3] sm:$0x3]  ;;  %v510_v41 = vld [vmem:[%s978_s7 + $0x18] sm:$0xff]  ;;  %v509_v42 = vld [vmem:[%s978_s7 + $0x10] sm:$0xff] }
  0xc2   : > { %v458_v33 = vmul.f32 0.3, %v456_v30  ;;  %vm457_vm0 = vcmp.gt.f32.partialorder %v456_v30, 0.0  ;;  %v462_v39 = vld [vmem:[%s975_s4] sm:$0xff]  ;;  %v508_v43 = vld [vmem:[%s978_s7 + $0x8] sm:$0xff] }
  0xc3   : > { %486 = vmatpush.msra.mxu0 %v473_v18  ;;  %534 = vmatpush.msra.mxu1 %v511_v24  ;;  %v507_v44 = vld [vmem:[%s978_s7] sm:$0xff] }
  0xc4   : > { %v459_v36 = vsel %vm457_vm0, %v456_v30, %v458_v33  ;;  %v707_v45 = vld [vmem:[%s976_s5] ss:$0 sm:$0xff] }
  0xc5   : > { %487 = vmatpush.msra.mxu0 %v472_v20  ;;  %v461_v40 = vmul.f32 %v460_v37, %v459_v36  ;;  %535 = vmatpush.msra.mxu1 %v510_v41  ;;  %v505_v49 = vld [vmem:[%s977_s6] sm:$0x3] }
  0xc6   : > { %v708_v52 = vld [vmem:[%s979_s8] ss:$0 sm:$0xff] }
  0xc7   : > { %488 = vmatpush.msra.mxu0 %v471_v23  ;;  %536 = vmatpush.msra.mxu1 %v509_v42 }
  0xc9   : > { %489 = vmatpush.msra.mxu0 %v470_v25  ;;  %537 = vmatpush.msra.mxu1 %v508_v43 }
  0xcb   : > { %490 = vmatpush.msra.mxu0 %v469_v27  ;;  %538 = vmatpush.msra.mxu1 %v507_v44 }
  0xcd   : > { %491 = vmatpush.msra.mxu0 %v468_v29 }
  0xcf   : > { %492 = vmatpush.msra.mxu0 %v467_v31 }
  0xd1   : > { %493 = vmatpush.msra.mxu0 %v466_v32 }
  0xd3   : > { %494 = vmatpush.msra.mxu0 %v465_v34 }
  0xd5   : > { %495 = vmatpush.msra.mxu0 %v464_v35 }
  0xd7   : > { %496 = vmatpush.msra.mxu0 %v463_v38 }
  0xd9   : > { %497 = vmatpush.msra.mxu0 %v462_v39 }
  0xda   : > { %498 = vmatmul.f32.vlgmr.msra.gmra.mxu0 %v461_v40 }
 0x157   : > { %v499_v46 = vpop.f32.mrf.mxu0 }
 0x158   : > { %v500_v47 = vadd.f32 %v707_v45, %v499_v46 }
 0x15a   : > { %vm502_vm1 = vcmp.gt.f32.partialorder %v500_v47, 0.0  ;;  %v503_v48 = vmul.f32 0.3, %v500_v47 }
 0x15c   : > { %v504_v50 = vsel %vm502_vm1, %v500_v47, %v503_v48 }
 0x15d   : > { %v506_v51 = vmul.f32 %v505_v49, %v504_v50 }
 0x15f   : > { %668 = vmatmul.msk.f32.vlgmr.msra.gmra.mxu1 %vm519_vm2, %v506_v51 }
 0x1dc   : > { %v540_v53 = vpop.f32.mrf.mxu1 }
 0x1dd   : > { %v541_v54 = vadd.f32 %v708_v52, %v540_v53 }
 0x1df   : > { %709 = vtanh.f32 %v541_v54 }
 0x1e5   : > { %v710_v55 = vpop.eup %709 }
 0x1e6   : > { %v544_v56 = vmul.f32 1.2, %v710_v55 }
 0x1e8   : > { %546 = vst.msk [vmem:[#allocation2] sm:$0x3] %vm545_vm3, %v544_v56 }
 0x1e9 PF: > { %p691_p7 = scmp.eq.s32.totalorder %s847_s14, 1  ;;  %s784_s28 = smov [#allocation2]  }
 0x1ea   : > { %s553_s29 = sshll.u32 %s784_s28, 4  ;;  %s555_s12 = sshll.u32 %s980_s9, 4  ;;  %s554_s29 = int_to_ptr.vmem [resolvable:$true] %s553_s29  ;;  %s556_s12 = int_to_ptr.hbm [resolvable:$true] %s555_s12 }
 0x1eb   : > { %684 = dma.vmem_to_hbm [thread:$0]  (%p691_p7), %s554_s29, 32, %s556_s12, [#allocation3]  }
 0x1ec   : > { %s567_s17 = sshll.u32 %s981_s10, 4  ;;  %s785_s18 = smov [#allocation4]   ;;  %s568_s17 = int_to_ptr.hbm [resolvable:$true] %s567_s17 }
 0x1ed   : > { %s565_s19 = sshll.u32 %s785_s18, 4  ;;  %s566_s19 = int_to_ptr.vmem [resolvable:$true] %s565_s19 }
 0x1ee   : > { %686 = dma.vmem_to_hbm [thread:$0]  (%p691_p7), %s566_s19, 32, %s568_s17, [#allocation5]  }
 0x1ef   : > { %772 = dma.done.wait (%p691_p7), [#allocation3], 32  }
 0x1f0   : > { %774 = vsyncadd (%p691_p7), [#allocation3], 4294967264 }
 0x1f1   : > { %776 = dma.done.wait (%p691_p7), [#allocation5], 32  }
 0x1f2   : > { %778 = vsyncadd (%p691_p7), [#allocation5], 4294967264 }
 0x1f3 PF: > { %s23_s13 = sadd.s32 1, %s781_s13  }
 0x1f4   : > { %p20_p8 = scmp.ge.s32.totalorder %s23_s13, 4  }
 0x1f6   :  { %22 = sbr.rel (!%p20_p8) target bundleno = 2 (0x2), region = 102 }
 0x1fb   :  { %586 = vsyncpa [#allocation3], 1 }
 0x1fc   :  { %588 = vsyncpa [#allocation3 + $0x1], 1 }
 0x1fd   :  { %589 = vsyncpa [#allocation5], 1 }

</bundles_post_ra>
